<compile_context>
chip_gen: v7x
topology: tpu7x:2x2x1
jax: 0.10.0
libtpu: 0.0.40
codegen_flags: <defaults>
</compile_context>

<pallas_src>
import functools

import numpy as np
import jax
import jax.numpy as jnp
from jax.experimental import pallas as pl

# ----------------------------- configuration --------------------------------
IN_SHAPE = (16, 16, 4)        # (H, W, C) of the input image
N_ROTATIONS = 4
CROP_SIZE = 8
PAD_SIZE = CROP_SIZE // 2     # 4
OUTPUT_DIM = 3                # key stream channels
KERNEL_DIM = 3                # query stream channels

H, W, C = IN_SHAPE
HP, WP = H + 2 * PAD_SIZE, W + 2 * PAD_SIZE          # 24, 24 : module's own zero pad
HPP, WPP = HP + 2 * PAD_SIZE, WP + 2 * PAD_SIZE      # 32, 32 : + conv zero pad (folded in)
OH, OW = HPP - CROP_SIZE + 1, WPP - CROP_SIZE + 1    # 25, 25 : conv output size
IMG_FLAT = HPP * WPP                                 # 1024
MAX_SHIFT = (CROP_SIZE - 1) * WPP + (CROP_SIZE - 1)  # 231


def _round_up(x, m):
    return (x + m - 1) // m * m


CORR_W = _round_up((OH - 1) * WPP + OW, 128)                   # 832 : lane-dense conv slab
LEXT_W = _round_up(max(IMG_FLAT, MAX_SHIFT + CORR_W), 128)     # 1152: padded logits width


# ------------------- host (numpy) constants: built once at import ------------
def _bilinear_matrix_np(out_size, in_size):
    """Interp matrix of F.interpolate(mode='bilinear', align_corners=False)."""
    scale = in_size / out_size
    d = np.arange(out_size, dtype=np.float64)
    src = np.maximum((d + 0.5) * scale - 0.5, 0.0)
    i0 = np.clip(np.floor(src).astype(np.int64), 0, in_size - 1)
    i1 = np.minimum(i0 + 1, in_size - 1)
    w1 = src - i0
    w0 = 1.0 - w1
    m = np.zeros((out_size, in_size), dtype=np.float64)
    m[np.arange(out_size), i0] += w0
    m[np.arange(out_size), i1] += w1
    return m.astype(np.float32)


# Combined "bilinear resize (OH,OW)->(HP,WP) then crop [pad:-pad]" operator,
# expressed on the row-major flattened conv output (column j = Y*WPP + X).
_RY = _bilinear_matrix_np(HP, OH)[PAD_SIZE:HP - PAD_SIZE]      # (16, 25)
_RX = _bilinear_matrix_np(WP, OW)[PAD_SIZE:WP - PAD_SIZE]      # (16, 25)
_RYX = np.einsum('yY,xX->YXyx', _RY, _RX).reshape(OH, OW, H * W).astype(np.float32)
RFOLD = np.zeros((CORR_W, H * W), np.float32)                  # (832, 256)
for _Y in range(OH):
    RFOLD[_Y * WPP:_Y * WPP + OW, :] = _RYX[_Y]                # junk/off-grid columns stay 0

# Interior-indicator row: 1 on the 24x24 logits support inside the 32x32 conv
# zero-pad ring.  Folds the key-stream bias into the projection matmul while
# keeping the conv padding exactly zero.
_IND2D = np.zeros((HPP, WPP), np.float32)
_IND2D[PAD_SIZE:PAD_SIZE + HP, PAD_SIZE:PAD_SIZE + WP] = 1.0
IND_ROW = np.zeros((1, LEXT_W), np.float32)
IND_ROW[:, :IMG_FLAT] = _IND2D.reshape(1, IMG_FLAT)


# ----------------------------- the fused Pallas kernel ----------------------
def _transport_kernel(ximg_ref, wk_ref, xcrop_ref, wq_ref, rfold_ref, out_ref, *, softmax):
    # (1) key-stream 1x1-conv projection, bias folded via the indicator row:
    #     l_ext[c, Y*32+X] = zeropad_4(Wk @ img24 + bk)[c, Y, X]  (zero tail cols).
    l_ext = jnp.dot(wk_ref[...], ximg_ref[...],
                    preferred_element_type=jnp.float32)                 # (3, LEXT_W)

    # (2) query-stream 1x1-conv projection, bias folded; rows ordered (ky, kx, r).
    q = jnp.dot(xcrop_ref[...], wq_ref[...],
                preferred_element_type=jnp.float32)                     # (R*64, 3)

    # (3) contract the 3 correlated channels ONCE on the MXU.  The bilinear
    #     resize and the kernel-footprint reduction now act on R rows instead of
    #     a 192-row im2col operand (review opt 2, applied before the conv too).
    a = jnp.dot(q, l_ext, preferred_element_type=jnp.float32)           # (R*64, LEXT_W)

    # (4) conv2d(logits, kernel, padding=4) == 64 lane-shifted accumulations of
    #     the row-major flattened product (VPU adds; single MXU contraction kept).
    corr = a[0:N_ROTATIONS, 0:CORR_W]
    for idx in range(1, CROP_SIZE * CROP_SIZE):
        ky, kx = divmod(idx, CROP_SIZE)
        s = ky * WPP + kx
        corr = corr + a[idx * N_ROTATIONS:(idx + 1) * N_ROTATIONS, s:s + CORR_W]

    # (5) bilinear resize (25->24) + [pad:-pad] crop folded into one constant
    #     matmul; output is lane-dense (R, 256).
    out = jnp.dot(corr, rfold_ref[...], preferred_element_type=jnp.float32)   # (R, H*W)

    # (6) global softmax fused into the epilogue: f32 math (v5e-safe), one scalar
    #     reciprocal + vector multiply instead of a per-lane divide.
    if softmax:
        m = jnp.max(out)
        e = jnp.exp(out - m)
        out = e * (1.0 / jnp.sum(e))
    out_ref[...] = out


def pallas_transport(ximg_aug, wk_aug, xcrop_aug, wq_aug_t, rfold, softmax):
    """Single VMEM-resident block: total working set ~2 MiB << scoped VMEM."""
    kern = functools.partial(_transport_kernel, softmax=softmax)

    def full(arr):
        return pl.BlockSpec(arr.shape, lambda i: (0, 0))

    return pl.pallas_call(
        kern,
        out_shape=jax.ShapeDtypeStruct((N_ROTATIONS, H * W), jnp.float32),
        grid=(1,),
        in_specs=[full(ximg_aug), full(wk_aug), full(xcrop_aug),
                  full(wq_aug_t), full(rfold)],
        out_specs=pl.BlockSpec((N_ROTATIONS, H * W), lambda i: (0, 0)),
    )(ximg_aug, wk_aug, xcrop_aug, wq_aug_t, rfold)


# ----------------------------- Transport forward ----------------------------
def transport_forward(params, inp_img, p, softmax=True):
    """inp_img: (H, W, C) float32;  p: static (row, col) python ints."""
    pad = PAD_SIZE
    img24 = jnp.pad(inp_img.astype(jnp.float32), ((pad, pad), (pad, pad), (0, 0)))
    img24 = img24.transpose(2, 0, 1)                                    # (C, 24, 24)
    py, px = int(p[0]) + pad, int(p[1]) + pad                           # static pivot

    # Exact 90-degree rotated crops about the pick pixel (pure strided slices,
    # no gathers): rotating the symmetric 9x9 window about its centre equals
    # rotating the full image about the pivot for these angles.
    # TODO(synk): utils.ImageRotator / kornia pivot convention for non-90-degree
    # angles is not reproduced (its source is not provided).
    assert (360 // N_ROTATIONS) % 90 == 0, "exact rot90 fast path needs 90-degree multiples"
    win = img24[:, py - pad:py + pad + 1, px - pad:px + pad + 1]        # (C, 9, 9)
    crops = jnp.stack(
        [jnp.rot90(win, k=(i * (360 // N_ROTATIONS)) // 90,
                   axes=(1, 2))[:, :CROP_SIZE, :CROP_SIZE]
         for i in range(N_ROTATIONS)], axis=0)                          # (R, C, 8, 8)

    # Kernel operand: doubly-padded image, row-major flattened, + indicator row.
    img32 = jnp.pad(img24, ((0, 0), (pad, pad), (pad, pad)))            # (C, 32, 32)
    img_rows = jnp.pad(img32.reshape(C, IMG_FLAT), ((0, 0), (0, LEXT_W - IMG_FLAT)))
    ximg_aug = jnp.concatenate([img_rows, jnp.asarray(IND_ROW)], axis=0)        # (C+1, LEXT_W)

    # Kernel operand: crop pixels, rows ordered (ky, kx, r), ones column for bias.
    xcrop = crops.transpose(2, 3, 0, 1).reshape(N_ROTATIONS * CROP_SIZE * CROP_SIZE, C)
    xcrop_aug = jnp.concatenate(
        [xcrop, jnp.ones((xcrop.shape[0], 1), jnp.float32)], axis=1)            # (256, C+1)

    # Stand-in 1x1-conv backbones; biases folded into the contraction (K: C -> C+1).
    # TODO(synk): key_resnet / query_resnet (models.names[stream_fcn]) are external
    # ResNet backbones not provided here; deterministic 1x1-conv projections stand in.
    wk_aug = jnp.concatenate([params["key_w"], params["key_b"][:, None]], axis=1)          # (3, C+1)
    wq_aug_t = jnp.concatenate([params["query_w"], params["query_b"][:, None]], axis=1).T  # (C+1, 3)

    out = pallas_transport(ximg_aug, wk_aug, xcrop_aug, wq_aug_t,
                           jnp.asarray(RFOLD), softmax)                 # (R, H*W)
    out = out.reshape(N_ROTATIONS, H, W)
    if not softmax:
        out = out[None]          # PyTorch keeps the batch dim when softmax=False
    return out


# ----------------------------- main ------------------------------------------
if __name__ == "__main__":
    key = jax.random.PRNGKey(0)
    k_img, k_kw, k_kb, k_qw, k_qb = jax.random.split(key, 5)

    inp_img = jax.random.normal(k_img, (H, W, C), dtype=jnp.float32)
    p = (7, 9)    # static pick pixel (concrete, like the numpy `p` in PyTorch)

    params = {
        "key_w": 0.1 * jax.random.normal(k_kw, (OUTPUT_DIM, C), dtype=jnp.float32),
        "key_b": 0.01 * jax.random.normal(k_kb, (OUTPUT_DIM,), dtype=jnp.float32),
        "query_w": 0.1 * jax.random.normal(k_qw, (KERNEL_DIM, C), dtype=jnp.float32),
        "query_b": 0.01 * jax.random.normal(k_qb, (KERNEL_DIM,), dtype=jnp.float32),
    }

    fwd = jax.jit(transport_forward, static_argnums=(2, 3))

    out = fwd(params, inp_img, p, True)
    jax.block_until_ready(out)
    assert out.shape == (N_ROTATIONS, H, W), out.shape
    assert bool(jnp.isfinite(out).all())
    assert abs(float(out.sum()) - 1.0) < 1e-4        # global softmax sums to 1

    out_ns = fwd(params, inp_img, p, False)          # non-softmax path (keeps batch dim)
    jax.block_until_ready(out_ns)
    assert out_ns.shape == (1, N_ROTATIONS, H, W), out_ns.shape
    assert bool(jnp.isfinite(out_ns).all())

    print("KERNEL_OK")
</pallas_src>

<mosaic_0001>
module attributes {stable_mosaic.version = 11 : i64} {
  func.func @_transport_kernel(%arg0: i32, %arg1: memref<5x1152xf32, #tpu.memory_space<vmem>>, %arg2: memref<3x5xf32, #tpu.memory_space<vmem>>, %arg3: memref<256x5xf32, #tpu.memory_space<vmem>>, %arg4: memref<5x3xf32, #tpu.memory_space<vmem>>, %arg5: memref<896x256xf32, #tpu.memory_space<vmem>>, %arg6: memref<4x256xf32, #tpu.memory_space<vmem>>) attributes {dimension_semantics = [#tpu.dimension_semantics<arbitrary>], iteration_bounds = array<i64: 1>, scalar_prefetch = 0 : i64, scratch_operands = 0 : i64, tpu.core_type = #tpu.core_type<tc>, window_params = [{pipeline_mode = #tpu.pipeline_mode<synchronous>, transform_indices = @transform_0, window_bounds = array<i64: 5, 1152>}, {pipeline_mode = #tpu.pipeline_mode<synchronous>, transform_indices = @transform_1, window_bounds = array<i64: 3, 5>}, {pipeline_mode = #tpu.pipeline_mode<synchronous>, transform_indices = @transform_2, window_bounds = array<i64: 256, 5>}, {pipeline_mode = #tpu.pipeline_mode<synchronous>, transform_indices = @transform_3, window_bounds = array<i64: 5, 3>}, {pipeline_mode = #tpu.pipeline_mode<synchronous>, transform_indices = @transform_4, window_bounds = array<i64: 896, 256>}, {pipeline_mode = #tpu.pipeline_mode<synchronous>, transform_indices = @transform_5, window_bounds = array<i64: 4, 256>}]} {
    %c0 = arith.constant 0 : index
    %c0_0 = arith.constant 0 : index
    %0 = vector.load %arg2[%c0, %c0_0] : memref<3x5xf32, #tpu.memory_space<vmem>>, vector<3x5xf32>
    %c0_1 = arith.constant 0 : index
    %c0_2 = arith.constant 0 : index
    %1 = vector.load %arg1[%c0_1, %c0_2] : memref<5x1152xf32, #tpu.memory_space<vmem>>, vector<5x1152xf32>
    %cst = arith.constant dense<0.000000e+00> : vector<3x1152xf32>
    %2 = tpu.matmul %0, %1, %cst {dimension_numbers = #tpu.dot_dimension_numbers<[1], [0], [0], [1], [0, 0, 1, 1], [], []>} : vector<3x5xf32>, vector<5x1152xf32>, vector<3x1152xf32> -> vector<3x1152xf32>
    %c0_3 = arith.constant 0 : index
    %c0_4 = arith.constant 0 : index
    %3 = vector.load %arg3[%c0_3, %c0_4] : memref<256x5xf32, #tpu.memory_space<vmem>>, vector<256x5xf32>
    %c0_5 = arith.constant 0 : index
    %c0_6 = arith.constant 0 : index
    %4 = vector.load %arg4[%c0_5, %c0_6] : memref<5x3xf32, #tpu.memory_space<vmem>>, vector<5x3xf32>
    %cst_7 = arith.constant dense<0.000000e+00> : vector<256x3xf32>
    %5 = tpu.matmul %3, %4, %cst_7 {dimension_numbers = #tpu.dot_dimension_numbers<[1], [0], [0], [1], [0, 0, 1, 1], [], []>} : vector<256x5xf32>, vector<5x3xf32>, vector<256x3xf32> -> vector<256x3xf32>
    %cst_8 = arith.constant dense<0.000000e+00> : vector<256x1152xf32>
    %6 = tpu.matmul %5, %2, %cst_8 {dimension_numbers = #tpu.dot_dimension_numbers<[1], [0], [0], [1], [0, 0, 1, 1], [], []>} : vector<256x3xf32>, vector<3x1152xf32>, vector<256x1152xf32> -> vector<256x1152xf32>
    %7 = vector.extract_strided_slice %6 {offsets = [0, 0], sizes = [4, 896], strides = [1, 1]} : vector<256x1152xf32> to vector<4x896xf32>
    %8 = vector.extract_strided_slice %6 {offsets = [4, 1], sizes = [4, 896], strides = [1, 1]} : vector<256x1152xf32> to vector<4x896xf32>
    %9 = arith.addf %7, %8 : vector<4x896xf32>
    %10 = vector.extract_strided_slice %6 {offsets = [8, 2], sizes = [4, 896], strides = [1, 1]} : vector<256x1152xf32> to vector<4x896xf32>
    %11 = arith.addf %9, %10 : vector<4x896xf32>
    %12 = vector.extract_strided_slice %6 {offsets = [12, 3], sizes = [4, 896], strides = [1, 1]} : vector<256x1152xf32> to vector<4x896xf32>
    %13 = arith.addf %11, %12 : vector<4x896xf32>
    %14 = vector.extract_strided_slice %6 {offsets = [16, 4], sizes = [4, 896], strides = [1, 1]} : vector<256x1152xf32> to vector<4x896xf32>
    %15 = arith.addf %13, %14 : vector<4x896xf32>
    %16 = vector.extract_strided_slice %6 {offsets = [20, 5], sizes = [4, 896], strides = [1, 1]} : vector<256x1152xf32> to vector<4x896xf32>
    %17 = arith.addf %15, %16 : vector<4x896xf32>
    %18 = vector.extract_strided_slice %6 {offsets = [24, 6], sizes = [4, 896], strides = [1, 1]} : vector<256x1152xf32> to vector<4x896xf32>
    %19 = arith.addf %17, %18 : vector<4x896xf32>
    %20 = vector.extract_strided_slice %6 {offsets = [28, 7], sizes = [4, 896], strides = [1, 1]} : vector<256x1152xf32> to vector<4x896xf32>
    %21 = arith.addf %19, %20 : vector<4x896xf32>
    %22 = vector.extract_strided_slice %6 {offsets = [32, 32], sizes = [4, 896], strides = [1, 1]} : vector<256x1152xf32> to vector<4x896xf32>
    %23 = arith.addf %21, %22 : vector<4x896xf32>
    %24 = vector.extract_strided_slice %6 {offsets = [36, 33], sizes = [4, 896], strides = [1, 1]} : vector<256x1152xf32> to vector<4x896xf32>
    %25 = arith.addf %23, %24 : vector<4x896xf32>
    %26 = vector.extract_strided_slice %6 {offsets = [40, 34], sizes = [4, 896], strides = [1, 1]} : vector<256x1152xf32> to vector<4x896xf32>
    %27 = arith.addf %25, %26 : vector<4x896xf32>
    %28 = vector.extract_strided_slice %6 {offsets = [44, 35], sizes = [4, 896], strides = [1, 1]} : vector<256x1152xf32> to vector<4x896xf32>
    %29 = arith.addf %27, %28 : vector<4x896xf32>
    %30 = vector.extract_strided_slice %6 {offsets = [48, 36], sizes = [4, 896], strides = [1, 1]} : vector<256x1152xf32> to vector<4x896xf32>
    %31 = arith.addf %29, %30 : vector<4x896xf32>
    %32 = vector.extract_strided_slice %6 {offsets = [52, 37], sizes = [4, 896], strides = [1, 1]} : vector<256x1152xf32> to vector<4x896xf32>
    %33 = arith.addf %31, %32 : vector<4x896xf32>
    %34 = vector.extract_strided_slice %6 {offsets = [56, 38], sizes = [4, 896], strides = [1, 1]} : vector<256x1152xf32> to vector<4x896xf32>
    %35 = arith.addf %33, %34 : vector<4x896xf32>
    %36 = vector.extract_strided_slice %6 {offsets = [60, 39], sizes = [4, 896], strides = [1, 1]} : vector<256x1152xf32> to vector<4x896xf32>
    %37 = arith.addf %35, %36 : vector<4x896xf32>
    %38 = vector.extract_strided_slice %6 {offsets = [64, 64], sizes = [4, 896], strides = [1, 1]} : vector<256x1152xf32> to vector<4x896xf32>
    %39 = arith.addf %37, %38 : vector<4x896xf32>
    %40 = vector.extract_strided_slice %6 {offsets = [68, 65], sizes = [4, 896], strides = [1, 1]} : vector<256x1152xf32> to vector<4x896xf32>
    %41 = arith.addf %39, %40 : vector<4x896xf32>
    %42 = vector.extract_strided_slice %6 {offsets = [72, 66], sizes = [4, 896], strides = [1, 1]} : vector<256x1152xf32> to vector<4x896xf32>
    %43 = arith.addf %41, %42 : vector<4x896xf32>
    %44 = vector.extract_strided_slice %6 {offsets = [76, 67], sizes = [4, 896], strides = [1, 1]} : vector<256x1152xf32> to vector<4x896xf32>
    %45 = arith.addf %43, %44 : vector<4x896xf32>
    %46 = vector.extract_strided_slice %6 {offsets = [80, 68], sizes = [4, 896], strides = [1, 1]} : vector<256x1152xf32> to vector<4x896xf32>
    %47 = arith.addf %45, %46 : vector<4x896xf32>
    %48 = vector.extract_strided_slice %6 {offsets = [84, 69], sizes = [4, 896], strides = [1, 1]} : vector<256x1152xf32> to vector<4x896xf32>
    %49 = arith.addf %47, %48 : vector<4x896xf32>
    %50 = vector.extract_strided_slice %6 {offsets = [88, 70], sizes = [4, 896], strides = [1, 1]} : vector<256x1152xf32> to vector<4x896xf32>
    %51 = arith.addf %49, %50 : vector<4x896xf32>
    %52 = vector.extract_strided_slice %6 {offsets = [92, 71], sizes = [4, 896], strides = [1, 1]} : vector<256x1152xf32> to vector<4x896xf32>
    %53 = arith.addf %51, %52 : vector<4x896xf32>
    %54 = vector.extract_strided_slice %6 {offsets = [96, 96], sizes = [4, 896], strides = [1, 1]} : vector<256x1152xf32> to vector<4x896xf32>
    %55 = arith.addf %53, %54 : vector<4x896xf32>
    %56 = vector.extract_strided_slice %6 {offsets = [100, 97], sizes = [4, 896], strides = [1, 1]} : vector<256x1152xf32> to vector<4x896xf32>
    %57 = arith.addf %55, %56 : vector<4x896xf32>
    %58 = vector.extract_strided_slice %6 {offsets = [104, 98], sizes = [4, 896], strides = [1, 1]} : vector<256x1152xf32> to vector<4x896xf32>
    %59 = arith.addf %57, %58 : vector<4x896xf32>
    %60 = vector.extract_strided_slice %6 {offsets = [108, 99], sizes = [4, 896], strides = [1, 1]} : vector<256x1152xf32> to vector<4x896xf32>
    %61 = arith.addf %59, %60 : vector<4x896xf32>
    %62 = vector.extract_strided_slice %6 {offsets = [112, 100], sizes = [4, 896], strides = [1, 1]} : vector<256x1152xf32> to vector<4x896xf32>
    %63 = arith.addf %61, %62 : vector<4x896xf32>
    %64 = vector.extract_strided_slice %6 {offsets = [116, 101], sizes = [4, 896], strides = [1, 1]} : vector<256x1152xf32> to vector<4x896xf32>
    %65 = arith.addf %63, %64 : vector<4x896xf32>
    %66 = vector.extract_strided_slice %6 {offsets = [120, 102], sizes = [4, 896], strides = [1, 1]} : vector<256x1152xf32> to vector<4x896xf32>
    %67 = arith.addf %65, %66 : vector<4x896xf32>
    %68 = vector.extract_strided_slice %6 {offsets = [124, 103], sizes = [4, 896], strides = [1, 1]} : vector<256x1152xf32> to vector<4x896xf32>
    %69 = arith.addf %67, %68 : vector<4x896xf32>
    %70 = vector.extract_strided_slice %6 {offsets = [128, 128], sizes = [4, 896], strides = [1, 1]} : vector<256x1152xf32> to vector<4x896xf32>
    %71 = arith.addf %69, %70 : vector<4x896xf32>
    %72 = vector.extract_strided_slice %6 {offsets = [132, 129], sizes = [4, 896], strides = [1, 1]} : vector<256x1152xf32> to vector<4x896xf32>
    %73 = arith.addf %71, %72 : vector<4x896xf32>
    %74 = vector.extract_strided_slice %6 {offsets = [136, 130], sizes = [4, 896], strides = [1, 1]} : vector<256x1152xf32> to vector<4x896xf32>
    %75 = arith.addf %73, %74 : vector<4x896xf32>
    %76 = vector.extract_strided_slice %6 {offsets = [140, 131], sizes = [4, 896], strides = [1, 1]} : vector<256x1152xf32> to vector<4x896xf32>
    %77 = arith.addf %75, %76 : vector<4x896xf32>
    %78 = vector.extract_strided_slice %6 {offsets = [144, 132], sizes = [4, 896], strides = [1, 1]} : vector<256x1152xf32> to vector<4x896xf32>
    %79 = arith.addf %77, %78 : vector<4x896xf32>
    %80 = vector.extract_strided_slice %6 {offsets = [148, 133], sizes = [4, 896], strides = [1, 1]} : vector<256x1152xf32> to vector<4x896xf32>
    %81 = arith.addf %79, %80 : vector<4x896xf32>
    %82 = vector.extract_strided_slice %6 {offsets = [152, 134], sizes = [4, 896], strides = [1, 1]} : vector<256x1152xf32> to vector<4x896xf32>
    %83 = arith.addf %81, %82 : vector<4x896xf32>
    %84 = vector.extract_strided_slice %6 {offsets = [156, 135], sizes = [4, 896], strides = [1, 1]} : vector<256x1152xf32> to vector<4x896xf32>
    %85 = arith.addf %83, %84 : vector<4x896xf32>
    %86 = vector.extract_strided_slice %6 {offsets = [160, 160], sizes = [4, 896], strides = [1, 1]} : vector<256x1152xf32> to vector<4x896xf32>
    %87 = arith.addf %85, %86 : vector<4x896xf32>
    %88 = vector.extract_strided_slice %6 {offsets = [164, 161], sizes = [4, 896], strides = [1, 1]} : vector<256x1152xf32> to vector<4x896xf32>
    %89 = arith.addf %87, %88 : vector<4x896xf32>
    %90 = vector.extract_strided_slice %6 {offsets = [168, 162], sizes = [4, 896], strides = [1, 1]} : vector<256x1152xf32> to vector<4x896xf32>
    %91 = arith.addf %89, %90 : vector<4x896xf32>
    %92 = vector.extract_strided_slice %6 {offsets = [172, 163], sizes = [4, 896], strides = [1, 1]} : vector<256x1152xf32> to vector<4x896xf32>
    %93 = arith.addf %91, %92 : vector<4x896xf32>
    %94 = vector.extract_strided_slice %6 {offsets = [176, 164], sizes = [4, 896], strides = [1, 1]} : vector<256x1152xf32> to vector<4x896xf32>
    %95 = arith.addf %93, %94 : vector<4x896xf32>
    %96 = vector.extract_strided_slice %6 {offsets = [180, 165], sizes = [4, 896], strides = [1, 1]} : vector<256x1152xf32> to vector<4x896xf32>
    %97 = arith.addf %95, %96 : vector<4x896xf32>
    %98 = vector.extract_strided_slice %6 {offsets = [184, 166], sizes = [4, 896], strides = [1, 1]} : vector<256x1152xf32> to vector<4x896xf32>
    %99 = arith.addf %97, %98 : vector<4x896xf32>
    %100 = vector.extract_strided_slice %6 {offsets = [188, 167], sizes = [4, 896], strides = [1, 1]} : vector<256x1152xf32> to vector<4x896xf32>
    %101 = arith.addf %99, %100 : vector<4x896xf32>
    %102 = vector.extract_strided_slice %6 {offsets = [192, 192], sizes = [4, 896], strides = [1, 1]} : vector<256x1152xf32> to vector<4x896xf32>
    %103 = arith.addf %101, %102 : vector<4x896xf32>
    %104 = vector.extract_strided_slice %6 {offsets = [196, 193], sizes = [4, 896], strides = [1, 1]} : vector<256x1152xf32> to vector<4x896xf32>
    %105 = arith.addf %103, %104 : vector<4x896xf32>
    %106 = vector.extract_strided_slice %6 {offsets = [200, 194], sizes = [4, 896], strides = [1, 1]} : vector<256x1152xf32> to vector<4x896xf32>
    %107 = arith.addf %105, %106 : vector<4x896xf32>
    %108 = vector.extract_strided_slice %6 {offsets = [204, 195], sizes = [4, 896], strides = [1, 1]} : vector<256x1152xf32> to vector<4x896xf32>
    %109 = arith.addf %107, %108 : vector<4x896xf32>
    %110 = vector.extract_strided_slice %6 {offsets = [208, 196], sizes = [4, 896], strides = [1, 1]} : vector<256x1152xf32> to vector<4x896xf32>
    %111 = arith.addf %109, %110 : vector<4x896xf32>
    %112 = vector.extract_strided_slice %6 {offsets = [212, 197], sizes = [4, 896], strides = [1, 1]} : vector<256x1152xf32> to vector<4x896xf32>
    %113 = arith.addf %111, %112 : vector<4x896xf32>
    %114 = vector.extract_strided_slice %6 {offsets = [216, 198], sizes = [4, 896], strides = [1, 1]} : vector<256x1152xf32> to vector<4x896xf32>
    %115 = arith.addf %113, %114 : vector<4x896xf32>
    %116 = vector.extract_strided_slice %6 {offsets = [220, 199], sizes = [4, 896], strides = [1, 1]} : vector<256x1152xf32> to vector<4x896xf32>
    %117 = arith.addf %115, %116 : vector<4x896xf32>
    %118 = vector.extract_strided_slice %6 {offsets = [224, 224], sizes = [4, 896], strides = [1, 1]} : vector<256x1152xf32> to vector<4x896xf32>
    %119 = arith.addf %117, %118 : vector<4x896xf32>
    %120 = vector.extract_strided_slice %6 {offsets = [228, 225], sizes = [4, 896], strides = [1, 1]} : vector<256x1152xf32> to vector<4x896xf32>
    %121 = arith.addf %119, %120 : vector<4x896xf32>
    %122 = vector.extract_strided_slice %6 {offsets = [232, 226], sizes = [4, 896], strides = [1, 1]} : vector<256x1152xf32> to vector<4x896xf32>
    %123 = arith.addf %121, %122 : vector<4x896xf32>
    %124 = vector.extract_strided_slice %6 {offsets = [236, 227], sizes = [4, 896], strides = [1, 1]} : vector<256x1152xf32> to vector<4x896xf32>
    %125 = arith.addf %123, %124 : vector<4x896xf32>
    %126 = vector.extract_strided_slice %6 {offsets = [240, 228], sizes = [4, 896], strides = [1, 1]} : vector<256x1152xf32> to vector<4x896xf32>
    %127 = arith.addf %125, %126 : vector<4x896xf32>
    %128 = vector.extract_strided_slice %6 {offsets = [244, 229], sizes = [4, 896], strides = [1, 1]} : vector<256x1152xf32> to vector<4x896xf32>
    %129 = arith.addf %127, %128 : vector<4x896xf32>
    %130 = vector.extract_strided_slice %6 {offsets = [248, 230], sizes = [4, 896], strides = [1, 1]} : vector<256x1152xf32> to vector<4x896xf32>
    %131 = arith.addf %129, %130 : vector<4x896xf32>
    %132 = vector.extract_strided_slice %6 {offsets = [252, 231], sizes = [4, 896], strides = [1, 1]} : vector<256x1152xf32> to vector<4x896xf32>
    %133 = arith.addf %131, %132 : vector<4x896xf32>
    %c0_9 = arith.constant 0 : index
    %c0_10 = arith.constant 0 : index
    %134 = vector.load %arg5[%c0_9, %c0_10] : memref<896x256xf32, #tpu.memory_space<vmem>>, vector<896x256xf32>
    %cst_11 = arith.constant dense<0.000000e+00> : vector<4x256xf32>
    %135 = tpu.matmul %133, %134, %cst_11 {dimension_numbers = #tpu.dot_dimension_numbers<[1], [0], [0], [1], [0, 0, 1, 1], [], []>} : vector<4x896xf32>, vector<896x256xf32>, vector<4x256xf32> -> vector<4x256xf32>
    %136 = vector.shape_cast %135 : vector<4x256xf32> to vector<1x4x256xf32>
    %cst_12 = arith.constant dense<0xFF800000> : vector<1xf32>
    %137 = vector.multi_reduction <maximumf>, %136, %cst_12 [1, 2] : vector<1x4x256xf32> to vector<1xf32>
    %138 = vector.shape_cast %137 : vector<1xf32> to vector<1x1x1xf32>
    %139 = vector.extract %138[0, 0, 0] : f32 from vector<1x1x1xf32>
    %140 = vector.broadcast %139 : f32 to vector<4x256xf32>
    %141 = arith.subf %135, %140 : vector<4x256xf32>
    %142 = math.exp %141 : vector<4x256xf32>
    %143 = vector.shape_cast %142 : vector<4x256xf32> to vector<1x4x256xf32>
    %cst_13 = arith.constant dense<0.000000e+00> : vector<1xf32>
    %144 = vector.multi_reduction <add>, %143, %cst_13 [1, 2] : vector<1x4x256xf32> to vector<1xf32>
    %145 = vector.shape_cast %144 : vector<1xf32> to vector<1x1x1xf32>
    %146 = vector.extract %145[0, 0, 0] : f32 from vector<1x1x1xf32>
    %cst_14 = arith.constant 1.000000e+00 : f32
    %147 = arith.divf %cst_14, %146 : f32
    %148 = vector.broadcast %147 : f32 to vector<4x256xf32>
    %149 = arith.mulf %142, %148 : vector<4x256xf32>
    %c0_15 = arith.constant 0 : index
    %c0_16 = arith.constant 0 : index
    %150 = vector.load %arg6[%c0_15, %c0_16] : memref<4x256xf32, #tpu.memory_space<vmem>>, vector<4x256xf32>
    tpu.vector_store %arg6[%c0_15, %c0_16], %149 {strides = array<i32>} : memref<4x256xf32, #tpu.memory_space<vmem>>, vector<4x256xf32>,
    return
  }
  func.func @transform_0(%arg0: i32) -> (i32, i32) {
    %c0_i32 = arith.constant 0 : i32
    %c0_i32_0 = arith.constant 0 : i32
    %c0_i32_1 = arith.constant 0 : i32
    return %c0_i32, %c0_i32_0 : i32, i32
  }
  func.func @transform_1(%arg0: i32) -> (i32, i32) {
    %c0_i32 = arith.constant 0 : i32
    %c0_i32_0 = arith.constant 0 : i32
    %c0_i32_1 = arith.constant 0 : i32
    return %c0_i32, %c0_i32_0 : i32, i32
  }
  func.func @transform_2(%arg0: i32) -> (i32, i32) {
    %c0_i32 = arith.constant 0 : i32
    %c0_i32_0 = arith.constant 0 : i32
    %c0_i32_1 = arith.constant 0 : i32
    return %c0_i32, %c0_i32_0 : i32, i32
  }
  func.func @transform_3(%arg0: i32) -> (i32, i32) {
    %c0_i32 = arith.constant 0 : i32
    %c0_i32_0 = arith.constant 0 : i32
    %c0_i32_1 = arith.constant 0 : i32
    return %c0_i32, %c0_i32_0 : i32, i32
  }
  func.func @transform_4(%arg0: i32) -> (i32, i32) {
    %c0_i32 = arith.constant 0 : i32
    %c0_i32_0 = arith.constant 0 : i32
    %c0_i32_1 = arith.constant 0 : i32
    return %c0_i32, %c0_i32_0 : i32, i32
  }
  func.func @transform_5(%arg0: i32) -> (i32, i32) {
    %c0_i32 = arith.constant 0 : i32
    %c0_i32_0 = arith.constant 0 : i32
    %c0_i32_1 = arith.constant 0 : i32
    return %c0_i32, %c0_i32_0 : i32, i32
  }
}

</mosaic_0001>

<bundles_post_ra>
// kernel: reverse.2
= control target key start
LH: loop header
LB: loop body
LE: loop exit
PB: predicated region body
PF: predicated region fallthrough
CT: control target
= control target key end

     0   :  { %v2_v0 = vlaneseq  ;;  %s340_s0 = inlined_call_operand.vmem [shape: f32[4,8,8], index: 0, kind: input, shape index: {}]   ;;  %s341_s1 = inlined_call_operand.vmem [shape: f32[4,8,8], index: 1, kind: output, shape index: {}]  }
   0x2   :  { %v3_v1 = vsub.s32 7, %v2_v0 }
   0x4   :  { %4 = vset.pattern.permute.xlu0 %v3_v1 }
   0x5   :  { %290 = vset.pattern.permute.xlu1 %v3_v1  ;;  %v24_v2 = vld [vmem:[%s340_s0 + $0x8] sm:$0xff]   ;;  %v20_v3 = vld [vmem:[%s340_s0] sm:$0xff]   ;;  %v30_v4 = vld [vmem:[%s340_s0 + $0x14] sm:$0xff]  }
   0x6   :  { %25 = vst [vmem:[#allocation1 + $0x8] sm:$0xff] %v24_v2   ;;  %21 = vst [vmem:[#allocation1] sm:$0xff] %v20_v3   ;;  %v28_v5 = vld [vmem:[%s340_s0 + $0x10] sm:$0xf]  ;;  %v34_v6 = vld [vmem:[%s340_s0 + $0x1c] sm:$0xf] }
   0x7   :  { %31 = vst [vmem:[#allocation1 + $0x14] sm:$0xff] %v30_v4   ;;  %29 = vst [vmem:[#allocation1 + $0x10] sm:$0xf] %v28_v5 }
   0x8   :  { %35 = vst [vmem:[#allocation1 + $0x1c] sm:$0xf] %v34_v6 }
   0xd   :  { %v101_v7 = vld [vmem:[#allocation1 + $0x8] sm:$0xf]  ;;  %v108_v8 = vld [vmem:[#allocation1] sm:$0xf]  ;;  %v96_v9 = vld [vmem:[#allocation1 + $0xc] sm:$0xf] }
   0xe   :  { %103 = vst [vmem:[#allocation0 + $0x10] sm:$0xf] %v101_v7  ;;  %109 = vst [vmem:[#allocation0] sm:$0xf] %v108_v8  ;;  %v105_v10 = vld [vmem:[#allocation1 + $0x4] sm:$0xf] }
   0xf   :  { %98 = vst [vmem:[#allocation0 + $0x18] sm:$0xf] %v96_v9  ;;  %v86_v11 = vld [vmem:[#allocation1 + $0x14] sm:$0xf]  ;;  %v91_v12 = vld [vmem:[#allocation1 + $0x10] sm:$0xf] }
  0x10   :  { %107 = vst [vmem:[#allocation0 + $0x8] sm:$0xf] %v105_v10  ;;  %88 = vst [vmem:[#allocation0 + $0x28] sm:$0xf] %v86_v11  ;;  %v76_v13 = vld [vmem:[#allocation1 + $0x1c] sm:$0xf] }
  0x11   :  { %93 = vst [vmem:[#allocation0 + $0x20] sm:$0xf] %v91_v12  ;;  %v81_v14 = vld [vmem:[#allocation1 + $0x18] sm:$0xf]  ;;  %78 = vst [vmem:[#allocation0 + $0x38] sm:$0xf] %v76_v13 }
  0x12   :  { %83 = vst [vmem:[#allocation0 + $0x30] sm:$0xf] %v81_v14 }
  0x15   :  { %v122_v15 = vld [vmem:[#allocation0 + $0x10] sm:$0xff]  ;;  %v110_v16 = vld [vmem:[#allocation0] sm:$0xff] }
  0x16   :  { %123 = vperm.xlu1 %290, %v122_v15   ;;  %111 = vperm.xlu0 %4, %v110_v16   ;;  %v128_v17 = vld [vmem:[#allocation0 + $0x18] sm:$0xff] }
  0x17   :  { %v116_v18 = vld [vmem:[#allocation0 + $0x8] sm:$0xff] }
  0x18   :  { %v140_v19 = vld [vmem:[#allocation0 + $0x28] sm:$0xff]  ;;  %v134_v20 = vld [vmem:[#allocation0 + $0x20] sm:$0xff]  ;;  %v152_v21 = vld [vmem:[#allocation0 + $0x38] sm:$0xff] }
  0x19   :  { %v146_v22 = vld [vmem:[#allocation0 + $0x30] sm:$0xff] }
  0x1a   :  { %129 = vperm.xlu1 %290, %v128_v17   ;;  %117 = vperm.xlu0 %4, %v116_v18  }
  0x1e   :  { %141 = vperm.xlu1 %290, %v140_v19   ;;  %135 = vperm.xlu0 %4, %v134_v20  }
  0x22   :  { %153 = vperm.xlu1 %290, %v152_v21   ;;  %147 = vperm.xlu0 %4, %v146_v22  }
  0x95   :  { %v124_v23 = vpop.permute.xlu1 %123  ;;  %v112_v24 = vpop.permute.xlu0 %111 }
  0x96   :  { %125 = vst [vmem:[#allocation2 + $0x10] sm:$0xff] %v124_v23  ;;  %113 = vst [vmem:[#allocation2] sm:$0xff] %v112_v24 }
  0x99   :  { %v130_v25 = vpop.permute.xlu1 %129  ;;  %v118_v26 = vpop.permute.xlu0 %117 }
  0x9a   :  { %131 = vst [vmem:[#allocation2 + $0x18] sm:$0xff] %v130_v25  ;;  %119 = vst [vmem:[#allocation2 + $0x8] sm:$0xff] %v118_v26 }
  0x9d   :  { %v168_v27 = vld [vmem:[#allocation2 + $0x10] sm:$0xf]  ;;  %v159_v28 = vld [vmem:[#allocation2] sm:$0xf]  ;;  %v142_v29 = vpop.permute.xlu1 %141  ;;  %v136_v30 = vpop.permute.xlu0 %135 }
  0x9e   :  { %172 = vst [vmem:[#allocation3 + $0x8] sm:$0xf] %v168_v27  ;;  %161 = vst [vmem:[#allocation3] sm:$0xf] %v159_v28 }
  0x9f   :  { %143 = vst [vmem:[#allocation2 + $0x28] sm:$0xff] %v142_v29  ;;  %137 = vst [vmem:[#allocation2 + $0x20] sm:$0xff] %v136_v30 }
  0xa1   :  { %v174_v31 = vld [vmem:[#allocation2 + $0x18] sm:$0xf]  ;;  %v163_v32 = vld [vmem:[#allocation2 + $0x8] sm:$0xf]  ;;  %v154_v33 = vpop.permute.xlu1 %153  ;;  %v148_v34 = vpop.permute.xlu0 %147 }
  0xa2   :  { %178 = vst [vmem:[#allocation3 + $0xc] sm:$0xf] %v174_v31  ;;  %166 = vst [vmem:[#allocation3 + $0x4] sm:$0xf] %v163_v32 }
  0xa3   :  { %155 = vst [vmem:[#allocation2 + $0x38] sm:$0xff] %v154_v33  ;;  %149 = vst [vmem:[#allocation2 + $0x30] sm:$0xff] %v148_v34 }
  0xa5   :  { %v222_v35 = vld [vmem:[#allocation3 + $0x8] sm:$0xf]  ;;  %v218_v36 = vld [vmem:[#allocation3] sm:$0xf] }
  0xa6   :  { %v186_v37 = vld [vmem:[#allocation2 + $0x28] sm:$0xf]  ;;  %223 = vst [vmem:[%s341_s1 + $0x8] sm:$0xf] %v222_v35  ;;  %219 = vst [vmem:[%s341_s1] sm:$0xf] %v218_v36 }
  0xa7   :  { %190 = vst [vmem:[#allocation3 + $0x14] sm:$0xf] %v186_v37  ;;  %v180_v38 = vld [vmem:[#allocation2 + $0x20] sm:$0xf] }
  0xa8   :  { %184 = vst [vmem:[#allocation3 + $0x10] sm:$0xf] %v180_v38 }
  0xa9   :  { %v224_v39 = vld [vmem:[#allocation3 + $0xc] sm:$0xf]  ;;  %v220_v40 = vld [vmem:[#allocation3 + $0x4] sm:$0xf] }
  0xaa   :  { %v198_v41 = vld [vmem:[#allocation2 + $0x38] sm:$0xf]  ;;  %225 = vst [vmem:[%s341_s1 + $0xc] sm:$0xf] %v224_v39  ;;  %221 = vst [vmem:[%s341_s1 + $0x4] sm:$0xf] %v220_v40 }
  0xab   :  { %202 = vst [vmem:[#allocation3 + $0x1c] sm:$0xf] %v198_v41  ;;  %v192_v42 = vld [vmem:[#allocation2 + $0x30] sm:$0xf] }
  0xac   :  { %196 = vst [vmem:[#allocation3 + $0x18] sm:$0xf] %v192_v42 }
  0xae   :  { %v228_v43 = vld [vmem:[#allocation3 + $0x14] sm:$0xf] }
  0xaf   :  { %229 = vst [vmem:[%s341_s1 + $0x14] sm:$0xf] %v228_v43  ;;  %v226_v44 = vld [vmem:[#allocation3 + $0x10] sm:$0xf] }
  0xb0   :  { %227 = vst [vmem:[%s341_s1 + $0x10] sm:$0xf] %v226_v44 }
  0xb2   :  { %v232_v45 = vld [vmem:[#allocation3 + $0x1c] sm:$0xf] }
  0xb3   :  { %233 = vst [vmem:[%s341_s1 + $0x1c] sm:$0xf] %v232_v45  ;;  %v230_v46 = vld [vmem:[#allocation3 + $0x18] sm:$0xf] }
  0xb4   :  { %231 = vst [vmem:[%s341_s1 + $0x18] sm:$0xf] %v230_v46 }

// kernel: reverse.1
= control target key start
LH: loop header
LB: loop body
LE: loop exit
PB: predicated region body
PF: predicated region fallthrough
CT: control target
= control target key end

     0   :  { %v2_v0 = vlaneseq  ;;  %s340_s0 = inlined_call_operand.vmem [shape: f32[4,8,8], index: 0, kind: input, shape index: {}]   ;;  %s341_s1 = inlined_call_operand.vmem [shape: f32[4,8,8], index: 1, kind: output, shape index: {}]  }
   0x2   :  { %v3_v1 = vsub.s32 7, %v2_v0 }
   0x4   :  { %4 = vset.pattern.permute.xlu0 %v3_v1 }
   0x5   :  { %290 = vset.pattern.permute.xlu1 %v3_v1  ;;  %v34_v2 = vld [vmem:[%s340_s0 + $0x1c] sm:$0xf]  ;;  %v30_v3 = vld [vmem:[%s340_s0 + $0x14] sm:$0xff]   ;;  %v28_v4 = vld [vmem:[%s340_s0 + $0xc] sm:$0xff]  }
   0x6   :  { %35 = vst [vmem:[#allocation1 + $0x1c] sm:$0xf] %v34_v2  ;;  %31 = vst [vmem:[#allocation1 + $0x14] sm:$0xff] %v30_v3   ;;  %v24_v5 = vld [vmem:[%s340_s0 + $0x4] sm:$0xff]   ;;  %v20_v6 = vld [vmem:[%s340_s0] sm:$0xf] }
   0x7   :  { %29 = vst [vmem:[#allocation1 + $0xc] sm:$0xff] %v28_v4   ;;  %25 = vst [vmem:[#allocation1 + $0x4] sm:$0xff] %v24_v5  }
   0x8   :  { %21 = vst [vmem:[#allocation1] sm:$0xf] %v20_v6 }
   0xd   :  { %v76_v7 = vld [vmem:[#allocation1 + $0x1c] sm:$0xf]  ;;  %v86_v8 = vld [vmem:[#allocation1 + $0x14] sm:$0xf]  ;;  %v81_v9 = vld [vmem:[#allocation1 + $0x18] sm:$0xf] }
   0xe   :  { %78 = vst [vmem:[#allocation0 + $0x38] sm:$0xf] %v76_v7  ;;  %88 = vst [vmem:[#allocation0 + $0x28] sm:$0xf] %v86_v8  ;;  %v91_v10 = vld [vmem:[#allocation1 + $0x10] sm:$0xf] }
   0xf   :  { %83 = vst [vmem:[#allocation0 + $0x30] sm:$0xf] %v81_v9  ;;  %v96_v11 = vld [vmem:[#allocation1 + $0xc] sm:$0xf]  ;;  %v101_v12 = vld [vmem:[#allocation1 + $0x8] sm:$0xf] }
  0x10   :  { %93 = vst [vmem:[#allocation0 + $0x20] sm:$0xf] %v91_v10  ;;  %98 = vst [vmem:[#allocation0 + $0x18] sm:$0xf] %v96_v11  ;;  %v105_v13 = vld [vmem:[#allocation1 + $0x4] sm:$0xf] }
  0x11   :  { %103 = vst [vmem:[#allocation0 + $0x10] sm:$0xf] %v101_v12  ;;  %v108_v14 = vld [vmem:[#allocation1] sm:$0xf]  ;;  %107 = vst [vmem:[#allocation0 + $0x8] sm:$0xf] %v105_v13 }
  0x12   :  { %109 = vst [vmem:[#allocation0] sm:$0xf] %v108_v14 }
  0x15   :  { %v111_v15 = vld [vmem:[#allocation0 + $0x38] sm:$0xff]  ;;  %v123_v16 = vld [vmem:[#allocation0 + $0x28] sm:$0xff] }
  0x16   :  { %112 = vperm.xlu0 %4, %v111_v15   ;;  %124 = vperm.xlu1 %290, %v123_v16   ;;  %v117_v17 = vld [vmem:[#allocation0 + $0x30] sm:$0xff] }
  0x17   :  { %v129_v18 = vld [vmem:[#allocation0 + $0x20] sm:$0xff]  ;;  %v135_v19 = vld [vmem:[#allocation0 + $0x18] sm:$0xff] }
  0x18   :  { %v141_v20 = vld [vmem:[#allocation0 + $0x10] sm:$0xff]  ;;  %v147_v21 = vld [vmem:[#allocation0 + $0x8] sm:$0xff] }
  0x19   :  { %v152_v22 = vld [vmem:[#allocation0] sm:$0xff] }
  0x1a   :  { %118 = vperm.xlu0 %4, %v117_v17   ;;  %130 = vperm.xlu1 %290, %v129_v18  }
  0x1e   :  { %136 = vperm.xlu0 %4, %v135_v19   ;;  %142 = vperm.xlu1 %290, %v141_v20  }
  0x22   :  { %148 = vperm.xlu0 %4, %v147_v21   ;;  %153 = vperm.xlu1 %290, %v152_v22  }
  0x95   :  { %v113_v23 = vpop.permute.xlu0 %112  ;;  %v125_v24 = vpop.permute.xlu1 %124 }
  0x96   :  { %114 = vst [vmem:[#allocation2] sm:$0xff] %v113_v23  ;;  %126 = vst [vmem:[#allocation2 + $0x10] sm:$0xff] %v125_v24 }
  0x99   :  { %v119_v25 = vpop.permute.xlu0 %118  ;;  %v131_v26 = vpop.permute.xlu1 %130 }
  0x9a   :  { %120 = vst [vmem:[#allocation2 + $0x8] sm:$0xff] %v119_v25  ;;  %132 = vst [vmem:[#allocation2 + $0x18] sm:$0xff] %v131_v26 }
  0x9d   :  { %v159_v27 = vld [vmem:[#allocation2] sm:$0xf]  ;;  %v168_v28 = vld [vmem:[#allocation2 + $0x10] sm:$0xf]  ;;  %v137_v29 = vpop.permute.xlu0 %136  ;;  %v143_v30 = vpop.permute.xlu1 %142 }
  0x9e   :  { %161 = vst [vmem:[#allocation3] sm:$0xf] %v159_v27  ;;  %172 = vst [vmem:[#allocation3 + $0x8] sm:$0xf] %v168_v28 }
  0x9f   :  { %138 = vst [vmem:[#allocation2 + $0x20] sm:$0xff] %v137_v29  ;;  %144 = vst [vmem:[#allocation2 + $0x28] sm:$0xff] %v143_v30 }
  0xa1   :  { %v163_v31 = vld [vmem:[#allocation2 + $0x8] sm:$0xf]  ;;  %v174_v32 = vld [vmem:[#allocation2 + $0x18] sm:$0xf]  ;;  %v149_v33 = vpop.permute.xlu0 %148  ;;  %v154_v34 = vpop.permute.xlu1 %153 }
  0xa2   :  { %166 = vst [vmem:[#allocation3 + $0x4] sm:$0xf] %v163_v31  ;;  %178 = vst [vmem:[#allocation3 + $0xc] sm:$0xf] %v174_v32 }
  0xa3   :  { %150 = vst [vmem:[#allocation2 + $0x30] sm:$0xff] %v149_v33  ;;  %155 = vst [vmem:[#allocation2 + $0x38] sm:$0xff] %v154_v34 }
  0xa5   :  { %v218_v35 = vld [vmem:[#allocation3] sm:$0xf]  ;;  %v222_v36 = vld [vmem:[#allocation3 + $0x8] sm:$0xf] }
  0xa6   :  { %v180_v37 = vld [vmem:[#allocation2 + $0x20] sm:$0xf]  ;;  %219 = vst [vmem:[%s341_s1] sm:$0xf] %v218_v35  ;;  %223 = vst [vmem:[%s341_s1 + $0x8] sm:$0xf] %v222_v36 }
  0xa7   :  { %184 = vst [vmem:[#allocation3 + $0x10] sm:$0xf] %v180_v37  ;;  %v186_v38 = vld [vmem:[#allocation2 + $0x28] sm:$0xf] }
  0xa8   :  { %190 = vst [vmem:[#allocation3 + $0x14] sm:$0xf] %v186_v38 }
  0xa9   :  { %v220_v39 = vld [vmem:[#allocation3 + $0x4] sm:$0xf]  ;;  %v224_v40 = vld [vmem:[#allocation3 + $0xc] sm:$0xf] }
  0xaa   :  { %v192_v41 = vld [vmem:[#allocation2 + $0x30] sm:$0xf]  ;;  %221 = vst [vmem:[%s341_s1 + $0x4] sm:$0xf] %v220_v39  ;;  %225 = vst [vmem:[%s341_s1 + $0xc] sm:$0xf] %v224_v40 }
  0xab   :  { %196 = vst [vmem:[#allocation3 + $0x18] sm:$0xf] %v192_v41  ;;  %v198_v42 = vld [vmem:[#allocation2 + $0x38] sm:$0xf] }
  0xac   :  { %202 = vst [vmem:[#allocation3 + $0x1c] sm:$0xf] %v198_v42 }
  0xae   :  { %v226_v43 = vld [vmem:[#allocation3 + $0x10] sm:$0xf] }
  0xaf   :  { %227 = vst [vmem:[%s341_s1 + $0x10] sm:$0xf] %v226_v43  ;;  %v228_v44 = vld [vmem:[#allocation3 + $0x14] sm:$0xf] }
  0xb0   :  { %229 = vst [vmem:[%s341_s1 + $0x14] sm:$0xf] %v228_v44 }
  0xb2   :  { %v230_v45 = vld [vmem:[#allocation3 + $0x18] sm:$0xf] }
  0xb3   :  { %231 = vst [vmem:[%s341_s1 + $0x18] sm:$0xf] %v230_v45  ;;  %v232_v46 = vld [vmem:[#allocation3 + $0x1c] sm:$0xf] }
  0xb4   :  { %233 = vst [vmem:[%s341_s1 + $0x1c] sm:$0xf] %v232_v46 }

// kernel: transport_forward.1
= control target key start
LH: loop header
LB: loop body
LE: loop exit
PB: predicated region body
PF: predicated region fallthrough
CT: control target
= control target key end

     0   :  { %vm34_vm0 = vcmask 1044480   ;;  %vm30_vm1 = vcmask 39936   ;;  %v11141_v3 = vmov 0.0   ;;  %vm6185_vm2 = vmmov 0   ;;  %s11517_s23 = smov 125   ;;  %s11516_s24 = smov 124   ;;  %s11099_s0 = inlined_call_operand.vmem [shape: f32[5,1152], index: 0, kind: input, shape index: {}]   ;;  %s11100_s1 = inlined_call_operand.vmem [shape: f32[3,5], index: 1, kind: input, shape index: {}]   ;;  %s11101_s3 = inlined_call_operand.vmem [shape: f32[5,3], index: 3, kind: input, shape index: {}]   ;;  %s11102_s2 = inlined_call_operand.vmem [shape: f32[256,5], index: 2, kind: input, shape index: {}]   ;;  %s11103_s4 = inlined_call_operand.vmem [shape: f32[896,256], index: 4, kind: input, shape index: {}]   ;;  %s11104_s5 = inlined_call_operand.vmem [shape: f32[4,256], index: 5, kind: output, shape index: {}]  }
   0x1   :  { %11537 = sst [smem:[#allocation268_spill]] %s11104_s5  ;;  %v22_v0 = vld [vmem:[%s11099_s0 + $0x8] sm:$0x1f]  ;;  %v24_v1 = vld [vmem:[%s11099_s0 + $0x18] sm:$0x1f]  ;;  %126 = vmatprep.mubr.f32.mxu0 %v11141_v3  ;;  %197 = vmatprep.mubr.f32.mxu1 %v11141_v3  ;;  %v416_v9 = vld [vmem:[%s11102_s2] sm:$0xff] }
   0x2   :  { %v21_v2 = vld [vmem:[%s11099_s0] sm:$0x1f]  ;;  %5518 = vmatprep.subr.msk.mxu0 %vm34_vm0, %v22_v0  ;;  %5521 = vmatprep.subr.msk.mxu1 %vm34_vm0, %v24_v1  ;;  %v23_v4 = vld [vmem:[%s11099_s0 + $0x10] sm:$0x1f]  ;;  %v28_v6 = vld [vmem:[%s11099_s0 + $0x38] sm:$0x1f] }
   0x3   :  { %v6266_v5 = vld [vmem:[%s11100_s1] sm:$0x7]  ;;  %5519 = vmatpush1.msk.msra.mxu0 %vm34_vm0, %v21_v2  ;;  %5522 = vmatpush1.msk.msra.mxu1 %vm34_vm0, %v23_v4  ;;  %v27_v7 = vld [vmem:[%s11099_s0 + $0x30] sm:$0x1f]  ;;  %v417_v10 = vld [vmem:[%s11102_s2 + $0x8] sm:$0xff]  ;;  %vm870_vm3 = vcmask 1042432  }
   0x4   :  { %5520 = vmatmul.mubr.msk.f32.vlgmr.msra.gmra.mrb[0].mxu0 %vm30_vm1, %v6266_v5  ;;  %5523 = vmatmul.mubr.msk.f32.vlgmr.msra.gmra.mrb[0].mxu1 %vm30_vm1, %v6266_v5  ;;  %v448_v8 = vld [vmem:[%s11101_s3] sm:$0x1f]  ;;  %v418_v11 = vld [vmem:[%s11102_s2 + $0x10] sm:$0xff]  ;;  %v419_v12 = vld [vmem:[%s11102_s2 + $0x18] sm:$0xff]  ;;  %vm773_vm4 = vcmask 23552   ;;  %s11511_s25 = smov 123  }
   0x5   :  { %5527 = vmatprep.subr.msk.mxu1 %vm34_vm0, %v28_v6  ;;  %339 = vmatprep.mubr.f32.mxu1 %v11141_v3  ;;  %v420_v13 = vld [vmem:[%s11102_s2 + $0x20] sm:$0xff]  ;;  %v26_v14 = vld [vmem:[%s11099_s0 + $0x28] sm:$0x1f]  ;;  %v422_v17 = vld [vmem:[%s11102_s2 + $0x30] sm:$0xff]  ;;  %s11509_s26 = smov 122   ;;  %s11507_s27 = smov 121  }
   0x6   :  { %5528 = vmatpush1.msk.msra.mxu1 %vm34_vm0, %v27_v7  ;;  %268 = vmatprep.mubr.f32.mxu0 %v11141_v3  ;;  %v25_v15 = vld [vmem:[%s11099_s0 + $0x20] sm:$0x1f]  ;;  %v421_v16 = vld [vmem:[%s11102_s2 + $0x28] sm:$0xff]  ;;  %v423_v18 = vld [vmem:[%s11102_s2 + $0x38] sm:$0xff]  ;;  %s11499_s28 = smov 96   ;;  %s11497_s29 = smov 95  }
   0x7   :  { %5807 = vmatprep.subr.msk.mxu1 %vm34_vm0, %v448_v8  ;;  %5524 = vmatprep.subr.msk.mxu0 %vm34_vm0, %v26_v14  ;;  %v424_v19 = vld [vmem:[%s11102_s2 + $0x40] sm:$0xff]  ;;  %v425_v20 = vld [vmem:[%s11102_s2 + $0x48] sm:$0xff]  ;;  %v426_v21 = vld [vmem:[%s11102_s2 + $0x50] sm:$0xff]  ;;  %s11495_s30 = smov 94   ;;  %s11493_s6 = smov 93   ;;  %vm2151_vm5 = vcmask 1039360  }
   0x8   :  { %5529 = vmatmul.mubr.msk.f32.vlgmr.msra.gmra.mrb[2].mxu1 %vm30_vm1, %v6266_v5  ;;  %5525 = vmatpush1.msk.msra.mxu0 %vm34_vm0, %v25_v15  ;;  %v427_v22 = vld [vmem:[%s11102_s2 + $0x58] sm:$0xff]  ;;  %v428_v23 = vld [vmem:[%s11102_s2 + $0x60] sm:$0xff]  ;;  %v429_v24 = vld [vmem:[%s11102_s2 + $0x68] sm:$0xff]  ;;  %s11505_s1 = smov 92   ;;  %s11503_s7 = smov 91   ;;  %vm2197_vm6 = vcmask 1031168  }
   0x9   :  { %5808 = vmatpush3.msk.msra.mxu1 %vm34_vm0, %v448_v8  ;;  %5809 = vmatprep.mubr.msk.f32.mxu1 %vm30_vm1, %v416_v9  ;;  %v430_v25 = vld [vmem:[%s11102_s2 + $0x70] sm:$0xff]  ;;  %v431_v26 = vld [vmem:[%s11102_s2 + $0x78] sm:$0xff]  ;;  %v432_v27 = vld [vmem:[%s11102_s2 + $0x80] sm:$0xff]  ;;  %s11501_s8 = smov 90   ;;  %s11449_s9 = smov 89   ;;  %vm2243_vm7 = vcmask 1022976  }
   0xa   :  { %5526 = vmatmul.mubr.msk.f32.vlgmr.msra.gmra.mrb[2].mxu0 %vm30_vm1, %v6266_v5  ;;  %5802 = vmatprep.subr.mxu0 %v11141_v3  ;;  %v433_v28 = vld [vmem:[%s11102_s2 + $0x88] sm:$0xff]  ;;  %v434_v29 = vld [vmem:[%s11102_s2 + $0x90] sm:$0xff]  ;;  %v435_v30 = vld [vmem:[%s11102_s2 + $0x98] sm:$0xff]  ;;  %s11168_s3 = smov 64   ;;  %s11178_s10 = smov 63   ;;  %vm2289_vm8 = vcmask 1014784  }
   0xb   :  { %v436_v31 = vld [vmem:[%s11102_s2 + $0xa0] sm:$0xff]  ;;  %v437_v32 = vld [vmem:[%s11102_s2 + $0xa8] sm:$0xff]  ;;  %v438_v33 = vld [vmem:[%s11102_s2 + $0xb0] sm:$0xff]  ;;  %5804 = vmatprep.mubr.msk.f32.mxu0 %vm6185_vm2, %v11141_v3  ;;  %s11447_s11 = smov 62   ;;  %s11432_s12 = smov 61   ;;  %vm2335_vm9 = vcmask 1006592  }
   0xc   :  { %5810 = vmatmul.mubr.msk.f32.vlgmr.msra.gmra.mrb[4].mxu1 %vm30_vm1, %v417_v10  ;;  %v439_v34 = vld [vmem:[%s11102_s2 + $0xb8] sm:$0xff]  ;;  %v440_v35 = vld [vmem:[%s11102_s2 + $0xc0] sm:$0xff]  ;;  %v441_v36 = vld [vmem:[%s11102_s2 + $0xc8] sm:$0xff]  ;;  %s11430_s13 = smov 60   ;;  %s11428_s14 = smov 59   ;;  %vm2381_vm10 = vcmask 998400  }
   0xd   :  { %5812 = vmatprep.mubr.msk.f32.mxu1 %vm30_vm1, %v418_v11  ;;  %v442_v37 = vld [vmem:[%s11102_s2 + $0xd0] sm:$0xff]  ;;  %v443_v38 = vld [vmem:[%s11102_s2 + $0xd8] sm:$0xff]  ;;  %v444_v39 = vld [vmem:[%s11102_s2 + $0xe0] sm:$0xff]  ;;  %s11426_s15 = smov 58   ;;  %s11422_s16 = smov 57   ;;  %vm11443_vm11 = vcmask 990208  }
   0xe   :  { %v445_v40 = vld [vmem:[%s11102_s2 + $0xe8] sm:$0xff]  ;;  %v446_v41 = vld [vmem:[%s11102_s2 + $0xf0] sm:$0xff]  ;;  %v447_v42 = vld [vmem:[%s11102_s2 + $0xf8] sm:$0xff]  ;;  %s6187_s2 = smov 126   ;;  %s11420_s17 = smov 32   ;;  %vm2473_vm12 = vcmask 785408  }
   0xf   :  { %v29_v43 = vld [vmem:[%s11099_s0 + $0x40] sm:$0x1f]  ;;  %s11281_s0 = smov 127   ;;  %s11354_s18 = smov 31   ;;  %vm2519_vm13 = vcmask 777216   ;;  %vm11445_vm14 = vcmask 769024  }
  0x10   :  { %5813 = vmatmul.mubr.msk.f32.gmra.mrb[6].mxu1 %vm30_vm1, %v419_v12  ;;  %5803 = vmatpush3.msk.msra.mxu0 %vm34_vm0, %v29_v43  ;;  %s11418_s19 = smov 30   ;;  %s11360_s20 = smov 29   ;;  %vm11444_vm15 = vcmask 760832   ;;  %vm11446_vm0 = vcmask 752640   ;;  %vm11261_vm2 = vcmask 736256  }
  0x11   :  { %5815 = vmatprep.mubr.msk.f32.mxu1 %vm30_vm1, %v420_v13  ;;  %5805 = vmatmul.mubr.msk.f32.vlgmr.msra.gmra.mrb[4].mxu0 %vm30_vm1, %v6266_v5  ;;  %s11412_s21 = smov 28   ;;  %s11416_s22 = smov 27  }
  0x12   :  { %962 = vmatprep.mubr.f32.mxu0 %v11141_v3  ;;  %s12536_s5 = smov 124  }
  0x14   :  { %5816 = vmatmul.mubr.msk.f32.gmra.mrb[8].mxu1 %vm30_vm1, %v421_v16 }
  0x15   :  { %5818 = vmatprep.mubr.msk.f32.mxu1 %vm30_vm1, %v422_v17 }
  0x18   :  { %5819 = vmatmul.mubr.msk.f32.gmra.mrb[10].mxu1 %vm30_vm1, %v423_v18 }
  0x19   :  { %5821 = vmatprep.mubr.msk.f32.mxu1 %vm30_vm1, %v424_v19 }
  0x1c   :  { %5822 = vmatmul.mubr.msk.f32.gmra.mrb[12].mxu1 %vm30_vm1, %v425_v20 }
  0x1d   :  { %5824 = vmatprep.mubr.msk.f32.mxu1 %vm30_vm1, %v426_v21 }
  0x20   :  { %5825 = vmatmul.mubr.msk.f32.gmra.mrb[14].mxu1 %vm30_vm1, %v427_v22 }
  0x21   :  { %5827 = vmatprep.mubr.msk.f32.mxu1 %vm30_vm1, %v428_v23 }
  0x24   :  { %5828 = vmatmul.mubr.msk.f32.gmra.mrb[16].mxu1 %vm30_vm1, %v429_v24 }
  0x25   :  { %5830 = vmatprep.mubr.msk.f32.mxu1 %vm30_vm1, %v430_v25 }
  0x28   :  { %5831 = vmatmul.mubr.msk.f32.gmra.mrb[18].mxu1 %vm30_vm1, %v431_v26 }
  0x29   :  { %5833 = vmatprep.mubr.msk.f32.mxu1 %vm30_vm1, %v432_v27 }
  0x2c   :  { %5834 = vmatmul.mubr.msk.f32.gmra.mrb[20].mxu1 %vm30_vm1, %v433_v28 }
  0x2d   :  { %5836 = vmatprep.mubr.msk.f32.mxu1 %vm30_vm1, %v434_v29 }
  0x30   :  { %5837 = vmatmul.mubr.msk.f32.gmra.mrb[22].mxu1 %vm30_vm1, %v435_v30 }
  0x31   :  { %5839 = vmatprep.mubr.msk.f32.mxu1 %vm30_vm1, %v436_v31 }
  0x34   :  { %5840 = vmatmul.mubr.msk.f32.gmra.mrb[24].mxu1 %vm30_vm1, %v437_v32 }
  0x35   :  { %5842 = vmatprep.mubr.msk.f32.mxu1 %vm30_vm1, %v438_v33 }
  0x38   :  { %5843 = vmatmul.mubr.msk.f32.gmra.mrb[26].mxu1 %vm30_vm1, %v439_v34 }
  0x39   :  { %5845 = vmatprep.mubr.msk.f32.mxu1 %vm30_vm1, %v440_v35 }
  0x3c   :  { %5846 = vmatmul.mubr.msk.f32.gmra.mrb[28].mxu1 %vm30_vm1, %v441_v36 }
  0x3d   :  { %5848 = vmatprep.mubr.msk.f32.mxu1 %vm30_vm1, %v442_v37 }
  0x40   :  { %5849 = vmatmul.mubr.msk.f32.gmra.mrb[30].mxu1 %vm30_vm1, %v443_v38 }
  0x41   :  { %5851 = vmatprep.mubr.msk.f32.mxu1 %vm30_vm1, %v444_v39 }
  0x44   :  { %5852 = vmatmul.mubr.msk.f32.gmra.mrb[32].mxu1 %vm30_vm1, %v445_v40 }
  0x45   :  { %5854 = vmatprep.mubr.msk.f32.mxu1 %vm30_vm1, %v446_v41 }
  0x48   :  { %5855 = vmatmul.mubr.msk.f32.gmra.mrb[34].mxu1 %vm30_vm1, %v447_v42  ;;  %vm11274_vm1 = vcmask 744448  }
  0x49   :  { %1323 = vmatprep.mubr.f32.mxu1 %v11141_v3 }
  0xd7   :  { %v128_v44 = vpop.f32.mrb[0].mxu0  ;;  %v199_v45 = vpop.f32.mrb[0].mxu1 }
  0xd8   :  { %v130_v46 = vpop.f32.mrb[1].mxu0  ;;  %v201_v47 = vpop.f32.mrb[1].mxu1 }
  0xd9   :  { %5565 = vmatprep.subr.msk.mxu0 %vm870_vm3, %v130_v46  ;;  %6131 = vmatprep.subr.msk.mxu1 %vm870_vm3, %v201_v47 }
  0xda   :  { %5566 = vmatpush1.msk.msra.mxu0 %vm870_vm3, %v128_v44  ;;  %6132 = vmatpush1.msk.msra.mxu1 %vm870_vm3, %v199_v45 }
  0xdb   :  { %v341_v48 = vpop.f32.mrb[2].mxu1  ;;  %5599 = vmatprep.subr.msk.mxu0 %vm870_vm3, %v201_v47 }
  0xdc   :  { %v343_v49 = vpop.f32.mrb[3].mxu1 }
  0xdd   :  { %5667 = vmatprep.subr.msk.mxu1 %vm870_vm3, %v343_v49  ;;  %v6593_v19 = vpop.f32.mrb[2].mxu0 }
  0xde   :  { %v272_v20 = vpop.f32.mrb[3].mxu0 }
  0xdf   :  { %v6445_v50 = vpop.f32.mrb[4].mxu1 }
  0xe0   :  { %v6447_v51 = vpop.f32.mrb[5].mxu1 }
  0xe1   :  { %5567 = vmatmul.mubr.msk.f32.vlgmr.msra.gmra.mrb[6].mxu0 %vm773_vm4, %v6447_v51 }
  0xe2   :  { %5600 = vmatpush1.msk.msra.mxu0 %vm870_vm3, %v199_v45  ;;  %968 = vmatprep.mubr.f32.mxu0 %v11141_v3 }
  0xe3   :  { %v6453_v52 = vpop.f32.mrb[6].mxu1  ;;  %5633 = vmatprep.subr.msk.mxu0 %vm870_vm3, %v272_v20 }
  0xe4   :  { %v6455_v53 = vpop.f32.mrb[7].mxu1  ;;  %v6602_v21 = vpop.f32.mrb[4].mxu0 }
  0xe5   :  { %5568 = vmatmul.mubr.msk.f32.gmra.mrb[8].mxu0 %vm773_vm4, %v6445_v50  ;;  %v5806_v22 = vpop.f32.mrb[5].mxu0 }
  0xe6   :  { %974 = vmatprep.mubr.f32.mxu0 %v11141_v3 }
  0xe7   :  { %v6460_v54 = vpop.f32.mrb[8].mxu1 }
  0xe8   :  { %v6462_v55 = vpop.f32.mrb[9].mxu1 }
  0xe9   :  { %5569 = vmatmul.mubr.msk.f32.gmra.mrb[10].mxu0 %vm773_vm4, %v6455_v53 }
  0xea   :  { %980 = vmatprep.mubr.f32.mxu0 %v11141_v3 }
  0xeb   :  { %v6467_v56 = vpop.f32.mrb[10].mxu1 }
  0xec   :  { %v6469_v57 = vpop.f32.mrb[11].mxu1 }
  0xed   :  { %5570 = vmatmul.mubr.msk.f32.gmra.mrb[12].mxu0 %vm773_vm4, %v6453_v52 }
  0xee   :  { %986 = vmatprep.mubr.f32.mxu0 %v11141_v3 }
  0xef   :  { %v6474_v58 = vpop.f32.mrb[12].mxu1 }
  0xf0   :  { %v6476_v59 = vpop.f32.mrb[13].mxu1 }
  0xf1   :  { %5571 = vmatmul.mubr.msk.f32.gmra.mrb[14].mxu0 %vm773_vm4, %v6462_v55 }
  0xf2   :  { %992 = vmatprep.mubr.f32.mxu0 %v11141_v3 }
  0xf3   :  { %v6481_v60 = vpop.f32.mrb[14].mxu1 }
  0xf4   :  { %v6483_v61 = vpop.f32.mrb[15].mxu1 }
  0xf5   :  { %5572 = vmatmul.mubr.msk.f32.gmra.mrb[16].mxu0 %vm773_vm4, %v6460_v54 }
  0xf6   :  { %998 = vmatprep.mubr.f32.mxu0 %v11141_v3 }
  0xf7   :  { %v6488_v62 = vpop.f32.mrb[16].mxu1 }
  0xf8   :  { %v6490_v63 = vpop.f32.mrb[17].mxu1 }
  0xf9   :  { %5573 = vmatmul.mubr.msk.f32.gmra.mrb[18].mxu0 %vm773_vm4, %v6469_v57 }
  0xfa   :  { %1004 = vmatprep.mubr.f32.mxu0 %v11141_v3 }
  0xfb   :  { %v6495_v0 = vpop.f32.mrb[18].mxu1 }
  0xfc   :  { %v6497_v1 = vpop.f32.mrb[19].mxu1 }
  0xfd   :  { %5574 = vmatmul.mubr.msk.f32.gmra.mrb[20].mxu0 %vm773_vm4, %v6467_v56 }
  0xfe   :  { %1010 = vmatprep.mubr.f32.mxu0 %v11141_v3 }
  0xff   :  { %v6502_v2 = vpop.f32.mrb[20].mxu1 }
 0x100   :  { %v6504_v4 = vpop.f32.mrb[21].mxu1 }
 0x101   :  { %5575 = vmatmul.mubr.msk.f32.gmra.mrb[22].mxu0 %vm773_vm4, %v6476_v59 }
 0x102   :  { %1016 = vmatprep.mubr.f32.mxu0 %v11141_v3 }
 0x103   :  { %v6509_v5 = vpop.f32.mrb[22].mxu1 }
 0x104   :  { %v6511_v6 = vpop.f32.mrb[23].mxu1 }
 0x105   :  { %5576 = vmatmul.mubr.msk.f32.gmra.mrb[24].mxu0 %vm773_vm4, %v6474_v58 }
 0x106   :  { %1022 = vmatprep.mubr.f32.mxu0 %v11141_v3 }
 0x107   :  { %v6516_v7 = vpop.f32.mrb[24].mxu1 }
 0x108   :  { %v6518_v8 = vpop.f32.mrb[25].mxu1 }
 0x109   :  { %5577 = vmatmul.mubr.msk.f32.gmra.mrb[26].mxu0 %vm773_vm4, %v6483_v61  ;;  %5621 = vmatmul.mubr.msk.f32.vlgmr.msra.gmra.mrb[36].mxu1 %vm773_vm4, %v6518_v8 }
 0x10a   :  { %5668 = vmatpush1.msk.msra.mxu1 %vm870_vm3, %v341_v48  ;;  %1028 = vmatprep.mubr.f32.mxu0 %v11141_v3 }
 0x10b   :  { %1329 = vmatprep.mubr.f32.mxu1 %v11141_v3  ;;  %v6527_v9 = vpop.f32.mrb[26].mxu1 }
 0x10c   :  { %v6529_v10 = vpop.f32.mrb[27].mxu1 }
 0x10d   :  { %5578 = vmatmul.mubr.msk.f32.gmra.mrb[28].mxu0 %vm773_vm4, %v6481_v60  ;;  %5622 = vmatmul.mubr.msk.f32.gmra.mrb[38].mxu1 %vm773_vm4, %v6516_v7 }
 0x10e   :  { %1034 = vmatprep.mubr.f32.mxu0 %v11141_v3  ;;  %1335 = vmatprep.mubr.f32.mxu1 %v11141_v3 }
 0x10f   :  { %v6537_v11 = vpop.f32.mrb[28].mxu1 }
 0x110   :  { %v6539_v12 = vpop.f32.mrb[29].mxu1 }
 0x111   :  { %5579 = vmatmul.mubr.msk.f32.gmra.mrb[30].mxu0 %vm773_vm4, %v6490_v63  ;;  %5623 = vmatmul.mubr.msk.f32.gmra.mrb[40].mxu1 %vm773_vm4, %v6529_v10 }
 0x112   :  { %1040 = vmatprep.mubr.f32.mxu0 %v11141_v3  ;;  %1341 = vmatprep.mubr.f32.mxu1 %v11141_v3 }
 0x113   :  { %v6547_v13 = vpop.f32.mrb[30].mxu1 }
 0x114   :  { %v6549_v14 = vpop.f32.mrb[31].mxu1 }
 0x115   :  { %5580 = vmatmul.mubr.msk.f32.gmra.mrb[32].mxu0 %vm773_vm4, %v6488_v62  ;;  %5624 = vmatmul.mubr.msk.f32.gmra.mrb[42].mxu1 %vm773_vm4, %v6527_v9 }
 0x116   :  { %1046 = vmatprep.mubr.f32.mxu0 %v11141_v3  ;;  %1347 = vmatprep.mubr.f32.mxu1 %v11141_v3 }
 0x117   :  { %v6557_v15 = vpop.f32.mrb[32].mxu1 }
 0x118   :  { %v6559_v16 = vpop.f32.mrb[33].mxu1 }
 0x119   :  { %5581 = vmatmul.mubr.msk.f32.gmra.mrb[34].mxu0 %vm773_vm4, %v6497_v1  ;;  %5625 = vmatmul.mubr.msk.f32.gmra.mrb[44].mxu1 %vm773_vm4, %v6539_v12 }
 0x11a   :  { %1052 = vmatprep.mubr.f32.mxu0 %v11141_v3  ;;  %1353 = vmatprep.mubr.f32.mxu1 %v11141_v3 }
 0x11b   :  { %v6567_v17 = vpop.f32.mrb[34].mxu1 }
 0x11c   :  { %v6569_v18 = vpop.f32.mrb[35].mxu1 }
 0x11d   :  { %5582 = vmatmul.mubr.msk.f32.gmra.mrb[36].mxu0 %vm773_vm4, %v6495_v0  ;;  %5626 = vmatmul.mubr.msk.f32.gmra.mrb[46].mxu1 %vm773_vm4, %v6537_v11 }
 0x11e   :  { %1058 = vmatprep.mubr.f32.mxu0 %v11141_v3  ;;  %1359 = vmatprep.mubr.f32.mxu1 %v11141_v3 }
 0x121   :  { %5583 = vmatmul.mubr.msk.f32.gmra.mrb[38].mxu0 %vm773_vm4, %v6504_v4  ;;  %5627 = vmatmul.mubr.msk.f32.gmra.mrb[48].mxu1 %vm773_vm4, %v6549_v14 }
 0x122   :  { %1063 = vmatprep.mubr.f32.mxu0 %v11141_v3  ;;  %1365 = vmatprep.mubr.f32.mxu1 %v11141_v3 }
 0x125   :  { %5584 = vmatmul.mubr.msk.f32.gmra.mrb[40].mxu0 %vm773_vm4, %v6502_v2  ;;  %5628 = vmatmul.mubr.msk.f32.gmra.mrb[50].mxu1 %vm773_vm4, %v6547_v13 }
 0x126   :  { %1068 = vmatprep.mubr.f32.mxu0 %v11141_v3  ;;  %1371 = vmatprep.mubr.f32.mxu1 %v11141_v3 }
 0x129   :  { %5585 = vmatmul.mubr.msk.f32.gmra.mrb[42].mxu0 %vm773_vm4, %v6511_v6  ;;  %5629 = vmatmul.mubr.msk.f32.gmra.mrb[52].mxu1 %vm773_vm4, %v6559_v16 }
 0x12a   :  { %1073 = vmatprep.mubr.f32.mxu0 %v11141_v3  ;;  %1377 = vmatprep.mubr.f32.mxu1 %v11141_v3 }
 0x12d   :  { %5586 = vmatmul.mubr.msk.f32.gmra.mrb[44].mxu0 %vm773_vm4, %v6509_v5  ;;  %5630 = vmatmul.mubr.msk.f32.gmra.mrb[54].mxu1 %vm773_vm4, %v6557_v15 }
 0x12e   :  { %1078 = vmatprep.mubr.f32.mxu0 %v11141_v3  ;;  %1383 = vmatprep.mubr.f32.mxu1 %v11141_v3 }
 0x131   :  { %5587 = vmatmul.mubr.msk.f32.gmra.mrb[46].mxu0 %vm773_vm4, %v6518_v8  ;;  %5631 = vmatmul.mubr.msk.f32.gmra.mrb[56].mxu1 %vm773_vm4, %v6569_v18 }
 0x132   :  { %1083 = vmatprep.mubr.f32.mxu0 %v11141_v3  ;;  %1389 = vmatprep.mubr.f32.mxu1 %v11141_v3 }
 0x135   :  { %5588 = vmatmul.mubr.msk.f32.gmra.mrb[48].mxu0 %vm773_vm4, %v6516_v7  ;;  %5632 = vmatmul.mubr.msk.f32.gmra.mrb[58].mxu1 %vm773_vm4, %v6567_v17 }
 0x136   :  { %1088 = vmatprep.mubr.f32.mxu0 %v11141_v3  ;;  %1717 = vmatprep.mubr.f32.mxu1 %v11141_v3 }
 0x139   :  { %5589 = vmatmul.mubr.msk.f32.gmra.mrb[50].mxu0 %vm773_vm4, %v6529_v10  ;;  %5669 = vmatmul.mubr.msk.f32.vlgmr.msra.gmra.mrb[60].mxu1 %vm773_vm4, %v6447_v51 }
 0x13a   :  { %1093 = vmatprep.mubr.f32.mxu0 %v11141_v3  ;;  %1723 = vmatprep.mubr.f32.mxu1 %v11141_v3 }
 0x13d   :  { %5590 = vmatmul.mubr.msk.f32.gmra.mrb[52].mxu0 %vm773_vm4, %v6527_v9  ;;  %5670 = vmatmul.mubr.msk.f32.gmra.mrb[62].mxu1 %vm773_vm4, %v6445_v50 }
 0x13e   :  { %1098 = vmatprep.mubr.f32.mxu0 %v11141_v3  ;;  %1729 = vmatprep.mubr.f32.mxu1 %v11141_v3 }
 0x141   :  { %5591 = vmatmul.mubr.msk.f32.gmra.mrb[54].mxu0 %vm773_vm4, %v6539_v12  ;;  %5671 = vmatmul.mubr.msk.f32.gmra.mrb[64].mxu1 %vm773_vm4, %v6455_v53 }
 0x142   :  { %1103 = vmatprep.mubr.f32.mxu0 %v11141_v3  ;;  %1735 = vmatprep.mubr.f32.mxu1 %v11141_v3 }
 0x145   :  { %5592 = vmatmul.mubr.msk.f32.gmra.mrb[56].mxu0 %vm773_vm4, %v6537_v11  ;;  %5672 = vmatmul.mubr.msk.f32.gmra.mrb[66].mxu1 %vm773_vm4, %v6453_v52 }
 0x146   :  { %1108 = vmatprep.mubr.f32.mxu0 %v11141_v3  ;;  %1741 = vmatprep.mubr.f32.mxu1 %v11141_v3 }
 0x149   :  { %5593 = vmatmul.mubr.msk.f32.gmra.mrb[58].mxu0 %vm773_vm4, %v6549_v14  ;;  %5673 = vmatmul.mubr.msk.f32.gmra.mrb[68].mxu1 %vm773_vm4, %v6462_v55 }
 0x14a   :  { %1113 = vmatprep.mubr.f32.mxu0 %v11141_v3  ;;  %1747 = vmatprep.mubr.f32.mxu1 %v11141_v3 }
 0x14d   :  { %5594 = vmatmul.mubr.msk.f32.gmra.mrb[60].mxu0 %vm773_vm4, %v6547_v13  ;;  %5674 = vmatmul.mubr.msk.f32.gmra.mrb[70].mxu1 %vm773_vm4, %v6460_v54 }
 0x14e   :  { %1118 = vmatprep.mubr.f32.mxu0 %v11141_v3  ;;  %1753 = vmatprep.mubr.f32.mxu1 %v11141_v3 }
 0x151   :  { %5595 = vmatmul.mubr.msk.f32.gmra.mrb[62].mxu0 %vm773_vm4, %v6559_v16  ;;  %5675 = vmatmul.mubr.msk.f32.gmra.mrb[72].mxu1 %vm773_vm4, %v6469_v57 }
 0x152   :  { %1123 = vmatprep.mubr.f32.mxu0 %v11141_v3  ;;  %1759 = vmatprep.mubr.f32.mxu1 %v11141_v3 }
 0x155   :  { %5596 = vmatmul.mubr.msk.f32.gmra.mrb[64].mxu0 %vm773_vm4, %v6557_v15  ;;  %5676 = vmatmul.mubr.msk.f32.gmra.mrb[74].mxu1 %vm773_vm4, %v6467_v56 }
 0x156   :  { %1128 = vmatprep.mubr.f32.mxu0 %v11141_v3  ;;  %1765 = vmatprep.mubr.f32.mxu1 %v11141_v3 }
 0x159   :  { %5597 = vmatmul.mubr.msk.f32.gmra.mrb[66].mxu0 %vm773_vm4, %v6569_v18  ;;  %5677 = vmatmul.mubr.msk.f32.gmra.mrb[76].mxu1 %vm773_vm4, %v6476_v59 }
 0x15a   :  { %1133 = vmatprep.mubr.f32.mxu0 %v11141_v3  ;;  %1771 = vmatprep.mubr.f32.mxu1 %v11141_v3 }
 0x15d   :  { %5598 = vmatmul.mubr.msk.f32.gmra.mrb[68].mxu0 %vm773_vm4, %v6567_v17  ;;  %5678 = vmatmul.mubr.msk.f32.gmra.mrb[78].mxu1 %vm773_vm4, %v6474_v58 }
 0x15e   :  { %1203 = vmatprep.mubr.f32.mxu0 %v11141_v3  ;;  %1777 = vmatprep.mubr.f32.mxu1 %v11141_v3 }
 0x161   :  { %5601 = vmatmul.mubr.msk.f32.vlgmr.msra.gmra.mrb[70].mxu0 %vm773_vm4, %v6447_v51  ;;  %5679 = vmatmul.mubr.msk.f32.gmra.mrb[80].mxu1 %vm773_vm4, %v6483_v61 }
 0x162   :  { %1209 = vmatprep.mubr.f32.mxu0 %v11141_v3  ;;  %1783 = vmatprep.mubr.f32.mxu1 %v11141_v3 }
 0x163   :  { %5634 = vmatpush1.msk.msra.mxu0 %vm870_vm3, %v6593_v19 }
 0x164   :  { %5857 = vmatprep.subr.msk.mxu0 %vm870_vm3, %v6602_v21 }
 0x165   :  { %5602 = vmatmul.mubr.msk.f32.gmra.mrb[72].mxu0 %vm773_vm4, %v6445_v50  ;;  %5680 = vmatmul.mubr.msk.f32.gmra.mrb[82].mxu1 %vm773_vm4, %v6481_v60 }
 0x166   :  { %1215 = vmatprep.mubr.f32.mxu0 %v11141_v3  ;;  %1789 = vmatprep.mubr.f32.mxu1 %v11141_v3 }
 0x169   :  { %5603 = vmatmul.mubr.msk.f32.gmra.mrb[74].mxu0 %vm773_vm4, %v6455_v53  ;;  %5681 = vmatmul.mubr.msk.f32.gmra.mrb[84].mxu1 %vm773_vm4, %v6490_v63 }
 0x16a   :  { %1221 = vmatprep.mubr.f32.mxu0 %v11141_v3  ;;  %1795 = vmatprep.mubr.f32.mxu1 %v11141_v3 }
 0x16d   :  { %5604 = vmatmul.mubr.msk.f32.gmra.mrb[76].mxu0 %vm773_vm4, %v6453_v52  ;;  %5682 = vmatmul.mubr.msk.f32.gmra.mrb[86].mxu1 %vm773_vm4, %v6488_v62 }
 0x16e   :  { %1227 = vmatprep.mubr.f32.mxu0 %v11141_v3  ;;  %1801 = vmatprep.mubr.f32.mxu1 %v11141_v3 }
 0x171   :  { %5605 = vmatmul.mubr.msk.f32.gmra.mrb[78].mxu0 %vm773_vm4, %v6462_v55  ;;  %5683 = vmatmul.mubr.msk.f32.gmra.mrb[88].mxu1 %vm773_vm4, %v6497_v1 }
 0x172   :  { %1233 = vmatprep.mubr.f32.mxu0 %v11141_v3  ;;  %1807 = vmatprep.mubr.f32.mxu1 %v11141_v3 }
 0x175   :  { %5606 = vmatmul.mubr.msk.f32.gmra.mrb[80].mxu0 %vm773_vm4, %v6460_v54  ;;  %5684 = vmatmul.mubr.msk.f32.gmra.mrb[90].mxu1 %vm773_vm4, %v6495_v0 }
 0x176   :  { %1239 = vmatprep.mubr.f32.mxu0 %v11141_v3  ;;  %1813 = vmatprep.mubr.f32.mxu1 %v11141_v3 }
 0x179   :  { %5607 = vmatmul.mubr.msk.f32.gmra.mrb[82].mxu0 %vm773_vm4, %v6469_v57  ;;  %5685 = vmatmul.mubr.msk.f32.gmra.mrb[92].mxu1 %vm773_vm4, %v6504_v4 }
 0x17a   :  { %1245 = vmatprep.mubr.f32.mxu0 %v11141_v3  ;;  %1819 = vmatprep.mubr.f32.mxu1 %v11141_v3 }
 0x17d   :  { %5608 = vmatmul.mubr.msk.f32.gmra.mrb[84].mxu0 %vm773_vm4, %v6467_v56  ;;  %5686 = vmatmul.mubr.msk.f32.gmra.mrb[94].mxu1 %vm773_vm4, %v6502_v2 }
 0x17e   :  { %1251 = vmatprep.mubr.f32.mxu0 %v11141_v3  ;;  %1825 = vmatprep.mubr.f32.mxu1 %v11141_v3 }
 0x181   :  { %5609 = vmatmul.mubr.msk.f32.gmra.mrb[86].mxu0 %vm773_vm4, %v6476_v59  ;;  %5687 = vmatmul.mubr.msk.f32.gmra.mrb[96].mxu1 %vm773_vm4, %v6511_v6 }
 0x182   :  { %1257 = vmatprep.mubr.f32.mxu0 %v11141_v3  ;;  %1831 = vmatprep.mubr.f32.mxu1 %v11141_v3 }
 0x185   :  { %5610 = vmatmul.mubr.msk.f32.gmra.mrb[88].mxu0 %vm773_vm4, %v6474_v58  ;;  %5688 = vmatmul.mubr.msk.f32.gmra.mrb[98].mxu1 %vm773_vm4, %v6509_v5 }
 0x186   :  { %1263 = vmatprep.mubr.f32.mxu0 %v11141_v3  ;;  %1837 = vmatprep.mubr.f32.mxu1 %v11141_v3 }
 0x189   :  { %5611 = vmatmul.mubr.msk.f32.gmra.mrb[90].mxu0 %vm773_vm4, %v6483_v61  ;;  %5689 = vmatmul.mubr.msk.f32.gmra.mrb[100].mxu1 %vm773_vm4, %v6518_v8 }
 0x18a   :  { %1269 = vmatprep.mubr.f32.mxu0 %v11141_v3  ;;  %1843 = vmatprep.mubr.f32.mxu1 %v11141_v3 }
 0x18d   :  { %5612 = vmatmul.mubr.msk.f32.gmra.mrb[92].mxu0 %vm773_vm4, %v6481_v60  ;;  %5690 = vmatmul.mubr.msk.f32.gmra.mrb[102].mxu1 %vm773_vm4, %v6516_v7 }
 0x18e   :  { %1275 = vmatprep.mubr.f32.mxu0 %v11141_v3  ;;  %1849 = vmatprep.mubr.f32.mxu1 %v11141_v3 }
 0x191   :  { %5613 = vmatmul.mubr.msk.f32.gmra.mrb[94].mxu0 %vm773_vm4, %v6490_v63  ;;  %5691 = vmatmul.mubr.msk.f32.gmra.mrb[104].mxu1 %vm773_vm4, %v6529_v10 }
 0x192   :  { %1281 = vmatprep.mubr.f32.mxu0 %v11141_v3  ;;  %1855 = vmatprep.mubr.f32.mxu1 %v11141_v3 }
 0x195   :  { %5614 = vmatmul.mubr.msk.f32.gmra.mrb[96].mxu0 %vm773_vm4, %v6488_v62  ;;  %5692 = vmatmul.mubr.msk.f32.gmra.mrb[106].mxu1 %vm773_vm4, %v6527_v9 }
 0x196   :  { %1287 = vmatprep.mubr.f32.mxu0 %v11141_v3  ;;  %1861 = vmatprep.mubr.f32.mxu1 %v11141_v3 }
 0x199   :  { %5615 = vmatmul.mubr.msk.f32.gmra.mrb[98].mxu0 %vm773_vm4, %v6497_v1  ;;  %5693 = vmatmul.mubr.msk.f32.gmra.mrb[108].mxu1 %vm773_vm4, %v6539_v12 }
 0x19a   :  { %1293 = vmatprep.mubr.f32.mxu0 %v11141_v3  ;;  %1867 = vmatprep.mubr.f32.mxu1 %v11141_v3 }
 0x19d   :  { %5616 = vmatmul.mubr.msk.f32.gmra.mrb[100].mxu0 %vm773_vm4, %v6495_v0  ;;  %5694 = vmatmul.mubr.msk.f32.gmra.mrb[110].mxu1 %vm773_vm4, %v6537_v11 }
 0x19e   :  { %1299 = vmatprep.mubr.f32.mxu0 %v11141_v3  ;;  %1873 = vmatprep.mubr.f32.mxu1 %v11141_v3 }
 0x1a1   :  { %5617 = vmatmul.mubr.msk.f32.gmra.mrb[102].mxu0 %vm773_vm4, %v6504_v4  ;;  %5695 = vmatmul.mubr.msk.f32.gmra.mrb[112].mxu1 %vm773_vm4, %v6549_v14 }
 0x1a2   :  { %1305 = vmatprep.mubr.f32.mxu0 %v11141_v3  ;;  %1879 = vmatprep.mubr.f32.mxu1 %v11141_v3 }
 0x1a5   :  { %5618 = vmatmul.mubr.msk.f32.gmra.mrb[104].mxu0 %vm773_vm4, %v6502_v2  ;;  %5696 = vmatmul.mubr.msk.f32.gmra.mrb[114].mxu1 %vm773_vm4, %v6547_v13 }
 0x1a6   :  { %1311 = vmatprep.mubr.f32.mxu0 %v11141_v3  ;;  %1885 = vmatprep.mubr.f32.mxu1 %v11141_v3 }
 0x1a9   :  { %5619 = vmatmul.mubr.msk.f32.gmra.mrb[106].mxu0 %vm773_vm4, %v6511_v6  ;;  %5697 = vmatmul.mubr.msk.f32.gmra.mrb[116].mxu1 %vm773_vm4, %v6559_v16 }
 0x1aa   :  { %1317 = vmatprep.mubr.f32.mxu0 %v11141_v3  ;;  %1891 = vmatprep.mubr.f32.mxu1 %v11141_v3 }
 0x1ad   :  { %5620 = vmatmul.mubr.msk.f32.gmra.mrb[108].mxu0 %vm773_vm4, %v6509_v5  ;;  %5698 = vmatmul.mubr.msk.f32.gmra.mrb[118].mxu1 %vm773_vm4, %v6557_v15 }
 0x1ae   :  { %1460 = vmatprep.mubr.f32.mxu0 %v11141_v3  ;;  %1897 = vmatprep.mubr.f32.mxu1 %v11141_v3 }
 0x1b1   :  { %5635 = vmatmul.mubr.msk.f32.vlgmr.msra.gmra.mrb[110].mxu0 %vm773_vm4, %v6447_v51  ;;  %5699 = vmatmul.mubr.msk.f32.gmra.mrb[120].mxu1 %vm773_vm4, %v6569_v18 }
 0x1b2   :  { %5858 = vmatpush3.msk.msra.mxu0 %vm870_vm3, %v6602_v21  ;;  %1466 = vmatprep.mubr.f32.mxu0 %v11141_v3  ;;  %vm11263_vm3 = vcmask 728064  }
 0x1b3   :  { %1903 = vmatprep.mubr.f32.mxu1 %v11141_v3 }
 0x1b4   :  { %v6810_v23 = vpop.f32.mrb[6].mxu0 }
 0x1b5   :  { %11538 = vst [vmem:[#allocation2_spill] sm:$0xff] %v6810_v23  ;;  %v6812_v24 = vpop.f32.mrb[7].mxu0  ;;  %5636 = vmatmul.mubr.msk.f32.gmra.mrb[112].mxu0 %vm773_vm4, %v6445_v50  ;;  %v2127_v25 = vrot.slane %v6810_v23, 4  ;;  %5700 = vmatmul.mubr.msk.f32.gmra.mrb[122].mxu1 %vm773_vm4, %v6567_v17 }
 0x1b6   :  { %11539 = vst [vmem:[#allocation3_spill] sm:$0xff] %v6812_v24  ;;  %1472 = vmatprep.mubr.f32.mxu0 %v11141_v3  ;;  %v2128_v27 = vrot.slane %v6812_v24, 4 }
 0x1b7   :  { %2135 = vrot.lane.b32.xlu0 %v2127_v25, %s11281_s0 }
 0x1b8   :  { %v970_v26 = vpop.f32.mrb[8].mxu0 }
 0x1b9   :  { %v972_v28 = vpop.f32.mrb[9].mxu0  ;;  %5637 = vmatmul.mubr.msk.f32.gmra.mrb[114].mxu0 %vm773_vm4, %v6455_v53  ;;  %v2219_v33 = vrot.slane %v970_v26, 4 }
 0x1ba   :  { %2183 = vrot.lane.b32.xlu1 %v972_v28, %s6187_s2  ;;  %1478 = vmatprep.mubr.f32.mxu0 %v11141_v3  ;;  %v2220_v29 = vrot.slane %v972_v28, 4 }
 0x1bb   :  { %2137 = vrot.lane.b32.xlu0 %v2128_v27, %s11281_s0 }
 0x1bc   :  { %v976_v30 = vpop.f32.mrb[10].mxu0 }
 0x1bd   :  { %5638 = vmatmul.mubr.msk.f32.gmra.mrb[116].mxu0 %vm773_vm4, %v6453_v52  ;;  %v978_v31 = vpop.f32.mrb[11].mxu0  ;;  %v2311_v39 = vrot.slane %v976_v30, 4 }
 0x1be   :  { %2229 = vrot.lane.b32.xlu1 %v2220_v29, %s11517_s23  ;;  %1484 = vmatprep.mubr.f32.mxu0 %v11141_v3  ;;  %v2312_v35 = vrot.slane %v978_v31, 4 }
 0x1bf   :  { %2181 = vrot.lane.b32.xlu0 %v970_v26, %s6187_s2 }
 0x1c0   :  { %v982_v32 = vpop.f32.mrb[12].mxu0 }
 0x1c1   :  { %v984_v34 = vpop.f32.mrb[13].mxu0  ;;  %5639 = vmatmul.mubr.msk.f32.gmra.mrb[118].mxu0 %vm773_vm4, %v6462_v55  ;;  %v2403_v45 = vrot.slane %v982_v32, 4 }
 0x1c2   :  { %2275 = vrot.lane.b32.xlu1 %v978_v31, %s11516_s24  ;;  %1490 = vmatprep.mubr.f32.mxu0 %v11141_v3  ;;  %v2404_v41 = vrot.slane %v984_v34, 4 }
 0x1c3   :  { %2227 = vrot.lane.b32.xlu0 %v2219_v33, %s11517_s23 }
 0x1c4   :  { %v988_v36 = vpop.f32.mrb[14].mxu0 }
 0x1c5   :  { %5640 = vmatmul.mubr.msk.f32.gmra.mrb[120].mxu0 %vm773_vm4, %v6460_v54  ;;  %v990_v37 = vpop.f32.mrb[15].mxu0  ;;  %v2495_v48 = vrot.slane %v988_v36, 4 }
 0x1c6   :  { %2321 = vrot.lane.b32.xlu1 %v2312_v35, %s11511_s25  ;;  %1496 = vmatprep.mubr.f32.mxu0 %v11141_v3  ;;  %v2496_v20 = vrot.slane %v990_v37, 4 }
 0x1c7   :  { %2273 = vrot.lane.b32.xlu0 %v976_v30, %s11516_s24 }
 0x1c8   :  { %v994_v38 = vpop.f32.mrb[16].mxu0 }
 0x1c9   :  { %5641 = vmatmul.mubr.msk.f32.gmra.mrb[122].mxu0 %vm773_vm4, %v6469_v57  ;;  %v996_v40 = vpop.f32.mrb[17].mxu0  ;;  %v2587_v26 = vrot.slane %v994_v38, 4 }
 0x1ca   :  { %2367 = vrot.lane.b32.xlu1 %v984_v34, %s11509_s26  ;;  %1502 = vmatprep.mubr.f32.mxu0 %v11141_v3  ;;  %v2588_v31 = vrot.slane %v996_v40, 4 }
 0x1cb   :  { %2319 = vrot.lane.b32.xlu0 %v2311_v39, %s11511_s25 }
 0x1cc   :  { %v1000_v42 = vpop.f32.mrb[18].mxu0 }
 0x1cd   :  { %5642 = vmatmul.mubr.msk.f32.gmra.mrb[124].mxu0 %vm773_vm4, %v6467_v56  ;;  %v6849_v43 = vpop.f32.mrb[19].mxu0 }
 0x1ce   :  { %2413 = vrot.lane.b32.xlu1 %v2404_v41, %s11507_s27  ;;  %1508 = vmatprep.mubr.f32.mxu0 %v11141_v3  ;;  %v2680_v41 = vrot.slane %v6849_v43, 4 }
 0x1cf   :  { %2365 = vrot.lane.b32.xlu0 %v982_v32, %s11509_s26 }
 0x1d0   :  { %v6854_v44 = vpop.f32.mrb[20].mxu0 }
 0x1d1   :  { %5643 = vmatmul.mubr.msk.f32.gmra.mrb[126].mxu0 %vm773_vm4, %v6476_v59  ;;  %v6858_v46 = vpop.f32.mrb[21].mxu0 }
 0x1d2   :  { %2457 = vrot.lane.b32.xlu1 %v988_v36, %s11499_s28  ;;  %1514 = vmatprep.mubr.f32.mxu0 %v11141_v3  ;;  %v2679_v36 = vrot.slane %v1000_v42, 4 }
 0x1d3   :  { %2411 = vrot.lane.b32.xlu0 %v2403_v45, %s11507_s27 }
 0x1d4   :  { %v6863_v47 = vpop.f32.mrb[22].mxu0 }
 0x1d5   :  { %5644 = vmatmul.mubr.msk.f32.gmra.mrb[128].mxu0 %vm773_vm4, %v6474_v58  ;;  %v6867_v49 = vpop.f32.mrb[23].mxu0 }
 0x1d6   :  { %2459 = vrot.lane.b32.xlu1 %v990_v37, %s11499_s28  ;;  %1520 = vmatprep.mubr.f32.mxu0 %v11141_v3 }
 0x1d7   :  { %2503 = vrot.lane.b32.xlu0 %v2495_v48, %s11497_s29 }
 0x1d8   :  { %v6872_v19 = vpop.f32.mrb[24].mxu0 }
 0x1d9   :  { %5645 = vmatmul.mubr.msk.f32.gmra.mrb[130].mxu0 %vm773_vm4, %v6483_v61  ;;  %v6876_v21 = vpop.f32.mrb[25].mxu0 }
 0x1da   :  { %2549 = vrot.lane.b32.xlu1 %v994_v38, %s11495_s30  ;;  %1526 = vmatprep.mubr.f32.mxu0 %v11141_v3 }
 0x1db   :  { %2505 = vrot.lane.b32.xlu0 %v2496_v20, %s11497_s29 }
 0x1dc   :  { %v6881_v22 = vpop.f32.mrb[26].mxu0  ;;  %v6883_v25 = vpop.f32.mrb[36].mxu1 }
 0x1dd   :  { %5646 = vmatmul.mubr.msk.f32.gmra.mrb[132].mxu0 %vm773_vm4, %v6481_v60  ;;  %v6887_v27 = vpop.f32.mrb[27].mxu0  ;;  %v6889_v28 = vpop.f32.mrb[37].mxu1 }
 0x1de   :  { %2551 = vrot.lane.b32.xlu1 %v996_v40, %s11495_s30  ;;  %1532 = vmatprep.mubr.f32.mxu0 %v11141_v3 }
 0x1df   :  { %2595 = vrot.lane.b32.xlu0 %v2587_v26, %s11493_s6 }
 0x1e0   :  { %v6894_v29 = vpop.f32.mrb[28].mxu0  ;;  %v6896_v30 = vpop.f32.mrb[38].mxu1 }
 0x1e1   :  { %5647 = vmatmul.mubr.msk.f32.gmra.mrb[134].mxu0 %vm773_vm4, %v6490_v63  ;;  %v6900_v32 = vpop.f32.mrb[29].mxu0  ;;  %v6902_v33 = vpop.f32.mrb[39].mxu1 }
 0x1e2   :  { %2641 = vrot.lane.b32.xlu1 %v1000_v42, %s11505_s1  ;;  %1538 = vmatprep.mubr.f32.mxu0 %v11141_v3 }
 0x1e3   :  { %2597 = vrot.lane.b32.xlu0 %v2588_v31, %s11493_s6 }
 0x1e4   :  { %v6907_v34 = vpop.f32.mrb[30].mxu0  ;;  %v6909_v35 = vpop.f32.mrb[40].mxu1 }
 0x1e5   :  { %5648 = vmatmul.mubr.msk.f32.gmra.mrb[136].mxu0 %vm773_vm4, %v6488_v62  ;;  %v6913_v37 = vpop.f32.mrb[31].mxu0  ;;  %v6915_v38 = vpop.f32.mrb[41].mxu1 }
 0x1e6   :  { %2643 = vrot.lane.b32.xlu1 %v6849_v43, %s11505_s1  ;;  %1544 = vmatprep.mubr.f32.mxu0 %v11141_v3  ;;  %v2771_v43 = vrot.slane %v6854_v44, 4 }
 0x1e7   :  { %2687 = vrot.lane.b32.xlu0 %v2679_v36, %s11503_s7 }
 0x1e8   :  { %v6921_v39 = vpop.f32.mrb[32].mxu0  ;;  %v6923_v40 = vpop.f32.mrb[42].mxu1 }
 0x1e9   :  { %5649 = vmatmul.mubr.msk.f32.gmra.mrb[138].mxu0 %vm773_vm4, %v6497_v1  ;;  %v6928_v42 = vpop.f32.mrb[33].mxu0  ;;  %v6930_v45 = vpop.f32.mrb[43].mxu1 }
 0x1ea   :  { %2733 = vrot.lane.b32.xlu1 %v6854_v44, %s11501_s8  ;;  %1550 = vmatprep.mubr.f32.mxu0 %v11141_v3  ;;  %v2772_v44 = vrot.slane %v6858_v46, 4 }
 0x1eb   :  { %2689 = vrot.lane.b32.xlu0 %v2680_v41, %s11503_s7 }
 0x1ec   :  { %v6936_v48 = vpop.f32.mrb[34].mxu0  ;;  %v6938_v20 = vpop.f32.mrb[44].mxu1 }
 0x1ed   :  { %5650 = vmatmul.mubr.msk.f32.gmra.mrb[140].mxu0 %vm773_vm4, %v6495_v0  ;;  %v6943_v26 = vpop.f32.mrb[35].mxu0  ;;  %v6945_v31 = vpop.f32.mrb[45].mxu1 }
 0x1ee   :  { %2735 = vrot.lane.b32.xlu1 %v6858_v46, %s11501_s8  ;;  %1556 = vmatprep.mubr.f32.mxu0 %v11141_v3  ;;  %v2863_v46 = vrot.slane %v6863_v47, 4 }
 0x1ef   :  { %2779 = vrot.lane.b32.xlu0 %v2771_v43, %s11449_s9 }
 0x1f0   :  { %v6951_v36 = vpop.f32.mrb[36].mxu0  ;;  %v6953_v41 = vpop.f32.mrb[46].mxu1 }
 0x1f1   :  { %11540 = vst [vmem:[#allocation4_spill] sm:$0xff] %v6951_v36  ;;  %11541 = vst [vmem:[#allocation5_spill] sm:$0xff] %v6953_v41  ;;  %5651 = vmatmul.mubr.msk.f32.gmra.mrb[142].mxu0 %vm773_vm4, %v6504_v4  ;;  %v6958_v24 = vpop.f32.mrb[37].mxu0  ;;  %v6960_v23 = vpop.f32.mrb[47].mxu1 }
 0x1f2   :  { %11542 = vst [vmem:[#allocation6_spill] sm:$0xff] %v6958_v24  ;;  %2825 = vrot.lane.b32.xlu1 %v6863_v47, %s11168_s3  ;;  %1562 = vmatprep.mubr.f32.mxu0 %v11141_v3  ;;  %v2864_v47 = vrot.slane %v6867_v49, 4 }
 0x1f3   :  { %2781 = vrot.lane.b32.xlu0 %v2772_v44, %s11449_s9 }
 0x1f4   :  { %v1060_v43 = vpop.f32.mrb[38].mxu0  ;;  %v6966_v36 = vpop.f32.mrb[48].mxu1 }
 0x1f5   :  { %11543 = vst [vmem:[#allocation7_spill] sm:$0xff] %v6966_v36  ;;  %5652 = vmatmul.mubr.msk.f32.gmra.mrb[144].mxu0 %vm773_vm4, %v6502_v2  ;;  %v6971_v41 = vpop.f32.mrb[39].mxu0  ;;  %v6973_v24 = vpop.f32.mrb[49].mxu1 }
 0x1f6   :  { %11544 = vst [vmem:[#allocation8_spill] sm:$0xff] %v6971_v41  ;;  %2827 = vrot.lane.b32.xlu1 %v6867_v49, %s11168_s3  ;;  %1568 = vmatprep.mubr.f32.mxu0 %v11141_v3  ;;  %v2955_v49 = vrot.slane %v6872_v19, 4 }
 0x1f7   :  { %2871 = vrot.lane.b32.xlu0 %v2863_v46, %s11178_s10 }
 0x1f8   :  { %v1065_v44 = vpop.f32.mrb[40].mxu0  ;;  %v6979_v43 = vpop.f32.mrb[50].mxu1 }
 0x1f9   :  { %11545 = vst [vmem:[#allocation9_spill] sm:$0xff] %v6979_v43  ;;  %5653 = vmatmul.mubr.msk.f32.gmra.mrb[146].mxu0 %vm773_vm4, %v6511_v6  ;;  %v6984_v36 = vpop.f32.mrb[41].mxu0  ;;  %v6986_v41 = vpop.f32.mrb[51].mxu1 }
 0x1fa   :  { %11546 = vst [vmem:[#allocation10_spill] sm:$0xff] %v6984_v36  ;;  %2917 = vrot.lane.b32.xlu1 %v6872_v19, %s11447_s11  ;;  %1574 = vmatprep.mubr.f32.mxu0 %v11141_v3  ;;  %v2956_v19 = vrot.slane %v6876_v21, 4 }
 0x1fb   :  { %2873 = vrot.lane.b32.xlu0 %v2864_v47, %s11178_s10 }
 0x1fc   :  { %v1070_v46 = vpop.f32.mrb[42].mxu0  ;;  %v6992_v44 = vpop.f32.mrb[52].mxu1 }
 0x1fd   :  { %11547 = vst [vmem:[#allocation11_spill] sm:$0xff] %v6992_v44  ;;  %5654 = vmatmul.mubr.msk.f32.gmra.mrb[148].mxu0 %vm773_vm4, %v6509_v5  ;;  %v6997_v43 = vpop.f32.mrb[43].mxu0  ;;  %v6999_v36 = vpop.f32.mrb[53].mxu1 }
 0x1fe   :  { %11548 = vst [vmem:[#allocation12_spill] sm:$0xff] %v6997_v43  ;;  %2919 = vrot.lane.b32.xlu1 %v6876_v21, %s11447_s11  ;;  %1580 = vmatprep.mubr.f32.mxu0 %v11141_v3 }
 0x1ff   :  { %2963 = vrot.lane.b32.xlu0 %v2955_v49, %s11432_s12 }
 0x200   :  { %v1075_v47 = vpop.f32.mrb[44].mxu0  ;;  %v7005_v46 = vpop.f32.mrb[54].mxu1 }
 0x201   :  { %11549 = vst [vmem:[#allocation13_spill] sm:$0xff] %v7005_v46  ;;  %5655 = vmatmul.mubr.msk.f32.gmra.mrb[150].mxu0 %vm773_vm4, %v6518_v8  ;;  %v7010_v44 = vpop.f32.mrb[45].mxu0  ;;  %v7012_v43 = vpop.f32.mrb[55].mxu1 }
 0x202   :  { %11550 = vst [vmem:[#allocation14_spill] sm:$0xff] %v7010_v44  ;;  %3009 = vrot.lane.b32.xlu1 %v6881_v22, %s11430_s13  ;;  %1586 = vmatprep.mubr.f32.mxu0 %v11141_v3 }
 0x203   :  { %2965 = vrot.lane.b32.xlu0 %v2956_v19, %s11432_s12 }
 0x204   :  { %v1080_v49 = vpop.f32.mrb[46].mxu0  ;;  %v7018_v47 = vpop.f32.mrb[56].mxu1 }
 0x205   :  { %11551 = vst [vmem:[#allocation15_spill] sm:$0xff] %v7018_v47  ;;  %5656 = vmatmul.mubr.msk.f32.gmra.mrb[152].mxu0 %vm773_vm4, %v6516_v7  ;;  %v7022_v21 = vpop.f32.mrb[47].mxu0  ;;  %v7024_v46 = vpop.f32.mrb[57].mxu1  ;;  %v3047_v49 = vrot.slane %v6881_v22, 4 }
 0x206   :  { %11552 = vst [vmem:[#allocation16_spill] sm:$0xff] %v7022_v21  ;;  %11553 = vst [vmem:[#allocation17_spill] sm:$0xff] %v7024_v46  ;;  %3011 = vrot.lane.b32.xlu1 %v6887_v27, %s11430_s13  ;;  %1592 = vmatprep.mubr.f32.mxu0 %v11141_v3 }
 0x207   :  { %3893 = vrot.lane.b32.xlu0 %v6883_v25, %s11499_s28 }
 0x208   :  { %v1085_v44 = vpop.f32.mrb[48].mxu0  ;;  %v7031_v19 = vpop.f32.mrb[58].mxu1 }
 0x209   :  { %11554 = vst [vmem:[#allocation18_spill] sm:$0xff] %v7031_v19  ;;  %v7034_v47 = vpop.f32.mrb[49].mxu0  ;;  %5657 = vmatmul.mubr.msk.f32.gmra.mrb[154].mxu0 %vm773_vm4, %v6529_v10  ;;  %v7038_v21 = vpop.f32.mrb[59].mxu1  ;;  %v3929_v44 = vrot.slane %v6883_v25, 4 }
 0x20a   :  { %11555 = vst [vmem:[#allocation19_spill] sm:$0xff] %v7034_v47  ;;  %11556 = vst [vmem:[#allocation20_spill] sm:$0xff] %v7038_v21  ;;  %3895 = vrot.lane.b32.xlu1 %v6889_v28, %s11499_s28  ;;  %1598 = vmatprep.mubr.f32.mxu0 %v11141_v3  ;;  %v3048_v47 = vrot.slane %v6887_v27, 4 }
 0x20b   :  { %3055 = vrot.lane.b32.xlu0 %v3047_v49, %s11428_s14 }
 0x20c   :  { %v7045_v19 = vpop.f32.mrb[60].mxu1  ;;  %v1090_v22 = vpop.f32.mrb[50].mxu0 }
 0x20d   :  { %11557 = vst [vmem:[#allocation21_spill] sm:$0xff] %v7045_v19  ;;  %5658 = vmatmul.mubr.msk.f32.gmra.mrb[156].mxu0 %vm773_vm4, %v6527_v9  ;;  %v7050_v46 = vpop.f32.mrb[61].mxu1  ;;  %v7052_v21 = vpop.f32.mrb[51].mxu0  ;;  %v3930_v22 = vrot.slane %v6889_v28, 4 }
 0x20e   :  { %3938 = vrot.lane.b32.xlu1 %v3929_v44, %s11497_s29  ;;  %1604 = vmatprep.mubr.f32.mxu0 %v11141_v3 }
 0x20f   :  { %3057 = vrot.lane.b32.xlu0 %v3048_v47, %s11428_s14 }
 0x210   :  { %v7057_v49 = vpop.f32.mrb[62].mxu1  ;;  %v1095_v25 = vpop.f32.mrb[52].mxu0 }
 0x211   :  { %5659 = vmatmul.mubr.msk.f32.gmra.mrb[158].mxu0 %vm773_vm4, %v6539_v12  ;;  %v7062_v27 = vpop.f32.mrb[63].mxu1  ;;  %v7064_v19 = vpop.f32.mrb[53].mxu0 }
 0x212   :  { %11558 = vst [vmem:[#allocation22_spill] sm:$0xff] %v7064_v19  ;;  %3101 = vrot.lane.b32.xlu1 %v6894_v29, %s11426_s15  ;;  %1610 = vmatprep.mubr.f32.mxu0 %v11141_v3 }
 0x213   :  { %3940 = vrot.lane.b32.xlu0 %v3930_v22, %s11497_s29 }
 0x214   :  { %v7070_v47 = vpop.f32.mrb[64].mxu1  ;;  %v1100_v44 = vpop.f32.mrb[54].mxu0 }
 0x215   :  { %11559 = vst [vmem:[#allocation23_spill] sm:$0xff] %v7070_v47  ;;  %5660 = vmatmul.mubr.msk.f32.gmra.mrb[160].mxu0 %vm773_vm4, %v6537_v11  ;;  %v7074_v28 = vpop.f32.mrb[65].mxu1  ;;  %v7076_v25 = vpop.f32.mrb[55].mxu0  ;;  %v3139_v44 = vrot.slane %v6894_v29, 4 }
 0x216   :  { %11560 = vst [vmem:[#allocation24_spill] sm:$0xff] %v7074_v28  ;;  %11561 = vst [vmem:[#allocation25_spill] sm:$0xff] %v7076_v25  ;;  %3103 = vrot.lane.b32.xlu1 %v6900_v32, %s11426_s15  ;;  %1616 = vmatprep.mubr.f32.mxu0 %v11141_v3  ;;  %v3140_v25 = vrot.slane %v6900_v32, 4 }
 0x217   :  { %3983 = vrot.lane.b32.xlu0 %v6896_v30, %s11495_s30 }
 0x218   :  { %v7083_v19 = vpop.f32.mrb[66].mxu1  ;;  %v1105_v22 = vpop.f32.mrb[56].mxu0 }
 0x219   :  { %11562 = vst [vmem:[#allocation26_spill] sm:$0xff] %v7083_v19  ;;  %5661 = vmatmul.mubr.msk.f32.gmra.mrb[162].mxu0 %vm773_vm4, %v6549_v14  ;;  %v7088_v47 = vpop.f32.mrb[67].mxu1  ;;  %v7090_v28 = vpop.f32.mrb[57].mxu0  ;;  %v4019_v19 = vrot.slane %v6896_v30, 4 }
 0x21a   :  { %11563 = vst [vmem:[#allocation27_spill] sm:$0xff] %v7088_v47  ;;  %11564 = vst [vmem:[#allocation28_spill] sm:$0xff] %v7090_v28  ;;  %3985 = vrot.lane.b32.xlu1 %v6902_v33, %s11495_s30  ;;  %1622 = vmatprep.mubr.f32.mxu0 %v11141_v3 }
 0x21b   :  { %3147 = vrot.lane.b32.xlu0 %v3139_v44, %s11422_s16 }
 0x21c   :  { %v7097_v22 = vpop.f32.mrb[68].mxu1  ;;  %v1110_v29 = vpop.f32.mrb[58].mxu0 }
 0x21d   :  { %11565 = vst [vmem:[#allocation29_spill] sm:$0xff] %v7097_v22  ;;  %5662 = vmatmul.mubr.msk.f32.gmra.mrb[164].mxu0 %vm773_vm4, %v6547_v13  ;;  %v7102_v47 = vpop.f32.mrb[69].mxu1  ;;  %v7104_v28 = vpop.f32.mrb[59].mxu0  ;;  %v4020_v29 = vrot.slane %v6902_v33, 4 }
 0x21e   :  { %4028 = vrot.lane.b32.xlu1 %v4019_v19, %s11493_s6  ;;  %1628 = vmatprep.mubr.f32.mxu0 %v11141_v3 }
 0x21f   :  { %3149 = vrot.lane.b32.xlu0 %v3140_v25, %s11422_s16 }
 0x220   :  { %v7109_v44 = vpop.f32.mrb[70].mxu1  ;;  %v1115_v30 = vpop.f32.mrb[60].mxu0 }
 0x221   :  { %11566 = vst [vmem:[#allocation30_spill] sm:$0xff] %v7109_v44  ;;  %5663 = vmatmul.mubr.msk.f32.gmra.mrb[166].mxu0 %vm773_vm4, %v6559_v16  ;;  %v7114_v32 = vpop.f32.mrb[71].mxu1  ;;  %v7116_v22 = vpop.f32.mrb[61].mxu0 }
 0x222   :  { %11567 = vst [vmem:[#allocation31_spill] sm:$0xff] %v7114_v32  ;;  %11568 = vst [vmem:[#allocation32_spill] sm:$0xff] %v7116_v22  ;;  %3193 = vrot.lane.b32.xlu1 %v6907_v34, %s11420_s17  ;;  %1634 = vmatprep.mubr.f32.mxu0 %v11141_v3 }
 0x223   :  { %4030 = vrot.lane.b32.xlu0 %v4020_v29, %s11493_s6 }
 0x224   :  { %v7122_v19 = vpop.f32.mrb[72].mxu1  ;;  %v1120_v25 = vpop.f32.mrb[62].mxu0 }
 0x225   :  { %11569 = vst [vmem:[#allocation33_spill] sm:$0xff] %v7122_v19  ;;  %5664 = vmatmul.mubr.msk.f32.gmra.mrb[168].mxu0 %vm773_vm4, %v6557_v15  ;;  %v7126_v33 = vpop.f32.mrb[73].mxu1  ;;  %v7128_v30 = vpop.f32.mrb[63].mxu0  ;;  %v3231_v25 = vrot.slane %v6907_v34, 4 }
 0x226   :  { %11570 = vst [vmem:[#allocation34_spill] sm:$0xff] %v7126_v33  ;;  %11571 = vst [vmem:[#allocation35_spill] sm:$0xff] %v7128_v30  ;;  %3195 = vrot.lane.b32.xlu1 %v6913_v37, %s11420_s17  ;;  %1640 = vmatprep.mubr.f32.mxu0 %v11141_v3 }
 0x227   :  { %4073 = vrot.lane.b32.xlu0 %v6909_v35, %s11505_s1 }
 0x228   :  { %v7135_v32 = vpop.f32.mrb[74].mxu1  ;;  %v1125_v29 = vpop.f32.mrb[64].mxu0 }
 0x229   :  { %11572 = vst [vmem:[#allocation36_spill] sm:$0xff] %v7135_v32  ;;  %5665 = vmatmul.mubr.msk.f32.gmra.mrb[170].mxu0 %vm773_vm4, %v6569_v18  ;;  %v7140_v19 = vpop.f32.mrb[75].mxu1  ;;  %v7142_v33 = vpop.permute.xlu0 %2135  ;;  %v4109_v29 = vrot.slane %v6909_v35, 4 }
 0x22a   :  { %11573 = vst [vmem:[#allocation37_spill] sm:$0xff] %v7140_v19  ;;  %4075 = vrot.lane.b32.xlu1 %v6915_v38, %s11505_s1  ;;  %1646 = vmatprep.mubr.f32.mxu0 %v11141_v3  ;;  %v7147_v30 = vpop.f32.mrb[65].mxu0  ;;  %v3232_v19 = vrot.slane %v6913_v37, 4 }
 0x22b   :  { %11574 = vst [vmem:[#allocation38_spill] sm:$0xff] %v7147_v30  ;;  %3239 = vrot.lane.b32.xlu0 %v3231_v25, %s11354_s18 }
 0x22c   :  { %v7151_v34 = vpop.f32.mrb[76].mxu1  ;;  %v7153_v32 = vpop.permute.xlu1 %2183 }
 0x22d   :  { %11575 = vst [vmem:[#allocation39_spill] sm:$0xff] %v7151_v34  ;;  %5666 = vmatmul.mubr.msk.f32.gmra.mrb[172].mxu0 %vm773_vm4, %v6567_v17  ;;  %v7158_v22 = vpop.f32.mrb[77].mxu1  ;;  %v7160_v44 = vpop.permute.xlu0 %2137  ;;  %v4110_v34 = vrot.slane %v6915_v38, 4 }
 0x22e   :  { %11576 = vst [vmem:[#allocation40_spill] sm:$0xff] %v7158_v22  ;;  %11577 = vst [vmem:[#allocation41_spill] sm:$0xff] %v7160_v44  ;;  %5859 = vmatprep.mubr.msk.f32.mxu0 %vm773_vm4, %v6447_v51  ;;  %4118 = vrot.lane.b32.xlu1 %v4109_v29, %s11503_s7  ;;  %v1130_v25 = vpop.f32.mrb[66].mxu0 }
 0x22f   :  { %3241 = vrot.lane.b32.xlu0 %v3232_v19, %s11354_s18  ;;  %v7166_v35 = vpop.f32.mrb[67].mxu0 }
 0x230   :  { %v7168_v3 = vpop.f32.mrb[78].mxu1  ;;  %v7170_v37 = vpop.permute.xlu1 %2229 }
 0x231   :  { %11578 = vst [vmem:[#allocation42_spill] sm:$0xff] %v7168_v3  ;;  %v7173_v30 = vpop.f32.mrb[79].mxu1  ;;  %5860 = vmatmul.mubr.msk.f32.vlgmr.msra.gmra.mrb[174].mxu0 %vm773_vm4, %v6445_v50  ;;  %v7177_v22 = vpop.permute.xlu0 %2181 }
 0x232   :  { %11579 = vst [vmem:[#allocation43_spill] sm:$0xff] %v7173_v30  ;;  %5862 = vmatprep.mubr.msk.f32.mxu0 %vm773_vm4, %v6455_v53  ;;  %3285 = vrot.lane.b32.xlu1 %v6921_v39, %s11418_s19  ;;  %v1135_v51 = vpop.f32.mrb[68].mxu0 }
 0x233   :  { %4120 = vrot.lane.b32.xlu0 %v4110_v34, %s11503_s7  ;;  %v7184_v19 = vpop.f32.mrb[69].mxu0 }
 0x234   :  { %v7186_v38 = vpop.f32.mrb[80].mxu1  ;;  %v7188_v29 = vpop.permute.xlu1 %2275 }
 0x235   :  { %11580 = vst [vmem:[#allocation44_spill] sm:$0xff] %v7186_v38  ;;  %v7190_v25 = vpop.f32.mrb[70].mxu0  ;;  %v7192_v50 = vpop.f32.mrb[81].mxu1  ;;  %5863 = vmatmul.mubr.msk.f32.gmra.mrb[176].mxu0 %vm773_vm4, %v6453_v52 }
 0x236   :  { %11581 = vst [vmem:[#allocation45_spill] sm:$0xff] %v7190_v25  ;;  %11582 = vst [vmem:[#allocation46_spill] sm:$0xff] %v7192_v50  ;;  %v7196_v53 = vpop.permute.xlu0 %2227  ;;  %v7198_v30 = vpop.f32.mrb[71].mxu0  ;;  %5865 = vmatprep.mubr.msk.f32.mxu0 %vm773_vm4, %v6462_v55  ;;  %3287 = vrot.lane.b32.xlu1 %v6928_v42, %s11418_s19  ;;  %v3323_v50 = vrot.slane %v6921_v39, 4  ;;  %v4199_v39 = vrot.slane %v6923_v40, 4 }
 0x237   :  { %11583 = vst [vmem:[#allocation47_spill] sm:$0xff] %v7198_v30  ;;  %4163 = vrot.lane.b32.xlu0 %v6923_v40, %s11501_s8 }
 0x238   :  { %v7206_v34 = vpop.f32.mrb[82].mxu1  ;;  %v7208_v51 = vpop.permute.xlu1 %2321 }
 0x239   :  { %11584 = vst [vmem:[#allocation48_spill] sm:$0xff] %v7206_v34  ;;  %v7211_v52 = vpop.f32.mrb[72].mxu0  ;;  %v7213_v25 = vpop.f32.mrb[83].mxu1  ;;  %5866 = vmatmul.mubr.msk.f32.gmra.mrb[178].mxu0 %vm773_vm4, %v6460_v54  ;;  %v3324_v54 = vrot.slane %v6928_v42, 4 }
 0x23a   :  { %11585 = vst [vmem:[#allocation49_spill] sm:$0xff] %v7213_v25  ;;  %v7217_v55 = vpop.permute.xlu0 %2273  ;;  %v7219_v30 = vpop.f32.mrb[73].mxu0  ;;  %5868 = vmatprep.mubr.msk.f32.mxu0 %vm773_vm4, %v6469_v57  ;;  %4165 = vrot.lane.b32.xlu1 %v6930_v45, %s11501_s8 }
 0x23b   :  { %11586 = vst [vmem:[#allocation50_spill] sm:$0xff] %v7219_v30  ;;  %3331 = vrot.lane.b32.xlu0 %v3323_v50, %s11360_s20  ;;  %v4200_v50 = vrot.slane %v6930_v45, 4 }
 0x23c   :  { %v7227_v38 = vpop.f32.mrb[84].mxu1  ;;  %v7229_v25 = vpop.permute.xlu1 %2367 }
 0x23d   :  { %11587 = vst [vmem:[#allocation51_spill] sm:$0xff] %v7227_v38  ;;  %v7232_v3 = vpop.f32.mrb[74].mxu0  ;;  %v7234_v30 = vpop.f32.mrb[85].mxu1  ;;  %5869 = vmatmul.mubr.msk.f32.gmra.mrb[180].mxu0 %vm773_vm4, %v6467_v56 }
 0x23e   :  { %11588 = vst [vmem:[#allocation52_spill] sm:$0xff] %v7232_v3  ;;  %11589 = vst [vmem:[#allocation53_spill] sm:$0xff] %v7234_v30  ;;  %v7238_v57 = vpop.permute.xlu0 %2319  ;;  %v7240_v34 = vpop.f32.mrb[75].mxu0  ;;  %5871 = vmatprep.mubr.msk.f32.mxu0 %vm773_vm4, %v6476_v59  ;;  %4208 = vrot.lane.b32.xlu1 %v4199_v39, %s11449_s9  ;;  %v11692_v3 = vld [vmem:[#allocation14_spill] sm:$0xff] }
 0x23f   :  { %11590 = vst [vmem:[#allocation54_spill] sm:$0xff] %v7240_v34  ;;  %3333 = vrot.lane.b32.xlu0 %v3324_v54, %s11360_s20 }
 0x240   :  { %v7246_v40 = vpop.f32.mrb[86].mxu1  ;;  %v7248_v42 = vpop.permute.xlu1 %2413 }
 0x241   :  { %11591 = vst [vmem:[#allocation55_spill] sm:$0xff] %v7246_v40  ;;  %11592 = vst [vmem:[#allocation56_spill] sm:$0xff] %v7248_v42  ;;  %v7251_v30 = vpop.f32.mrb[76].mxu0  ;;  %v7253_v56 = vpop.f32.mrb[87].mxu1  ;;  %5872 = vmatmul.mubr.msk.f32.gmra.mrb[182].mxu0 %vm773_vm4, %v6474_v58 }
 0x242   :  { %11593 = vst [vmem:[#allocation57_spill] sm:$0xff] %v7251_v30  ;;  %11594 = vst [vmem:[#allocation58_spill] sm:$0xff] %v7253_v56  ;;  %v7257_v34 = vpop.permute.xlu0 %2365  ;;  %v7259_v59 = vpop.f32.mrb[77].mxu0  ;;  %5874 = vmatprep.mubr.msk.f32.mxu0 %vm773_vm4, %v6483_v61  ;;  %3377 = vrot.lane.b32.xlu1 %v6936_v48, %s11412_s21 }
 0x243   :  { %11595 = vst [vmem:[#allocation59_spill] sm:$0xff] %v7259_v59  ;;  %4210 = vrot.lane.b32.xlu0 %v4200_v50, %s11449_s9 }
 0x244   :  { %v7266_v45 = vpop.f32.mrb[88].mxu1  ;;  %v7268_v39 = vpop.permute.xlu1 %2457 }
 0x245   :  { %11596 = vst [vmem:[#allocation60_spill] sm:$0xff] %v7266_v45  ;;  %v7270_v54 = vpop.f32.mrb[78].mxu0  ;;  %v7272_v58 = vpop.f32.mrb[89].mxu1  ;;  %5875 = vmatmul.mubr.msk.f32.gmra.mrb[184].mxu0 %vm773_vm4, %v6481_v60 }
 0x246   :  { %11597 = vst [vmem:[#allocation61_spill] sm:$0xff] %v7270_v54  ;;  %11598 = vst [vmem:[#allocation62_spill] sm:$0xff] %v7272_v58  ;;  %v7276_v56 = vpop.permute.xlu0 %2411  ;;  %v7278_v61 = vpop.f32.mrb[79].mxu0  ;;  %5877 = vmatprep.mubr.msk.f32.mxu0 %vm773_vm4, %v6490_v63  ;;  %3379 = vrot.lane.b32.xlu1 %v6943_v26, %s11412_s21  ;;  %v3415_v58 = vrot.slane %v6936_v48, 4  ;;  %v4289_v48 = vrot.slane %v6938_v20, 4 }
 0x247   :  { %11599 = vst [vmem:[#allocation63_spill] sm:$0xff] %v7278_v61  ;;  %4253 = vrot.lane.b32.xlu0 %v6938_v20, %s11168_s3 }
 0x248   :  { %v7286_v50 = vpop.f32.mrb[90].mxu1  ;;  %v7288_v59 = vpop.permute.xlu1 %2459 }
 0x249   :  { %11600 = vst [vmem:[#allocation64_spill] sm:$0xff] %v7286_v50  ;;  %11601 = vst [vmem:[#allocation65_spill] sm:$0xff] %v7288_v59  ;;  %v7291_v60 = vpop.f32.mrb[80].mxu0  ;;  %v7293_v45 = vpop.f32.mrb[91].mxu1  ;;  %5878 = vmatmul.mubr.msk.f32.gmra.mrb[186].mxu0 %vm773_vm4, %v6488_v62  ;;  %v3416_v62 = vrot.slane %v6943_v26, 4 }
 0x24a   :  { %11602 = vst [vmem:[#allocation66_spill] sm:$0xff] %v7291_v60  ;;  %11603 = vst [vmem:[#allocation67_spill] sm:$0xff] %v7293_v45  ;;  %v7297_v63 = vpop.permute.xlu0 %2503  ;;  %v7299_v61 = vpop.f32.mrb[81].mxu0  ;;  %5880 = vmatprep.mubr.msk.f32.mxu0 %vm773_vm4, %v6497_v1  ;;  %4255 = vrot.lane.b32.xlu1 %v6945_v31, %s11168_s3  ;;  %s11406_s3 = smov 26  }
 0x24b   :  { %11604 = vst [vmem:[#allocation68_spill] sm:$0xff] %v7299_v61  ;;  %3423 = vrot.lane.b32.xlu0 %v3415_v58, %s11416_s22  ;;  %v4290_v58 = vrot.slane %v6945_v31, 4 }
 0x24c   :  { %v7307_v50 = vpop.f32.mrb[92].mxu1  ;;  %v7309_v45 = vpop.permute.xlu1 %2549 }
 0x24d   :  { %11605 = vst [vmem:[#allocation69_spill] sm:$0xff] %v7307_v50  ;;  %v7312_v60 = vpop.f32.mrb[82].mxu0  ;;  %v7314_v61 = vpop.f32.mrb[93].mxu1  ;;  %5881 = vmatmul.mubr.msk.f32.gmra.mrb[188].mxu0 %vm773_vm4, %v6495_v0 }
 0x24e   :  { %11606 = vst [vmem:[#allocation70_spill] sm:$0xff] %v7312_v60  ;;  %11607 = vst [vmem:[#allocation71_spill] sm:$0xff] %v7314_v61  ;;  %v7318_v1 = vpop.permute.xlu0 %2505  ;;  %v7320_v54 = vpop.f32.mrb[83].mxu0  ;;  %5883 = vmatprep.mubr.msk.f32.mxu0 %vm773_vm4, %v6504_v4  ;;  %4298 = vrot.lane.b32.xlu1 %v4289_v48, %s11178_s10  ;;  %v11615_v48 = vld [vmem:[#allocation4_spill] sm:$0xff] }
 0x24f   :  { %11608 = vst [vmem:[#allocation72_spill] sm:$0xff] %v7318_v1  ;;  %11609 = vst [vmem:[#allocation73_spill] sm:$0xff] %v7320_v54  ;;  %3425 = vrot.lane.b32.xlu0 %v3416_v62, %s11416_s22 }
 0x250   :  { %v7326_v20 = vpop.f32.mrb[94].mxu1  ;;  %v7328_v26 = vpop.permute.xlu1 %2551 }
 0x251   :  { %11610 = vst [vmem:[#allocation74_spill] sm:$0xff] %v7326_v20  ;;  %11611 = vst [vmem:[#allocation75_spill] sm:$0xff] %v7328_v26  ;;  %v7331_v61 = vpop.f32.mrb[84].mxu0  ;;  %v7333_v0 = vpop.f32.mrb[95].mxu1  ;;  %5884 = vmatmul.mubr.msk.f32.gmra.mrb[190].mxu0 %vm773_vm4, %v6502_v2 }
 0x252   :  { %11612 = vst [vmem:[#allocation76_spill] sm:$0xff] %v7331_v61  ;;  %11613 = vst [vmem:[#allocation77_spill] sm:$0xff] %v7333_v0  ;;  %v7337_v50 = vpop.permute.xlu0 %2595  ;;  %v7339_v4 = vpop.f32.mrb[85].mxu0  ;;  %5886 = vmatprep.mubr.msk.f32.mxu0 %vm773_vm4, %v6511_v6  ;;  %3469 = vrot.lane.b32.xlu1 %v11615_v48, %s11406_s3 }
 0x253   :  { %11614 = vst [vmem:[#allocation78_spill] sm:$0xff] %v7339_v4  ;;  %4300 = vrot.lane.b32.xlu0 %v4290_v58, %s11178_s10  ;;  %v11621_v58 = vld [vmem:[#allocation6_spill] sm:$0xff]  ;;  %s11288_s10 = smov 25  }
 0x254   :  { %v7346_v31 = vpop.f32.mrb[96].mxu1  ;;  %v7348_v62 = vpop.permute.xlu1 %2641 }
 0x255   :  { %11616 = vst [vmem:[#allocation4_spill] sm:$0xff] %v7346_v31  ;;  %v7350_v0 = vpop.f32.mrb[86].mxu0  ;;  %v7352_v2 = vpop.f32.mrb[97].mxu1  ;;  %5887 = vmatmul.mubr.msk.f32.gmra.mrb[192].mxu0 %vm773_vm4, %v6509_v5  ;;  %v11622_v31 = vld [vmem:[#allocation5_spill] sm:$0xff] }
 0x256   :  { %11617 = vst [vmem:[#allocation79_spill] sm:$0xff] %v7350_v0  ;;  %11618 = vst [vmem:[#allocation80_spill] sm:$0xff] %v7352_v2  ;;  %v7356_v20 = vpop.permute.xlu0 %2597  ;;  %v7358_v6 = vpop.f32.mrb[87].mxu0  ;;  %5889 = vmatprep.mubr.msk.f32.mxu0 %vm773_vm4, %v6518_v8  ;;  %3471 = vrot.lane.b32.xlu1 %v11621_v58, %s11406_s3  ;;  %v3507_v2 = vrot.slane %v11615_v48, 4  ;;  %v4379_v48 = vrot.slane %v11622_v31, 4 }
 0x257   :  { %11619 = vst [vmem:[#allocation81_spill] sm:$0xff] %v7356_v20  ;;  %11620 = vst [vmem:[#allocation82_spill] sm:$0xff] %v7358_v6  ;;  %4343 = vrot.lane.b32.xlu0 %v11622_v31, %s11447_s11 }
 0x258   :  { %v7366_v4 = vpop.f32.mrb[98].mxu1  ;;  %v7368_v0 = vpop.permute.xlu1 %2643 }
 0x259   :  { %11623 = vst [vmem:[#allocation6_spill] sm:$0xff] %v7366_v4  ;;  %11624 = vst [vmem:[#allocation5_spill] sm:$0xff] %v7368_v0  ;;  %v7371_v5 = vpop.f32.mrb[88].mxu0  ;;  %v7373_v61 = vpop.f32.mrb[99].mxu1  ;;  %5890 = vmatmul.mubr.msk.f32.gmra.mrb[194].mxu0 %vm773_vm4, %v6516_v7  ;;  %v3508_v7 = vrot.slane %v11621_v58, 4  ;;  %v4380_v58 = vrot.slane %v6960_v23, 4 }
 0x25a   :  { %11625 = vst [vmem:[#allocation83_spill] sm:$0xff] %v7371_v5  ;;  %11626 = vst [vmem:[#allocation84_spill] sm:$0xff] %v7373_v61  ;;  %v7377_v8 = vpop.permute.xlu0 %2687  ;;  %v7379_v6 = vpop.f32.mrb[89].mxu0  ;;  %5892 = vmatprep.mubr.msk.f32.mxu0 %vm773_vm4, %v6529_v10  ;;  %4345 = vrot.lane.b32.xlu1 %v6960_v23, %s11447_s11  ;;  %v11636_v23 = vld [vmem:[#allocation7_spill] sm:$0xff] }
 0x25b   :  { %11627 = vst [vmem:[#allocation85_spill] sm:$0xff] %v7379_v6  ;;  %3515 = vrot.lane.b32.xlu0 %v3507_v2, %s11288_s10 }
 0x25c   :  { %v7387_v4 = vpop.f32.mrb[100].mxu1  ;;  %v7389_v61 = vpop.permute.xlu1 %2733 }
 0x25d   :  { %11628 = vst [vmem:[#allocation86_spill] sm:$0xff] %v7387_v4  ;;  %v7392_v5 = vpop.f32.mrb[90].mxu0  ;;  %v7394_v6 = vpop.f32.mrb[101].mxu1  ;;  %5893 = vmatmul.mubr.msk.f32.gmra.mrb[196].mxu0 %vm773_vm4, %v6527_v9 }
 0x25e   :  { %11629 = vst [vmem:[#allocation87_spill] sm:$0xff] %v7392_v5  ;;  %11630 = vst [vmem:[#allocation88_spill] sm:$0xff] %v7394_v6  ;;  %v7398_v10 = vpop.permute.xlu0 %2689  ;;  %v7400_v54 = vpop.f32.mrb[91].mxu0  ;;  %5895 = vmatprep.mubr.msk.f32.mxu0 %vm773_vm4, %v6539_v12  ;;  %4388 = vrot.lane.b32.xlu1 %v4379_v48, %s11432_s12  ;;  %v4469_v48 = vrot.slane %v11636_v23, 4  ;;  %v4560_v5 = vrot.slane %v6986_v41, 4 }
 0x25f   :  { %11631 = vst [vmem:[#allocation89_spill] sm:$0xff] %v7400_v54  ;;  %3517 = vrot.lane.b32.xlu0 %v3508_v7, %s11288_s10 }
 0x260   :  { %v7406_v31 = vpop.f32.mrb[102].mxu1  ;;  %v7408_v2 = vpop.permute.xlu1 %2735 }
 0x261   :  { %11632 = vst [vmem:[#allocation90_spill] sm:$0xff] %v7406_v31  ;;  %v7411_v6 = vpop.f32.mrb[92].mxu0  ;;  %v7413_v9 = vpop.f32.mrb[103].mxu1  ;;  %5896 = vmatmul.mubr.msk.f32.gmra.mrb[198].mxu0 %vm773_vm4, %v6537_v11 }
 0x262   :  { %11633 = vst [vmem:[#allocation91_spill] sm:$0xff] %v7411_v6  ;;  %11634 = vst [vmem:[#allocation92_spill] sm:$0xff] %v7413_v9  ;;  %v7417_v4 = vpop.permute.xlu0 %2779  ;;  %v7419_v12 = vpop.f32.mrb[93].mxu0  ;;  %5898 = vmatprep.mubr.msk.f32.mxu0 %vm773_vm4, %v6549_v14  ;;  %4435 = vrot.lane.b32.xlu1 %v6973_v24, %s11430_s13 }
 0x263   :  { %11635 = vst [vmem:[#allocation93_spill] sm:$0xff] %v7419_v12  ;;  %4390 = vrot.lane.b32.xlu0 %v4380_v58, %s11432_s12  ;;  %v11641_v58 = vld [vmem:[#allocation8_spill] sm:$0xff] }
 0x264   :  { %v7427_v7 = vpop.f32.mrb[104].mxu1  ;;  %v7429_v9 = vpop.permute.xlu1 %2825 }
 0x265   :  { %11637 = vst [vmem:[#allocation7_spill] sm:$0xff] %v7427_v7  ;;  %v7431_v31 = vpop.f32.mrb[94].mxu0  ;;  %v7433_v11 = vpop.f32.mrb[105].mxu1  ;;  %5899 = vmatmul.mubr.msk.f32.gmra.mrb[200].mxu0 %vm773_vm4, %v6547_v13  ;;  %v3568_v7 = vrot.slane %v11641_v58, 4  ;;  %v4470_v13 = vrot.slane %v6973_v24, 4 }
 0x266   :  { %11638 = vst [vmem:[#allocation94_spill] sm:$0xff] %v7431_v31  ;;  %11639 = vst [vmem:[#allocation95_spill] sm:$0xff] %v7433_v11  ;;  %v7437_v12 = vpop.permute.xlu0 %2781  ;;  %v7439_v14 = vpop.f32.mrb[95].mxu0  ;;  %5901 = vmatprep.mubr.msk.f32.mxu0 %vm773_vm4, %v6559_v16  ;;  %4478 = vrot.lane.b32.xlu1 %v4469_v48, %s11428_s14 }
 0x267   :  { %11640 = vst [vmem:[#allocation96_spill] sm:$0xff] %v7439_v14  ;;  %4433 = vrot.lane.b32.xlu0 %v11636_v23, %s11430_s13 }
 0x268   :  { %v7447_v31 = vpop.f32.mrb[106].mxu1  ;;  %v7449_v11 = vpop.permute.xlu1 %2827 }
 0x269   :  { %11642 = vst [vmem:[#allocation8_spill] sm:$0xff] %v7447_v31  ;;  %v7452_v6 = vpop.f32.mrb[96].mxu0  ;;  %v7454_v54 = vpop.f32.mrb[107].mxu1  ;;  %5902 = vmatmul.mubr.msk.f32.gmra.mrb[202].mxu0 %vm773_vm4, %v6557_v15 }
 0x26a   :  { %11643 = vst [vmem:[#allocation97_spill] sm:$0xff] %v7452_v6  ;;  %11644 = vst [vmem:[#allocation98_spill] sm:$0xff] %v7454_v54  ;;  %v7458_v16 = vpop.permute.xlu0 %2871  ;;  %v7460_v48 = vpop.f32.mrb[97].mxu0  ;;  %5904 = vmatprep.mubr.msk.f32.mxu0 %vm773_vm4, %v6569_v18  ;;  %3576 = vrot.lane.b32.xlu1 %v3568_v7, %s11281_s0  ;;  %v11650_v18 = vld [vmem:[#allocation9_spill] sm:$0xff] }
 0x26b   :  { %11645 = vst [vmem:[#allocation99_spill] sm:$0xff] %v7460_v48  ;;  %4480 = vrot.lane.b32.xlu0 %v4470_v13, %s11428_s14  ;;  %v4559_v7 = vrot.slane %v11650_v18, 4 }
 0x26c   :  { %v7466_v23 = vpop.f32.mrb[108].mxu1  ;;  %v7468_v24 = vpop.permute.xlu1 %2917 }
 0x26d   :  { %11646 = vst [vmem:[#allocation100_spill] sm:$0xff] %v7466_v23  ;;  %v7470_v31 = vpop.f32.mrb[98].mxu0  ;;  %v7472_v54 = vpop.f32.mrb[109].mxu1  ;;  %5905 = vmatmul.mubr.msk.f32.gmra.mrb[204].mxu0 %vm773_vm4, %v6567_v17  ;;  %vm11264_vm4 = vcmask 523264  }
 0x26e   :  { %11647 = vst [vmem:[#allocation101_spill] sm:$0xff] %v7470_v31  ;;  %11648 = vst [vmem:[#allocation102_spill] sm:$0xff] %v7472_v54  ;;  %v7476_v15 = vpop.permute.xlu0 %2873  ;;  %v7478_v48 = vpop.f32.mrb[99].mxu0  ;;  %4525 = vrot.lane.b32.xlu1 %v6986_v41, %s11426_s15 }
 0x26f   :  { %11649 = vst [vmem:[#allocation103_spill] sm:$0xff] %v7478_v48  ;;  %4523 = vrot.lane.b32.xlu0 %v11650_v18, %s11426_s15  ;;  %v11655_v48 = vld [vmem:[#allocation10_spill] sm:$0xff] }
 0x270   :  { %v7485_v13 = vpop.f32.mrb[110].mxu1  ;;  %v7487_v23 = vpop.permute.xlu1 %2919  ;;  %v3658_v14 = vrot.slane %v11655_v48, 4 }
 0x271   :  { %11651 = vst [vmem:[#allocation9_spill] sm:$0xff] %v7485_v13  ;;  %v7489_v54 = vpop.f32.mrb[100].mxu0  ;;  %v7491_v31 = vpop.f32.mrb[111].mxu1 }
 0x272   :  { %11652 = vst [vmem:[#allocation104_spill] sm:$0xff] %v7489_v54  ;;  %11653 = vst [vmem:[#allocation105_spill] sm:$0xff] %v7491_v31  ;;  %v7493_v17 = vpop.permute.xlu0 %2963  ;;  %v7495_v6 = vpop.f32.mrb[101].mxu0  ;;  %4568 = vrot.lane.b32.xlu1 %v4559_v7, %s11422_s16 }
 0x273   :  { %11654 = vst [vmem:[#allocation106_spill] sm:$0xff] %v7495_v6  ;;  %3621 = vrot.lane.b32.xlu0 %v11655_v48, %s6187_s2 }
 0x274   :  { %v7501_v18 = vpop.f32.mrb[112].mxu1  ;;  %v7503_v13 = vpop.permute.xlu1 %3009 }
 0x275   :  { %11656 = vst [vmem:[#allocation10_spill] sm:$0xff] %v7501_v18  ;;  %v7506_v54 = vpop.f32.mrb[102].mxu0  ;;  %v7508_v31 = vpop.f32.mrb[113].mxu1 }
 0x276   :  { %11657 = vst [vmem:[#allocation107_spill] sm:$0xff] %v7506_v54  ;;  %11658 = vst [vmem:[#allocation108_spill] sm:$0xff] %v7508_v31  ;;  %v7510_v60 = vpop.permute.xlu0 %2965  ;;  %v7512_v6 = vpop.f32.mrb[103].mxu0  ;;  %3666 = vrot.lane.b32.xlu1 %v3658_v14, %s11517_s23  ;;  %v11666_v31 = vld [vmem:[#allocation11_spill] sm:$0xff] }
 0x277   :  { %11659 = vst [vmem:[#allocation109_spill] sm:$0xff] %v7512_v6  ;;  %4570 = vrot.lane.b32.xlu0 %v4560_v5, %s11422_s16  ;;  %v4649_v5 = vrot.slane %v11666_v31, 4 }
 0x278   :  { %v7516_v7 = vpop.f32.mrb[114].mxu1  ;;  %v7518_v48 = vpop.permute.xlu1 %3011 }
 0x279   :  { %11660 = vst [vmem:[#allocation110_spill] sm:$0xff] %v7516_v7  ;;  %11661 = vst [vmem:[#allocation111_spill] sm:$0xff] %v7518_v48  ;;  %v7520_v18 = vpop.f32.mrb[104].mxu0  ;;  %v7522_v40 = vpop.f32.mrb[115].mxu1 }
 0x27a   :  { %11662 = vst [vmem:[#allocation112_spill] sm:$0xff] %v7520_v18  ;;  %11663 = vst [vmem:[#allocation113_spill] sm:$0xff] %v7522_v40  ;;  %v7524_v41 = vpop.permute.xlu0 %3893  ;;  %v7526_v54 = vpop.f32.mrb[105].mxu0  ;;  %4615 = vrot.lane.b32.xlu1 %v6999_v36, %s11420_s17 }
 0x27b   :  { %11664 = vst [vmem:[#allocation114_spill] sm:$0xff] %v7524_v41  ;;  %11665 = vst [vmem:[#allocation115_spill] sm:$0xff] %v7526_v54  ;;  %4613 = vrot.lane.b32.xlu0 %v11666_v31, %s11420_s17  ;;  %v11672_v54 = vld [vmem:[#allocation12_spill] sm:$0xff] }
 0x27c   :  { %v7533_v14 = vpop.f32.mrb[116].mxu1  ;;  %v7535_v7 = vpop.permute.xlu1 %3895  ;;  %v3748_v30 = vrot.slane %v11672_v54, 4 }
 0x27d   :  { %11667 = vst [vmem:[#allocation11_spill] sm:$0xff] %v7533_v14  ;;  %11668 = vst [vmem:[#allocation116_spill] sm:$0xff] %v7535_v7  ;;  %v7537_v6 = vpop.f32.mrb[106].mxu0  ;;  %v7539_v18 = vpop.f32.mrb[117].mxu1  ;;  %v4650_v7 = vrot.slane %v6999_v36, 4 }
 0x27e   :  { %11669 = vst [vmem:[#allocation117_spill] sm:$0xff] %v7537_v6  ;;  %11670 = vst [vmem:[#allocation118_spill] sm:$0xff] %v7539_v18  ;;  %v7541_v40 = vpop.permute.xlu0 %3055  ;;  %v7543_v41 = vpop.f32.mrb[107].mxu0  ;;  %4658 = vrot.lane.b32.xlu1 %v4649_v5, %s11354_s18 }
 0x27f   :  { %11671 = vst [vmem:[#allocation119_spill] sm:$0xff] %v7543_v41  ;;  %3711 = vrot.lane.b32.xlu0 %v11672_v54, %s11516_s24 }
 0x280   :  { %v7549_v31 = vpop.f32.mrb[118].mxu1  ;;  %v7551_v14 = vpop.permute.xlu1 %3938 }
 0x281   :  { %11673 = vst [vmem:[#allocation12_spill] sm:$0xff] %v7549_v31  ;;  %11674 = vst [vmem:[#allocation120_spill] sm:$0xff] %v7551_v14  ;;  %v7554_v6 = vpop.f32.mrb[108].mxu0  ;;  %v7556_v18 = vpop.f32.mrb[119].mxu1 }
 0x282   :  { %11675 = vst [vmem:[#allocation121_spill] sm:$0xff] %v7554_v6  ;;  %11676 = vst [vmem:[#allocation122_spill] sm:$0xff] %v7556_v18  ;;  %v7558_v38 = vpop.permute.xlu0 %3057  ;;  %v7560_v41 = vpop.f32.mrb[109].mxu0  ;;  %3756 = vrot.lane.b32.xlu1 %v3748_v30, %s11511_s25  ;;  %v2152_v30 = vsel %vm2151_vm5, %v7142_v33, %v7160_v44  ;;  %v11689_v6 = vld [vmem:[#allocation2_spill] sm:$0xff] }
 0x283   :  { %11677 = vst [vmem:[#allocation123_spill] sm:$0xff] %v7558_v38  ;;  %11678 = vst [vmem:[#allocation124_spill] sm:$0xff] %v7560_v41  ;;  %4660 = vrot.lane.b32.xlu0 %v4650_v7, %s11354_s18  ;;  %v11684_v7 = vld [vmem:[#allocation13_spill] sm:$0xff]  ;;  %v2166_v33 = vadd.f32 %v2152_v30, %v11689_v6  ;;  %v4740_v30 = vrot.slane %v7012_v43, 4 }
 0x284   :  { %v7564_v54 = vpop.permute.xlu1 %3101  ;;  %v7566_v5 = vpop.f32.mrb[110].mxu0 }
 0x285   :  { %11679 = vst [vmem:[#allocation125_spill] sm:$0xff] %v7566_v5  ;;  %v7568_v31 = vpop.f32.mrb[111].mxu0  ;;  %v7570_v36 = vpop.f32.mrb[120].mxu1  ;;  %v4739_v5 = vrot.slane %v11684_v7, 4 }
 0x286   :  { %11680 = vst [vmem:[#allocation126_spill] sm:$0xff] %v7568_v31  ;;  %11681 = vst [vmem:[#allocation127_spill] sm:$0xff] %v7570_v36  ;;  %v7572_v14 = vpop.permute.xlu0 %3940  ;;  %4705 = vrot.lane.b32.xlu1 %v7012_v43, %s11418_s19  ;;  %v7576_v18 = vpop.f32.mrb[121].mxu1 }
 0x287   :  { %11682 = vst [vmem:[#allocation128_spill] sm:$0xff] %v7572_v14  ;;  %11683 = vst [vmem:[#allocation129_spill] sm:$0xff] %v7576_v18  ;;  %4703 = vrot.lane.b32.xlu0 %v11684_v7, %s11418_s19  ;;  %v2198_v14 = vsel %vm2197_vm6, %v7177_v22, %v7153_v32  ;;  %v3838_v22 = vrot.slane %v11692_v3, 4 }
 0x288   :  { %v7584_v31 = vpop.permute.xlu1 %3103  ;;  %v7586_v36 = vpop.f32.mrb[112].mxu0 }
 0x289   :  { %11685 = vst [vmem:[#allocation13_spill] sm:$0xff] %v7584_v31  ;;  %11686 = vst [vmem:[#allocation130_spill] sm:$0xff] %v7586_v36  ;;  %v7591_v41 = vpop.f32.mrb[113].mxu0  ;;  %v7593_v18 = vpop.f32.mrb[122].mxu1  ;;  %v2244_v36 = vsel %vm2243_vm7, %v7196_v53, %v7170_v37 }
 0x28a   :  { %11687 = vst [vmem:[#allocation131_spill] sm:$0xff] %v7591_v41  ;;  %11688 = vst [vmem:[#allocation132_spill] sm:$0xff] %v7593_v18  ;;  %v7596_v44 = vpop.permute.xlu0 %3983  ;;  %4748 = vrot.lane.b32.xlu1 %v4739_v5, %s11360_s20  ;;  %v7599_v7 = vpop.f32.mrb[123].mxu1  ;;  %v2212_v41 = vadd.f32 %v2198_v14, %v2166_v33  ;;  %v2290_v5 = vsel %vm2289_vm8, %v7217_v55, %v7188_v29  ;;  %v2382_v55 = vsel %vm2381_vm10, %v7257_v34, %v7229_v25 }
 0x28b   :  { %11690 = vst [vmem:[#allocation2_spill] sm:$0xff] %v7596_v44  ;;  %11691 = vst [vmem:[#allocation133_spill] sm:$0xff] %v7599_v7  ;;  %3801 = vrot.lane.b32.xlu0 %v11692_v3, %s11509_s26  ;;  %v2336_v3 = vsel %vm2335_vm9, %v7238_v57, %v7208_v51  ;;  %v2428_v57 = vsel %vm11443_vm11, %v7276_v56, %v7248_v42  ;;  %v2474_v56 = vsel %vm2473_vm12, %v7268_v39, %v7288_v59 }
 0x28c   :  { %v7607_v18 = vpop.permute.xlu1 %3985  ;;  %v7609_v6 = vpop.f32.mrb[114].mxu0  ;;  %v2258_v53 = vadd.f32 %v2244_v36, %v2212_v41 }
 0x28d   :  { %11693 = vst [vmem:[#allocation14_spill] sm:$0xff] %v7607_v18  ;;  %v7615_v7 = vpop.f32.mrb[115].mxu0  ;;  %v11698_v18 = vld [vmem:[#allocation17_spill] sm:$0xff] }
 0x28e   :  { %11694 = vst [vmem:[#allocation134_spill] sm:$0xff] %v7615_v7  ;;  %v7617_v44 = vpop.permute.xlu0 %3147  ;;  %3846 = vrot.lane.b32.xlu1 %v3838_v22, %s11507_s27  ;;  %v2304_v14 = vadd.f32 %v2290_v5, %v2258_v53 }
 0x28f   :  { %4750 = vrot.lane.b32.xlu0 %v4740_v30, %s11360_s20  ;;  %v11699_v30 = vld [vmem:[#allocation15_spill] sm:$0xff] }
 0x290   :  { %v7624_v43 = vpop.permute.xlu1 %4028  ;;  %v7626_v33 = vpop.f32.mrb[116].mxu0  ;;  %v2350_v36 = vadd.f32 %v2336_v3, %v2304_v14  ;;  %v4829_v5 = vrot.slane %v11699_v30, 4 }
 0x291   :  { %11695 = vst [vmem:[#allocation135_spill] sm:$0xff] %v7624_v43  ;;  %v7631_v41 = vpop.f32.mrb[117].mxu0 }
 0x292   :  { %11696 = vst [vmem:[#allocation136_spill] sm:$0xff] %v7631_v41  ;;  %v7633_v22 = vpop.permute.xlu0 %3149  ;;  %4795 = vrot.lane.b32.xlu1 %v11698_v18, %s11412_s21  ;;  %v2396_v53 = vadd.f32 %v2382_v55, %v2350_v36 }
 0x293   :  { %11697 = vst [vmem:[#allocation137_spill] sm:$0xff] %v7633_v22  ;;  %4793 = vrot.lane.b32.xlu0 %v11699_v30, %s11412_s21  ;;  %v11701_v30 = vld [vmem:[#allocation16_spill] sm:$0xff] }
 0x294   :  { %v7643_v34 = vpop.permute.xlu1 %3193  ;;  %v7645_v43 = vpop.f32.mrb[118].mxu0  ;;  %v2442_v14 = vadd.f32 %v2428_v57, %v2396_v53  ;;  %v3928_v55 = vrot.slane %v11701_v30, 4  ;;  %v4830_v57 = vrot.slane %v11698_v18, 4  ;;  %v2520_v53 = vsel %vm2519_vm13, %v7297_v63, %v7318_v1 }
 0x295   :  { %v7647_v3 = vpop.f32.mrb[119].mxu0  ;;  %v2566_v63 = vsel %vm11445_vm14, %v7309_v45, %v7328_v26 }
 0x296   :  { %v7649_v41 = vpop.permute.xlu0 %4030  ;;  %4838 = vrot.lane.b32.xlu1 %v4829_v5, %s11416_s22 }
 0x297   :  { %11700 = vst [vmem:[#allocation17_spill] sm:$0xff] %v7649_v41  ;;  %3891 = vrot.lane.b32.xlu0 %v11701_v30, %s11499_s28  ;;  %v2488_v41 = vadd.f32 %v2474_v56, %v2442_v14  ;;  %v11705_v56 = vld [vmem:[#allocation20_spill] sm:$0xff] }
 0x298   :  { %v7658_v36 = vpop.permute.xlu1 %3195  ;;  %v7660_v7 = vpop.f32.mrb[120].mxu0 }
 0x299   :  { %11702 = vst [vmem:[#allocation15_spill] sm:$0xff] %v7658_v36  ;;  %v7666_v5 = vpop.f32.mrb[121].mxu0  ;;  %v2534_v30 = vadd.f32 %v2520_v53, %v2488_v41  ;;  %v2612_v41 = vsel %vm11444_vm15, %v7337_v50, %v7356_v20  ;;  %v2658_v50 = vsel %vm11446_vm0, %v7348_v62, %v7368_v0 }
 0x29a   :  { %v7668_v39 = vpop.permute.xlu0 %4073  ;;  %3936 = vrot.lane.b32.xlu1 %v3928_v55, %s11497_s29  ;;  %v11706_v55 = vld [vmem:[#allocation18_spill] sm:$0xff] }
 0x29b   :  { %11703 = vst [vmem:[#allocation16_spill] sm:$0xff] %v7668_v39  ;;  %4840 = vrot.lane.b32.xlu0 %v4830_v57, %s11416_s22  ;;  %v4919_v57 = vrot.slane %v11706_v55, 4  ;;  %v2580_v53 = vadd.f32 %v2566_v63, %v2534_v30 }
 0x29c   :  { %v7672_v59 = vpop.permute.xlu1 %4075  ;;  %v7674_v42 = vpop.f32.mrb[122].mxu0 }
 0x29d   :  { %11704 = vst [vmem:[#allocation138_spill] sm:$0xff] %v7672_v59  ;;  %v7679_v18 = vpop.f32.mrb[123].mxu0  ;;  %v2626_v26 = vadd.f32 %v2612_v41, %v2580_v53  ;;  %v4920_v41 = vrot.slane %v11705_v56, 4  ;;  %v2704_v53 = vsel %vm11274_vm1, %v7377_v8, %v7398_v10  ;;  %v2750_v8 = vsel %vm11261_vm2, %v7389_v61, %v7408_v2 }
 0x29e   :  { %v7681_v14 = vpop.permute.xlu0 %3239  ;;  %4885 = vrot.lane.b32.xlu1 %v11705_v56, %s11406_s3  ;;  %vm11267_vm2 = vcmask 515072   ;;  %vm11290_vm1 = vcmask 465920  }
 0x29f   :  { %4883 = vrot.lane.b32.xlu0 %v11706_v55, %s11406_s3  ;;  %v11709_v55 = vld [vmem:[#allocation19_spill] sm:$0xff]  ;;  %v2672_v20 = vadd.f32 %v2658_v50, %v2626_v26 }
 0x2a0   :  { %v7691_v39 = vpop.permute.xlu1 %4118  ;;  %v7693_v45 = vpop.f32.mrb[124].mxu0  ;;  %v4018_v30 = vrot.slane %v11709_v55, 4 }
 0x2a1   :  { %11707 = vst [vmem:[#allocation20_spill] sm:$0xff] %v7691_v39  ;;  %v7695_v59 = vpop.f32.mrb[125].mxu0  ;;  %v2718_v0 = vadd.f32 %v2704_v53, %v2672_v20  ;;  %v4108_v20 = vrot.slane %v7052_v21, 4  ;;  %v11717_v53 = vld [vmem:[#allocation21_spill] sm:$0xff] }
 0x2a2   :  { %v7697_v1 = vpop.permute.xlu0 %3241  ;;  %4928 = vrot.lane.b32.xlu1 %v4919_v57, %s11288_s10 }
 0x2a3   :  { %11708 = vst [vmem:[#allocation18_spill] sm:$0xff] %v7697_v1  ;;  %3981 = vrot.lane.b32.xlu0 %v11709_v55, %s11495_s30  ;;  %v2134_v55 = vrot.slane %v7050_v46, 4  ;;  %v2796_v46 = vsel %vm11263_vm3, %v7417_v4, %v7437_v12  ;;  %vm11271_vm3 = vcmask 506880  }
 0x2a4   :  { %v7706_v63 = vpop.permute.xlu1 %3285  ;;  %v7708_v39 = vpop.f32.mrb[126].mxu0 }
 0x2a5   :  { %11710 = vst [vmem:[#allocation19_spill] sm:$0xff] %v7708_v39  ;;  %v7714_v57 = vpop.f32.mrb[127].mxu0 }
 0x2a6   :  { %v7716_v62 = vpop.permute.xlu0 %4120  ;;  %4026 = vrot.lane.b32.xlu1 %v4018_v30, %s11493_s6  ;;  %v2764_v30 = vadd.f32 %v2750_v8, %v2718_v0  ;;  %v2888_v8 = vsel %vm11267_vm2, %v7458_v16, %v7476_v15  ;;  %v2934_v16 = vsel %vm11271_vm3, %v7468_v24, %v7487_v23  ;;  %vm11277_vm2 = vcmask 490496  }
 0x2a7   :  { %11711 = vst [vmem:[#allocation139_spill] sm:$0xff] %v7716_v62  ;;  %4930 = vrot.lane.b32.xlu0 %v4920_v41, %s11288_s10  ;;  %v2133_v62 = vrot.slane %v11717_v53, 4  ;;  %vm11280_vm3 = vcmask 482304   ;;  %s11745_s10 = smov 63  }
 0x2a8   :  { %v7721_v39 = vpop.permute.xlu1 %3287  ;;  %v7723_v56 = vpop.f32.mrb[128].mxu0 }
 0x2a9   :  { %11712 = vst [vmem:[#allocation140_spill] sm:$0xff] %v7721_v39  ;;  %11713 = vst [vmem:[#allocation141_spill] sm:$0xff] %v7723_v56  ;;  %v7728_v26 = vpop.f32.mrb[129].mxu0 }
 0x2aa   :  { %v7730_v50 = vpop.permute.xlu0 %4163  ;;  %2149 = vrot.lane.b32.xlu1 %v2134_v55, %s11281_s0  ;;  %v2810_v55 = vadd.f32 %v2796_v46, %v2764_v30 }
 0x2ab   :  { %11714 = vst [vmem:[#allocation142_spill] sm:$0xff] %v7730_v50  ;;  %4071 = vrot.lane.b32.xlu0 %v7052_v21, %s11505_s1  ;;  %v2842_v21 = vsel %vm11264_vm4, %v7429_v9, %v7449_v11  ;;  %v2226_v9 = vrot.slane %v7062_v27, 4  ;;  %vm11273_vm4 = vcmask 498688  }
 0x2ac   :  { %v7739_v41 = vpop.permute.xlu1 %4165  ;;  %v7741_v61 = vpop.f32.mrb[130].mxu0  ;;  %v2856_v30 = vadd.f32 %v2842_v21, %v2810_v55 }
 0x2ad   :  { %11715 = vst [vmem:[#allocation143_spill] sm:$0xff] %v7739_v41  ;;  %11716 = vst [vmem:[#allocation144_spill] sm:$0xff] %v7741_v61  ;;  %v7744_v50 = vpop.f32.mrb[131].mxu0 }
 0x2ae   :  { %11718 = vst [vmem:[#allocation145_spill] sm:$0xff] %v7744_v50  ;;  %v7746_v56 = vpop.permute.xlu0 %3331  ;;  %4116 = vrot.lane.b32.xlu1 %v4108_v20, %s11503_s7 }
 0x2af   :  { %2147 = vrot.lane.b32.xlu0 %v2133_v62, %s11281_s0  ;;  %v2902_v62 = vadd.f32 %v2888_v8, %v2856_v30  ;;  %v11726_v8 = vld [vmem:[#allocation22_spill] sm:$0xff]  ;;  %s11740_s0 = smov 64  }
 0x2b0   :  { %v7753_v0 = vpop.permute.xlu1 %4208  ;;  %v7755_v4 = vpop.f32.mrb[132].mxu0  ;;  %v4198_v30 = vrot.slane %v11726_v8, 4 }
 0x2b1   :  { %11719 = vst [vmem:[#allocation146_spill] sm:$0xff] %v7753_v0  ;;  %11720 = vst [vmem:[#allocation147_spill] sm:$0xff] %v7755_v4  ;;  %v7760_v46 = vpop.f32.mrb[133].mxu0  ;;  %v2948_v41 = vadd.f32 %v2934_v16, %v2902_v62 }
 0x2b2   :  { %11721 = vst [vmem:[#allocation148_spill] sm:$0xff] %v7760_v46  ;;  %v7762_v53 = vpop.permute.xlu0 %3333  ;;  %2195 = vrot.lane.b32.xlu1 %v7062_v27, %s6187_s2  ;;  %v2980_v27 = vsel %vm11273_vm4, %v7493_v17, %v7510_v60  ;;  %v3026_v17 = vsel %vm11277_vm2, %v7503_v13, %v7518_v48  ;;  %vm11284_vm4 = vcmask 474112   ;;  %vm11287_vm2 = vcmask 261120  }
 0x2b3   :  { %11722 = vst [vmem:[#allocation149_spill] sm:$0xff] %v7762_v53  ;;  %2193 = vrot.lane.b32.xlu0 %v7057_v49, %s6187_s2  ;;  %v3118_v13 = vsel %vm11284_vm4, %v7564_v54, %v7584_v31  ;;  %vm3301_vm4 = vcmask 244736  }
 0x2b4   :  { %v7769_v20 = vpop.permute.xlu1 %3377  ;;  %v7771_v0 = vpop.f32.mrb[134].mxu0 }
 0x2b5   :  { %11723 = vst [vmem:[#allocation150_spill] sm:$0xff] %v7771_v0  ;;  %v7776_v55 = vpop.f32.mrb[135].mxu0 }
 0x2b6   :  { %11724 = vst [vmem:[#allocation151_spill] sm:$0xff] %v7776_v55  ;;  %v7778_v21 = vpop.permute.xlu0 %4210  ;;  %2241 = vrot.lane.b32.xlu1 %v2226_v9, %s11517_s23  ;;  %v2225_v55 = vrot.slane %v7057_v49, 4  ;;  %v2994_v9 = vadd.f32 %v2980_v27, %v2948_v41  ;;  %v3072_v49 = vsel %vm11280_vm3, %v7541_v40, %v7558_v38  ;;  %vm11291_vm3 = vcmask 252928  }
 0x2b7   :  { %11725 = vst [vmem:[#allocation152_spill] sm:$0xff] %v7778_v21  ;;  %4161 = vrot.lane.b32.xlu0 %v11726_v8, %s11501_s8 }
 0x2b8   :  { %v7787_v0 = vpop.permute.xlu1 %3379  ;;  %v7789_v24 = vpop.f32.mrb[136].mxu0  ;;  %v3040_v27 = vadd.f32 %v3026_v17, %v2994_v9  ;;  %v3164_v9 = vsel %vm11290_vm1, %v7617_v44, %v7633_v22  ;;  %vm11299_vm1 = vcmask 228352  }
 0x2b9   :  { %11727 = vst [vmem:[#allocation22_spill] sm:$0xff] %v7787_v0  ;;  %11728 = vst [vmem:[#allocation153_spill] sm:$0xff] %v7789_v24  ;;  %v7792_v21 = vpop.f32.mrb[137].mxu0  ;;  %v11941_v24 = vld [vmem:[#allocation109_spill] sm:$0xff] }
 0x2ba   :  { %11729 = vst [vmem:[#allocation154_spill] sm:$0xff] %v7792_v21  ;;  %v7794_v46 = vpop.permute.xlu0 %4253  ;;  %4206 = vrot.lane.b32.xlu1 %v4198_v30, %s11449_s9  ;;  %v11734_v30 = vld [vmem:[#allocation24_spill] sm:$0xff] }
 0x2bb   :  { %11730 = vst [vmem:[#allocation155_spill] sm:$0xff] %v7794_v46  ;;  %2239 = vrot.lane.b32.xlu0 %v2225_v55, %s11517_s23  ;;  %v11735_v55 = vld [vmem:[#allocation23_spill] sm:$0xff]  ;;  %v2318_v46 = vrot.slane %v11734_v30, 4 }
 0x2bc   :  { %v7801_v62 = vpop.permute.xlu1 %4255  ;;  %v7803_v16 = vpop.f32.mrb[138].mxu0 }
 0x2bd   :  { %11731 = vst [vmem:[#allocation156_spill] sm:$0xff] %v7801_v62  ;;  %11732 = vst [vmem:[#allocation157_spill] sm:$0xff] %v7803_v16  ;;  %v7808_v41 = vpop.f32.mrb[139].mxu0  ;;  %v3086_v62 = vadd.f32 %v3072_v49, %v3040_v27  ;;  %v3210_v49 = vsel %vm11287_vm2, %v7643_v34, %v7658_v36  ;;  %v11741_v27 = vld [vmem:[#allocation25_spill] sm:$0xff]  ;;  %vm11294_vm2 = vcmask 236544  }
 0x2be   :  { %11733 = vst [vmem:[#allocation158_spill] sm:$0xff] %v7808_v41  ;;  %v3424_v8 = vpop.permute.xlu0 %3423  ;;  %2287 = vrot.lane.b32.xlu1 %v11734_v30, %s11516_s24  ;;  %v4288_v30 = vrot.slane %v11741_v27, 4 }
 0x2bf   :  { %2285 = vrot.lane.b32.xlu0 %v11735_v55, %s11516_s24  ;;  %v3132_v16 = vadd.f32 %v3118_v13, %v3086_v62  ;;  %v2317_v62 = vrot.slane %v11735_v55, 4 }
 0x2c0   :  { %v7818_v40 = vpop.permute.xlu1 %4298  ;;  %v7820_v41 = vpop.f32.mrb[140].mxu0 }
 0x2c1   :  { %11736 = vst [vmem:[#allocation24_spill] sm:$0xff] %v7818_v40  ;;  %11737 = vst [vmem:[#allocation23_spill] sm:$0xff] %v7820_v41  ;;  %v7825_v17 = vpop.f32.mrb[141].mxu0  ;;  %v3178_v40 = vadd.f32 %v3164_v9, %v3132_v16  ;;  %v3302_v16 = vsel %vm3301_vm4, %v7706_v63, %v7721_v39  ;;  %v11750_v63 = vld [vmem:[#allocation27_spill] sm:$0xff]  ;;  %v11955_v39 = vld [vmem:[#allocation124_spill] sm:$0xff] }
 0x2c2   :  { %11738 = vst [vmem:[#allocation159_spill] sm:$0xff] %v7825_v17  ;;  %v7827_v54 = vpop.permute.xlu0 %3425  ;;  %2333 = vrot.lane.b32.xlu1 %v2318_v46, %s11511_s25  ;;  %v3256_v46 = vsel %vm11291_vm3, %v7681_v14, %v7697_v1  ;;  %v3348_v14 = vsel %vm11294_vm2, %v7746_v56, %v7762_v53  ;;  %vm3439_vm3 = vcmask 220160   ;;  %vm11492_vm2 = vcmask 211968  }
 0x2c3   :  { %11739 = vst [vmem:[#allocation160_spill] sm:$0xff] %v7827_v54  ;;  %4251 = vrot.lane.b32.xlu0 %v11741_v27, %s11740_s0  ;;  %v3224_v17 = vadd.f32 %v3210_v49, %v3178_v40  ;;  %v3840_v1 = vrot.slane %v11955_v39, 4 }
 0x2c4   :  { %v3470_v44 = vpop.permute.xlu1 %3469  ;;  %v7836_v41 = vpop.f32.mrb[142].mxu0 }
 0x2c5   :  { %11742 = vst [vmem:[#allocation25_spill] sm:$0xff] %v7836_v41  ;;  %v7842_v13 = vpop.f32.mrb[143].mxu0  ;;  %v3270_v9 = vadd.f32 %v3256_v46, %v3224_v17  ;;  %v3394_v17 = vsel %vm11299_vm1, %v7769_v20, %v7787_v0  ;;  %v11752_v46 = vld [vmem:[#allocation28_spill] sm:$0xff]  ;;  %vm11470_vm1 = vcmask 203776  }
 0x2c6   :  { %11743 = vst [vmem:[#allocation161_spill] sm:$0xff] %v7842_v13  ;;  %v7844_v34 = vpop.permute.xlu0 %4300  ;;  %4296 = vrot.lane.b32.xlu1 %v4288_v30, %s11745_s10  ;;  %v11910_v13 = vld [vmem:[#allocation87_spill] sm:$0xff] }
 0x2c7   :  { %11744 = vst [vmem:[#allocation162_spill] sm:$0xff] %v7844_v34  ;;  %2331 = vrot.lane.b32.xlu0 %v2317_v62, %s11511_s25  ;;  %v3316_v49 = vadd.f32 %v3302_v16, %v3270_v9  ;;  %v11751_v62 = vld [vmem:[#allocation26_spill] sm:$0xff]  ;;  %v4378_v34 = vrot.slane %v11752_v46, 4  ;;  %v3440_v9 = vsel %vm3439_vm3, %v3424_v8, %v7827_v54 }
 0x2c8   :  { %v7851_v55 = vpop.permute.xlu1 %3471  ;;  %v7853_v27 = vpop.f32.mrb[144].mxu0  ;;  %v2409_v8 = vrot.slane %v11751_v62, 4 }
 0x2c9   :  { %11746 = vst [vmem:[#allocation163_spill] sm:$0xff] %v7851_v55  ;;  %11747 = vst [vmem:[#allocation164_spill] sm:$0xff] %v7853_v27  ;;  %v7858_v40 = vpop.f32.mrb[145].mxu0  ;;  %v3362_v27 = vadd.f32 %v3348_v14, %v3316_v49  ;;  %v3486_v20 = vsel %vm11492_vm2, %v3470_v44, %v7851_v55 }
 0x2ca   :  { %11748 = vst [vmem:[#allocation165_spill] sm:$0xff] %v7858_v40  ;;  %v7860_v30 = vpop.permute.xlu0 %4343  ;;  %2379 = vrot.lane.b32.xlu1 %v11750_v63, %s11509_s26 }
 0x2cb   :  { %11749 = vst [vmem:[#allocation166_spill] sm:$0xff] %v7860_v30  ;;  %2377 = vrot.lane.b32.xlu0 %v11751_v62, %s11509_s26  ;;  %v3408_v40 = vadd.f32 %v3394_v17, %v3362_v27  ;;  %v2410_v62 = vrot.slane %v11750_v63, 4 }
 0x2cc   :  { %v7870_v56 = vpop.permute.xlu1 %4345  ;;  %v7872_v16 = vpop.f32.mrb[146].mxu0 }
 0x2cd   :  { %11753 = vst [vmem:[#allocation27_spill] sm:$0xff] %v7870_v56  ;;  %11754 = vst [vmem:[#allocation26_spill] sm:$0xff] %v7872_v16  ;;  %v7876_v30 = vpop.f32.mrb[147].mxu0  ;;  %v3454_v14 = vadd.f32 %v3440_v9, %v3408_v40 }
 0x2ce   :  { %11755 = vst [vmem:[#allocation28_spill] sm:$0xff] %v7876_v30  ;;  %v3516_v41 = vpop.permute.xlu0 %3515  ;;  %4386 = vrot.lane.b32.xlu1 %v4378_v34, %s11432_s12  ;;  %v11760_v34 = vld [vmem:[#allocation29_spill] sm:$0xff] }
 0x2cf   :  { %4341 = vrot.lane.b32.xlu0 %v11752_v46, %s11447_s11  ;;  %v3500_v27 = vadd.f32 %v3486_v20, %v3454_v14 }
 0x2d0   :  { %v7883_v49 = vpop.permute.xlu1 %4388  ;;  %v7885_v56 = vpop.f32.mrb[148].mxu0 }
 0x2d1   :  { %11756 = vst [vmem:[#allocation167_spill] sm:$0xff] %v7883_v49  ;;  %11757 = vst [vmem:[#allocation168_spill] sm:$0xff] %v7885_v56  ;;  %v7888_v16 = vpop.f32.mrb[149].mxu0 }
 0x2d2   :  { %11758 = vst [vmem:[#allocation169_spill] sm:$0xff] %v7888_v16  ;;  %v7890_v17 = vpop.permute.xlu0 %3517  ;;  %2469 = vrot.lane.b32.xlu1 %v11760_v34, %s11499_s28 }
 0x2d3   :  { %11759 = vst [vmem:[#allocation170_spill] sm:$0xff] %v7890_v17  ;;  %v3532_v44 = vsel %vm11470_vm1, %v3516_v41, %v7890_v17  ;;  %2423 = vrot.lane.b32.xlu0 %v2409_v8, %s11507_s27  ;;  %v2501_v41 = vrot.slane %v11760_v34, 4  ;;  %v2502_v34 = vrot.slane %v7102_v47, 4 }
 0x2d4   :  { %v3546_v40 = vadd.f32 %v3532_v44, %v3500_v27  ;;  %v7897_v46 = vpop.permute.xlu1 %4435  ;;  %v7899_v9 = vpop.f32.mrb[150].mxu0 }
 0x2d5   :  { %11761 = vst [vmem:[#allocation29_spill] sm:$0xff] %v7897_v46  ;;  %11762 = vst [vmem:[#allocation171_spill] sm:$0xff] %v7899_v9  ;;  %v7902_v49 = vpop.f32.mrb[151].mxu0 }
 0x2d6   :  { %11763 = vst [vmem:[#allocation172_spill] sm:$0xff] %v7902_v49  ;;  %v7904_v20 = vpop.permute.xlu0 %4390  ;;  %2471 = vrot.lane.b32.xlu1 %v7102_v47, %s11499_s28  ;;  %v7909_v14 = vadd.f32 %v3546_v40, %v11641_v58  ;;  %v4468_v58 = vrot.slane %v7104_v28, 4  ;;  %v11779_v47 = vld [vmem:[#allocation32_spill] sm:$0xff] }
 0x2d7   :  { %11764 = vst [vmem:[#allocation173_spill] sm:$0xff] %v7904_v20  ;;  %2425 = vrot.lane.b32.xlu0 %v2410_v62, %s11507_s27  ;;  %v4558_v49 = vrot.slane %v11779_v47, 4 }
 0x2d8   :  { %11765 = vst [vmem:[#allocation174_spill] sm:$0xff] %v7909_v14  ;;  %v7913_v8 = vpop.permute.xlu1 %4478  ;;  %v7915_v27 = vpop.f32.mrb[152].mxu0 }
 0x2d9   :  { %11766 = vst [vmem:[#allocation175_spill] sm:$0xff] %v7913_v8  ;;  %11767 = vst [vmem:[#allocation176_spill] sm:$0xff] %v7915_v27  ;;  %v7917_v44 = vpop.f32.mrb[153].mxu0 }
 0x2da   :  { %11768 = vst [vmem:[#allocation177_spill] sm:$0xff] %v7917_v44  ;;  %v7919_v63 = vpop.permute.xlu0 %4433  ;;  %2515 = vrot.lane.b32.xlu1 %v2501_v41, %s11497_s29 }
 0x2db   :  { %11769 = vst [vmem:[#allocation178_spill] sm:$0xff] %v7919_v63  ;;  %4431 = vrot.lane.b32.xlu0 %v7104_v28, %s11430_s13 }
 0x2dc   :  { %v7925_v40 = vpop.permute.xlu1 %3576  ;;  %v7927_v62 = vpop.f32.mrb[154].mxu0 }
 0x2dd   :  { %11770 = vst [vmem:[#allocation179_spill] sm:$0xff] %v7925_v40  ;;  %11771 = vst [vmem:[#allocation180_spill] sm:$0xff] %v7927_v62  ;;  %v7930_v8 = vpop.f32.mrb[155].mxu0  ;;  %v11778_v62 = vld [vmem:[#allocation30_spill] sm:$0xff] }
 0x2de   :  { %11772 = vst [vmem:[#allocation181_spill] sm:$0xff] %v7930_v8  ;;  %v7932_v46 = vpop.permute.xlu0 %4480  ;;  %4476 = vrot.lane.b32.xlu1 %v4468_v58, %s11428_s14  ;;  %v11782_v58 = vld [vmem:[#allocation31_spill] sm:$0xff] }
 0x2df   :  { %11773 = vst [vmem:[#allocation182_spill] sm:$0xff] %v7932_v46  ;;  %2517 = vrot.lane.b32.xlu0 %v2502_v34, %s11497_s29  ;;  %v2594_v34 = vrot.slane %v11782_v58, 4 }
 0x2e0   :  { %v7936_v41 = vpop.permute.xlu1 %4525  ;;  %v7938_v44 = vpop.f32.mrb[156].mxu0 }
 0x2e1   :  { %11774 = vst [vmem:[#allocation183_spill] sm:$0xff] %v7936_v41  ;;  %11775 = vst [vmem:[#allocation184_spill] sm:$0xff] %v7938_v44  ;;  %v7940_v63 = vpop.f32.mrb[157].mxu0 }
 0x2e2   :  { %11776 = vst [vmem:[#allocation185_spill] sm:$0xff] %v7940_v63  ;;  %v7942_v28 = vpop.permute.xlu0 %4523  ;;  %2561 = vrot.lane.b32.xlu1 %v11778_v62, %s11495_s30 }
 0x2e3   :  { %11777 = vst [vmem:[#allocation186_spill] sm:$0xff] %v7942_v28  ;;  %4521 = vrot.lane.b32.xlu0 %v11779_v47, %s11426_s15  ;;  %v2593_v28 = vrot.slane %v11778_v62, 4  ;;  %v11792_v62 = vld [vmem:[#allocation34_spill] sm:$0xff] }
 0x2e4   :  { %v7948_v8 = vpop.permute.xlu1 %4568  ;;  %v7950_v46 = vpop.f32.mrb[158].mxu0  ;;  %v2686_v20 = vrot.slane %v11792_v62, 4 }
 0x2e5   :  { %11780 = vst [vmem:[#allocation30_spill] sm:$0xff] %v7948_v8  ;;  %11781 = vst [vmem:[#allocation32_spill] sm:$0xff] %v7950_v46  ;;  %v7953_v27 = vpop.f32.mrb[159].mxu0 }
 0x2e6   :  { %11783 = vst [vmem:[#allocation31_spill] sm:$0xff] %v7953_v27  ;;  %v7955_v41 = vpop.permute.xlu0 %3621  ;;  %2563 = vrot.lane.b32.xlu1 %v11782_v58, %s11495_s30  ;;  %v11789_v27 = vld [vmem:[#allocation35_spill] sm:$0xff] }
 0x2e7   :  { %11784 = vst [vmem:[#allocation187_spill] sm:$0xff] %v7955_v41  ;;  %2609 = vrot.lane.b32.xlu0 %v2594_v34, %s11493_s6  ;;  %v11900_v41 = vld [vmem:[#allocation82_spill] sm:$0xff] }
 0x2e8   :  { %v7961_v63 = vpop.permute.xlu1 %3666  ;;  %v7963_v44 = vpop.f32.mrb[160].mxu0 }
 0x2e9   :  { %11785 = vst [vmem:[#allocation188_spill] sm:$0xff] %v7961_v63  ;;  %11786 = vst [vmem:[#allocation189_spill] sm:$0xff] %v7963_v44  ;;  %v7965_v8 = vpop.f32.mrb[161].mxu0 }
 0x2ea   :  { %11787 = vst [vmem:[#allocation190_spill] sm:$0xff] %v7965_v8  ;;  %v7967_v46 = vpop.permute.xlu0 %4570  ;;  %2607 = vrot.lane.b32.xlu1 %v2593_v28, %s11493_s6 }
 0x2eb   :  { %11788 = vst [vmem:[#allocation191_spill] sm:$0xff] %v7967_v46  ;;  %4611 = vrot.lane.b32.xlu0 %v11789_v27, %s11420_s17 }
 0x2ec   :  { %v7973_v58 = vpop.permute.xlu1 %4615  ;;  %v7975_v34 = vpop.f32.mrb[162].mxu0 }
 0x2ed   :  { %11790 = vst [vmem:[#allocation35_spill] sm:$0xff] %v7973_v58  ;;  %11791 = vst [vmem:[#allocation192_spill] sm:$0xff] %v7975_v34  ;;  %v7978_v9 = vpop.f32.mrb[163].mxu0  ;;  %v11799_v34 = vld [vmem:[#allocation33_spill] sm:$0xff]  ;;  %v11800_v58 = vld [vmem:[#allocation38_spill] sm:$0xff] }
 0x2ee   :  { %11793 = vst [vmem:[#allocation34_spill] sm:$0xff] %v7978_v9  ;;  %v7980_v44 = vpop.permute.xlu0 %4613  ;;  %4566 = vrot.lane.b32.xlu1 %v4558_v49, %s11422_s16  ;;  %v11803_v49 = vld [vmem:[#allocation37_spill] sm:$0xff] }
 0x2ef   :  { %11794 = vst [vmem:[#allocation193_spill] sm:$0xff] %v7980_v44  ;;  %2701 = vrot.lane.b32.xlu0 %v2686_v20, %s11503_s7  ;;  %v2778_v20 = vrot.slane %v11803_v49, 4 }
 0x2f0   :  { %v7984_v28 = vpop.permute.xlu1 %4658  ;;  %v7986_v8 = vpop.f32.mrb[164].mxu0 }
 0x2f1   :  { %11795 = vst [vmem:[#allocation194_spill] sm:$0xff] %v7984_v28  ;;  %11796 = vst [vmem:[#allocation195_spill] sm:$0xff] %v7986_v8  ;;  %v7988_v46 = vpop.f32.mrb[165].mxu0  ;;  %v2685_v8 = vrot.slane %v11799_v34, 4 }
 0x2f2   :  { %11797 = vst [vmem:[#allocation196_spill] sm:$0xff] %v7988_v46  ;;  %v7990_v47 = vpop.permute.xlu0 %3711  ;;  %2653 = vrot.lane.b32.xlu1 %v11799_v34, %s11505_s1 }
 0x2f3   :  { %11798 = vst [vmem:[#allocation197_spill] sm:$0xff] %v7990_v47  ;;  %4701 = vrot.lane.b32.xlu0 %v11800_v58, %s11418_s19 }
 0x2f4   :  { %v7996_v9 = vpop.permute.xlu1 %3756  ;;  %v7998_v44 = vpop.f32.mrb[166].mxu0 }
 0x2f5   :  { %11801 = vst [vmem:[#allocation33_spill] sm:$0xff] %v7996_v9  ;;  %11802 = vst [vmem:[#allocation38_spill] sm:$0xff] %v7998_v44  ;;  %v8001_v16 = vpop.f32.mrb[167].mxu0 }
 0x2f6   :  { %11804 = vst [vmem:[#allocation37_spill] sm:$0xff] %v8001_v16  ;;  %v8003_v28 = vpop.permute.xlu0 %4660  ;;  %2655 = vrot.lane.b32.xlu1 %v11792_v62, %s11505_s1  ;;  %v4648_v16 = vrot.slane %v11789_v27, 4 }
 0x2f7   :  { %11805 = vst [vmem:[#allocation198_spill] sm:$0xff] %v8003_v28  ;;  %2793 = vrot.lane.b32.xlu0 %v2778_v20, %s11449_s9 }
 0x2f8   :  { %v8009_v46 = vpop.permute.xlu1 %4705  ;;  %v8011_v56 = vpop.f32.mrb[168].mxu0 }
 0x2f9   :  { %11806 = vst [vmem:[#allocation199_spill] sm:$0xff] %v8009_v46  ;;  %11807 = vst [vmem:[#allocation200_spill] sm:$0xff] %v8011_v56  ;;  %v8013_v30 = vpop.f32.mrb[169].mxu0 }
 0x2fa   :  { %11808 = vst [vmem:[#allocation201_spill] sm:$0xff] %v8013_v30  ;;  %v8015_v44 = vpop.permute.xlu0 %4703  ;;  %2699 = vrot.lane.b32.xlu1 %v2685_v8, %s11503_s7 }
 0x2fb   :  { %11809 = vst [vmem:[#allocation202_spill] sm:$0xff] %v8015_v44  ;;  %4791 = vrot.lane.b32.xlu0 %v7166_v35, %s11412_s21 }
 0x2fc   :  { %v8021_v62 = vpop.permute.xlu1 %4748  ;;  %v8023_v20 = vpop.f32.mrb[170].mxu0 }
 0x2fd   :  { %11810 = vst [vmem:[#allocation203_spill] sm:$0xff] %v8021_v62  ;;  %11811 = vst [vmem:[#allocation204_spill] sm:$0xff] %v8023_v20  ;;  %v8025_v34 = vpop.f32.mrb[171].mxu0  ;;  %v11818_v62 = vld [vmem:[#allocation36_spill] sm:$0xff] }
 0x2fe   :  { %11812 = vst [vmem:[#allocation205_spill] sm:$0xff] %v8025_v34  ;;  %v8027_v46 = vpop.permute.xlu0 %3801  ;;  %4656 = vrot.lane.b32.xlu1 %v4648_v16, %s11354_s18  ;;  %v2221_v34 = vrot.slane %v7211_v52, 4 }
 0x2ff   :  { %11813 = vst [vmem:[#allocation206_spill] sm:$0xff] %v8027_v46  ;;  %4881 = vrot.lane.b32.xlu0 %v7184_v19, %s11406_s3 }
 0x300   :  { %v8032_v56 = vpop.permute.xlu1 %3846  ;;  %v8034_v8 = vpop.f32.mrb[172].mxu0 }
 0x301   :  { %11814 = vst [vmem:[#allocation207_spill] sm:$0xff] %v8032_v56  ;;  %11815 = vst [vmem:[#allocation208_spill] sm:$0xff] %v8034_v8  ;;  %v8036_v30 = vpop.f32.mrb[173].mxu0  ;;  %v2777_v8 = vrot.slane %v11818_v62, 4  ;;  %v11822_v56 = vld [vmem:[#allocation48_spill] sm:$0xff] }
 0x302   :  { %11816 = vst [vmem:[#allocation209_spill] sm:$0xff] %v8036_v30  ;;  %v8038_v27 = vpop.permute.xlu0 %4750  ;;  %2745 = vrot.lane.b32.xlu1 %v11818_v62, %s11501_s8  ;;  %v3145_v46 = vrot.slane %v11822_v56, 4  ;;  %v11826_v62 = vld [vmem:[#allocation52_spill] sm:$0xff] }
 0x303   :  { %11817 = vst [vmem:[#allocation210_spill] sm:$0xff] %v8038_v27  ;;  %2185 = vrot.lane.b32.xlu0 %v7211_v52, %s6187_s2  ;;  %v4738_v52 = vrot.slane %v11800_v58, 4  ;;  %v11829_v58 = vld [vmem:[#allocation39_spill] sm:$0xff] }
 0x304   :  { %v8044_v20 = vpop.permute.xlu1 %4795  ;;  %v5861_v16 = vpop.f32.mrb[174].mxu0 }
 0x305   :  { %11819 = vst [vmem:[#allocation36_spill] sm:$0xff] %v8044_v20  ;;  %v1976_v44 = vpop.f32.mrb[175].mxu0 }
 0x306   :  { %v8047_v28 = vpop.permute.xlu0 %4793  ;;  %2747 = vrot.lane.b32.xlu1 %v11803_v49, %s11501_s8 }
 0x307   :  { %11820 = vst [vmem:[#allocation211_spill] sm:$0xff] %v8047_v28  ;;  %2231 = vrot.lane.b32.xlu0 %v2221_v34, %s11517_s23 }
 0x308   :  { %v8053_v30 = vpop.permute.xlu1 %4838  ;;  %v5864_v27 = vpop.f32.mrb[176].mxu0 }
 0x309   :  { %11821 = vst [vmem:[#allocation212_spill] sm:$0xff] %v8053_v30  ;;  %v1984_v9 = vpop.f32.mrb[177].mxu0 }
 0x30a   :  { %v8056_v20 = vpop.permute.xlu0 %3891  ;;  %2791 = vrot.lane.b32.xlu1 %v2777_v8, %s11449_s9  ;;  %v2313_v8 = vrot.slane %v11826_v62, 4 }
 0x30b   :  { %11823 = vst [vmem:[#allocation48_spill] sm:$0xff] %v8056_v20  ;;  %3159 = vrot.lane.b32.xlu0 %v3145_v46, %s11422_s16 }
 0x30c   :  { %v8061_v44 = vpop.permute.xlu1 %3936  ;;  %v5867_v49 = vpop.f32.mrb[178].mxu0 }
 0x30d   :  { %11824 = vst [vmem:[#allocation213_spill] sm:$0xff] %v8061_v44  ;;  %v1992_v34 = vpop.f32.mrb[179].mxu0  ;;  %v2869_v49 = vrot.slane %v11829_v58, 4 }
 0x30e   :  { %v8063_v16 = vpop.permute.xlu0 %4840  ;;  %4746 = vrot.lane.b32.xlu1 %v4738_v52, %s11360_s20 }
 0x30f   :  { %11825 = vst [vmem:[#allocation214_spill] sm:$0xff] %v8063_v16  ;;  %2277 = vrot.lane.b32.xlu0 %v11826_v62, %s11516_s24  ;;  %v11831_v16 = vld [vmem:[#allocation51_spill] sm:$0xff] }
 0x310   :  { %v8068_v9 = vpop.permute.xlu1 %4885  ;;  %v5870_v27 = vpop.f32.mrb[180].mxu0  ;;  %v3237_v28 = vrot.slane %v11831_v16, 4 }
 0x311   :  { %11827 = vst [vmem:[#allocation52_spill] sm:$0xff] %v8068_v9  ;;  %v2000_v30 = vpop.f32.mrb[181].mxu0 }
 0x312   :  { %v8071_v46 = vpop.permute.xlu0 %4883  ;;  %2837 = vrot.lane.b32.xlu1 %v11829_v58, %s11740_s0  ;;  %v4828_v30 = vrot.slane %v7166_v35, 4  ;;  %v11835_v58 = vld [vmem:[#allocation57_spill] sm:$0xff]  ;;  %v11838_v35 = vld [vmem:[#allocation42_spill] sm:$0xff] }
 0x313   :  { %11828 = vst [vmem:[#allocation215_spill] sm:$0xff] %v8071_v46  ;;  %2323 = vrot.lane.b32.xlu0 %v2313_v8, %s11511_s25 }
 0x314   :  { %v8077_v34 = vpop.permute.xlu1 %4928  ;;  %v5873_v52 = vpop.f32.mrb[182].mxu0 }
 0x315   :  { %11830 = vst [vmem:[#allocation39_spill] sm:$0xff] %v8077_v34  ;;  %v2008_v44 = vpop.f32.mrb[183].mxu0 }
 0x316   :  { %v8080_v9 = vpop.permute.xlu0 %3981  ;;  %2883 = vrot.lane.b32.xlu1 %v2869_v49, %s11745_s10  ;;  %v2405_v49 = vrot.slane %v11835_v58, 4 }
 0x317   :  { %11832 = vst [vmem:[#allocation51_spill] sm:$0xff] %v8080_v9  ;;  %3251 = vrot.lane.b32.xlu0 %v3237_v28, %s11354_s18  ;;  %s11846_s18 = smov 25  }
 0x318   :  { %v8085_v62 = vpop.permute.xlu1 %4026  ;;  %v5876_v27 = vpop.f32.mrb[184].mxu0 }
 0x319   :  { %11833 = vst [vmem:[#allocation216_spill] sm:$0xff] %v8085_v62  ;;  %v2016_v8 = vpop.f32.mrb[185].mxu0  ;;  %v2961_v27 = vrot.slane %v11838_v35, 4 }
 0x31a   :  { %v8087_v46 = vpop.permute.xlu0 %4930  ;;  %4836 = vrot.lane.b32.xlu1 %v4828_v30, %s11416_s22 }
 0x31b   :  { %11834 = vst [vmem:[#allocation217_spill] sm:$0xff] %v8087_v46  ;;  %2369 = vrot.lane.b32.xlu0 %v11835_v58, %s11509_s26  ;;  %v11840_v46 = vld [vmem:[#allocation55_spill] sm:$0xff] }
 0x31c   :  { %v8092_v44 = vpop.permute.xlu1 %2149  ;;  %v5879_v52 = vpop.f32.mrb[186].mxu0  ;;  %v3329_v62 = vrot.slane %v11840_v46, 4 }
 0x31d   :  { %11836 = vst [vmem:[#allocation57_spill] sm:$0xff] %v8092_v44  ;;  %v2024_v34 = vpop.f32.mrb[187].mxu0 }
 0x31e   :  { %v8095_v28 = vpop.permute.xlu0 %4071  ;;  %2929 = vrot.lane.b32.xlu1 %v11838_v35, %s11447_s11  ;;  %v4918_v34 = vrot.slane %v7184_v19, 4 }
 0x31f   :  { %11837 = vst [vmem:[#allocation218_spill] sm:$0xff] %v8095_v28  ;;  %2415 = vrot.lane.b32.xlu0 %v2405_v49, %s11507_s27 }
 0x320   :  { %v8101_v8 = vpop.permute.xlu1 %4116  ;;  %v5882_v30 = vpop.f32.mrb[188].mxu0 }
 0x321   :  { %11839 = vst [vmem:[#allocation42_spill] sm:$0xff] %v8101_v8  ;;  %v2032_v9 = vpop.f32.mrb[189].mxu0  ;;  %v11857_v8 = vld [vmem:[#allocation60_spill] sm:$0xff] }
 0x322   :  { %v8104_v44 = vpop.permute.xlu0 %2147  ;;  %2975 = vrot.lane.b32.xlu1 %v2961_v27, %s11432_s12  ;;  %v11847_v9 = vld [vmem:[#allocation61_spill] sm:$0xff] }
 0x323   :  { %11841 = vst [vmem:[#allocation55_spill] sm:$0xff] %v8104_v44  ;;  %3343 = vrot.lane.b32.xlu0 %v3329_v62, %s11360_s20  ;;  %s11860_s20 = smov 127  }
 0x324   :  { %v8109_v58 = vpop.permute.xlu1 %2195  ;;  %v8111_v52 = vpop.f32.mrb[190].mxu0 }
 0x325   :  { %11842 = vst [vmem:[#allocation219_spill] sm:$0xff] %v8109_v58  ;;  %11843 = vst [vmem:[#allocation220_spill] sm:$0xff] %v8111_v52  ;;  %v8113_v49 = vpop.f32.mrb[191].mxu0  ;;  %v11852_v58 = vld [vmem:[#allocation44_spill] sm:$0xff]  ;;  %v11853_v52 = vld [vmem:[#allocation63_spill] sm:$0xff] }
 0x326   :  { %11844 = vst [vmem:[#allocation221_spill] sm:$0xff] %v8113_v49  ;;  %v8115_v35 = vpop.permute.xlu0 %2193  ;;  %4926 = vrot.lane.b32.xlu1 %v4918_v34, %s11846_s18  ;;  %v11854_v49 = vld [vmem:[#allocation45_spill] sm:$0xff] }
 0x327   :  { %11845 = vst [vmem:[#allocation222_spill] sm:$0xff] %v8115_v35  ;;  %2461 = vrot.lane.b32.xlu0 %v11847_v9, %s11499_s28  ;;  %v2129_v35 = vrot.slane %v11854_v49, 4 }
 0x328   :  { %v8120_v30 = vpop.permute.xlu1 %2241  ;;  %v8122_v27 = vpop.f32.mrb[192].mxu0 }
 0x329   :  { %11848 = vst [vmem:[#allocation61_spill] sm:$0xff] %v8120_v30  ;;  %11849 = vst [vmem:[#allocation223_spill] sm:$0xff] %v8122_v27  ;;  %v8124_v62 = vpop.f32.mrb[193].mxu0  ;;  %v3421_v30 = vrot.slane %v11857_v8, 4 }
 0x32a   :  { %11850 = vst [vmem:[#allocation224_spill] sm:$0xff] %v8124_v62  ;;  %v8126_v19 = vpop.permute.xlu0 %4161  ;;  %3021 = vrot.lane.b32.xlu1 %v11852_v58, %s11430_s13  ;;  %v3053_v62 = vrot.slane %v11852_v58, 4 }
 0x32b   :  { %11851 = vst [vmem:[#allocation225_spill] sm:$0xff] %v8126_v19  ;;  %2463 = vrot.lane.b32.xlu0 %v11853_v52, %s11499_s28 }
 0x32c   :  { %v8133_v34 = vpop.permute.xlu1 %4206  ;;  %v8135_v44 = vpop.f32.mrb[194].mxu0 }
 0x32d   :  { %11855 = vst [vmem:[#allocation44_spill] sm:$0xff] %v8133_v34  ;;  %11856 = vst [vmem:[#allocation63_spill] sm:$0xff] %v8135_v44  ;;  %v8138_v28 = vpop.f32.mrb[195].mxu0  ;;  %v11865_v44 = vld [vmem:[#allocation66_spill] sm:$0xff] }
 0x32e   :  { %11858 = vst [vmem:[#allocation45_spill] sm:$0xff] %v8138_v28  ;;  %v8140_v27 = vpop.permute.xlu0 %2239  ;;  %2139 = vrot.lane.b32.xlu1 %v2129_v35, %s11860_s20  ;;  %v11866_v28 = vld [vmem:[#allocation47_spill] sm:$0xff] }
 0x32f   :  { %11859 = vst [vmem:[#allocation60_spill] sm:$0xff] %v8140_v27  ;;  %3435 = vrot.lane.b32.xlu0 %v3421_v30, %s11416_s22  ;;  %v2130_v27 = vrot.slane %v11866_v28, 4 }
 0x330   :  { %v8145_v19 = vpop.permute.xlu1 %2287  ;;  %v8147_v20 = vpop.f32.mrb[196].mxu0 }
 0x331   :  { %11861 = vst [vmem:[#allocation226_spill] sm:$0xff] %v8145_v19  ;;  %11862 = vst [vmem:[#allocation227_spill] sm:$0xff] %v8147_v20  ;;  %v8149_v47 = vpop.f32.mrb[197].mxu0  ;;  %v11871_v20 = vld [vmem:[#allocation68_spill] sm:$0xff] }
 0x332   :  { %11863 = vst [vmem:[#allocation228_spill] sm:$0xff] %v8149_v47  ;;  %v8151_v34 = vpop.permute.xlu0 %2285  ;;  %3067 = vrot.lane.b32.xlu1 %v3053_v62, %s11428_s14 }
 0x333   :  { %11864 = vst [vmem:[#allocation229_spill] sm:$0xff] %v8151_v34  ;;  %2553 = vrot.lane.b32.xlu0 %v11865_v44, %s11495_s30  ;;  %v11874_v34 = vld [vmem:[#allocation64_spill] sm:$0xff] }
 0x334   :  { %v8157_v35 = vpop.permute.xlu1 %2333  ;;  %v8159_v30 = vpop.f32.mrb[198].mxu0  ;;  %v3513_v63 = vrot.slane %v11874_v34, 4 }
 0x335   :  { %11867 = vst [vmem:[#allocation66_spill] sm:$0xff] %v8157_v35  ;;  %11868 = vst [vmem:[#allocation230_spill] sm:$0xff] %v8159_v30  ;;  %v8161_v58 = vpop.f32.mrb[199].mxu0 }
 0x336   :  { %11869 = vst [vmem:[#allocation231_spill] sm:$0xff] %v8161_v58  ;;  %v8163_v19 = vpop.permute.xlu0 %4251  ;;  %2141 = vrot.lane.b32.xlu1 %v2130_v27, %s11860_s20 }
 0x337   :  { %11870 = vst [vmem:[#allocation232_spill] sm:$0xff] %v8163_v19  ;;  %2555 = vrot.lane.b32.xlu0 %v11871_v20, %s11495_s30 }
 0x338   :  { %v8168_v47 = vpop.permute.xlu1 %4296  ;;  %v8170_v62 = vpop.f32.mrb[200].mxu0 }
 0x339   :  { %11872 = vst [vmem:[#allocation68_spill] sm:$0xff] %v8168_v47  ;;  %11873 = vst [vmem:[#allocation233_spill] sm:$0xff] %v8170_v62  ;;  %v8173_v28 = vpop.f32.mrb[201].mxu0  ;;  %v11881_v62 = vld [vmem:[#allocation50_spill] sm:$0xff] }
 0x33a   :  { %11875 = vst [vmem:[#allocation64_spill] sm:$0xff] %v8173_v28  ;;  %v8175_v35 = vpop.permute.xlu0 %2331  ;;  %3113 = vrot.lane.b32.xlu1 %v11822_v56, %s11426_s15  ;;  %v11882_v28 = vld [vmem:[#allocation70_spill] sm:$0xff] }
 0x33b   :  { %11876 = vst [vmem:[#allocation234_spill] sm:$0xff] %v8175_v35  ;;  %3527 = vrot.lane.b32.xlu0 %v3513_v63, %s11846_s18  ;;  %v2222_v35 = vrot.slane %v11881_v62, 4 }
 0x33c   :  { %v8180_v30 = vpop.permute.xlu1 %2379  ;;  %v8182_v27 = vpop.f32.mrb[202].mxu0 }
 0x33d   :  { %11877 = vst [vmem:[#allocation235_spill] sm:$0xff] %v8180_v30  ;;  %11878 = vst [vmem:[#allocation236_spill] sm:$0xff] %v8182_v27  ;;  %v8184_v58 = vpop.f32.mrb[203].mxu0  ;;  %v11887_v27 = vld [vmem:[#allocation73_spill] sm:$0xff] }
 0x33e   :  { %11879 = vst [vmem:[#allocation237_spill] sm:$0xff] %v8184_v58  ;;  %v8186_v47 = vpop.permute.xlu0 %2377  ;;  %2187 = vrot.lane.b32.xlu1 %v11881_v62, %s6187_s2  ;;  %v11890_v62 = vld [vmem:[#allocation76_spill] sm:$0xff] }
 0x33f   :  { %11880 = vst [vmem:[#allocation238_spill] sm:$0xff] %v8186_v47  ;;  %2645 = vrot.lane.b32.xlu0 %v11882_v28, %s11505_s1 }
 0x340   :  { %v8193_v19 = vpop.permute.xlu1 %4386  ;;  %v8195_v56 = vpop.f32.mrb[204].mxu0 }
 0x341   :  { %11883 = vst [vmem:[#allocation50_spill] sm:$0xff] %v8193_v19  ;;  %11884 = vst [vmem:[#allocation70_spill] sm:$0xff] %v8195_v56  ;;  %v8197_v63 = vpop.f32.mrb[205].mxu0 }
 0x342   :  { %11885 = vst [vmem:[#allocation239_spill] sm:$0xff] %v8197_v63  ;;  %v8199_v30 = vpop.permute.xlu0 %4341  ;;  %2233 = vrot.lane.b32.xlu1 %v2222_v35, %s11517_s23  ;;  %v11894_v35 = vld [vmem:[#allocation78_spill] sm:$0xff] }
 0x343   :  { %11886 = vst [vmem:[#allocation240_spill] sm:$0xff] %v8199_v30  ;;  %2647 = vrot.lane.b32.xlu0 %v11887_v27, %s11505_s1  ;;  %v11893_v30 = vld [vmem:[#allocation54_spill] sm:$0xff] }
 0x344   :  { %v8204_v58 = vpop.permute.xlu1 %2469 }
 0x345   :  { %11888 = vst [vmem:[#allocation73_spill] sm:$0xff] %v8204_v58  ;;  %v2314_v58 = vrot.slane %v11893_v30, 4 }
 0x346   :  { %v8206_v47 = vpop.permute.xlu0 %2423  ;;  %3205 = vrot.lane.b32.xlu1 %v11831_v16, %s11420_s17  ;;  %v11897_v16 = vld [vmem:[#allocation79_spill] sm:$0xff] }
 0x347   :  { %11889 = vst [vmem:[#allocation241_spill] sm:$0xff] %v8206_v47  ;;  %2737 = vrot.lane.b32.xlu0 %v11890_v62, %s11501_s8 }
 0x348   :  { %v8212_v56 = vpop.permute.xlu1 %2471 }
 0x349   :  { %11891 = vst [vmem:[#allocation76_spill] sm:$0xff] %v8212_v56 }
 0x34a   :  { %v8214_v63 = vpop.permute.xlu0 %2425  ;;  %2279 = vrot.lane.b32.xlu1 %v11893_v30, %s11516_s24 }
 0x34b   :  { %11892 = vst [vmem:[#allocation242_spill] sm:$0xff] %v8214_v63  ;;  %2739 = vrot.lane.b32.xlu0 %v11894_v35, %s11501_s8 }
 0x34c   :  { %v8221_v19 = vpop.permute.xlu1 %2515 }
 0x34d   :  { %11895 = vst [vmem:[#allocation54_spill] sm:$0xff] %v8221_v19 }
 0x34e   :  { %v8223_v47 = vpop.permute.xlu0 %4431  ;;  %2325 = vrot.lane.b32.xlu1 %v2314_v58, %s11511_s25  ;;  %v11904_v58 = vld [vmem:[#allocation83_spill] sm:$0xff] }
 0x34f   :  { %11896 = vst [vmem:[#allocation78_spill] sm:$0xff] %v8223_v47  ;;  %2829 = vrot.lane.b32.xlu0 %v11897_v16, %s11740_s0  ;;  %v11903_v47 = vld [vmem:[#allocation59_spill] sm:$0xff] }
 0x350   :  { %v8228_v56 = vpop.permute.xlu1 %4476 }
 0x351   :  { %11898 = vst [vmem:[#allocation79_spill] sm:$0xff] %v8228_v56  ;;  %v2406_v56 = vrot.slane %v11903_v47, 4 }
 0x352   :  { %v8230_v63 = vpop.permute.xlu0 %2517  ;;  %3297 = vrot.lane.b32.xlu1 %v11840_v46, %s11418_s19  ;;  %v11907_v46 = vld [vmem:[#allocation85_spill] sm:$0xff] }
 0x353   :  { %11899 = vst [vmem:[#allocation243_spill] sm:$0xff] %v8230_v63  ;;  %2831 = vrot.lane.b32.xlu0 %v11900_v41, %s11740_s0 }
 0x354   :  { %v8236_v30 = vpop.permute.xlu1 %2561 }
 0x355   :  { %11901 = vst [vmem:[#allocation82_spill] sm:$0xff] %v8236_v30 }
 0x356   :  { %v8238_v19 = vpop.permute.xlu0 %4521  ;;  %2371 = vrot.lane.b32.xlu1 %v11903_v47, %s11509_s26  ;;  %v2497_v47 = vrot.slane %v11847_v9, 4 }
 0x357   :  { %11902 = vst [vmem:[#allocation244_spill] sm:$0xff] %v8238_v19  ;;  %2921 = vrot.lane.b32.xlu0 %v11904_v58, %s11447_s11 }
 0x358   :  { %v8245_v14 = vpop.permute.xlu1 %2563 }
 0x359   :  { %11905 = vst [vmem:[#allocation59_spill] sm:$0xff] %v8245_v14 }
 0x35a   :  { %v8247_v63 = vpop.permute.xlu0 %2609  ;;  %2417 = vrot.lane.b32.xlu1 %v2406_v56, %s11507_s27  ;;  %v11913_v56 = vld [vmem:[#allocation89_spill] sm:$0xff] }
 0x35b   :  { %11906 = vst [vmem:[#allocation83_spill] sm:$0xff] %v8247_v63  ;;  %2923 = vrot.lane.b32.xlu0 %v11907_v46, %s11447_s11 }
 0x35c   :  { %v8252_v30 = vpop.permute.xlu1 %2607 }
 0x35d   :  { %11908 = vst [vmem:[#allocation85_spill] sm:$0xff] %v8252_v30  ;;  %v2498_v30 = vrot.slane %v11853_v52, 4  ;;  %v2589_v52 = vrot.slane %v11865_v44, 4  ;;  %v2681_v44 = vrot.slane %v11882_v28, 4  ;;  %v2773_v28 = vrot.slane %v11890_v62, 4 }
 0x35e   :  { %v8254_v19 = vpop.permute.xlu0 %4611  ;;  %3389 = vrot.lane.b32.xlu1 %v11857_v8, %s11412_s21  ;;  %v11916_v8 = vld [vmem:[#allocation91_spill] sm:$0xff]  ;;  %v2865_v62 = vrot.slane %v11897_v16, 4  ;;  %v2957_v16 = vrot.slane %v11904_v58, 4  ;;  %v11943_v58 = vld [vmem:[#allocation112_spill] sm:$0xff] }
 0x35f   :  { %11909 = vst [vmem:[#allocation245_spill] sm:$0xff] %v8254_v19  ;;  %3013 = vrot.lane.b32.xlu0 %v11910_v13, %s11430_s13  ;;  %v3659_v38 = vrot.slane %v11943_v58, 4 }
 0x360   :  { %v8261_v14 = vpop.permute.xlu1 %4566 }
 0x361   :  { %11911 = vst [vmem:[#allocation87_spill] sm:$0xff] %v8261_v14 }
 0x362   :  { %v8263_v63 = vpop.permute.xlu0 %2701  ;;  %2507 = vrot.lane.b32.xlu1 %v2497_v47, %s11497_s29  ;;  %v11919_v47 = vld [vmem:[#allocation93_spill] sm:$0xff] }
 0x363   :  { %11912 = vst [vmem:[#allocation246_spill] sm:$0xff] %v8263_v63  ;;  %3015 = vrot.lane.b32.xlu0 %v11913_v56, %s11430_s13  ;;  %s12047_s13 = smov 32  }
 0x364   :  { %v8269_v19 = vpop.permute.xlu1 %2653 }
 0x365   :  { %11914 = vst [vmem:[#allocation89_spill] sm:$0xff] %v8269_v19 }
 0x366   :  { %v8271_v40 = vpop.permute.xlu0 %4701  ;;  %2509 = vrot.lane.b32.xlu1 %v2498_v30, %s11497_s29  ;;  %v11922_v30 = vld [vmem:[#allocation94_spill] sm:$0xff] }
 0x367   :  { %11915 = vst [vmem:[#allocation247_spill] sm:$0xff] %v8271_v40  ;;  %3105 = vrot.lane.b32.xlu0 %v11916_v8, %s11426_s15 }
 0x368   :  { %v8276_v9 = vpop.permute.xlu1 %2655 }
 0x369   :  { %11917 = vst [vmem:[#allocation91_spill] sm:$0xff] %v8276_v9  ;;  %v2590_v9 = vrot.slane %v11871_v20, 4  ;;  %v2682_v20 = vrot.slane %v11887_v27, 4  ;;  %v2774_v27 = vrot.slane %v11894_v35, 4  ;;  %v2866_v35 = vrot.slane %v11900_v41, 4 }
 0x36a   :  { %v8278_v14 = vpop.permute.xlu0 %2793  ;;  %3481 = vrot.lane.b32.xlu1 %v11874_v34, %s11406_s3  ;;  %v11925_v34 = vld [vmem:[#allocation96_spill] sm:$0xff]  ;;  %v2958_v41 = vrot.slane %v11907_v46, 4  ;;  %v3050_v46 = vrot.slane %v11913_v56, 4 }
 0x36b   :  { %11918 = vst [vmem:[#allocation248_spill] sm:$0xff] %v8278_v14  ;;  %3107 = vrot.lane.b32.xlu0 %v11919_v47, %s11426_s15  ;;  %s12034_s15 = smov 58  }
 0x36c   :  { %v8285_v63 = vpop.permute.xlu1 %2699 }
 0x36d   :  { %11920 = vst [vmem:[#allocation93_spill] sm:$0xff] %v8285_v63 }
 0x36e   :  { %v8287_v19 = vpop.permute.xlu0 %4791  ;;  %2599 = vrot.lane.b32.xlu1 %v2589_v52, %s11493_s6  ;;  %v11927_v52 = vld [vmem:[#allocation97_spill] sm:$0xff] }
 0x36f   :  { %11921 = vst [vmem:[#allocation249_spill] sm:$0xff] %v8287_v19  ;;  %3197 = vrot.lane.b32.xlu0 %v11922_v30, %s11420_s17 }
 0x370   :  { %v8293_v14 = vpop.permute.xlu1 %4656 }
 0x371   :  { %11923 = vst [vmem:[#allocation94_spill] sm:$0xff] %v8293_v14 }
 0x372   :  { %v8295_v40 = vpop.permute.xlu0 %4881  ;;  %2601 = vrot.lane.b32.xlu1 %v2590_v9, %s11493_s6  ;;  %v11929_v9 = vld [vmem:[#allocation99_spill] sm:$0xff] }
 0x373   :  { %11924 = vst [vmem:[#allocation250_spill] sm:$0xff] %v8295_v40  ;;  %3199 = vrot.lane.b32.xlu0 %v11925_v34, %s11420_s17  ;;  %s12016_s17 = smov 60  }
 0x374   :  { %v8301_v63 = vpop.permute.xlu1 %2745 }
 0x375   :  { %11926 = vst [vmem:[#allocation96_spill] sm:$0xff] %v8301_v63 }
 0x376   :  { %v8303_v19 = vpop.permute.xlu0 %2185  ;;  %2691 = vrot.lane.b32.xlu1 %v2681_v44, %s11503_s7  ;;  %v11932_v44 = vld [vmem:[#allocation101_spill] sm:$0xff] }
 0x377   :  { %3289 = vrot.lane.b32.xlu0 %v11927_v52, %s11418_s19 }
 0x378   :  { %v8309_v14 = vpop.permute.xlu1 %2747 }
 0x379   :  { %11928 = vst [vmem:[#allocation97_spill] sm:$0xff] %v8309_v14 }
 0x37a   :  { %v8311_v40 = vpop.permute.xlu0 %2231  ;;  %2693 = vrot.lane.b32.xlu1 %v2682_v20, %s11503_s7  ;;  %v11934_v20 = vld [vmem:[#allocation103_spill] sm:$0xff] }
 0x37b   :  { %3291 = vrot.lane.b32.xlu0 %v11929_v9, %s11418_s19  ;;  %s12058_s19 = smov 30  }
 0x37c   :  { %v8317_v63 = vpop.permute.xlu1 %2791 }
 0x37d   :  { %11930 = vst [vmem:[#allocation99_spill] sm:$0xff] %v8317_v63 }
 0x37e   :  { %v8319_v17 = vpop.permute.xlu0 %3159  ;;  %2783 = vrot.lane.b32.xlu1 %v2773_v28, %s11449_s9  ;;  %v11936_v28 = vld [vmem:[#allocation104_spill] sm:$0xff] }
 0x37f   :  { %11931 = vst [vmem:[#allocation251_spill] sm:$0xff] %v8319_v17  ;;  %3381 = vrot.lane.b32.xlu0 %v11932_v44, %s11412_s21 }
 0x380   :  { %v8325_v14 = vpop.permute.xlu1 %4746 }
 0x381   :  { %11933 = vst [vmem:[#allocation101_spill] sm:$0xff] %v8325_v14 }
 0x382   :  { %v8327_v55 = vpop.permute.xlu0 %2277  ;;  %2785 = vrot.lane.b32.xlu1 %v2774_v27, %s11449_s9  ;;  %v11939_v27 = vld [vmem:[#allocation106_spill] sm:$0xff] }
 0x383   :  { %3383 = vrot.lane.b32.xlu0 %v11934_v20, %s11412_s21  ;;  %s11961_s21 = smov 29  }
 0x384   :  { %v8333_v63 = vpop.permute.xlu1 %2837 }
 0x385   :  { %11935 = vst [vmem:[#allocation103_spill] sm:$0xff] %v8333_v63 }
 0x386   :  { %v8335_v17 = vpop.permute.xlu0 %2323  ;;  %2875 = vrot.lane.b32.xlu1 %v2865_v62, %s11745_s10  ;;  %v3570_v62 = vrot.slane %v11941_v24, 4  ;;  %v11945_v24 = vld [vmem:[#allocation115_spill] sm:$0xff] }
 0x387   :  { %3473 = vrot.lane.b32.xlu0 %v11936_v28, %s11406_s3  ;;  %v3660_v0 = vrot.slane %v11945_v24, 4 }
 0x388   :  { %v8341_v14 = vpop.permute.xlu1 %2883 }
 0x389   :  { %11937 = vst [vmem:[#allocation104_spill] sm:$0xff] %v8341_v14  ;;  %v3049_v14 = vrot.slane %v11910_v13, 4  ;;  %v11948_v13 = vld [vmem:[#allocation117_spill] sm:$0xff] }
 0x38a   :  { %v8343_v21 = vpop.permute.xlu0 %3251  ;;  %2877 = vrot.lane.b32.xlu1 %v2866_v35, %s11745_s10 }
 0x38b   :  { %11938 = vst [vmem:[#allocation252_spill] sm:$0xff] %v8343_v21  ;;  %3475 = vrot.lane.b32.xlu0 %v11939_v27, %s11406_s3  ;;  %s11956_s3 = smov 31  }
 0x38c   :  { %v8349_v63 = vpop.permute.xlu1 %4836 }
 0x38d   :  { %11940 = vst [vmem:[#allocation106_spill] sm:$0xff] %v8349_v63 }
 0x38e   :  { %v8352_v54 = vpop.permute.xlu0 %2369  ;;  %2967 = vrot.lane.b32.xlu1 %v2957_v16, %s11432_s12 }
 0x38f   :  { %3580 = vrot.lane.b32.xlu0 %v3570_v62, %s11860_s20 }
 0x390   :  { %v8357_v21 = vpop.permute.xlu1 %2929 }
 0x391   :  { %11942 = vst [vmem:[#allocation253_spill] sm:$0xff] %v8357_v21 }
 0x392   :  { %v8359_v35 = vpop.permute.xlu0 %2415  ;;  %2969 = vrot.lane.b32.xlu1 %v2958_v41, %s11432_s12  ;;  %s12044_s12 = smov 57  }
 0x393   :  { %3623 = vrot.lane.b32.xlu0 %v11943_v58, %s6187_s2  ;;  %v11970_v58 = vld [vmem:[#allocation41_spill] sm:$0xff] }
 0x394   :  { %v8365_v63 = vpop.permute.xlu1 %2975 }
 0x395   :  { %11944 = vst [vmem:[#allocation112_spill] sm:$0xff] %v8365_v63  ;;  %v3141_v63 = vrot.slane %v11916_v8, 4  ;;  %v11953_v8 = vld [vmem:[#allocation121_spill] sm:$0xff] }
 0x396   :  { %v8368_v16 = vpop.permute.xlu0 %3343  ;;  %3059 = vrot.lane.b32.xlu1 %v3049_v14, %s11428_s14 }
 0x397   :  { %11946 = vst [vmem:[#allocation115_spill] sm:$0xff] %v8368_v16  ;;  %3670 = vrot.lane.b32.xlu0 %v3660_v0, %s11517_s23  ;;  %v11950_v16 = vld [vmem:[#allocation119_spill] sm:$0xff]  ;;  %v3142_v0 = vrot.slane %v11919_v47, 4 }
 0x398   :  { %v8373_v62 = vpop.permute.xlu1 %4926  ;;  %v3750_v53 = vrot.slane %v11950_v16, 4 }
 0x399   :  { %11947 = vst [vmem:[#allocation254_spill] sm:$0xff] %v8373_v62 }
 0x39a   :  { %v8375_v41 = vpop.permute.xlu0 %2461  ;;  %3061 = vrot.lane.b32.xlu1 %v3050_v46, %s11428_s14  ;;  %s12025_s14 = smov 59  }
 0x39b   :  { %3713 = vrot.lane.b32.xlu0 %v11948_v13, %s11516_s24 }
 0x39c   :  { %v8381_v21 = vpop.permute.xlu1 %3021 }
 0x39d   :  { %11949 = vst [vmem:[#allocation117_spill] sm:$0xff] %v8381_v21  ;;  %v3233_v21 = vrot.slane %v11922_v30, 4  ;;  %v3325_v30 = vrot.slane %v11927_v52, 4  ;;  %v3417_v52 = vrot.slane %v11932_v44, 4  ;;  %v3509_v44 = vrot.slane %v11936_v28, 4  ;;  %v4966_v28 = vld [vmem:[%s11103_s4 + $0x18] sm:$0xff] }
 0x39e   :  { %v8384_v14 = vpop.permute.xlu0 %2463  ;;  %3151 = vrot.lane.b32.xlu1 %v3141_v63, %s11422_s16 }
 0x39f   :  { %11951 = vst [vmem:[#allocation119_spill] sm:$0xff] %v8384_v14  ;;  %3760 = vrot.lane.b32.xlu0 %v3750_v53, %s11511_s25  ;;  %v3234_v53 = vrot.slane %v11925_v34, 4 }
 0x3a0   :  { %v8389_v56 = vpop.permute.xlu1 %2139 }
 0x3a2   :  { %v8391_v46 = vpop.permute.xlu0 %3435  ;;  %3153 = vrot.lane.b32.xlu1 %v3142_v0, %s11422_s16  ;;  %v11957_v0 = vld [vmem:[#allocation125_spill] sm:$0xff]  ;;  %s12007_s16 = smov 61  }
 0x3a3   :  { %11952 = vst [vmem:[#allocation255_spill] sm:$0xff] %v8391_v46  ;;  %3803 = vrot.lane.b32.xlu0 %v11953_v8, %s11509_s26  ;;  %v2131_v46 = vrot.slane %v11957_v0, 4 }
 0x3a4   :  { %v8397_v62 = vpop.permute.xlu1 %3067 }
 0x3a5   :  { %11954 = vst [vmem:[#allocation121_spill] sm:$0xff] %v8397_v62 }
 0x3a6   :  { %v8400_v63 = vpop.permute.xlu0 %2553  ;;  %3243 = vrot.lane.b32.xlu1 %v3233_v21, %s11956_s3  ;;  %v3326_v21 = vrot.slane %v11929_v9, 4  ;;  %v3418_v9 = vrot.slane %v11934_v20, 4  ;;  %v3510_v20 = vrot.slane %v11939_v27, 4 }
 0x3a7   :  { %3850 = vrot.lane.b32.xlu0 %v3840_v1, %s11507_s27  ;;  %v11962_v1 = vld [vmem:[#allocation130_spill] sm:$0xff] }
 0x3a8   :  { %v8405_v47 = vpop.permute.xlu1 %2141  ;;  %v2223_v0 = vrot.slane %v11962_v1, 4 }
 0x3aa   :  { %v8408_v36 = vpop.permute.xlu0 %2555  ;;  %3245 = vrot.lane.b32.xlu1 %v3234_v53, %s11956_s3 }
 0x3ab   :  { %11958 = vst [vmem:[#allocation124_spill] sm:$0xff] %v8408_v36  ;;  %2143 = vrot.lane.b32.xlu0 %v2131_v46, %s11860_s20 }
 0x3ac   :  { %v8413_v62 = vpop.permute.xlu1 %3113 }
 0x3ad   :  { %11959 = vst [vmem:[#allocation256_spill] sm:$0xff] %v8413_v62 }
 0x3ae   :  { %v8415_v4 = vpop.permute.xlu0 %3527  ;;  %3335 = vrot.lane.b32.xlu1 %v3325_v30, %s11961_s21 }
 0x3af   :  { %11960 = vst [vmem:[#allocation257_spill] sm:$0xff] %v8415_v4  ;;  %2189 = vrot.lane.b32.xlu0 %v11962_v1, %s6187_s2  ;;  %v2315_v4 = vrot.slane %v7609_v6, 4 }
 0x3b0   :  { %v8421_v34 = vpop.permute.xlu1 %2187 }
 0x3b2   :  { %v8424_v53 = vpop.permute.xlu0 %2645  ;;  %3337 = vrot.lane.b32.xlu1 %v3326_v21, %s11961_s21 }
 0x3b3   :  { %2235 = vrot.lane.b32.xlu0 %v2223_v0, %s11517_s23 }
 0x3b4   :  { %v8429_v46 = vpop.permute.xlu1 %2233 }
 0x3b6   :  { %v8431_v30 = vpop.permute.xlu0 %2647  ;;  %3427 = vrot.lane.b32.xlu1 %v3417_v52, %s11416_s22 }
 0x3b7   :  { %11963 = vst [vmem:[#allocation130_spill] sm:$0xff] %v8431_v30  ;;  %2281 = vrot.lane.b32.xlu0 %v7609_v6, %s11516_s24 }
 0x3b8   :  { %v8437_v1 = vpop.permute.xlu1 %3205 }
 0x3b9   :  { %11964 = vst [vmem:[#allocation258_spill] sm:$0xff] %v8437_v1  ;;  %v2407_v1 = vrot.slane %v7626_v33, 4 }
 0x3ba   :  { %v8440_v21 = vpop.permute.xlu0 %2737  ;;  %3429 = vrot.lane.b32.xlu1 %v3418_v9, %s11416_s22  ;;  %s12065_s22 = smov 28  }
 0x3bb   :  { %2327 = vrot.lane.b32.xlu0 %v2315_v4, %s11511_s25  ;;  %v4964_v4 = vld [vmem:[%s11103_s4 + $0x8] sm:$0xff] }
 0x3bc   :  { %v8445_v0 = vpop.permute.xlu1 %2279  ;;  %v5907_v22 = vpack.c.bf16 %v4966_v28, %v4964_v4  ;;  %v4968_v4 = vld [vmem:[%s11103_s4 + $0x28] sm:$0xff]  ;;  %v4970_v28 = vld [vmem:[%s11103_s4 + $0x38] sm:$0xff] }
 0x3be   :  { %v8447_v52 = vpop.permute.xlu0 %2739  ;;  %3519 = vrot.lane.b32.xlu1 %v3509_v44, %s11846_s18  ;;  %v11966_v44 = vld [vmem:[#allocation107_spill] sm:$0xff]  ;;  %5908 = vmatprep.subr.bf16.mxu1 %v5907_v22  ;;  %v4969_v22 = vld [vmem:[%s11103_s4 + $0x30] sm:$0xff] }
 0x3bf   :  { %11965 = vst [vmem:[#allocation259_spill] sm:$0xff] %v8447_v52  ;;  %2373 = vrot.lane.b32.xlu0 %v7626_v33, %s11509_s26  ;;  %v3569_v27 = vrot.slane %v11966_v44, 4  ;;  %v4963_v33 = vld [vmem:[%s11103_s4] sm:$0xff] }
 0x3c0   :  { %v8453_v6 = vpop.permute.xlu1 %2325 }
 0x3c2   :  { %v8456_v9 = vpop.permute.xlu0 %2829  ;;  %3521 = vrot.lane.b32.xlu1 %v3510_v20, %s11846_s18 }
 0x3c3   :  { %2419 = vrot.lane.b32.xlu0 %v2407_v1, %s11507_s27  ;;  %v4965_v1 = vld [vmem:[%s11103_s4 + $0x10] sm:$0xff] }
 0x3c4   :  { %v8467_v62 = vpop.permute.xlu1 %3297  ;;  %v5909_v20 = vpack.c.bf16 %v4965_v1, %v4963_v33  ;;  %v5911_v33 = vpack.c.bf16 %v4970_v28, %v4968_v4  ;;  %v2499_v1 = vrot.slane %v7645_v43, 4  ;;  %v4972_v4 = vld [vmem:[%s11103_s4 + $0x48] sm:$0xff]  ;;  %v4974_v28 = vld [vmem:[%s11103_s4 + $0x58] sm:$0xff] }
 0x3c5   :  { %11967 = vst [vmem:[#allocation260_spill] sm:$0xff] %v8467_v62 }
 0x3c6   :  { %v8475_v31 = vpop.permute.xlu0 %2831  ;;  %3578 = vrot.lane.b32.xlu1 %v3569_v27, %s11860_s20  ;;  %5910 = vmatpush1.bf16.msra.mxu1 %v5909_v20  ;;  %v4967_v27 = vld [vmem:[%s11103_s4 + $0x20] sm:$0xff] }
 0x3c7   :  { %11968 = vst [vmem:[#allocation261_spill] sm:$0xff] %v8475_v31  ;;  %2467 = vrot.lane.b32.xlu0 %v7647_v3, %s11499_s28  ;;  %v5913_v20 = vpack.c.bf16 %v4969_v22, %v4967_v27  ;;  %5912 = vmatprep.subr.bf16.mxu1 %v5911_v33  ;;  %v5915_v22 = vpack.c.bf16 %v4974_v28, %v4972_v4  ;;  %v4973_v33 = vld [vmem:[%s11103_s4 + $0x50] sm:$0xff]  ;;  %v4976_v28 = vld [vmem:[%s11103_s4 + $0x68] sm:$0xff] }
 0x3c8   :  { %v8486_v62 = vpop.permute.xlu1 %2371  ;;  %v2153_v4 = vsel %vm2151_vm5, %v11970_v58, %v8389_v56 }
 0x3ca   :  { %v8495_v44 = vpop.permute.xlu0 %2921  ;;  %3625 = vrot.lane.b32.xlu1 %v11945_v24, %s6187_s2  ;;  %5914 = vmatpush1.bf16.msra.mxu1 %v5913_v20  ;;  %v4971_v24 = vld [vmem:[%s11103_s4 + $0x40] sm:$0xff] }
 0x3cb   :  { %2511 = vrot.lane.b32.xlu0 %v2499_v1, %s11497_s29  ;;  %v2500_v1 = vrot.slane %v7647_v3, 4  ;;  %v5917_v20 = vpack.c.bf16 %v4973_v33, %v4971_v24  ;;  %5916 = vmatprep.subr.bf16.mxu1 %v5915_v22  ;;  %v4978_v3 = vld [vmem:[%s11103_s4 + $0x78] sm:$0xff]  ;;  %v4977_v22 = vld [vmem:[%s11103_s4 + $0x70] sm:$0xff] }
 0x3cc   :  { %v8507_v27 = vpop.permute.xlu1 %2417  ;;  %v5919_v33 = vpack.c.bf16 %v4978_v3, %v4976_v28  ;;  %v4980_v28 = vld [vmem:[%s11103_s4 + $0x88] sm:$0xff]  ;;  %v4982_v3 = vld [vmem:[%s11103_s4 + $0x98] sm:$0xff] }
 0x3ce   :  { %v8516_v48 = vpop.permute.xlu0 %2923  ;;  %3668 = vrot.lane.b32.xlu1 %v3659_v38, %s11517_s23  ;;  %5918 = vmatpush1.bf16.msra.mxu1 %v5917_v20  ;;  %v4975_v38 = vld [vmem:[%s11103_s4 + $0x60] sm:$0xff]  ;;  %v11972_v20 = vld [vmem:[#allocation3_spill] sm:$0xff] }
 0x3cf   :  { %11969 = vst [vmem:[#allocation262_spill] sm:$0xff] %v8516_v48  ;;  %2513 = vrot.lane.b32.xlu0 %v2500_v1, %s11497_s29  ;;  %v5921_v1 = vpack.c.bf16 %v4977_v22, %v4975_v38  ;;  %v2167_v58 = vadd.f32 %v2153_v4, %v11972_v20  ;;  %5920 = vmatprep.subr.bf16.mxu1 %v5919_v33  ;;  %v3749_v4 = vrot.slane %v11948_v13, 4  ;;  %v4981_v33 = vld [vmem:[%s11103_s4 + $0x90] sm:$0xff] }
 0x3d0   :  { %v8529_v24 = vpop.permute.xlu1 %3389  ;;  %v5923_v22 = vpack.c.bf16 %v4982_v3, %v4980_v28  ;;  %v2199_v20 = vsel %vm2197_vm6, %v7153_v32, %v8303_v19  ;;  %v4984_v28 = vld [vmem:[%s11103_s4 + $0xa8] sm:$0xff]  ;;  %v4986_v3 = vld [vmem:[%s11103_s4 + $0xb8] sm:$0xff] }
 0x3d1   :  { %11971 = vst [vmem:[#allocation41_spill] sm:$0xff] %v8529_v24  ;;  %v5927_v32 = vpack.c.bf16 %v4986_v3, %v4984_v28  ;;  %v4989_v3 = vld [vmem:[%s11103_s4 + $0xd0] sm:$0xff] }
 0x3d2   :  { %v8538_v61 = vpop.permute.xlu0 %3013  ;;  %3715 = vrot.lane.b32.xlu1 %v11950_v16, %s11516_s24  ;;  %5922 = vmatpush1.bf16.msra.mxu1 %v5921_v1  ;;  %v4979_v16 = vld [vmem:[%s11103_s4 + $0x80] sm:$0xff]  ;;  %v2591_v1 = vrot.slane %v7660_v7, 4 }
 0x3d3   :  { %11973 = vst [vmem:[#allocation3_spill] sm:$0xff] %v8538_v61  ;;  %2559 = vrot.lane.b32.xlu0 %v7666_v5, %s11495_s30  ;;  %v5925_v24 = vpack.c.bf16 %v4981_v33, %v4979_v16  ;;  %v2213_v61 = vadd.f32 %v2199_v20, %v2167_v58  ;;  %5924 = vmatprep.subr.bf16.mxu1 %v5923_v22  ;;  %v4983_v58 = vld [vmem:[%s11103_s4 + $0xa0] sm:$0xff]  ;;  %v4988_v20 = vld [vmem:[%s11103_s4 + $0xc8] sm:$0xff] }
 0x3d4   :  { %v8551_v38 = vpop.permute.xlu1 %2507  ;;  %v2245_v22 = vsel %vm2243_vm7, %v7170_v37, %v8311_v40  ;;  %v3839_v37 = vrot.slane %v11953_v8, 4  ;;  %v2154_v8 = vsel %vm2151_vm5, %v8389_v56, %v8405_v47  ;;  %v4991_v56 = vld [vmem:[%s11103_s4 + $0xe0] sm:$0xff] }
 0x3d5   :  { %v2259_v33 = vadd.f32 %v2245_v22, %v2213_v61  ;;  %v4992_v22 = vld [vmem:[%s11103_s4 + $0xe8] sm:$0xff] }
 0x3d6   :  { %v8563_v13 = vpop.permute.xlu0 %3015  ;;  %3758 = vrot.lane.b32.xlu1 %v3749_v4, %s11511_s25  ;;  %5926 = vmatpush1.bf16.msra.mxu1 %v5925_v24  ;;  %v4985_v4 = vld [vmem:[%s11103_s4 + $0xb0] sm:$0xff]  ;;  %v2592_v24 = vrot.slane %v7666_v5, 4  ;;  %v4990_v5 = vld [vmem:[%s11103_s4 + $0xd8] sm:$0xff] }
 0x3d7   :  { %11974 = vst [vmem:[#allocation263_spill] sm:$0xff] %v8563_v13  ;;  %2603 = vrot.lane.b32.xlu0 %v2591_v1, %s11493_s6  ;;  %v5929_v16 = vpack.c.bf16 %v4985_v4, %v4983_v58  ;;  %5928 = vmatprep.subr.bf16.mxu1 %v5927_v32  ;;  %v5931_v28 = vpack.c.bf16 %v4990_v5, %v4988_v20 }
 0x3d8   :  { %v8573_v50 = vpop.permute.xlu1 %2509  ;;  %v2291_v32 = vsel %vm2289_vm8, %v7188_v29, %v8327_v55  ;;  %v4994_v29 = vld [vmem:[%s11103_s4 + $0xf8] sm:$0xff] }
 0x3d9   :  { %11975 = vst [vmem:[#allocation264_spill] sm:$0xff] %v8573_v50  ;;  %v2305_v4 = vadd.f32 %v2291_v32, %v2259_v33  ;;  %v5935_v5 = vpack.c.bf16 %v4994_v29, %v4992_v22 }
 0x3da   :  { %v8585_v1 = vpop.permute.xlu0 %3105  ;;  %3805 = vrot.lane.b32.xlu1 %v11955_v39, %s11509_s26  ;;  %5930 = vmatpush1.bf16.msra.mxu1 %v5929_v16  ;;  %v4987_v39 = vld [vmem:[%s11103_s4 + $0xc0] sm:$0xff] }
 0x3db   :  { %2605 = vrot.lane.b32.xlu0 %v2592_v24, %s11493_s6  ;;  %v5933_v58 = vpack.c.bf16 %v4989_v3, %v4987_v39  ;;  %5932 = vmatprep.subr.bf16.mxu1 %v5931_v28  ;;  %v11978_v16 = vld [vmem:[#allocation126_spill] sm:$0xff]  ;;  %v2683_v28 = vrot.slane %v7674_v42, 4  ;;  %v2337_v39 = vsel %vm2335_vm9, %v7208_v51, %v8335_v17  ;;  %v2200_v3 = vsel %vm2197_vm6, %v8303_v19, %v8421_v34  ;;  %v4996_v51 = vld [vmem:[%s11103_s4 + $0x108] sm:$0xff] }
 0x3dc   :  { %v8597_v61 = vpop.permute.xlu1 %3481  ;;  %v2132_v33 = vrot.slane %v11978_v16, 4  ;;  %v2351_v22 = vadd.f32 %v2337_v39, %v2305_v4 }
 0x3dd   :  { %11976 = vst [vmem:[#allocation265_spill] sm:$0xff] %v8597_v61  ;;  %v2246_v61 = vsel %vm2243_vm7, %v8311_v40, %v8429_v46  ;;  %v4997_v40 = vld [vmem:[%s11103_s4 + $0x110] sm:$0xff] }
 0x3de   :  { %v8608_v24 = vpop.permute.xlu0 %3107  ;;  %3848 = vrot.lane.b32.xlu1 %v3839_v37, %s11507_s27  ;;  %5934 = vmatpush1.bf16.msra.mxu1 %v5933_v58  ;;  %v4993_v37 = vld [vmem:[%s11103_s4 + $0xf0] sm:$0xff]  ;;  %v2168_v58 = vadd.f32 %v2154_v8, %v11854_v49  ;;  %v4998_v49 = vld [vmem:[%s11103_s4 + $0x118] sm:$0xff] }
 0x3df   :  { %11977 = vst [vmem:[#allocation266_spill] sm:$0xff] %v8608_v24  ;;  %2651 = vrot.lane.b32.xlu0 %v7679_v18, %s11505_s1  ;;  %v5937_v32 = vpack.c.bf16 %v4993_v37, %v4991_v56  ;;  %5936 = vmatprep.subr.bf16.mxu1 %v5935_v5  ;;  %v5939_v8 = vpack.c.bf16 %v4998_v49, %v4996_v51  ;;  %v2684_v5 = vrot.slane %v7679_v18, 4 }
 0x3e0   :  { %v8623_v20 = vpop.permute.xlu1 %2599  ;;  %v2214_v19 = vadd.f32 %v2200_v3, %v2168_v58  ;;  %v2383_v56 = vsel %vm2381_vm10, %v7229_v25, %v8352_v54  ;;  %v2292_v37 = vsel %vm2289_vm8, %v8327_v55, %v8445_v0  ;;  %v11981_v58 = vld [vmem:[#allocation131_spill] sm:$0xff]  ;;  %v2338_v18 = vsel %vm2335_vm9, %v8335_v17, %v8453_v6  ;;  %v5002_v55 = vld [vmem:[%s11103_s4 + $0x138] sm:$0xff]  ;;  %v4999_v17 = vld [vmem:[%s11103_s4 + $0x120] sm:$0xff] }
 0x3e1   :  { %v2397_v3 = vadd.f32 %v2383_v56, %v2351_v22  ;;  %v5000_v25 = vld [vmem:[%s11103_s4 + $0x128] sm:$0xff] }
 0x3e2   :  { %v8639_v29 = vpop.permute.xlu0 %3197  ;;  %2145 = vrot.lane.b32.xlu1 %v2132_v33, %s11860_s20  ;;  %5938 = vmatpush1.bf16.msra.mxu1 %v5937_v32  ;;  %v4995_v33 = vld [vmem:[%s11103_s4 + $0x100] sm:$0xff]  ;;  %v2260_v39 = vadd.f32 %v2246_v61, %v2214_v19  ;;  %v2224_v61 = vrot.slane %v11981_v58, 4  ;;  %v5943_v49 = vpack.c.bf16 %v5002_v55, %v5000_v25  ;;  %v5001_v19 = vld [vmem:[%s11103_s4 + $0x130] sm:$0xff] }
 0x3e3   :  { %2695 = vrot.lane.b32.xlu0 %v2683_v28, %s11503_s7  ;;  %v5941_v28 = vpack.c.bf16 %v4997_v40, %v4995_v33  ;;  %5940 = vmatprep.subr.bf16.mxu1 %v5939_v8  ;;  %v11982_v8 = vld [vmem:[#allocation56_spill] sm:$0xff]  ;;  %v2384_v40 = vsel %vm2381_vm10, %v8352_v54, %v8486_v62  ;;  %v5004_v54 = vld [vmem:[%s11103_s4 + $0x148] sm:$0xff] }
 0x3e4   :  { %v8652_v4 = vpop.permute.xlu1 %2601  ;;  %v2306_v22 = vadd.f32 %v2292_v37, %v2260_v39  ;;  %v2429_v33 = vsel %vm11443_vm11, %v11982_v8, %v8359_v35  ;;  %v2430_v39 = vsel %vm11443_vm11, %v8359_v35, %v8507_v27  ;;  %v5003_v35 = vld [vmem:[%s11103_s4 + $0x140] sm:$0xff]  ;;  %v5005_v55 = vld [vmem:[%s11103_s4 + $0x150] sm:$0xff]  ;;  %vm11995_vm11 = vcmask 744448  }
 0x3e5   :  { %11979 = vst [vmem:[#allocation126_spill] sm:$0xff] %v8652_v4  ;;  %v2443_v37 = vadd.f32 %v2429_v33, %v2397_v3  ;;  %v5006_v3 = vld [vmem:[%s11103_s4 + $0x158] sm:$0xff]  ;;  %v5949_v8 = vpack.c.bf16 %v5005_v55, %v5003_v35  ;;  %v5009_v55 = vld [vmem:[%s11103_s4 + $0x170] sm:$0xff] }
 0x3e6   :  { %v8667_v32 = vpop.permute.xlu0 %3199  ;;  %2191 = vrot.lane.b32.xlu1 %v11981_v58, %s6187_s2  ;;  %5942 = vmatpush1.bf16.msra.mxu1 %v5941_v28  ;;  %v2352_v56 = vadd.f32 %v2338_v18, %v2306_v22  ;;  %v5947_v25 = vpack.c.bf16 %v5006_v3, %v5004_v54  ;;  %v11984_v22 = vld [vmem:[#allocation65_spill] sm:$0xff]  ;;  %v5008_v54 = vld [vmem:[%s11103_s4 + $0x168] sm:$0xff] }
 0x3e7   :  { %11980 = vst [vmem:[#allocation267_spill] sm:$0xff] %v8667_v32  ;;  %2697 = vrot.lane.b32.xlu0 %v2684_v5, %s11503_s7  ;;  %v5945_v5 = vpack.c.bf16 %v5001_v19, %v4999_v17  ;;  %5944 = vmatprep.subr.bf16.mxu1 %v5943_v49  ;;  %v2475_v49 = vsel %vm2473_vm12, %v11984_v22, %v8375_v41  ;;  %v11985_v17 = vld [vmem:[#allocation72_spill] sm:$0xff]  ;;  %v5010_v3 = vld [vmem:[%s11103_s4 + $0x178] sm:$0xff] }
 0x3e8   :  { %v8682_v51 = vpop.permute.xlu1 %2691  ;;  %v2398_v58 = vadd.f32 %v2384_v40, %v2352_v56  ;;  %v2521_v19 = vsel %vm2519_vm13, %v11985_v17, %v8551_v38  ;;  %v2489_v40 = vadd.f32 %v2475_v49, %v2443_v37  ;;  %v11987_v56 = vld [vmem:[#allocation134_spill] sm:$0xff]  ;;  %v5951_v35 = vpack.c.bf16 %v5010_v3, %v5008_v54 }
 0x3e9   :  { %v2476_v22 = vsel %vm2473_vm12, %v8375_v41, %v8384_v14  ;;  %v2522_v49 = vsel %vm2519_vm13, %v8551_v38, %v8573_v50  ;;  %v5012_v41 = vld [vmem:[%s11103_s4 + $0x188] sm:$0xff]  ;;  %v5014_v38 = vld [vmem:[%s11103_s4 + $0x198] sm:$0xff] }
 0x3ea   :  { %v8696_v28 = vpop.permute.xlu0 %3289  ;;  %2237 = vrot.lane.b32.xlu1 %v2224_v61, %s11517_s23  ;;  %5946 = vmatpush1.bf16.msra.mxu1 %v5945_v5  ;;  %v2775_v61 = vrot.slane %v7693_v45, 4  ;;  %v2444_v33 = vadd.f32 %v2430_v39, %v2398_v58  ;;  %v2316_v39 = vrot.slane %v11987_v56, 4  ;;  %v2535_v37 = vadd.f32 %v2521_v19, %v2489_v40  ;;  %v11988_v40 = vld [vmem:[#allocation75_spill] sm:$0xff] }
 0x3eb   :  { %2743 = vrot.lane.b32.xlu0 %v7695_v59, %s11501_s8  ;;  %5948 = vmatprep.subr.bf16.mxu1 %v5947_v25  ;;  %v5007_v25 = vld [vmem:[%s11103_s4 + $0x160] sm:$0xff] }
 0x3ec   :  { %v8710_v18 = vpop.permute.xlu1 %2693  ;;  %v5953_v17 = vpack.c.bf16 %v5009_v55, %v5007_v25  ;;  %v2490_v19 = vadd.f32 %v2476_v22, %v2444_v33  ;;  %v5011_v25 = vld [vmem:[%s11103_s4 + $0x180] sm:$0xff]  ;;  %v5013_v55 = vld [vmem:[%s11103_s4 + $0x190] sm:$0xff] }
 0x3ed   :  { %11983 = vst [vmem:[#allocation131_spill] sm:$0xff] %v8710_v18 }
 0x3ee   :  { %v8725_v5 = vpop.permute.xlu0 %3291  ;;  %2283 = vrot.lane.b32.xlu1 %v11987_v56, %s11516_s24  ;;  %5950 = vmatpush1.bf16.msra.mxu1 %v5949_v8  ;;  %v2567_v56 = vsel %vm11445_vm14, %v11988_v40, %v8400_v63  ;;  %v2536_v33 = vadd.f32 %v2522_v49, %v2490_v19  ;;  %v11992_v40 = vld [vmem:[#allocation136_spill] sm:$0xff]  ;;  %v2614_v49 = vsel %vm11444_vm15, %v8623_v20, %v8652_v4  ;;  %v5016_v19 = vld [vmem:[%s11103_s4 + $0x1a8] sm:$0xff] }
 0x3ef   :  { %11986 = vst [vmem:[#allocation56_spill] sm:$0xff] %v8725_v5  ;;  %2787 = vrot.lane.b32.xlu0 %v2775_v61, %s11449_s9  ;;  %v2776_v61 = vrot.slane %v7695_v59, 4  ;;  %5952 = vmatprep.subr.bf16.mxu1 %v5951_v35  ;;  %v11989_v59 = vld [vmem:[#allocation81_spill] sm:$0xff]  ;;  %v2581_v3 = vadd.f32 %v2567_v56, %v2535_v37  ;;  %v5955_v35 = vpack.c.bf16 %v5014_v38, %v5012_v41  ;;  %v5017_v38 = vld [vmem:[%s11103_s4 + $0x1b0] sm:$0xff] }
 0x3f0   :  { %v8737_v58 = vpop.permute.xlu1 %2783  ;;  %v2613_v54 = vsel %vm11444_vm15, %v11989_v59, %v8623_v20  ;;  %v2568_v37 = vsel %vm11445_vm14, %v8400_v63, %v8408_v36  ;;  %v5018_v56 = vld [vmem:[%s11103_s4 + $0x1b8] sm:$0xff]  ;;  %v2408_v59 = vrot.slane %v11992_v40, 4  ;;  %v5015_v20 = vld [vmem:[%s11103_s4 + $0x1a0] sm:$0xff]  ;;  %vm11998_vm15 = vcmask 736256   ;;  %v12140_v4 = vld [vmem:[#allocation172_spill] sm:$0xff] }
 0x3f1   :  { %v2627_v22 = vadd.f32 %v2613_v54, %v2581_v3  ;;  %v2582_v54 = vadd.f32 %v2568_v37, %v2536_v33  ;;  %v5959_v41 = vpack.c.bf16 %v5018_v56, %v5016_v19  ;;  %v11993_v3 = vld [vmem:[#allocation19_spill] sm:$0xff]  ;;  %v2705_v33 = vsel %vm11995_vm11, %v7398_v10, %v8682_v51  ;;  %v12141_v36 = vld [vmem:[#allocation176_spill] sm:$0xff] }
 0x3f2   :  { %v8752_v8 = vpop.permute.xlu0 %3381  ;;  %2329 = vrot.lane.b32.xlu1 %v2316_v39, %s11511_s25  ;;  %5954 = vmatpush1.bf16.msra.mxu1 %v5953_v17  ;;  %v5020_v56 = vld [vmem:[%s11103_s4 + $0x1c8] sm:$0xff]  ;;  %vm11999_vm14 = vcmask 728064  }
 0x3f3   :  { %2789 = vrot.lane.b32.xlu0 %v2776_v61, %s11449_s9  ;;  %v5957_v61 = vpack.c.bf16 %v5013_v55, %v5011_v25  ;;  %5956 = vmatprep.subr.bf16.mxu1 %v5955_v35  ;;  %v2867_v35 = vrot.slane %v11993_v3, 4  ;;  %v11994_v25 = vld [vmem:[#allocation5_spill] sm:$0xff]  ;;  %s12074_s9 = smov 26  }
 0x3f4   :  { %v8768_v39 = vpop.permute.xlu1 %2785  ;;  %v2659_v55 = vsel %vm11446_vm0, %v11994_v25, %v8424_v53  ;;  %v5022_v25 = vld [vmem:[%s11103_s4 + $0x1d8] sm:$0xff] }
 0x3f5   :  { %11990 = vst [vmem:[#allocation65_spill] sm:$0xff] %v8768_v39  ;;  %v2673_v37 = vadd.f32 %v2659_v55, %v2627_v22  ;;  %v5963_v22 = vpack.c.bf16 %v5022_v25, %v5020_v56 }
 0x3f6   :  { %v8776_v17 = vpop.permute.xlu0 %3383  ;;  %2375 = vrot.lane.b32.xlu1 %v11992_v40, %s11509_s26  ;;  %5958 = vmatpush1.bf16.msra.mxu1 %v5957_v61  ;;  %v5961_v61 = vpack.c.bf16 %v5017_v38, %v5015_v20  ;;  %v2628_v40 = vadd.f32 %v2614_v49, %v2582_v54  ;;  %v5019_v49 = vld [vmem:[%s11103_s4 + $0x1c0] sm:$0xff]  ;;  %v2868_v54 = vrot.slane %v7714_v57, 4  ;;  %v2706_v38 = vsel %vm11995_vm11, %v8682_v51, %v8710_v18  ;;  %v5024_v51 = vld [vmem:[%s11103_s4 + $0x1e8] sm:$0xff] }
 0x3f7   :  { %11991 = vst [vmem:[#allocation72_spill] sm:$0xff] %v8776_v17  ;;  %2835 = vrot.lane.b32.xlu0 %v7714_v57, %s11740_s0  ;;  %5960 = vmatprep.subr.bf16.mxu1 %v5959_v41  ;;  %v2719_v10 = vadd.f32 %v2705_v33, %v2673_v37  ;;  %v2660_v41 = vsel %vm11446_vm0, %v8424_v53, %v8431_v30  ;;  %vm12005_vm11 = vcmask 523264   ;;  %vm12012_vm0 = vcmask 498688   ;;  %v12137_v30 = vld [vmem:[#allocation173_spill] sm:$0xff] }
 0x3f8   :  { %v8795_v63 = vpop.permute.xlu1 %2875  ;;  %v2674_v55 = vadd.f32 %v2660_v41, %v2628_v40  ;;  %v2751_v57 = vsel %vm11998_vm15, %v7408_v2, %v8440_v21  ;;  %v2797_v53 = vsel %vm11999_vm14, %v7437_v12, %v8737_v58  ;;  %v5023_v2 = vld [vmem:[%s11103_s4 + $0x1e0] sm:$0xff]  ;;  %v5025_v12 = vld [vmem:[%s11103_s4 + $0x1f0] sm:$0xff]  ;;  %vm12001_vm14 = vmmov %vm11998_vm15  ;;  %vm12002_vm15 = vcmask 728064  }
 0x3f9   :  { %v2765_v40 = vadd.f32 %v2751_v57, %v2719_v10  ;;  %v5969_v25 = vpack.c.bf16 %v5025_v12, %v5023_v2  ;;  %v2752_v10 = vsel %vm12001_vm14, %v8440_v21, %v8447_v52  ;;  %vm12006_vm14 = vcmask 515072  }
 0x3fa   :  { %v8810_v19 = vpop.permute.xlu0 %3473  ;;  %2421 = vrot.lane.b32.xlu1 %v2408_v59, %s11507_s27  ;;  %5962 = vmatpush1.bf16.msra.mxu1 %v5961_v61  ;;  %v5021_v59 = vld [vmem:[%s11103_s4 + $0x1d0] sm:$0xff]  ;;  %v2720_v61 = vadd.f32 %v2706_v38, %v2674_v55  ;;  %v12004_v38 = vld [vmem:[#allocation141_spill] sm:$0xff]  ;;  %v2889_v21 = vsel %vm12006_vm14, %v7476_v15, %v8795_v63 }
 0x3fb   :  { %2879 = vrot.lane.b32.xlu0 %v2867_v35, %s11745_s10  ;;  %v5965_v35 = vpack.c.bf16 %v5021_v59, %v5019_v49  ;;  %5964 = vmatprep.subr.bf16.mxu1 %v5963_v22  ;;  %v2811_v22 = vadd.f32 %v2797_v53, %v2765_v40  ;;  %v2798_v59 = vsel %vm12002_vm15, %v8737_v58, %v8768_v39  ;;  %vm12008_vm15 = vmmov %vm12005_vm11 }
 0x3fc   :  { %v8820_v20 = vpop.permute.xlu1 %2877 }
 0x3fd   :  { %11996 = vst [vmem:[#allocation134_spill] sm:$0xff] %v8820_v20 }
 0x3fe   :  { %v8835_v33 = vpop.permute.xlu0 %3475  ;;  %2465 = vrot.lane.b32.xlu1 %v7645_v43, %s11499_s28  ;;  %5966 = vmatpush1.bf16.msra.mxu1 %v5965_v35  ;;  %v5026_v43 = vld [vmem:[%s11103_s4 + $0x1f8] sm:$0xff]  ;;  %v2959_v35 = vrot.slane %v12004_v38, 4 }
 0x3ff   :  { %11997 = vst [vmem:[#allocation75_spill] sm:$0xff] %v8835_v33  ;;  %2881 = vrot.lane.b32.xlu0 %v2868_v54, %s11745_s10  ;;  %v5967_v56 = vpack.c.bf16 %v5026_v43, %v5024_v51  ;;  %v2766_v54 = vadd.f32 %v2752_v10, %v2720_v61  ;;  %v2960_v43 = vrot.slane %v7728_v26, 4  ;;  %v12018_v10 = vld [vmem:[#allocation144_spill] sm:$0xff] }
 0x400   :  { %v2968_v37 = vpop.permute.xlu1 %2967 }
 0x401   :  { %5968 = vmatprep.subr.bf16.mxu1 %v5967_v56  ;;  %v2812_v55 = vadd.f32 %v2798_v59, %v2766_v54  ;;  %v3051_v59 = vrot.slane %v12018_v10, 4  ;;  %v12019_v54 = vld [vmem:[#allocation3_spill] sm:$0xff] }
 0x402   :  { %v8858_v49 = vpop.permute.xlu0 %3580  ;;  %2557 = vrot.lane.b32.xlu1 %v7660_v7, %s11495_s30  ;;  %5970 = vmatpush1.bf16.msra.mxu1 %v5969_v25  ;;  %v2843_v7 = vsel %vm12005_vm11, %v7449_v11, %v8456_v9  ;;  %v2844_v11 = vsel %vm12008_vm15, %v8456_v9, %v8475_v31  ;;  %vm12009_vm11 = vmmov %vm12006_vm14  ;;  %vm12011_vm14 = vcmask 506880   ;;  %v12133_v31 = vld [vmem:[#allocation168_spill] sm:$0xff] }
 0x403   :  { %12000 = vst [vmem:[#allocation81_spill] sm:$0xff] %v8858_v49  ;;  %2927 = vrot.lane.b32.xlu0 %v7728_v26, %s11447_s11  ;;  %v2857_v57 = vadd.f32 %v2843_v7, %v2811_v22  ;;  %v2890_v15 = vsel %vm12009_vm11, %v8795_v63, %v8820_v20  ;;  %v2858_v61 = vadd.f32 %v2844_v11, %v2812_v55  ;;  %vm12014_vm15 = vmmov %vm12011_vm14  ;;  %v12131_v20 = vld [vmem:[#allocation166_spill] sm:$0xff]  ;;  %v3841_v39 = vrot.slane %v12133_v31, 4 }
 0x404   :  { %v8870_v41 = vpop.permute.xlu1 %2969  ;;  %v2981_v26 = vsel %vm12012_vm0, %v7510_v60, %v2968_v37  ;;  %vm12015_vm11 = vmmov %vm12012_vm0  ;;  %v12017_v60 = vld [vmem:[#allocation145_spill] sm:$0xff]  ;;  %vm12021_vm0 = vcmask 490496  }
 0x405   :  { %12003 = vst [vmem:[#allocation136_spill] sm:$0xff] %v8870_v41  ;;  %v2903_v53 = vadd.f32 %v2889_v21, %v2857_v57  ;;  %v2904_v9 = vadd.f32 %v2890_v15, %v2858_v61  ;;  %v12022_v21 = vld [vmem:[#allocation123_spill] sm:$0xff] }
 0x406   :  { %v8879_v58 = vpop.permute.xlu0 %3623  ;;  %2649 = vrot.lane.b32.xlu1 %v7674_v42, %s11505_s1  ;;  %v2935_v42 = vsel %vm12011_vm14, %v7487_v23, %v8495_v44  ;;  %v2982_v23 = vsel %vm12015_vm11, %v2968_v37, %v8870_v41  ;;  %vm12023_vm14 = vcmask 482304   ;;  %v12121_v41 = vld [vmem:[#allocation146_spill] sm:$0xff] }
 0x407   :  { %2971 = vrot.lane.b32.xlu0 %v2959_v35, %s12007_s16  ;;  %v2949_v56 = vadd.f32 %v2935_v42, %v2903_v53  ;;  %v12020_v35 = vld [vmem:[#allocation111_spill] sm:$0xff]  ;;  %vm12028_vm11 = vmmov %vm12023_vm14 }
 0x408   :  { %v3060_v51 = vpop.permute.xlu1 %3059  ;;  %v3027_v7 = vsel %vm12021_vm0, %v12020_v35, %v12019_v54 }
 0x409   :  { %v2995_v63 = vadd.f32 %v2981_v26, %v2949_v56 }
 0x40a   :  { %v8891_v40 = vpop.permute.xlu0 %3670  ;;  %2741 = vrot.lane.b32.xlu1 %v7693_v45, %s11501_s8  ;;  %v2936_v45 = vsel %vm12014_vm15, %v8495_v44, %v8516_v48  ;;  %vm12027_vm15 = vmmov %vm12021_vm0  ;;  %vm12030_vm0 = vcmask 474112  }
 0x40b   :  { %12010 = vst [vmem:[#allocation19_spill] sm:$0xff] %v8891_v40  ;;  %2973 = vrot.lane.b32.xlu0 %v2960_v43, %s12007_s16  ;;  %v2950_v25 = vadd.f32 %v2936_v45, %v2904_v9  ;;  %v3041_v57 = vadd.f32 %v3027_v7, %v2995_v63  ;;  %v3052_v43 = vrot.slane %v12017_v60, 4  ;;  %v3028_v11 = vsel %vm12027_vm15, %v12019_v54, %v8563_v13  ;;  %v12031_v9 = vld [vmem:[#allocation137_spill] sm:$0xff]  ;;  %vm12036_vm15 = vmmov %vm12030_vm0  ;;  %v12038_v54 = vld [vmem:[#allocation148_spill] sm:$0xff] }
 0x40c   :  { %v8901_v2 = vpop.permute.xlu1 %3061  ;;  %v3144_v35 = vrot.slane %v12038_v54, 4 }
 0x40d   :  { %12013 = vst [vmem:[#allocation5_spill] sm:$0xff] %v8901_v2  ;;  %v2996_v55 = vadd.f32 %v2982_v23, %v2950_v25  ;;  %v3074_v15 = vsel %vm12028_vm11, %v3060_v51, %v8901_v2  ;;  %v12035_v25 = vld [vmem:[#allocation147_spill] sm:$0xff] }
 0x40e   :  { %v8903_v12 = vpop.permute.xlu0 %3713  ;;  %2833 = vrot.lane.b32.xlu1 %v11993_v3, %s11740_s0  ;;  %v3073_v3 = vsel %vm12023_vm14, %v12022_v21, %v3060_v51  ;;  %vm12032_vm14 = vcmask 465920  }
 0x40f   :  { %3019 = vrot.lane.b32.xlu0 %v12017_v60, %s12016_s17  ;;  %v3087_v37 = vadd.f32 %v3073_v3, %v3041_v57  ;;  %v3042_v61 = vadd.f32 %v3028_v11, %v2996_v55  ;;  %vm12037_vm11 = vmmov %vm12032_vm14  ;;  %v3143_v3 = vrot.slane %v12035_v25, 4  ;;  %v12040_v55 = vld [vmem:[#allocation15_spill] sm:$0xff] }
 0x410   :  { %v3152_v22 = vpop.permute.xlu1 %3151 }
 0x411   :  { %v3165_v56 = vsel %vm12032_vm14, %v12031_v9, %v3152_v22  ;;  %v3088_v63 = vadd.f32 %v3074_v15, %v3042_v61  ;;  %vm12043_vm14 = vcmask 252928  }
 0x412   :  { %v8920_v44 = vpop.permute.xlu0 %3760  ;;  %2925 = vrot.lane.b32.xlu1 %v12004_v38, %s11447_s11  ;;  %v12029_v38 = vld [vmem:[#allocation13_spill] sm:$0xff]  ;;  %s12070_s11 = smov 27  }
 0x413   :  { %12024 = vst [vmem:[#allocation141_spill] sm:$0xff] %v8920_v44  ;;  %3063 = vrot.lane.b32.xlu0 %v3051_v59, %s12025_s14  ;;  %v3119_v26 = vsel %vm12030_vm0, %v12029_v38, %v8585_v1  ;;  %vm12041_vm0 = vcmask 261120  }
 0x414   :  { %v8925_v53 = vpop.permute.xlu1 %3153  ;;  %v3133_v45 = vadd.f32 %v3119_v26, %v3087_v37  ;;  %v3211_v57 = vsel %vm12041_vm0, %v12040_v55, %v8639_v29  ;;  %v12042_v37 = vld [vmem:[#allocation18_spill] sm:$0xff] }
 0x415   :  { %12026 = vst [vmem:[#allocation145_spill] sm:$0xff] %v8925_v53  ;;  %v3166_v59 = vsel %vm12037_vm11, %v3152_v22, %v8925_v53  ;;  %vm12046_vm11 = vmmov %vm12043_vm14  ;;  %v12114_v53 = vld [vmem:[#allocation143_spill] sm:$0xff] }
 0x416   :  { %v8933_v42 = vpop.permute.xlu0 %3803  ;;  %3017 = vrot.lane.b32.xlu1 %v12018_v10, %s12016_s17  ;;  %v3179_v60 = vadd.f32 %v3165_v56, %v3133_v45  ;;  %v3120_v10 = vsel %vm12036_vm15, %v8585_v1, %v8608_v24  ;;  %vm12045_vm15 = vmmov %vm12041_vm0  ;;  %v12049_v45 = vld [vmem:[#allocation140_spill] sm:$0xff]  ;;  %vm12051_vm0 = vcmask 236544  }
 0x417   :  { %3065 = vrot.lane.b32.xlu0 %v3052_v43, %s12025_s14  ;;  %v3134_v7 = vadd.f32 %v3120_v10, %v3088_v63  ;;  %v3212_v38 = vsel %vm12045_vm15, %v8639_v29, %v8667_v32  ;;  %v12048_v63 = vld [vmem:[#allocation150_spill] sm:$0xff]  ;;  %vm12056_vm15 = vcmask 228352  }
 0x418   :  { %v3244_v23 = vpop.permute.xlu1 %3243  ;;  %v3225_v11 = vadd.f32 %v3211_v57, %v3179_v60  ;;  %v3303_v60 = vsel %vm3301_vm4, %v12049_v45, %v8696_v28  ;;  %v3304_v57 = vsel %vm3301_vm4, %v8696_v28, %v8725_v5  ;;  %v12059_v28 = vld [vmem:[#allocation153_spill] sm:$0xff] }
 0x419   :  { %v3257_v1 = vsel %vm12043_vm14, %v12042_v37, %v3244_v23  ;;  %v3180_v43 = vadd.f32 %v3166_v59, %v3134_v7  ;;  %v12052_v59 = vld [vmem:[#allocation151_spill] sm:$0xff]  ;;  %v3235_v7 = vrot.slane %v12048_v63, 4  ;;  %vm12054_vm14 = vmmov %vm12051_vm0 }
 0x41a   :  { %v8943_v51 = vpop.permute.xlu0 %3850  ;;  %3109 = vrot.lane.b32.xlu1 %v12035_v25, %s12034_s15  ;;  %v3271_v15 = vadd.f32 %v3257_v1, %v3225_v11  ;;  %v12050_v25 = vld [vmem:[#allocation149_spill] sm:$0xff]  ;;  %v3236_v29 = vrot.slane %v12052_v59, 4  ;;  %v12055_v11 = vld [vmem:[#allocation22_spill] sm:$0xff] }
 0x41b   :  { %12033 = vst [vmem:[#allocation144_spill] sm:$0xff] %v8943_v51  ;;  %3111 = vrot.lane.b32.xlu0 %v12038_v54, %s12034_s15  ;;  %v3226_v9 = vadd.f32 %v3212_v38, %v3180_v43  ;;  %v12057_v38 = vld [vmem:[#allocation160_spill] sm:$0xff] }
 0x41c   :  { %v8955_v21 = vpop.permute.xlu1 %3245 }
 0x41d   :  { %12039 = vst [vmem:[#allocation3_spill] sm:$0xff] %v8955_v21  ;;  %v3258_v26 = vsel %vm12046_vm11, %v3244_v23, %v8955_v21  ;;  %v3317_v23 = vadd.f32 %v3303_v60, %v3271_v15  ;;  %v3395_v15 = vsel %vm12056_vm15, %v12055_v11, %v8752_v8  ;;  %vm12062_vm11 = vmmov %vm12056_vm15  ;;  %vm12108_vm15 = vcmask 752640  }
 0x41e   :  { %v8963_v22 = vpop.permute.xlu0 %2143  ;;  %3157 = vrot.lane.b32.xlu1 %v3144_v35, %s12044_s12  ;;  %v3272_v54 = vadd.f32 %v3258_v26, %v3226_v9 }
 0x41f   :  { %3155 = vrot.lane.b32.xlu0 %v3143_v3, %s12044_s12 }
 0x420   :  { %v3336_v61 = vpop.permute.xlu1 %3335  ;;  %v3318_v1 = vadd.f32 %v3304_v57, %v3272_v54 }
 0x421   :  { %v3349_v10 = vsel %vm12051_vm0, %v12050_v25, %v3336_v61  ;;  %vm12102_vm0 = vcmask 769024  }
 0x422   :  { %v8972_v56 = vpop.permute.xlu0 %2189  ;;  %3201 = vrot.lane.b32.xlu1 %v12048_v63, %s12047_s13  ;;  %v3363_v3 = vadd.f32 %v3349_v10, %v3317_v23 }
 0x423   :  { %3203 = vrot.lane.b32.xlu0 %v12052_v59, %s12047_s13  ;;  %v3327_v59 = vrot.slane %v12059_v28, 4 }
 0x424   :  { %v8984_v35 = vpop.permute.xlu1 %3337  ;;  %v3409_v63 = vadd.f32 %v3395_v15, %v3363_v3  ;;  %v12063_v3 = vld [vmem:[#allocation163_spill] sm:$0xff]  ;;  %v12064_v15 = vld [vmem:[#allocation170_spill] sm:$0xff] }
 0x425   :  { %12053 = vst [vmem:[#allocation111_spill] sm:$0xff] %v8984_v35  ;;  %v3350_v37 = vsel %vm12054_vm14, %v3336_v61, %v8984_v35  ;;  %v12060_v61 = vld [vmem:[#allocation154_spill] sm:$0xff]  ;;  %v3487_v57 = vsel %vm11492_vm2, %v12063_v3, %v8810_v19  ;;  %vm12105_vm14 = vcmask 760832   ;;  %v12112_v35 = vld [vmem:[#allocation20_spill] sm:$0xff] }
 0x426   :  { %v8987_v55 = vpop.permute.xlu0 %2235  ;;  %3249 = vrot.lane.b32.xlu1 %v3236_v29, %s11956_s3  ;;  %v3364_v9 = vadd.f32 %v3350_v37, %v3318_v1  ;;  %v3328_v60 = vrot.slane %v12060_v61, 4  ;;  %v3396_v29 = vsel %vm12062_vm11, %v8752_v8, %v8776_v17  ;;  %v12111_v17 = vld [vmem:[#allocation139_spill] sm:$0xff]  ;;  %vm12113_vm11 = vcmask 744448  }
 0x427   :  { %3247 = vrot.lane.b32.xlu0 %v3235_v7, %s11956_s3 }
 0x428   :  { %v3428_v43 = vpop.permute.xlu1 %3427  ;;  %v3410_v23 = vadd.f32 %v3396_v29, %v3364_v9  ;;  %v3488_v9 = vsel %vm11492_vm2, %v8810_v19, %v8835_v33  ;;  %v12071_v19 = vld [vmem:[#allocation109_spill] sm:$0xff]  ;;  %vm12205_vm2 = vcmask 506880  }
 0x429   :  { %v3441_v26 = vsel %vm3439_vm3, %v12057_v38, %v3428_v43 }
 0x42a   :  { %v9001_v45 = vpop.permute.xlu0 %2281  ;;  %3293 = vrot.lane.b32.xlu1 %v12059_v28, %s12058_s19  ;;  %v3455_v25 = vadd.f32 %v3441_v26, %v3409_v63  ;;  %v12067_v63 = vld [vmem:[#allocation158_spill] sm:$0xff] }
 0x42b   :  { %3295 = vrot.lane.b32.xlu0 %v12060_v61, %s12058_s19  ;;  %v3420_v28 = vrot.slane %v12067_v63, 4 }
 0x42c   :  { %v9008_v10 = vpop.permute.xlu1 %3429  ;;  %v3501_v1 = vadd.f32 %v3487_v57, %v3455_v25  ;;  %v12069_v25 = vld [vmem:[#allocation107_spill] sm:$0xff] }
 0x42d   :  { %12061 = vst [vmem:[#allocation123_spill] sm:$0xff] %v9008_v10  ;;  %v3442_v54 = vsel %vm3439_vm3, %v3428_v43, %v9008_v10  ;;  %v12066_v43 = vld [vmem:[#allocation157_spill] sm:$0xff] }
 0x42e   :  { %v9016_v7 = vpop.permute.xlu0 %2327  ;;  %3341 = vrot.lane.b32.xlu1 %v3328_v60, %s11961_s21  ;;  %v3456_v37 = vadd.f32 %v3442_v54, %v3410_v23  ;;  %v3419_v29 = vrot.slane %v12066_v43, 4 }
 0x42f   :  { %3339 = vrot.lane.b32.xlu0 %v3327_v59, %s11961_s21 }
 0x430   :  { %v3520_v11 = vpop.permute.xlu1 %3519  ;;  %v3502_v61 = vadd.f32 %v3488_v9, %v3456_v37  ;;  %v12078_v9 = vld [vmem:[#allocation179_spill] sm:$0xff] }
 0x431   :  { %v3533_v8 = vsel %vm11470_vm1, %v12064_v15, %v3520_v11  ;;  %v12075_v15 = vld [vmem:[#allocation23_spill] sm:$0xff] }
 0x432   :  { %v3547_v38 = vadd.f32 %v3533_v8, %v3501_v1  ;;  %v9025_v26 = vpop.permute.xlu0 %2373  ;;  %3385 = vrot.lane.b32.xlu1 %v12066_v43, %s12065_s22  ;;  %v12076_v8 = vld [vmem:[#allocation159_spill] sm:$0xff]  ;;  %v3511_v43 = vrot.slane %v12075_v15, 4 }
 0x433   :  { %3387 = vrot.lane.b32.xlu0 %v12067_v63, %s12065_s22 }
 0x434   :  { %v9035_v60 = vpop.permute.xlu1 %3521  ;;  %v3554_v59 = vadd.f32 %v3547_v38, %v12069_v25 }
 0x435   :  { %12068 = vst [vmem:[#allocation13_spill] sm:$0xff] %v9035_v60  ;;  %v3534_v54 = vsel %vm11470_vm1, %v3520_v11, %v9035_v60  ;;  %v3512_v11 = vrot.slane %v12076_v8, 4  ;;  %v12085_v60 = vld [vmem:[#allocation188_spill] sm:$0xff]  ;;  %vm12125_vm1 = vcmask 523264  }
 0x436   :  { %v3548_v23 = vadd.f32 %v3534_v54, %v3502_v61  ;;  %v9041_v3 = vpop.permute.xlu0 %2419  ;;  %3433 = vrot.lane.b32.xlu1 %v3420_v28, %s12070_s11  ;;  %v12080_v61 = vld [vmem:[#allocation161_spill] sm:$0xff] }
 0x437   :  { %3431 = vrot.lane.b32.xlu0 %v3419_v29, %s12070_s11  ;;  %v3572_v25 = vrot.slane %v12080_v61, 4  ;;  %v12081_v29 = vld [vmem:[#allocation174_spill] sm:$0xff] }
 0x438   :  { %v9046_v57 = vadd.f32 %v3548_v23, %v12071_v19  ;;  %v3579_v37 = vpop.permute.xlu1 %3578  ;;  %v12082_v19 = vld [vmem:[#allocation25_spill] sm:$0xff] }
 0x439   :  { %v3592_v63 = vsel %vm2151_vm5, %v12078_v9, %v3579_v37 }
 0x43a   :  { %12072 = vst [vmem:[#allocation137_spill] sm:$0xff] %v9046_v57  ;;  %v9048_v1 = vpop.permute.xlu0 %2467  ;;  %3477 = vrot.lane.b32.xlu1 %v12075_v15, %s12074_s9  ;;  %v3606_v54 = vadd.f32 %v3592_v63, %v12081_v29  ;;  %v12084_v15 = vld [vmem:[#allocation187_spill] sm:$0xff] }
 0x43b   :  { %12073 = vst [vmem:[#allocation147_spill] sm:$0xff] %v9048_v1  ;;  %3479 = vrot.lane.b32.xlu0 %v12076_v8, %s12074_s9  ;;  %v3571_v8 = vrot.slane %v12082_v19, 4  ;;  %v3637_v9 = vsel %vm2197_vm6, %v12084_v15, %v8879_v58  ;;  %v12088_v15 = vld [vmem:[#allocation165_spill] sm:$0xff] }
 0x43c   :  { %v9055_v38 = vpop.permute.xlu1 %3625  ;;  %v3651_v63 = vadd.f32 %v3637_v9, %v3606_v54  ;;  %v3662_v54 = vrot.slane %v12088_v15, 4 }
 0x43d   :  { %12077 = vst [vmem:[#allocation148_spill] sm:$0xff] %v9055_v38  ;;  %v3638_v61 = vsel %vm2197_vm6, %v8879_v58, %v9055_v38  ;;  %v12090_v58 = vld [vmem:[#allocation197_spill] sm:$0xff] }
 0x43e   :  { %v9060_v28 = vpop.permute.xlu0 %2511  ;;  %3525 = vrot.lane.b32.xlu1 %v3512_v11, %s11846_s18  ;;  %v3593_v11 = vsel %vm2151_vm5, %v3579_v37, %v8858_v49 }
 0x43f   :  { %12079 = vst [vmem:[#allocation15_spill] sm:$0xff] %v9060_v28  ;;  %3523 = vrot.lane.b32.xlu0 %v3511_v43, %s11846_s18  ;;  %v12159_v28 = vld [vmem:[#allocation186_spill] sm:$0xff] }
 0x440   :  { %v3669_v23 = vpop.permute.xlu1 %3668 }
 0x441   :  { %v3682_v43 = vsel %vm2243_vm7, %v12085_v60, %v3669_v23  ;;  %v3683_v37 = vsel %vm2243_vm7, %v3669_v23, %v8891_v40  ;;  %v12089_v60 = vld [vmem:[#allocation164_spill] sm:$0xff] }
 0x442   :  { %v9067_v57 = vpop.permute.xlu0 %2513  ;;  %3584 = vrot.lane.b32.xlu1 %v3572_v25, %s11860_s20  ;;  %v3607_v25 = vadd.f32 %v3593_v11, %v3554_v59  ;;  %v3696_v19 = vadd.f32 %v3682_v43, %v3651_v63  ;;  %v3661_v49 = vrot.slane %v12089_v60, 4  ;;  %v3727_v59 = vsel %vm2289_vm8, %v12090_v58, %v8903_v12  ;;  %v12091_v43 = vld [vmem:[#allocation33_spill] sm:$0xff]  ;;  %v12094_v58 = vld [vmem:[#allocation116_spill] sm:$0xff] }
 0x443   :  { %12083 = vst [vmem:[#allocation18_spill] sm:$0xff] %v9067_v57  ;;  %3582 = vrot.lane.b32.xlu0 %v3571_v8, %s11860_s20  ;;  %v12150_v57 = vld [vmem:[#allocation175_spill] sm:$0xff] }
 0x444   :  { %v9078_v29 = vpop.permute.xlu1 %3715  ;;  %v3652_v8 = vadd.f32 %v3638_v61, %v3607_v25  ;;  %v3741_v40 = vadd.f32 %v3727_v59, %v3696_v19  ;;  %v12097_v59 = vld [vmem:[#allocation120_spill] sm:$0xff] }
 0x445   :  { %12086 = vst [vmem:[#allocation150_spill] sm:$0xff] %v9078_v29  ;;  %v3728_v11 = vsel %vm2289_vm8, %v8903_v12, %v9078_v29  ;;  %v12106_v29 = vld [vmem:[#allocation138_spill] sm:$0xff] }
 0x446   :  { %v9083_v33 = vpop.permute.xlu0 %2559  ;;  %3629 = vrot.lane.b32.xlu1 %v12088_v15, %s6187_s2  ;;  %v3697_v63 = vadd.f32 %v3683_v37, %v3652_v8  ;;  %v12095_v37 = vld [vmem:[#allocation114_spill] sm:$0xff]  ;;  %v12096_v8 = vld [vmem:[#allocation128_spill] sm:$0xff] }
 0x447   :  { %12087 = vst [vmem:[#allocation140_spill] sm:$0xff] %v9083_v33  ;;  %3627 = vrot.lane.b32.xlu0 %v12089_v60, %s6187_s2  ;;  %v3908_v19 = vsel %vm2473_vm12, %v12095_v37, %v12094_v58  ;;  %v12107_v58 = vld [vmem:[#allocation16_spill] sm:$0xff]  ;;  %v12144_v33 = vld [vmem:[#allocation178_spill] sm:$0xff] }
 0x448   :  { %v3759_v9 = vpop.permute.xlu1 %3758  ;;  %v3742_v25 = vadd.f32 %v3728_v11, %v3697_v63  ;;  %v12101_v11 = vld [vmem:[#allocation2_spill] sm:$0xff]  ;;  %v12103_v63 = vld [vmem:[#allocation17_spill] sm:$0xff]  ;;  %v9131_v10 = vsel %vm12108_vm15, %v12107_v58, %v12106_v29 }
 0x449   :  { %v3772_v23 = vsel %vm2335_vm9, %v12091_v43, %v3759_v9  ;;  %v3773_v61 = vsel %vm2335_vm9, %v3759_v9, %v8920_v44  ;;  %v12115_v29 = vld [vmem:[#allocation142_spill] sm:$0xff] }
 0x44a   :  { %v9101_v38 = vpop.permute.xlu0 %2603  ;;  %3674 = vrot.lane.b32.xlu1 %v3662_v54, %s11517_s23  ;;  %v3786_v15 = vadd.f32 %v3772_v23, %v3741_v40  ;;  %v3953_v54 = vsel %vm2519_vm13, %v12097_v59, %v12096_v8  ;;  %v3787_v43 = vadd.f32 %v3773_v61, %v3742_v25  ;;  %v12100_v40 = vld [vmem:[#allocation14_spill] sm:$0xff] }
 0x44b   :  { %12092 = vst [vmem:[#allocation149_spill] sm:$0xff] %v9101_v38  ;;  %3672 = vrot.lane.b32.xlu0 %v3661_v49, %s11517_s23  ;;  %v12099_v49 = vld [vmem:[#allocation28_spill] sm:$0xff]  ;;  %v3998_v23 = vsel %vm12102_vm0, %v12101_v11, %v12100_v40  ;;  %v12109_v61 = vld [vmem:[#allocation206_spill] sm:$0xff]  ;;  %v9141_v40 = vsel %vm12113_vm11, %v12112_v35, %v12111_v17  ;;  %vm12116_vm0 = vcmask 736256   ;;  %vm12122_vm11 = vcmask 728064   ;;  %v12158_v38 = vld [vmem:[#allocation183_spill] sm:$0xff] }
 0x44c   :  { %v9107_v60 = vpop.permute.xlu1 %3805  ;;  %v3817_v25 = vsel %vm2381_vm10, %v12109_v61, %v8933_v42  ;;  %v12110_v8 = vld [vmem:[#allocation26_spill] sm:$0xff]  ;;  %v3752_v5 = vrot.slane %v12099_v49, 4  ;;  %v9147_v24 = vsel %vm12116_vm0, %v12115_v29, %v12114_v53  ;;  %v12117_v61 = vld [vmem:[#allocation207_spill] sm:$0xff]  ;;  %v12120_v17 = vld [vmem:[#allocation152_spill] sm:$0xff]  ;;  %vm12129_vm0 = vcmask 515072  }
 0x44d   :  { %12093 = vst [vmem:[#allocation151_spill] sm:$0xff] %v9107_v60  ;;  %v3818_v12 = vsel %vm2381_vm10, %v8933_v42, %v9107_v60  ;;  %v12104_v60 = vld [vmem:[#allocation135_spill] sm:$0xff]  ;;  %v3831_v21 = vadd.f32 %v3817_v25, %v3786_v15  ;;  %v3751_v42 = vrot.slane %v12110_v8, 4  ;;  %v12123_v15 = vld [vmem:[#allocation156_spill] sm:$0xff] }
 0x44e   :  { %v9118_v9 = vpop.permute.xlu0 %2605  ;;  %3719 = vrot.lane.b32.xlu1 %v12099_v49, %s11516_s24  ;;  %v4043_v44 = vsel %vm12105_vm14, %v12104_v60, %v12103_v63  ;;  %v3832_v63 = vadd.f32 %v3818_v12, %v3787_v43  ;;  %vm12118_vm14 = vcmask 990208   ;;  %v9157_v49 = vsel %vm12122_vm11, %v12121_v41, %v12120_v17  ;;  %v12124_v12 = vld [vmem:[#allocation155_spill] sm:$0xff] }
 0x44f   :  { %12098 = vst [vmem:[#allocation22_spill] sm:$0xff] %v9118_v9  ;;  %3717 = vrot.lane.b32.xlu0 %v12110_v8, %s11516_s24  ;;  %vm12119_vm15 = vmmov %vm12118_vm14  ;;  %v9162_v43 = vsel %vm12125_vm1, %v12124_v12, %v12123_v15  ;;  %v12127_v8 = vld [vmem:[#allocation162_spill] sm:$0xff]  ;;  %v12134_v15 = vld [vmem:[#allocation48_spill] sm:$0xff]  ;;  %vm12139_vm1 = vcmask 498688   ;;  %vm12151_vm11 = vcmask 482304  }
 0x450   :  { %v3849_v32 = vpop.permute.xlu1 %3848 }
 0x451   :  { %v3862_v2 = vsel %vm12118_vm14, %v12117_v61, %v3849_v32  ;;  %v3863_v13 = vsel %vm12119_vm15, %v3849_v32, %v8943_v51  ;;  %v12128_v61 = vld [vmem:[#allocation24_spill] sm:$0xff]  ;;  %v12130_v51 = vld [vmem:[#allocation27_spill] sm:$0xff]  ;;  %vm12132_vm14 = vcmask 506880   ;;  %vm12145_vm15 = vcmask 490496  }
 0x452   :  { %v3876_v25 = vadd.f32 %v3862_v2, %v3831_v21  ;;  %v3877_v53 = vadd.f32 %v3863_v13, %v3832_v63  ;;  %v9164_v48 = vpop.permute.xlu0 %2651  ;;  %3764 = vrot.lane.b32.xlu1 %v3752_v5, %s11511_s25  ;;  %v9170_v32 = vsel %vm12129_vm0, %v12128_v61, %v12127_v8  ;;  %v9175_v17 = vsel %vm12132_vm14, %v12131_v20, %v12130_v51  ;;  %v12135_v2 = vld [vmem:[#allocation169_spill] sm:$0xff]  ;;  %v12136_v21 = vld [vmem:[#allocation171_spill] sm:$0xff] }
 0x453   :  { %12126 = vst [vmem:[#allocation160_spill] sm:$0xff] %v9164_v48  ;;  %v3907_v13 = vsel %vm2473_vm12, %v12134_v15, %v12095_v37  ;;  %3762 = vrot.lane.b32.xlu0 %v3751_v42, %s11511_s25  ;;  %v3842_v5 = vrot.slane %v12135_v2, 4  ;;  %v12138_v48 = vld [vmem:[#allocation167_spill] sm:$0xff]  ;;  %v12142_v37 = vld [vmem:[#allocation213_spill] sm:$0xff]  ;;  %vm12155_vm0 = vcmask 769024   ;;  %vm12160_vm14 = vcmask 474112  }
 0x454   :  { %v3921_v52 = vadd.f32 %v3907_v13, %v3876_v25  ;;  %v3922_v8 = vadd.f32 %v3908_v19, %v3877_v53  ;;  %v9184_v18 = vpop.permute.xlu1 %2145  ;;  %v9189_v51 = vsel %vm12139_vm1, %v12138_v48, %v12137_v30  ;;  %v3952_v42 = vsel %vm2519_vm13, %v12142_v37, %v12097_v59  ;;  %v12143_v15 = vld [vmem:[#allocation29_spill] sm:$0xff]  ;;  %v12149_v30 = vld [vmem:[#allocation182_spill] sm:$0xff]  ;;  %s12450_s25 = smov 93  }
 0x455   :  { %v9199_v25 = vsel %vm12145_vm15, %v12144_v33, %v12143_v15  ;;  %v12146_v53 = vld [vmem:[#allocation177_spill] sm:$0xff]  ;;  %v9210_v59 = vsel %vm12151_vm11, %v12150_v57, %v12149_v30  ;;  %v12154_v15 = vld [vmem:[#allocation51_spill] sm:$0xff]  ;;  %v9223_v30 = vsel %vm12160_vm14, %v12159_v28, %v12158_v38  ;;  %v12163_v37 = vld [vmem:[#allocation30_spill] sm:$0xff]  ;;  %vm12164_vm1 = vcmask 465920  }
 0x456   :  { %v3966_v13 = vadd.f32 %v3952_v42, %v3921_v52  ;;  %v3967_v63 = vadd.f32 %v3953_v54, %v3922_v8  ;;  %v9202_v14 = vpop.permute.xlu0 %2695  ;;  %3809 = vrot.lane.b32.xlu1 %v12135_v2, %s11509_s26  ;;  %12152 = vst [vmem:[#allocation154_spill] sm:$0xff] %v9210_v59  ;;  %v3997_v19 = vsel %vm12155_vm0, %v12154_v15, %v12101_v11  ;;  %v12162_v59 = vld [vmem:[#allocation191_spill] sm:$0xff]  ;;  %vm12167_vm15 = vcmask 760832   ;;  %v12177_v52 = vld [vmem:[#allocation202_spill] sm:$0xff] }
 0x457   :  { %12147 = vst [vmem:[#allocation153_spill] sm:$0xff] %v9202_v14  ;;  %3807 = vrot.lane.b32.xlu0 %v12133_v31, %s11509_s26  ;;  %v9229_v11 = vsel %vm12164_vm1, %v12163_v37, %v12162_v59  ;;  %v12166_v31 = vld [vmem:[#allocation216_spill] sm:$0xff]  ;;  %v12168_v54 = vld [vmem:[#allocation35_spill] sm:$0xff]  ;;  %vm12170_vm11 = vcmask 261120   ;;  %vm12174_vm0 = vcmask 252928   ;;  %vm12181_vm14 = vcmask 236544  }
 0x458   :  { %v4011_v42 = vadd.f32 %v3997_v19, %v3966_v13  ;;  %v4012_v9 = vadd.f32 %v3998_v23, %v3967_v63  ;;  %v2192_v14 = vpop.permute.xlu1 %2191  ;;  %12165 = vst [vmem:[#allocation163_spill] sm:$0xff] %v9229_v11  ;;  %v4042_v15 = vsel %vm12167_vm15, %v12166_v31, %v12104_v60  ;;  %v12169_v19 = vld [vmem:[#allocation193_spill] sm:$0xff]  ;;  %v12172_v63 = vld [vmem:[#allocation198_spill] sm:$0xff]  ;;  %v12176_v59 = vld [vmem:[#allocation199_spill] sm:$0xff]  ;;  %vm12185_vm1 = vcmask 228352   ;;  %s12456_s26 = smov 92  }
 0x459   :  { %v9237_v23 = vsel %vm12170_vm11, %v12169_v19, %v12168_v54  ;;  %v12173_v13 = vld [vmem:[#allocation194_spill] sm:$0xff]  ;;  %v9250_v60 = vsel %vm3301_vm4, %v12177_v52, %v12176_v59  ;;  %v12180_v8 = vld [vmem:[#allocation203_spill] sm:$0xff]  ;;  %vm12188_vm15 = vcmask 752640   ;;  %vm12193_vm11 = vcmask 744448  }
 0x45a   :  { %12171 = vst [vmem:[#allocation170_spill] sm:$0xff] %v9237_v23  ;;  %v9242_v2 = vsel %vm12174_vm0, %v12173_v13, %v12172_v63  ;;  %v4056_v1 = vadd.f32 %v4042_v15, %v4011_v42  ;;  %v4057_v38 = vadd.f32 %v4043_v44, %v4012_v9  ;;  %v9244_v50 = vpop.permute.xlu0 %2697  ;;  %3854 = vrot.lane.b32.xlu1 %v3842_v5, %s11507_s27  ;;  %12178 = vst [vmem:[#allocation158_spill] sm:$0xff] %v9250_v60  ;;  %v12179_v31 = vld [vmem:[#allocation210_spill] sm:$0xff]  ;;  %v12183_v23 = vld [vmem:[#allocation36_spill] sm:$0xff]  ;;  %vm12195_vm0 = vcmask 736256  }
 0x45b   :  { %12175 = vst [vmem:[#allocation157_spill] sm:$0xff] %v9244_v50  ;;  %v9255_v54 = vsel %vm12181_vm14, %v12180_v8, %v12179_v31  ;;  %v12184_v11 = vld [vmem:[#allocation211_spill] sm:$0xff]  ;;  %v12187_v44 = vld [vmem:[#allocation218_spill] sm:$0xff]  ;;  %3852 = vrot.lane.b32.xlu0 %v3841_v39, %s11507_s27  ;;  %v12190_v42 = vld [vmem:[#allocation212_spill] sm:$0xff]  ;;  %vm12197_vm14 = vcmask 728064   ;;  %s12433_s27 = smov 95  }
 0x45c   :  { %12182 = vst [vmem:[#allocation107_spill] sm:$0xff] %v9255_v54  ;;  %v9260_v63 = vsel %vm12185_vm1, %v12184_v11, %v12183_v23  ;;  %v4087_v9 = vsel %vm12188_vm15, %v12187_v44, %v12107_v58  ;;  %v12189_v5 = vld [vmem:[#allocation214_spill] sm:$0xff]  ;;  %v4102_v50 = vadd.f32 %v9131_v10, %v4057_v38  ;;  %v2238_v23 = vpop.permute.xlu1 %2237  ;;  %v12196_v58 = vld [vmem:[#allocation44_spill] sm:$0xff]  ;;  %vm12199_vm1 = vcmask 523264  }
 0x45d   :  { %12186 = vst [vmem:[#allocation109_spill] sm:$0xff] %v9260_v63  ;;  %v9269_v15 = vsel %vm3439_vm3, %v12190_v42, %v12189_v5  ;;  %v12192_v59 = vld [vmem:[#allocation42_spill] sm:$0xff]  ;;  %v4101_v54 = vadd.f32 %v4087_v9, %v4056_v1  ;;  %v12194_v63 = vld [vmem:[#allocation225_spill] sm:$0xff]  ;;  %v4222_v39 = vsel %vm12197_vm14, %v12196_v58, %v12121_v41  ;;  %v12198_v44 = vld [vmem:[#allocation232_spill] sm:$0xff]  ;;  %vm12201_vm15 = vcmask 515072  }
 0x45e   :  { %12191 = vst [vmem:[#allocation23_spill] sm:$0xff] %v9269_v15  ;;  %v4132_v31 = vsel %vm12193_vm11, %v12192_v59, %v12112_v35  ;;  %v4177_v60 = vsel %vm12195_vm0, %v12194_v63, %v12115_v29  ;;  %v4267_v5 = vsel %vm12199_vm1, %v12198_v44, %v12124_v12  ;;  %v12200_v15 = vld [vmem:[#allocation68_spill] sm:$0xff]  ;;  %v12202_v1 = vld [vmem:[#allocation50_spill] sm:$0xff]  ;;  %vm12203_vm11 = vcmask 498688   ;;  %v9294_v41 = vpop.permute.xlu0 %2743  ;;  %3899 = vrot.lane.b32.xlu1 %v12140_v4, %s11499_s28  ;;  %v12208_v9 = vld [vmem:[#allocation79_spill] sm:$0xff] }
 0x45f   :  { %v4312_v35 = vsel %vm12201_vm15, %v12200_v15, %v12128_v61  ;;  %v4402_v10 = vsel %vm12203_vm11, %v12202_v1, %v12138_v48  ;;  %v12204_v38 = vld [vmem:[#allocation240_spill] sm:$0xff]  ;;  %v4146_v59 = vadd.f32 %v4132_v31, %v4101_v54  ;;  %v4147_v63 = vadd.f32 %v9141_v40, %v4102_v50  ;;  %v12206_v12 = vld [vmem:[#allocation78_spill] sm:$0xff]  ;;  %v12212_v50 = vld [vmem:[#allocation55_spill] sm:$0xff]  ;;  %3897 = vrot.lane.b32.xlu0 %v12136_v21, %s11499_s28  ;;  %s12279_s28 = smov 89  }
 0x460   :  { %v4357_v29 = vsel %vm12205_vm2, %v12204_v38, %v12131_v20  ;;  %vm12207_vm0 = vcmask 490496   ;;  %vm12209_vm14 = vcmask 482304   ;;  %v12210_v20 = vld [vmem:[#allocation244_spill] sm:$0xff]  ;;  %vm12211_vm2 = vcmask 474112   ;;  %v2284_v58 = vpop.permute.xlu1 %2283  ;;  %v12215_v44 = vld [vmem:[#allocation87_spill] sm:$0xff] }
 0x461   :  { %v9301_v61 = vsel %vm12207_vm0, %v12206_v12, %v12144_v33  ;;  %v9306_v48 = vsel %vm12209_vm14, %v12208_v9, %v12150_v57  ;;  %v9311_v54 = vsel %vm12211_vm2, %v12210_v20, %v12159_v28  ;;  %v2157_v40 = vsel %vm2151_vm5, %v9184_v18, %v12212_v50  ;;  %v12213_v33 = vld [vmem:[#allocation245_spill] sm:$0xff]  ;;  %v12217_v38 = vld [vmem:[#allocation247_spill] sm:$0xff]  ;;  %v12218_v9 = vld [vmem:[#allocation222_spill] sm:$0xff] }
 0x462   :  { %vm12214_vm1 = vcmask 261120   ;;  %v2155_v57 = vsel %vm2151_vm5, %v8405_v47, %v8963_v22  ;;  %v4191_v15 = vadd.f32 %v4177_v60, %v4146_v59  ;;  %v4192_v28 = vadd.f32 %v9147_v24, %v4147_v63  ;;  %v9347_v63 = vpop.permute.xlu0 %2787  ;;  %v12220_v20 = vld [vmem:[#allocation47_spill] sm:$0xff] }
 0x463   :  { %v9321_v31 = vsel %vm12214_vm1, %v12213_v33, %v12169_v19  ;;  %vm12216_vm15 = vcmask 465920   ;;  %v9335_v12 = vsel %vm3301_vm4, %v12217_v38, %v12177_v52  ;;  %v2156_v19 = vsel %vm2151_vm5, %v8963_v22, %v9184_v18  ;;  %v12223_v33 = vld [vmem:[#allocation125_spill] sm:$0xff] }
 0x464   :  { %v9330_v1 = vsel %vm12216_vm15, %v12215_v44, %v12163_v37  ;;  %v2203_v47 = vsel %vm2197_vm6, %v2192_v14, %v12218_v9  ;;  %v2201_v24 = vsel %vm2197_vm6, %v8421_v34, %v8972_v56  ;;  %v4236_v60 = vadd.f32 %v4222_v39, %v4191_v15  ;;  %v12221_v39 = vld [vmem:[#allocation60_spill] sm:$0xff] }
 0x465   :  { %v4237_v37 = vadd.f32 %v9157_v49, %v4192_v28  ;;  %v2171_v59 = vadd.f32 %v2157_v40, %v11978_v16  ;;  %v12219_v52 = vrot.slane %v12140_v4, 4  ;;  %v2169_v18 = vadd.f32 %v2155_v57, %v12220_v20  ;;  %v2330_v28 = vpop.permute.xlu1 %2329 }
 0x466   :  { %v2247_v22 = vsel %vm2243_vm7, %v8429_v46, %v8987_v55  ;;  %v2202_v34 = vsel %vm2197_vm6, %v8972_v56, %v2192_v14  ;;  %v2249_v49 = vsel %vm2243_vm7, %v2238_v23, %v12221_v39  ;;  %v12222_v16 = vrot.slane %v12136_v21, 4  ;;  %v12224_v56 = vld [vmem:[#allocation229_spill] sm:$0xff] }
 0x467   :  { %3944 = vrot.lane.b32.xlu1 %v12219_v52, %s11497_s29  ;;  %v4281_v40 = vadd.f32 %v4267_v5, %v4236_v60  ;;  %v4282_v4 = vadd.f32 %v9162_v43, %v4237_v37  ;;  %v2170_v15 = vadd.f32 %v2156_v19, %v12223_v33  ;;  %v2217_v57 = vadd.f32 %v2203_v47, %v2171_v59  ;;  %v9373_v37 = vpop.permute.xlu0 %2789 }
 0x468   :  { %3942 = vrot.lane.b32.xlu0 %v12222_v16, %s11497_s29  ;;  %v2215_v44 = vadd.f32 %v2201_v24, %v2169_v18  ;;  %v2293_v46 = vsel %vm2289_vm8, %v8445_v0, %v9001_v45  ;;  %v2248_v14 = vsel %vm2243_vm7, %v8987_v55, %v2238_v23  ;;  %v2295_v38 = vsel %vm2289_vm8, %v2284_v58, %v12224_v56  ;;  %v12225_v23 = vld [vmem:[#allocation234_spill] sm:$0xff]  ;;  %s12415_s29 = smov 123  }
 0x469   :  { %v4326_v21 = vadd.f32 %v4312_v35, %v4281_v40  ;;  %v4327_v5 = vadd.f32 %v9170_v32, %v4282_v4  ;;  %v2216_v60 = vadd.f32 %v2202_v34, %v2170_v15  ;;  %v2263_v43 = vadd.f32 %v2249_v49, %v2217_v57  ;;  %v2376_v52 = vpop.permute.xlu1 %2375  ;;  %v12228_v40 = vld [vmem:[#allocation249_spill] sm:$0xff] }
 0x46a   :  { %v2261_v19 = vadd.f32 %v2247_v22, %v2215_v44  ;;  %v2339_v0 = vsel %vm2335_vm9, %v8453_v6, %v9016_v7  ;;  %v2294_v55 = vsel %vm2289_vm8, %v9001_v45, %v2284_v58  ;;  %v2341_v35 = vsel %vm2335_vm9, %v2330_v28, %v12225_v23  ;;  %v12226_v58 = vld [vmem:[#allocation238_spill] sm:$0xff] }
 0x46b   :  { %3989 = vrot.lane.b32.xlu1 %v12146_v53, %s11495_s30  ;;  %v4371_v32 = vadd.f32 %v4357_v29, %v4326_v21  ;;  %v4372_v47 = vadd.f32 %v9175_v17, %v4327_v5  ;;  %v2262_v24 = vadd.f32 %v2248_v14, %v2216_v60  ;;  %v2309_v59 = vadd.f32 %v2295_v38, %v2263_v43  ;;  %v9394_v29 = vpop.permute.xlu0 %2835  ;;  %v12238_v5 = vld [vmem:[#allocation154_spill] sm:$0xff] }
 0x46c   :  { %3987 = vrot.lane.b32.xlu0 %v12141_v36, %s11495_s30  ;;  %v2307_v20 = vadd.f32 %v2293_v46, %v2261_v19  ;;  %v2385_v6 = vsel %vm2381_vm10, %v8486_v62, %v9025_v26  ;;  %v2340_v45 = vsel %vm2335_vm9, %v9016_v7, %v2330_v28  ;;  %v2387_v18 = vsel %vm2381_vm10, %v2376_v52, %v12226_v58  ;;  %v12232_v28 = vld [vmem:[#allocation94_spill] sm:$0xff]  ;;  %v12241_v19 = vld [vmem:[#allocation73_spill] sm:$0xff]  ;;  %s12417_s30 = smov 122  }
 0x46d   :  { %v4416_v22 = vadd.f32 %v4402_v10, %v4371_v32  ;;  %v2308_v34 = vadd.f32 %v2294_v55, %v2262_v24  ;;  %v2355_v49 = vadd.f32 %v2341_v35, %v2309_v59  ;;  %v12227_v17 = vrot.slane %v12146_v53, 4  ;;  %v2422_v57 = vpop.permute.xlu1 %2421  ;;  %v12243_v35 = vld [vmem:[#allocation15_spill] sm:$0xff]  ;;  %v12244_v32 = vld [vmem:[#allocation264_spill] sm:$0xff] }
 0x46e   :  { %v4417_v16 = vadd.f32 %v9189_v51, %v4372_v47  ;;  %vm12229_vm11 = vcmask 228352   ;;  %v2353_v7 = vadd.f32 %v2339_v0, %v2307_v20  ;;  %vm12230_vm0 = vcmask 990208   ;;  %v12242_v0 = vld [vmem:[#allocation147_spill] sm:$0xff]  ;;  %v12245_v24 = vld [vmem:[#allocation180_spill] sm:$0xff] }
 0x46f   :  { %4034 = vrot.lane.b32.xlu1 %v12227_v17, %s11493_s6  ;;  %v9403_v62 = vsel %vm12229_vm11, %v12228_v40, %v12184_v11  ;;  %v2431_v10 = vsel %vm12230_vm0, %v8507_v27, %v9041_v3  ;;  %v2386_v4 = vsel %vm2381_vm10, %v9025_v26, %v2376_v52  ;;  %v12231_v33 = vrot.slane %v12141_v36, 4  ;;  %vm12234_vm2 = vmmov %vm12230_vm0  ;;  %v12235_v26 = vld [vmem:[#allocation241_spill] sm:$0xff]  ;;  %v9422_v21 = vpop.permute.xlu0 %2879 }
 0x470   :  { %v4461_v53 = vadd.f32 %v9301_v61, %v4416_v22  ;;  %v2354_v51 = vadd.f32 %v2340_v45, %v2308_v34  ;;  %v2401_v15 = vadd.f32 %v2387_v18, %v2355_v49  ;;  %v4462_v11 = vadd.f32 %v9199_v25, %v4417_v16  ;;  %vm12236_vm1 = vmmov %vm12230_vm0  ;;  %v12237_v61 = vld [vmem:[#allocation181_spill] sm:$0xff]  ;;  %v12246_v18 = vld [vmem:[#allocation54_spill] sm:$0xff] }
 0x471   :  { %4032 = vrot.lane.b32.xlu0 %v12231_v33, %s11493_s6  ;;  %vm12233_vm14 = vcmask 252928   ;;  %v2399_v46 = vadd.f32 %v2385_v6, %v2353_v7  ;;  %v2432_v27 = vsel %vm12234_vm2, %v9041_v3, %v2422_v57  ;;  %v2433_v14 = vsel %vm12236_vm1, %v2422_v57, %v12235_v26  ;;  %v5028_v6 = vld [vmem:[%s11103_s4 + $0x208] sm:$0xff]  ;;  %v5030_v45 = vld [vmem:[%s11103_s4 + $0x218] sm:$0xff]  ;;  %v12247_v22 = vld [vmem:[#allocation18_spill] sm:$0xff]  ;;  %s12439_s6 = smov 94  }
 0x472   :  { %v4672_v44 = vsel %vm12233_vm14, %v12232_v28, %v12173_v13  ;;  %v2400_v36 = vadd.f32 %v2386_v4, %v2354_v51  ;;  %v2447_v38 = vadd.f32 %v2433_v14, %v2401_v15  ;;  %v4507_v25 = vadd.f32 %v12238_v5, %v4462_v11  ;;  %v12239_v13 = vld [vmem:[#allocation101_spill] sm:$0xff]  ;;  %v12248_v49 = vld [vmem:[#allocation119_spill] sm:$0xff]  ;;  %v12252_v11 = vld [vmem:[#allocation82_spill] sm:$0xff] }
 0x473   :  { %4079 = vrot.lane.b32.xlu1 %v12237_v61, %s11505_s1  ;;  %v4506_v60 = vadd.f32 %v9306_v48, %v4461_v53  ;;  %vm12240_vm15 = vcmask 236544   ;;  %v2445_v3 = vadd.f32 %v2431_v10, %v2399_v46  ;;  %v2479_v55 = vsel %vm2473_vm12, %v12242_v0, %v12241_v19  ;;  %v2466_v48 = vpop.permute.xlu1 %2465  ;;  %v9456_v10 = vpop.permute.xlu0 %2881  ;;  %v12250_v33 = vld [vmem:[#allocation163_spill] sm:$0xff]  ;;  %v12253_v28 = vld [vmem:[#allocation140_spill] sm:$0xff] }
 0x474   :  { %v9431_v43 = vsel %vm12240_vm15, %v12239_v13, %v12180_v8  ;;  %v2523_v47 = vsel %vm2519_vm13, %v12244_v32, %v12243_v35  ;;  %v2446_v59 = vadd.f32 %v2432_v27, %v2400_v36  ;;  %v2493_v52 = vadd.f32 %v2479_v55, %v2447_v38  ;;  %v12251_v51 = vld [vmem:[#allocation31_spill] sm:$0xff]  ;;  %v12257_v13 = vld [vmem:[#allocation85_spill] sm:$0xff]  ;;  %v12260_v55 = vld [vmem:[#allocation124_spill] sm:$0xff] }
 0x475   :  { %4077 = vrot.lane.b32.xlu0 %v12245_v24, %s11505_s1  ;;  %v4552_v20 = vadd.f32 %v9223_v30, %v4507_v25  ;;  %v4551_v8 = vadd.f32 %v9311_v54, %v4506_v60  ;;  %v2525_v34 = vsel %vm2519_vm13, %v12247_v22, %v12246_v18  ;;  %v2477_v17 = vsel %vm2473_vm12, %v12248_v49, %v2466_v48  ;;  %v12256_v25 = vld [vmem:[#allocation170_spill] sm:$0xff]  ;;  %s12420_s1 = smov 121  }
 0x476   :  { %v2478_v30 = vsel %vm2473_vm12, %v2466_v48, %v12242_v0  ;;  %v5971_v16 = vpack.c.bf16 %v5030_v45, %v5028_v6  ;;  %v2539_v54 = vadd.f32 %v2525_v34, %v2493_v52  ;;  %v2491_v40 = vadd.f32 %v2477_v17, %v2445_v3  ;;  %v12258_v3 = vld [vmem:[#allocation22_spill] sm:$0xff]  ;;  %v12263_v48 = vld [vmem:[#allocation185_spill] sm:$0xff]  ;;  %v12271_v17 = vld [vmem:[#allocation184_spill] sm:$0xff] }
 0x477   :  { %v2492_v7 = vadd.f32 %v2478_v30, %v2446_v59  ;;  %v12249_v4 = vrot.slane %v12237_v61, 4  ;;  %v4597_v53 = vadd.f32 %v12250_v33, %v4552_v20  ;;  %v4292_v15 = vrot.slane %v12251_v51, 4  ;;  %v2558_v5 = vpop.permute.xlu1 %2557  ;;  %v12265_v6 = vld [vmem:[#allocation126_spill] sm:$0xff]  ;;  %v12268_v34 = vld [vmem:[#allocation89_spill] sm:$0xff] }
 0x478   :  { %v2524_v57 = vsel %vm2519_vm13, %v12243_v35, %v12247_v22  ;;  %vm12254_vm11 = vcmask 769024   ;;  %v12255_v27 = vrot.slane %v12245_v24, 4  ;;  %v4596_v14 = vadd.f32 %v9330_v1, %v4551_v8  ;;  %5972 = vmatprep.subr.bf16.mxu1 %v5971_v16  ;;  %v12264_v8 = vld [vmem:[#allocation149_spill] sm:$0xff] }
 0x479   :  { %4124 = vrot.lane.b32.xlu1 %v12249_v4, %s11503_s7  ;;  %v2571_v46 = vsel %vm12254_vm11, %v12253_v28, %v12252_v11  ;;  %v2537_v38 = vadd.f32 %v2523_v47, %v2491_v40  ;;  %v2538_v61 = vadd.f32 %v2524_v57, %v2492_v7  ;;  %v4642_v60 = vadd.f32 %v12256_v25, %v4597_v53  ;;  %vm12261_vm14 = vmmov %vm12254_vm11  ;;  %v9482_v47 = vpop.permute.xlu0 %2927  ;;  %v12272_v7 = vld [vmem:[#allocation158_spill] sm:$0xff]  ;;  %v12273_v33 = vld [vmem:[#allocation93_spill] sm:$0xff] }
 0x47a   :  { %4122 = vrot.lane.b32.xlu0 %v12255_v27, %s11503_s7  ;;  %v2585_v36 = vadd.f32 %v2571_v46, %v2539_v54  ;;  %vm12259_vm0 = vcmask 760832   ;;  %v2569_v35 = vsel %vm12261_vm14, %v12260_v55, %v2558_v5  ;;  %vm12262_vm2 = vmmov %vm12254_vm11  ;;  %v4641_v24 = vadd.f32 %v9321_v31, %v4596_v14  ;;  %v12269_v31 = vld [vmem:[#allocation160_spill] sm:$0xff]  ;;  %v12274_v53 = vld [vmem:[#allocation157_spill] sm:$0xff]  ;;  %s12425_s7 = smov 96  }
 0x47b   :  { %v2617_v0 = vsel %vm12259_vm0, %v12258_v3, %v12257_v13  ;;  %v2570_v32 = vsel %vm12262_vm2, %v2558_v5, %v12253_v28  ;;  %v2583_v59 = vadd.f32 %v2569_v35, %v2537_v38  ;;  %v4687_v20 = vadd.f32 %v9242_v2, %v4642_v60  ;;  %vm12266_vm1 = vmmov %vm12259_vm0  ;;  %v2650_v2 = vpop.permute.xlu1 %2649  ;;  %v12276_v28 = vld [vmem:[#allocation130_spill] sm:$0xff]  ;;  %v12281_v25 = vld [vmem:[#allocation107_spill] sm:$0xff] }
 0x47c   :  { %v2631_v1 = vadd.f32 %v2617_v0, %v2585_v36  ;;  %v2584_v52 = vadd.f32 %v2570_v32, %v2538_v61  ;;  %v2615_v45 = vsel %vm12266_vm1, %v12265_v6, %v12264_v8  ;;  %vm12267_vm15 = vmmov %vm12259_vm0  ;;  %vm12270_vm11 = vcmask 752640   ;;  %v12283_v55 = vld [vmem:[#allocation153_spill] sm:$0xff]  ;;  %v12284_v35 = vld [vmem:[#allocation131_spill] sm:$0xff] }
 0x47d   :  { %4169 = vrot.lane.b32.xlu1 %v12263_v48, %s11501_s8  ;;  %v2616_v22 = vsel %vm12267_vm15, %v12264_v8, %v12258_v3  ;;  %v2663_v49 = vsel %vm12270_vm11, %v12269_v31, %v12268_v34  ;;  %v4686_v30 = vadd.f32 %v4672_v44, %v4641_v24  ;;  %v2629_v54 = vadd.f32 %v2615_v45, %v2583_v59  ;;  %vm12277_vm14 = vmmov %vm12270_vm11  ;;  %v9507_v61 = vpop.permute.xlu0 %2971  ;;  %v12282_v3 = vld [vmem:[#allocation106_spill] sm:$0xff]  ;;  %v12290_v8 = vld [vmem:[#allocation109_spill] sm:$0xff] }
 0x47e   :  { %4167 = vrot.lane.b32.xlu0 %v12271_v17, %s11501_s8  ;;  %v2677_v16 = vadd.f32 %v2663_v49, %v2631_v1  ;;  %v2630_v40 = vadd.f32 %v2616_v22, %v2584_v52  ;;  %v4732_v4 = vadd.f32 %v12272_v7, %v4687_v20  ;;  %vm12275_vm0 = vcmask 744448   ;;  %vm12278_vm2 = vmmov %vm12270_vm11  ;;  %v12291_v45 = vld [vmem:[#allocation99_spill] sm:$0xff]  ;;  %s12321_s8 = smov 62  }
 0x47f   :  { %v2709_v57 = vsel %vm12275_vm0, %v12274_v53, %v12273_v33  ;;  %v2661_v46 = vsel %vm12277_vm14, %v12276_v28, %v2650_v2  ;;  %v2662_v27 = vsel %vm12278_vm2, %v2650_v2, %v12269_v31  ;;  %v4731_v14 = vadd.f32 %v9335_v12, %v4686_v30  ;;  %vm12285_vm1 = vmmov %vm12275_vm0  ;;  %v12286_v12 = vld [vmem:[#allocation96_spill] sm:$0xff]  ;;  %v2742_v20 = vpop.permute.xlu1 %2741  ;;  %v12293_v49 = vld [vmem:[#allocation259_spill] sm:$0xff] }
 0x480   :  { %v2723_v36 = vadd.f32 %v2709_v57, %v2677_v16  ;;  %v2675_v44 = vadd.f32 %v2661_v46, %v2629_v54  ;;  %v2676_v38 = vadd.f32 %v2662_v27, %v2630_v40  ;;  %v12280_v5 = vrot.slane %v12263_v48, 4  ;;  %vm12289_vm11 = vmmov %vm12275_vm0  ;;  %v12296_v2 = vld [vmem:[#allocation23_spill] sm:$0xff]  ;;  %v12300_v28 = vld [vmem:[#allocation217_spill] sm:$0xff] }
 0x481   :  { %v4777_v60 = vadd.f32 %v12281_v25, %v4732_v4  ;;  %v4852_v0 = vsel %vm3439_vm3, %v12282_v3, %v12190_v42  ;;  %v2707_v32 = vsel %vm12285_vm1, %v12284_v35, %v12283_v55  ;;  %vm12287_vm15 = vcmask 736256   ;;  %v9538_v40 = vpop.permute.xlu0 %2973  ;;  %v12297_v4 = vld [vmem:[#allocation52_spill] sm:$0xff]  ;;  %v12301_v46 = vld [vmem:[#allocation39_spill] sm:$0xff]  ;;  %v12303_v27 = vld [vmem:[#allocation65_spill] sm:$0xff] }
 0x482   :  { %4214 = vrot.lane.b32.xlu1 %v12280_v5, %s12279_s28  ;;  %v2755_v24 = vsel %vm12287_vm15, %v9294_v41, %v12286_v12  ;;  %v12288_v1 = vrot.slane %v12271_v17, 4  ;;  %v4776_v59 = vadd.f32 %v9431_v43, %v4731_v14  ;;  %v2708_v52 = vsel %vm12289_vm11, %v12283_v55, %v12274_v53  ;;  %vm12294_vm14 = vmmov %vm12287_vm15  ;;  %v12298_v53 = vld [vmem:[#allocation215_spill] sm:$0xff]  ;;  %v12305_v14 = vld [vmem:[#allocation32_spill] sm:$0xff] }
 0x483   :  { %v2769_v48 = vadd.f32 %v2755_v24, %v2723_v36  ;;  %v2721_v42 = vadd.f32 %v2707_v32, %v2675_v44  ;;  %v4822_v6 = vadd.f32 %v12290_v8, %v4777_v60  ;;  %vm12292_vm0 = vcmask 728064   ;;  %vm12295_vm2 = vmmov %vm12294_vm14  ;;  %v5027_v44 = vld [vmem:[%s11103_s4 + $0x200] sm:$0xff]  ;;  %v2834_v35 = vpop.permute.xlu1 %2833  ;;  %v5034_v24 = vld [vmem:[%s11103_s4 + $0x238] sm:$0xff] }
 0x484   :  { %4212 = vrot.lane.b32.xlu0 %v12288_v1, %s12279_s28  ;;  %v2801_v22 = vsel %vm12292_vm0, %v9373_v37, %v12291_v45  ;;  %v2722_v31 = vadd.f32 %v2708_v52, %v2676_v38  ;;  %v2753_v17 = vsel %vm12294_vm14, %v12293_v49, %v2742_v20  ;;  %v4821_v30 = vadd.f32 %v9403_v62, %v4776_v59  ;;  %vm12304_vm11 = vmmov %vm12292_vm0  ;;  %v5029_v38 = vld [vmem:[%s11103_s4 + $0x210] sm:$0xff]  ;;  %v12306_v5 = vld [vmem:[#allocation250_spill] sm:$0xff] }
 0x485   :  { %v2815_v43 = vadd.f32 %v2801_v22, %v2769_v48  ;;  %v2754_v16 = vsel %vm12295_vm2, %v2742_v20, %v9294_v41  ;;  %v2767_v54 = vadd.f32 %v2753_v17, %v2721_v42  ;;  %v4867_v7 = vadd.f32 %v12296_v2, %v4822_v6  ;;  %v12308_v60 = vld [vmem:[#allocation254_spill] sm:$0xff]  ;;  %v12310_v1 = vld [vmem:[#allocation103_spill] sm:$0xff]  ;;  %v12312_v48 = vld [vmem:[#allocation261_spill] sm:$0xff]  ;;  %v9577_v22 = vpop.permute.xlu0 %3019 }
 0x486   :  { %4259 = vrot.lane.b32.xlu1 %v12251_v51, %s11740_s0  ;;  %vm12299_vm1 = vcmask 211968   ;;  %vm12302_vm15 = vcmask 203776   ;;  %v2799_v41 = vsel %vm12304_vm11, %v12303_v27, %v9347_v63  ;;  %v4866_v36 = vadd.f32 %v4852_v0, %v4821_v30  ;;  %v5032_v0 = vld [vmem:[%s11103_s4 + $0x228] sm:$0xff]  ;;  %v5031_v30 = vld [vmem:[%s11103_s4 + $0x220] sm:$0xff] }
 0x487   :  { %v4898_v57 = vsel %vm12299_vm1, %v12298_v53, %v12297_v4  ;;  %v4943_v62 = vsel %vm12302_vm15, %v12301_v46, %v12300_v28  ;;  %vm12307_vm0 = vmmov %vm12299_vm1  ;;  %v2813_v55 = vadd.f32 %v2799_v41, %v2767_v54  ;;  %vm12311_vm2 = vcmask 523264   ;;  %v5036_v2 = vld [vmem:[%s11103_s4 + $0x248] sm:$0xff] }
 0x488   :  { %4257 = vrot.lane.b32.xlu0 %v12305_v14, %s11740_s0  ;;  %v4897_v25 = vsel %vm12307_vm0, %v12306_v5, %v12298_v53  ;;  %vm12309_vm14 = vmmov %vm12302_vm15  ;;  %v4912_v32 = vadd.f32 %v4898_v57, %v4867_v7  ;;  %v2847_v59 = vsel %vm12311_vm2, %v9394_v29, %v12310_v1  ;;  %v2768_v52 = vadd.f32 %v2754_v16, %v2722_v31  ;;  %v5033_v31 = vld [vmem:[%s11103_s4 + $0x230] sm:$0xff]  ;;  %v5038_v7 = vld [vmem:[%s11103_s4 + $0x258] sm:$0xff] }
 0x489   :  { %v4942_v3 = vsel %vm12309_vm14, %v12308_v60, %v12301_v46  ;;  %vm12313_vm1 = vmmov %vm12311_vm2  ;;  %v4911_v20 = vadd.f32 %v4897_v25, %v4866_v36  ;;  %v2861_v8 = vadd.f32 %v2847_v59, %v2815_v43  ;;  %v5973_v17 = vpack.c.bf16 %v5029_v38, %v5027_v44  ;;  %v12316_v53 = vld [vmem:[#allocation134_spill] sm:$0xff]  ;;  %v12318_v46 = vld [vmem:[#allocation104_spill] sm:$0xff]  ;;  %v9608_v36 = vpop.permute.xlu0 %3063 }
 0x48a   :  { %v2845_v42 = vsel %vm12313_vm1, %v12312_v48, %v2834_v35  ;;  %4304 = vrot.lane.b32.xlu1 %v4292_v15, %s11745_s10  ;;  %v4957_v49 = vadd.f32 %v4943_v62, %v4912_v32  ;;  %v12314_v43 = vrot.slane %v12305_v14, 4  ;;  %v5975_v54 = vpack.c.bf16 %v5034_v24, %v5032_v0  ;;  %vm12315_vm15 = vmmov %vm12304_vm11  ;;  %v2926_v15 = vpop.permute.xlu1 %2925  ;;  %v12322_v44 = vld [vmem:[#allocation190_spill] sm:$0xff]  ;;  %v12325_v25 = vld [vmem:[#allocation189_spill] sm:$0xff] }
 0x48b   :  { %v2859_v6 = vadd.f32 %v2845_v42, %v2813_v55  ;;  %v4956_v16 = vadd.f32 %v4942_v3, %v4911_v20  ;;  %v2800_v51 = vsel %vm12315_vm15, %v9347_v63, %v9373_v37  ;;  %vm12317_vm11 = vcmask 515072   ;;  %vm12320_vm14 = vmmov %vm12313_vm1  ;;  %v12323_v38 = vld [vmem:[#allocation262_spill] sm:$0xff]  ;;  %v5040_v32 = vld [vmem:[%s11103_s4 + $0x268] sm:$0xff] }
 0x48c   :  { %4302 = vrot.lane.b32.xlu0 %v12314_v43, %s11745_s10  ;;  %5251 = vmatprep.mubr.f32.mxu1 %v4957_v49  ;;  %v2891_v57 = vsel %vm12317_vm11, %v12316_v53, %v9422_v21  ;;  %vm12319_vm0 = vmmov %vm12317_vm11  ;;  %v2814_v27 = vadd.f32 %v2800_v51, %v2768_v52  ;;  %v5977_v63 = vpack.c.bf16 %v5033_v31, %v5031_v30  ;;  %vm12324_vm2 = vcmask 506880   ;;  %v5035_v3 = vld [vmem:[%s11103_s4 + $0x240] sm:$0xff]  ;;  %v5042_v0 = vld [vmem:[%s11103_s4 + $0x278] sm:$0xff] }
 0x48d   :  { %v2893_v62 = vsel %vm12319_vm0, %v9456_v10, %v12318_v46  ;;  %5252 = vmatmul.mubr.f32.vlgmr.msra.gmra.mrb[124].mxu1 %v4956_v16  ;;  %v2846_v41 = vsel %vm12320_vm14, %v2834_v35, %v9394_v29  ;;  %v2905_v14 = vadd.f32 %v2891_v57, %v2859_v6  ;;  %v2937_v5 = vsel %vm12324_vm2, %v12323_v38, %v2926_v15  ;;  %v5037_v29 = vld [vmem:[%s11103_s4 + $0x250] sm:$0xff]  ;;  %v12326_v59 = vld [vmem:[#allocation253_spill] sm:$0xff]  ;;  %vm12327_vm1 = vmmov %vm12324_vm2 }
 0x48e   :  { %v2907_v37 = vadd.f32 %v2893_v62, %v2861_v8  ;;  %4349 = vrot.lane.b32.xlu1 %v12322_v44, %s12321_s8  ;;  %5974 = vmatpush1.bf16.msra.mxu1 %v5973_v17  ;;  %v5979_v60 = vpack.c.bf16 %v5038_v7, %v5036_v2  ;;  %v4382_v55 = vrot.slane %v12322_v44, 4  ;;  %v9623_v35 = vpop.permute.xlu1 %3017  ;;  %v4381_v24 = vrot.slane %v12325_v25, 4  ;;  %v9635_v8 = vpop.permute.xlu0 %3065  ;;  %v5039_v49 = vld [vmem:[%s11103_s4 + $0x260] sm:$0xff]  ;;  %v5041_v17 = vld [vmem:[%s11103_s4 + $0x270] sm:$0xff]  ;;  %vm12328_vm15 = vmmov %vm12319_vm0 }
 0x48f   :  { %5976 = vmatprep.subr.bf16.mxu1 %v5975_v54  ;;  %v2939_v52 = vsel %vm12327_vm1, %v9482_v47, %v12326_v59  ;;  %v2860_v48 = vadd.f32 %v2846_v41, %v2814_v27  ;;  %v2951_v20 = vadd.f32 %v2937_v5, %v2905_v14  ;;  %v5981_v6 = vpack.c.bf16 %v5037_v29, %v5035_v3  ;;  %v5044_v16 = vld [vmem:[%s11103_s4 + $0x288] sm:$0xff]  ;;  %v5046_v54 = vld [vmem:[%s11103_s4 + $0x298] sm:$0xff]  ;;  %v12329_v51 = vld [vmem:[#allocation136_spill] sm:$0xff] }
 0x490   :  { %4347 = vrot.lane.b32.xlu0 %v12325_v25, %s12321_s8  ;;  %v2953_v42 = vadd.f32 %v2939_v52, %v2907_v37  ;;  %v5983_v30 = vpack.c.bf16 %v5042_v0, %v5040_v32  ;;  %v2892_v31 = vsel %vm12328_vm15, %v9422_v21, %v9456_v10  ;;  %vm12330_vm11 = vcmask 498688   ;;  %v12331_v7 = vld [vmem:[#allocation112_spill] sm:$0xff]  ;;  %vm12333_vm14 = vmmov %vm12327_vm1  ;;  %v12334_v37 = vld [vmem:[#allocation34_spill] sm:$0xff] }
 0x491   :  { %v2983_v2 = vsel %vm12330_vm11, %v12329_v51, %v9507_v61  ;;  %vm12332_vm0 = vmmov %vm12330_vm11  ;;  %v2906_v57 = vadd.f32 %v2892_v31, %v2860_v48  ;;  %v5985_v21 = vpack.c.bf16 %v5041_v17, %v5039_v49  ;;  %v2938_v62 = vsel %vm12333_vm14, %v2926_v15, %v9482_v47  ;;  %v12335_v41 = vld [vmem:[#allocation263_spill] sm:$0xff]  ;;  %v12337_v44 = vld [vmem:[#allocation192_spill] sm:$0xff] }
 0x492   :  { %4394 = vrot.lane.b32.xlu1 %v4382_v55, %s12007_s16  ;;  %5978 = vmatpush1.bf16.msra.mxu1 %v5977_v63  ;;  %v9648_v43 = vpop.permute.xlu1 %3109  ;;  %v2985_v53 = vsel %vm12332_vm0, %v9538_v40, %v12331_v7  ;;  %v2997_v27 = vadd.f32 %v2983_v2, %v2951_v20  ;;  %v9664_v63 = vpop.permute.xlu0 %3111  ;;  %vm12336_vm2 = vcmask 490496   ;;  %v5987_v38 = vpack.c.bf16 %v5046_v54, %v5044_v16  ;;  %v5043_v47 = vld [vmem:[%s11103_s4 + $0x280] sm:$0xff]  ;;  %v5045_v15 = vld [vmem:[%s11103_s4 + $0x290] sm:$0xff]  ;;  %v5050_v3 = vld [vmem:[%s11103_s4 + $0x2b8] sm:$0xff] }
 0x493   :  { %5980 = vmatprep.subr.bf16.mxu1 %v5979_v60  ;;  %v2999_v10 = vadd.f32 %v2985_v53, %v2953_v42  ;;  %v3029_v14 = vsel %vm12336_vm2, %v12335_v41, %v9623_v35  ;;  %v4472_v5 = vrot.slane %v12334_v37, 4  ;;  %v5048_v60 = vld [vmem:[%s11103_s4 + $0x2a8] sm:$0xff]  ;;  %v4471_v29 = vrot.slane %v12337_v44, 4  ;;  %v12338_v55 = vld [vmem:[#allocation117_spill] sm:$0xff]  ;;  %vm12339_vm1 = vmmov %vm12336_vm2 }
 0x494   :  { %4392 = vrot.lane.b32.xlu0 %v4381_v24, %s12007_s16  ;;  %v3031_v32 = vsel %vm12339_vm1, %v9577_v22, %v12338_v55  ;;  %v2952_v0 = vadd.f32 %v2938_v62, %v2906_v57  ;;  %v3043_v52 = vadd.f32 %v3029_v14, %v2997_v27  ;;  %v5989_v42 = vpack.c.bf16 %v5045_v15, %v5043_v47  ;;  %v5047_v20 = vld [vmem:[%s11103_s4 + $0x2a0] sm:$0xff]  ;;  %v12340_v49 = vld [vmem:[#allocation121_spill] sm:$0xff]  ;;  %vm12342_vm11 = vmmov %vm12332_vm0 }
 0x495   :  { %v3045_v24 = vadd.f32 %v3031_v32, %v2999_v10  ;;  %vm12341_vm15 = vcmask 482304   ;;  %v2984_v31 = vsel %vm12342_vm11, %v9507_v61, %v9538_v40  ;;  %v5052_v54 = vld [vmem:[%s11103_s4 + $0x2c8] sm:$0xff]  ;;  %v5054_v51 = vld [vmem:[%s11103_s4 + $0x2d8] sm:$0xff]  ;;  %vm12346_vm14 = vcmask 474112   ;;  %vm12347_vm2 = vmmov %vm12339_vm1 }
 0x496   :  { %4439 = vrot.lane.b32.xlu1 %v12334_v37, %s12016_s17  ;;  %5982 = vmatpush1.bf16.msra.mxu1 %v5981_v6  ;;  %v9680_v25 = vpop.permute.xlu1 %3157  ;;  %v9692_v48 = vpop.permute.xlu0 %3155  ;;  %v5049_v6 = vld [vmem:[%s11103_s4 + $0x2b0] sm:$0xff]  ;;  %v3077_v17 = vsel %vm12341_vm15, %v9635_v8, %v12340_v49  ;;  %v2998_v2 = vadd.f32 %v2984_v31, %v2952_v0  ;;  %v12343_v53 = vld [vmem:[#allocation5_spill] sm:$0xff]  ;;  %vm12344_vm0 = vmmov %vm12341_vm15  ;;  %v3030_v40 = vsel %vm12347_vm2, %v9623_v35, %v9577_v22  ;;  %vm12353_vm15 = vcmask 465920  }
 0x497   :  { %5984 = vmatprep.subr.bf16.mxu1 %v5983_v30  ;;  %v5991_v30 = vpack.c.bf16 %v5050_v3, %v5048_v60  ;;  %v3075_v57 = vsel %vm12344_vm0, %v12343_v53, %v9608_v36  ;;  %v5993_v61 = vpack.c.bf16 %v5049_v6, %v5047_v20  ;;  %v3091_v27 = vadd.f32 %v3077_v17, %v3045_v24  ;;  %v12348_v41 = vld [vmem:[#allocation196_spill] sm:$0xff]  ;;  %v12349_v14 = vld [vmem:[#allocation266_spill] sm:$0xff]  ;;  %vm12350_vm1 = vmmov %vm12346_vm14 }
 0x498   :  { %4437 = vrot.lane.b32.xlu0 %v12337_v44, %s12016_s17  ;;  %v3089_v62 = vadd.f32 %v3075_v57, %v3043_v52  ;;  %v3121_v44 = vsel %vm12350_vm1, %v12349_v14, %v9648_v43  ;;  %v5995_v47 = vpack.c.bf16 %v5054_v51, %v5052_v54  ;;  %v5051_v22 = vld [vmem:[%s11103_s4 + $0x2c0] sm:$0xff]  ;;  %v5053_v35 = vld [vmem:[%s11103_s4 + $0x2d0] sm:$0xff]  ;;  %v5056_v3 = vld [vmem:[%s11103_s4 + $0x2e8] sm:$0xff]  ;;  %v4562_v32 = vrot.slane %v12348_v41, 4 }
 0x499   :  { %v3044_v0 = vadd.f32 %v3030_v40, %v2998_v2  ;;  %v12352_v24 = vld [vmem:[#allocation251_spill] sm:$0xff]  ;;  %vm12355_vm11 = vmmov %vm12353_vm15  ;;  %v3076_v6 = vsel %vm12344_vm0, %v9608_v36, %v9635_v8  ;;  %v5997_v31 = vpack.c.bf16 %v5053_v35, %v5051_v22  ;;  %v12356_v54 = vld [vmem:[#allocation258_spill] sm:$0xff]  ;;  %v3122_v14 = vsel %vm12350_vm1, %v9648_v43, %v9664_v63 }
 0x49a   :  { %4484 = vrot.lane.b32.xlu1 %v4472_v5, %s12025_s14  ;;  %5986 = vmatpush1.bf16.msra.mxu1 %v5985_v21  ;;  %v9708_v16 = vpop.permute.xlu1 %3201  ;;  %v12345_v21 = vld [vmem:[#allocation256_spill] sm:$0xff]  ;;  %v9725_v37 = vpop.permute.xlu0 %3203  ;;  %v3169_v52 = vsel %vm12353_vm15, %v9680_v25, %v12352_v24  ;;  %v3135_v17 = vadd.f32 %v3121_v44, %v3089_v62  ;;  %v5055_v53 = vld [vmem:[%s11103_s4 + $0x2e0] sm:$0xff]  ;;  %v5062_v40 = vld [vmem:[%s11103_s4 + $0x318] sm:$0xff]  ;;  %vm12362_vm15 = vcmask 252928   ;;  %vm12366_vm0 = vcmask 465920  }
 0x49b   :  { %5988 = vmatprep.subr.bf16.mxu1 %v5987_v38  ;;  %v3123_v10 = vsel %vm12346_vm14, %v9664_v63, %v12345_v21  ;;  %v12351_v38 = vld [vmem:[#allocation195_spill] sm:$0xff]  ;;  %vm12357_vm14 = vcmask 261120   ;;  %v5057_v36 = vld [vmem:[%s11103_s4 + $0x2f0] sm:$0xff]  ;;  %v3090_v62 = vadd.f32 %v3076_v6, %v3044_v0  ;;  %v5059_v43 = vld [vmem:[%s11103_s4 + $0x300] sm:$0xff]  ;;  %vm12372_vm1 = vcmask 236544  }
 0x49c   :  { %4482 = vrot.lane.b32.xlu0 %v4471_v29, %s12025_s14  ;;  %v4561_v15 = vrot.slane %v12351_v38, 4  ;;  %v3137_v5 = vadd.f32 %v3123_v10, %v3091_v27  ;;  %v5058_v29 = vld [vmem:[%s11103_s4 + $0x2f8] sm:$0xff]  ;;  %v3215_v51 = vsel %vm12357_vm14, %v9725_v37, %v12356_v54  ;;  %v12358_v27 = vld [vmem:[#allocation267_spill] sm:$0xff]  ;;  %vm12359_vm2 = vmmov %vm12357_vm14  ;;  %v6001_v22 = vpack.c.bf16 %v5057_v36, %v5055_v53 }
 0x49d   :  { %v5999_v2 = vpack.c.bf16 %v5058_v29, %v5056_v3  ;;  %v12361_v35 = vld [vmem:[#allocation252_spill] sm:$0xff]  ;;  %v12365_v29 = vld [vmem:[#allocation38_spill] sm:$0xff]  ;;  %v5066_v6 = vld [vmem:[%s11103_s4 + $0x338] sm:$0xff] }
 0x49e   :  { %4529 = vrot.lane.b32.xlu1 %v12348_v41, %s12034_s15  ;;  %5990 = vmatpush1.bf16.msra.mxu1 %v5989_v42  ;;  %v9741_v60 = vpop.permute.xlu1 %3249  ;;  %v12354_v42 = vld [vmem:[#allocation145_spill] sm:$0xff]  ;;  %v3183_v8 = vadd.f32 %v3169_v52, %v3137_v5  ;;  %v3213_v41 = vsel %vm12359_vm2, %v12358_v27, %v9708_v16  ;;  %v12363_v5 = vld [vmem:[#allocation3_spill] sm:$0xff]  ;;  %v5061_v63 = vld [vmem:[%s11103_s4 + $0x310] sm:$0xff]  ;;  %v4651_v0 = vrot.slane %v12365_v29, 4 }
 0x49f   :  { %5992 = vmatprep.subr.bf16.mxu1 %v5991_v30  ;;  %v3167_v20 = vsel %vm12355_vm11, %v12354_v42, %v9692_v48  ;;  %v3248_v30 = vpop.permute.xlu0 %3247  ;;  %vm12364_vm11 = vmmov %vm12362_vm15  ;;  %v12369_v27 = vld [vmem:[#allocation56_spill] sm:$0xff]  ;;  %v12424_v54 = vld [vmem:[#allocation137_spill] sm:$0xff] }
 0x4a0   :  { %4527 = vrot.lane.b32.xlu0 %v12351_v38, %s12034_s15  ;;  %v3181_v57 = vadd.f32 %v3167_v20, %v3135_v17  ;;  %v3229_v44 = vadd.f32 %v3215_v51, %v3183_v8  ;;  %v3259_v3 = vsel %vm12364_vm11, %v12363_v5, %v3248_v30  ;;  %v5064_v20 = vld [vmem:[%s11103_s4 + $0x328] sm:$0xff]  ;;  %v3168_v51 = vsel %vm12366_vm0, %v9692_v48, %v9680_v25  ;;  %vm12368_vm14 = vmmov %vm12359_vm2  ;;  %v5063_v48 = vld [vmem:[%s11103_s4 + $0x320] sm:$0xff] }
 0x4a1   :  { %v6007_v25 = vpack.c.bf16 %v5066_v6, %v5064_v20  ;;  %vm12370_vm2 = vmmov %vm12364_vm11  ;;  %v5067_v20 = vld [vmem:[%s11103_s4 + $0x340] sm:$0xff]  ;;  %v12376_v6 = vld [vmem:[#allocation41_spill] sm:$0xff]  ;;  %vm12377_vm11 = vcmask 228352  }
 0x4a2   :  { %4572 = vrot.lane.b32.xlu1 %v4561_v15, %s12044_s12  ;;  %5994 = vmatpush1.bf16.msra.mxu1 %v5993_v61  ;;  %v3294_v10 = vpop.permute.xlu1 %3293  ;;  %v5060_v61 = vld [vmem:[%s11103_s4 + $0x308] sm:$0xff]  ;;  %v3261_v15 = vsel %vm12362_vm15, %v9741_v60, %v12361_v35  ;;  %v3227_v52 = vadd.f32 %v3213_v41, %v3181_v57  ;;  %v5065_v41 = vld [vmem:[%s11103_s4 + $0x330] sm:$0xff]  ;;  %vm12374_vm15 = vmmov %vm12372_vm1 }
 0x4a3   :  { %5996 = vmatprep.subr.bf16.mxu1 %v5995_v47  ;;  %v3296_v38 = vpop.permute.xlu0 %3295  ;;  %v12360_v47 = vld [vmem:[#allocation37_spill] sm:$0xff]  ;;  %v3275_v36 = vadd.f32 %v3261_v15, %v3229_v44  ;;  %v12371_v15 = vld [vmem:[#allocation115_spill] sm:$0xff]  ;;  %vm12379_vm0 = vmmov %vm12372_vm1 }
 0x4a4   :  { %4574 = vrot.lane.b32.xlu0 %v4562_v32, %s12044_s12  ;;  %v6003_v32 = vpack.c.bf16 %v5062_v40, %v5060_v61  ;;  %v4652_v17 = vrot.slane %v12360_v47, 4  ;;  %v3273_v8 = vadd.f32 %v3259_v3, %v3227_v52  ;;  %v6005_v61 = vpack.c.bf16 %v5061_v63, %v5059_v43  ;;  %v12373_v3 = vld [vmem:[#allocation111_spill] sm:$0xff] }
 0x4a5   :  { %v3214_v40 = vsel %vm12368_vm14, %v9708_v16, %v9725_v37  ;;  %v5068_v16 = vld [vmem:[%s11103_s4 + $0x348] sm:$0xff]  ;;  %v5070_v37 = vld [vmem:[%s11103_s4 + $0x358] sm:$0xff]  ;;  %v6009_v52 = vpack.c.bf16 %v5065_v41, %v5063_v48  ;;  %vm12381_vm14 = vmmov %vm12377_vm11 }
 0x4a6   :  { %4619 = vrot.lane.b32.xlu1 %v12360_v47, %s12047_s13  ;;  %5998 = vmatpush1.bf16.msra.mxu1 %v5997_v31  ;;  %v3342_v42 = vpop.permute.xlu1 %3341  ;;  %v3136_v31 = vadd.f32 %v3122_v14, %v3090_v62  ;;  %v3305_v62 = vsel %vm3301_vm4, %v12369_v27, %v3294_v10  ;;  %v12432_v46 = vld [vmem:[#allocation151_spill] sm:$0xff] }
 0x4a7   :  { %6000 = vmatprep.subr.bf16.mxu1 %v5999_v2  ;;  %v12367_v2 = vld [vmem:[#allocation260_spill] sm:$0xff]  ;;  %v3340_v57 = vpop.permute.xlu0 %3339  ;;  %v3353_v5 = vsel %vm12372_vm1, %v3342_v42, %v12371_v15  ;;  %v3319_v43 = vadd.f32 %v3305_v62, %v3273_v8  ;;  %vm12387_vm1 = vcmask 211968  }
 0x4a8   :  { %4617 = vrot.lane.b32.xlu0 %v12365_v29, %s12047_s13  ;;  %v3307_v53 = vsel %vm3301_vm4, %v3296_v38, %v12367_v2  ;;  %v3182_v14 = vadd.f32 %v3168_v51, %v3136_v31  ;;  %v3351_v29 = vsel %vm12374_vm15, %v12373_v3, %v3340_v57  ;;  %v12378_v31 = vld [vmem:[#allocation200_spill] sm:$0xff]  ;;  %v6011_v51 = vpack.c.bf16 %v5070_v37, %v5068_v16  ;;  %vm12388_vm15 = vmmov %vm12387_vm1 }
 0x4a9   :  { %v3321_v44 = vadd.f32 %v3307_v53, %v3275_v36  ;;  %v5072_v53 = vld [vmem:[%s11103_s4 + $0x368] sm:$0xff]  ;;  %v5074_v36 = vld [vmem:[%s11103_s4 + $0x378] sm:$0xff]  ;;  %v4741_v8 = vrot.slane %v12378_v31, 4  ;;  %v3352_v62 = vsel %vm12379_vm0, %v3340_v57, %v3342_v42  ;;  %vm12393_vm0 = vcmask 203776  }
 0x4aa   :  { %4662 = vrot.lane.b32.xlu1 %v4651_v0, %s11956_s3  ;;  %6002 = vmatpush1.bf16.msra.mxu1 %v6001_v22  ;;  %v3386_v47 = vpop.permute.xlu1 %3385  ;;  %v3260_v22 = vsel %vm12370_vm2, %v3248_v30, %v9741_v60  ;;  %v12375_v0 = vld [vmem:[#allocation201_spill] sm:$0xff]  ;;  %v5069_v60 = vld [vmem:[%s11103_s4 + $0x350] sm:$0xff]  ;;  %v3306_v30 = vsel %vm3301_vm4, %v3294_v10, %v3296_v38  ;;  %v3365_v38 = vadd.f32 %v3351_v29, %v3319_v43  ;;  %v5076_v42 = vld [vmem:[%s11103_s4 + $0x388] sm:$0xff] }
 0x4ab   :  { %6004 = vmatprep.subr.bf16.mxu1 %v6003_v32  ;;  %v3228_v32 = vadd.f32 %v3214_v40, %v3182_v14  ;;  %v3388_v63 = vpop.permute.xlu0 %3387  ;;  %v3367_v10 = vadd.f32 %v3353_v5, %v3321_v44  ;;  %v4742_v27 = vrot.slane %v12375_v0, 4  ;;  %v6013_v41 = vpack.c.bf16 %v5069_v60, %v5067_v20  ;;  %v5071_v14 = vld [vmem:[%s11103_s4 + $0x360] sm:$0xff]  ;;  %v5078_v57 = vld [vmem:[%s11103_s4 + $0x398] sm:$0xff]  ;;  %vm12382_vm2 = vmmov %vm12377_vm11 }
 0x4ac   :  { %4664 = vrot.lane.b32.xlu0 %v4652_v17, %s11956_s3  ;;  %v3399_v17 = vsel %vm12377_vm11, %v3388_v63, %v12376_v6  ;;  %v6015_v44 = vpack.c.bf16 %v5074_v36, %v5072_v53  ;;  %v3398_v5 = vsel %vm12382_vm2, %v3386_v47, %v3388_v63  ;;  %v12383_v29 = vld [vmem:[#allocation255_spill] sm:$0xff]  ;;  %v12385_v63 = vld [vmem:[#allocation205_spill] sm:$0xff]  ;;  %vm12390_vm11 = vmmov %vm12387_vm1 }
 0x4ad   :  { %v3413_v37 = vadd.f32 %v3399_v17, %v3367_v10  ;;  %v12384_v43 = vld [vmem:[#allocation123_spill] sm:$0xff]  ;;  %vm12396_vm2 = vmmov %vm12393_vm0 }
 0x4ae   :  { %4709 = vrot.lane.b32.xlu1 %v12375_v0, %s12058_s19  ;;  %6006 = vmatpush1.bf16.msra.mxu1 %v6005_v61  ;;  %v3274_v61 = vadd.f32 %v3260_v22, %v3228_v32  ;;  %v3434_v40 = vpop.permute.xlu1 %3433  ;;  %v5073_v22 = vld [vmem:[%s11103_s4 + $0x370] sm:$0xff]  ;;  %v12386_v10 = vld [vmem:[#allocation75_spill] sm:$0xff] }
 0x4af   :  { %6008 = vmatprep.subr.bf16.mxu1 %v6007_v25  ;;  %v12380_v25 = vld [vmem:[#allocation72_spill] sm:$0xff]  ;;  %v3432_v3 = vpop.permute.xlu0 %3431  ;;  %v3445_v32 = vsel %vm3439_vm3, %v3434_v40, %v12383_v29  ;;  %v6017_v17 = vpack.c.bf16 %v5073_v22, %v5071_v14  ;;  %v4832_v22 = vrot.slane %v12385_v63, 4 }
 0x4b0   :  { %4707 = vrot.lane.b32.xlu0 %v12378_v31, %s12058_s19  ;;  %v3397_v48 = vsel %vm12381_vm14, %v12380_v25, %v3386_v47  ;;  %v3320_v16 = vadd.f32 %v3306_v30, %v3274_v61  ;;  %v3443_v0 = vsel %vm3439_vm3, %v12384_v43, %v3432_v3  ;;  %v3444_v30 = vsel %vm3439_vm3, %v3432_v3, %v3434_v40  ;;  %v5075_v61 = vld [vmem:[%s11103_s4 + $0x380] sm:$0xff]  ;;  %v12391_v25 = vld [vmem:[#allocation204_spill] sm:$0xff]  ;;  %v5082_v3 = vld [vmem:[%s11103_s4 + $0x3b8] sm:$0xff] }
 0x4b1   :  { %v3411_v20 = vadd.f32 %v3397_v48, %v3365_v38  ;;  %v6019_v31 = vpack.c.bf16 %v5078_v57, %v5076_v42  ;;  %v3459_v36 = vadd.f32 %v3445_v32, %v3413_v37  ;;  %v4831_v48 = vrot.slane %v12391_v25, 4  ;;  %v5080_v37 = vld [vmem:[%s11103_s4 + $0x3a8] sm:$0xff]  ;;  %v12392_v42 = vld [vmem:[#allocation257_spill] sm:$0xff]  ;;  %vm12395_vm14 = vmmov %vm12393_vm0 }
 0x4b2   :  { %4752 = vrot.lane.b32.xlu1 %v4741_v8, %s11961_s21  ;;  %6010 = vmatpush1.bf16.msra.mxu1 %v6009_v52  ;;  %v3366_v52 = vadd.f32 %v3352_v62, %v3320_v16  ;;  %v3478_v60 = vpop.permute.xlu1 %3477 }
 0x4b3   :  { %6012 = vmatprep.subr.bf16.mxu1 %v6011_v51  ;;  %v3457_v8 = vadd.f32 %v3443_v0, %v3411_v20  ;;  %v3480_v47 = vpop.permute.xlu0 %3479  ;;  %v5077_v51 = vld [vmem:[%s11103_s4 + $0x390] sm:$0xff]  ;;  %v3489_v38 = vsel %vm12387_vm1, %v12386_v10, %v3478_v60  ;;  %v12400_v10 = vld [vmem:[#allocation25_spill] sm:$0xff]  ;;  %vm12435_vm1 = vcmask 990208  }
 0x4b4   :  { %4754 = vrot.lane.b32.xlu0 %v4742_v27, %s11961_s21  ;;  %v3412_v53 = vadd.f32 %v3398_v5, %v3366_v52  ;;  %v3490_v40 = vsel %vm12388_vm15, %v3478_v60, %v3480_v47  ;;  %v12389_v27 = vld [vmem:[#allocation265_spill] sm:$0xff]  ;;  %v6021_v5 = vpack.c.bf16 %v5077_v51, %v5075_v61  ;;  %vm12443_vm15 = vcmask 769024  }
 0x4b5   :  { %v3491_v62 = vsel %vm12390_vm11, %v3480_v47, %v12389_v27  ;;  %v12394_v52 = vld [vmem:[#allocation13_spill] sm:$0xff]  ;;  %vm12446_vm11 = vcmask 760832  }
 0x4b6   :  { %4799 = vrot.lane.b32.xlu1 %v12385_v63, %s12065_s22  ;;  %6014 = vmatpush1.bf16.msra.mxu1 %v6013_v41  ;;  %v3458_v41 = vadd.f32 %v3444_v30, %v3412_v53  ;;  %v3505_v14 = vadd.f32 %v3491_v62, %v3459_v36  ;;  %v3526_v16 = vpop.permute.xlu1 %3525  ;;  %v6023_v30 = vpack.c.bf16 %v5082_v3, %v5080_v37  ;;  %v5079_v53 = vld [vmem:[%s11103_s4 + $0x3a0] sm:$0xff]  ;;  %v5081_v36 = vld [vmem:[%s11103_s4 + $0x3b0] sm:$0xff]  ;;  %v5086_v51 = vld [vmem:[%s11103_s4 + $0x3d8] sm:$0xff] }
 0x4b7   :  { %6016 = vmatprep.subr.bf16.mxu1 %v6015_v44  ;;  %v3537_v57 = vsel %vm12393_vm0, %v3526_v16, %v12392_v42  ;;  %v3503_v44 = vadd.f32 %v3489_v38, %v3457_v8  ;;  %v3524_v0 = vpop.permute.xlu0 %3523  ;;  %v12397_v8 = vld [vmem:[#allocation69_spill] sm:$0xff]  ;;  %v5083_v37 = vld [vmem:[%s11103_s4 + $0x3c0] sm:$0xff]  ;;  %v5085_v3 = vld [vmem:[%s11103_s4 + $0x3d0] sm:$0xff] }
 0x4b8   :  { %4797 = vrot.lane.b32.xlu0 %v12391_v25, %s12065_s22  ;;  %v3504_v32 = vadd.f32 %v3490_v40, %v3458_v41  ;;  %v3551_v43 = vadd.f32 %v3537_v57, %v3505_v14  ;;  %v3535_v20 = vsel %vm12395_vm14, %v12394_v52, %v3524_v0  ;;  %v3536_v60 = vsel %vm12396_vm2, %v3524_v0, %v3526_v16  ;;  %v12401_v40 = vld [vmem:[#allocation161_spill] sm:$0xff]  ;;  %v12404_v14 = vld [vmem:[#allocation208_spill] sm:$0xff]  ;;  %vm12447_vm0 = vmmov %vm12435_vm1 }
 0x4b9   :  { %v6025_v41 = vpack.c.bf16 %v5081_v36, %v5079_v53  ;;  %v6029_v0 = vpack.c.bf16 %v5085_v3, %v5083_v37  ;;  %v12406_v53 = vld [vmem:[#allocation40_spill] sm:$0xff]  ;;  %vm12449_vm14 = vcmask 752640   ;;  %vm12452_vm2 = vcmask 744448  }
 0x4ba   :  { %4842 = vrot.lane.b32.xlu1 %v4831_v48, %s12070_s11  ;;  %6018 = vmatpush1.bf16.msra.mxu1 %v6017_v17  ;;  %v9916_v47 = vadd.f32 %v3551_v43, %v12397_v8  ;;  %v3549_v17 = vadd.f32 %v3535_v20, %v3503_v44  ;;  %v3550_v63 = vadd.f32 %v3536_v60, %v3504_v32  ;;  %v9918_v61 = vpop.permute.xlu1 %3584  ;;  %v12403_v48 = vld [vmem:[#allocation209_spill] sm:$0xff]  ;;  %v5087_v20 = vld [vmem:[%s11103_s4 + $0x3e0] sm:$0xff]  ;;  %v5089_v60 = vld [vmem:[%s11103_s4 + $0x3f0] sm:$0xff]  ;;  %v2870_v36 = vrot.slane %v12406_v53, 4 }
 0x4bb   :  { %6020 = vmatprep.subr.bf16.mxu1 %v6019_v31  ;;  %12399 = vst [vmem:[#allocation179_spill] sm:$0xff] %v9918_v61  ;;  %v5084_v31 = vld [vmem:[%s11103_s4 + $0x3c8] sm:$0xff]  ;;  %v9932_v25 = vpop.permute.xlu0 %3582  ;;  %v5090_v44 = vld [vmem:[%s11103_s4 + $0x3f8] sm:$0xff]  ;;  %v4922_v32 = vrot.slane %v12403_v48, 4 }
 0x4bc   :  { %4844 = vrot.lane.b32.xlu0 %v4832_v22, %s12070_s11  ;;  %12398 = vst [vmem:[#allocation159_spill] sm:$0xff] %v9916_v47  ;;  %v9927_v38 = vadd.f32 %v3549_v17, %v12400_v10  ;;  %v9930_v62 = vadd.f32 %v3550_v63, %v12401_v40  ;;  %v6027_v16 = vpack.c.bf16 %v5086_v51, %v5084_v31  ;;  %v4921_v22 = vrot.slane %v12404_v14, 4  ;;  %v12407_v10 = vld [vmem:[#allocation71_spill] sm:$0xff] }
 0x4bd   :  { %v6033_v63 = vpack.c.bf16 %v5089_v60, %v5087_v20  ;;  %v3573_v31 = vrot.slane %v12397_v8, 4  ;;  %v3574_v40 = vrot.slane %v12407_v10, 4  ;;  %v12410_v8 = vld [vmem:[#allocation74_spill] sm:$0xff]  ;;  %v12416_v10 = vld [vmem:[#allocation49_spill] sm:$0xff] }
 0x4be   :  { %12402 = vst [vmem:[#allocation174_spill] sm:$0xff] %v9930_v62  ;;  %4889 = vrot.lane.b32.xlu1 %v12403_v48, %s12074_s9  ;;  %6022 = vmatpush1.bf16.msra.mxu1 %v6021_v5  ;;  %v9945_v57 = vpop.permute.xlu1 %3629  ;;  %v5088_v5 = vld [vmem:[%s11103_s4 + $0x3e8] sm:$0xff] }
 0x4bf   :  { %6024 = vmatprep.subr.bf16.mxu1 %v6023_v30  ;;  %v9954_v43 = vpop.permute.xlu0 %3627  ;;  %v6031_v52 = vpack.c.bf16 %v5090_v44, %v5088_v5  ;;  %v12411_v5 = vld [vmem:[#allocation77_spill] sm:$0xff]  ;;  %v3663_v44 = vrot.slane %v12410_v8, 4 }
 0x4c0   :  { %4887 = vrot.lane.b32.xlu0 %v12404_v14, %s12074_s9 }
 0x4c2   :  { %4932 = vrot.lane.b32.xlu1 %v4921_v22, %s11846_s18  ;;  %6026 = vmatpush1.bf16.msra.mxu1 %v6025_v41  ;;  %v9964_v30 = vpop.permute.xlu1 %3674 }
 0x4c3   :  { %6028 = vmatprep.subr.bf16.mxu1 %v6027_v16  ;;  %12405 = vst [vmem:[#allocation187_spill] sm:$0xff] %v9964_v30  ;;  %v9967_v17 = vpop.permute.xlu0 %3672  ;;  %v12409_v16 = vld [vmem:[#allocation43_spill] sm:$0xff] }
 0x4c4   :  { %4934 = vrot.lane.b32.xlu0 %v4922_v32, %s11846_s18  ;;  %v2962_v3 = vrot.slane %v12409_v16, 4 }
 0x4c6   :  { %2839 = vrot.lane.b32.xlu1 %v12406_v53, %s11740_s0  ;;  %6030 = vmatpush1.bf16.msra.mxu1 %v6029_v0  ;;  %v9973_v51 = vpop.permute.xlu1 %3719  ;;  %v3664_v0 = vrot.slane %v12411_v5, 4  ;;  %v12412_v53 = vld [vmem:[#allocation46_spill] sm:$0xff] }
 0x4c7   :  { %6032 = vmatprep.subr.bf16.mxu1 %v6031_v52  ;;  %v9976_v48 = vpop.permute.xlu0 %3717 }
 0x4c8   :  { %2885 = vrot.lane.b32.xlu0 %v2870_v36, %s11745_s10  ;;  %v12413_v36 = vld [vmem:[#allocation4_spill] sm:$0xff] }
 0x4ca   :  { %3586 = vrot.lane.b32.xlu1 %v3573_v31, %s11860_s20  ;;  %6034 = vmatpush1.bf16.msra.mxu1 %v6033_v63  ;;  %v9980_v41 = vpop.permute.xlu1 %3764  ;;  %v3054_v31 = vrot.slane %v12412_v53, 4 }
 0x4cb   :  { %12408 = vst [vmem:[#allocation188_spill] sm:$0xff] %v9980_v41  ;;  %v9982_v14 = vpop.permute.xlu0 %3762 }
 0x4cc   :  { %3588 = vrot.lane.b32.xlu0 %v3574_v40, %s11860_s20 }
 0x4ce   :  { %2931 = vrot.lane.b32.xlu1 %v12409_v16, %s12321_s8  ;;  %v9988_v37 = vpop.permute.xlu1 %3809  ;;  %v12414_v16 = vld [vmem:[#allocation80_spill] sm:$0xff] }
 0x4cf   :  { %v9991_v22 = vpop.permute.xlu0 %3807 }
 0x4d0   :  { %3631 = vrot.lane.b32.xlu0 %v12410_v8, %s6187_s2  ;;  %v3753_v8 = vrot.slane %v12413_v36, 4 }
 0x4d2   :  { %3633 = vrot.lane.b32.xlu1 %v12411_v5, %s6187_s2  ;;  %v9997_v32 = vpop.permute.xlu1 %3854  ;;  %v3754_v5 = vrot.slane %v12414_v16, 4 }
 0x4d3   :  { %v10000_v52 = vpop.permute.xlu0 %3852 }
 0x4d4   :  { %2977 = vrot.lane.b32.xlu0 %v2962_v3, %s12007_s16 }
 0x4d6   :  { %3676 = vrot.lane.b32.xlu1 %v3663_v44, %s11517_s23  ;;  %v10004_v20 = vpop.permute.xlu1 %3899 }
 0x4d7   :  { %v10006_v60 = vpop.permute.xlu0 %3897 }
 0x4d8   :  { %3678 = vrot.lane.b32.xlu0 %v3664_v0, %s11517_s23  ;;  %s12479_s23 = smov 90  }
 0x4da   :  { %3023 = vrot.lane.b32.xlu1 %v12412_v53, %s12016_s17  ;;  %v10012_v63 = vpop.permute.xlu1 %3944 }
 0x4db   :  { %v10015_v40 = vpop.permute.xlu0 %3942 }
 0x4dc   :  { %3721 = vrot.lane.b32.xlu0 %v12413_v36, %s11516_s24 }
 0x4de   :  { %3723 = vrot.lane.b32.xlu1 %v12414_v16, %s11516_s24  ;;  %v10021_v3 = vpop.permute.xlu1 %3989  ;;  %v3146_v16 = vrot.slane %v12416_v10, 4  ;;  %s12470_s24 = smov 91  }
 0x4df   :  { %v10024_v44 = vpop.permute.xlu0 %3987 }
 0x4e0   :  { %3069 = vrot.lane.b32.xlu0 %v3054_v31, %s12025_s14  ;;  %v12418_v31 = vld [vmem:[#allocation6_spill] sm:$0xff] }
 0x4e2   :  { %3766 = vrot.lane.b32.xlu1 %v3753_v8, %s12415_s29  ;;  %v10028_v0 = vpop.permute.xlu1 %4034  ;;  %v12419_v8 = vld [vmem:[#allocation84_spill] sm:$0xff] }
 0x4e3   :  { %v10030_v53 = vpop.permute.xlu0 %4032  ;;  %v3844_v29 = vrot.slane %v12419_v8, 4 }
 0x4e4   :  { %3768 = vrot.lane.b32.xlu0 %v3754_v5, %s12415_s29  ;;  %v3843_v5 = vrot.slane %v12418_v31, 4 }
 0x4e6   :  { %3115 = vrot.lane.b32.xlu1 %v12416_v10, %s12034_s15  ;;  %v10036_v36 = vpop.permute.xlu1 %4079  ;;  %v12421_v10 = vld [vmem:[#allocation81_spill] sm:$0xff] }
 0x4e7   :  { %v10039_v42 = vpop.permute.xlu0 %4077  ;;  %v3594_v15 = vsel %vm2151_vm5, %v12421_v10, %v9932_v25 }
 0x4e8   :  { %3811 = vrot.lane.b32.xlu0 %v12418_v31, %s12417_s30  ;;  %v3608_v24 = vadd.f32 %v3594_v15, %v12424_v54  ;;  %v12429_v54 = vld [vmem:[#allocation88_spill] sm:$0xff] }
 0x4ea   :  { %3813 = vrot.lane.b32.xlu1 %v12419_v8, %s12417_s30  ;;  %v12423_v8 = vld [vmem:[#allocation53_spill] sm:$0xff] }
 0x4eb   :  { %v10045_v27 = vpop.permute.xlu1 %4124  ;;  %v3238_v49 = vrot.slane %v12423_v8, 4 }
 0x4ec   :  { %3161 = vrot.lane.b32.xlu0 %v3146_v16, %s12044_s12  ;;  %v10048_v6 = vpop.permute.xlu0 %4122  ;;  %v12422_v16 = vld [vmem:[#allocation148_spill] sm:$0xff] }
 0x4ed   :  { %v3639_v31 = vsel %vm2197_vm6, %v12422_v16, %v9954_v43  ;;  %v12428_v16 = vld [vmem:[#allocation150_spill] sm:$0xff] }
 0x4ee   :  { %3856 = vrot.lane.b32.xlu1 %v3843_v5, %s12420_s1  ;;  %v12426_v5 = vld [vmem:[#allocation86_spill] sm:$0xff]  ;;  %v3653_v47 = vadd.f32 %v3639_v31, %v3608_v24  ;;  %v3729_v55 = vsel %vm2289_vm8, %v12428_v16, %v9976_v48  ;;  %v3934_v24 = vrot.slane %v12429_v54, 4  ;;  %v3595_v31 = vsel %vm2151_vm5, %v9932_v25, %v9918_v61  ;;  %v12434_v25 = vld [vmem:[#allocation144_spill] sm:$0xff] }
 0x4ef   :  { %v10055_v2 = vpop.permute.xlu1 %4169  ;;  %v3933_v7 = vrot.slane %v12426_v5, 4  ;;  %v12437_v61 = vld [vmem:[#allocation116_spill] sm:$0xff] }
 0x4f0   :  { %3858 = vrot.lane.b32.xlu0 %v3844_v29, %s12420_s1  ;;  %v10060_v35 = vpop.permute.xlu0 %4167  ;;  %v12427_v29 = vld [vmem:[#allocation19_spill] sm:$0xff] }
 0x4f1   :  { %v3684_v10 = vsel %vm2243_vm7, %v12427_v29, %v9967_v17  ;;  %v12430_v29 = vld [vmem:[#allocation141_spill] sm:$0xff] }
 0x4f2   :  { %3207 = vrot.lane.b32.xlu1 %v12423_v8, %s12047_s13  ;;  %v3698_v15 = vadd.f32 %v3684_v10, %v3653_v47  ;;  %v3774_v59 = vsel %vm2335_vm9, %v12430_v29, %v9982_v14  ;;  %v3819_v47 = vsel %vm2381_vm10, %v12432_v46, %v9991_v22  ;;  %v3685_v46 = vsel %vm2243_vm7, %v9967_v17, %v9964_v30 }
 0x4f4   :  { %3901 = vrot.lane.b32.xlu0 %v12426_v5, %s12425_s7  ;;  %v10070_v21 = vpop.permute.xlu1 %4214  ;;  %v3743_v16 = vadd.f32 %v3729_v55, %v3698_v15  ;;  %v3640_v5 = vsel %vm2197_vm6, %v9954_v43, %v9945_v57  ;;  %v3864_v55 = vsel %vm12435_vm1, %v12434_v25, %v10000_v52  ;;  %vm12454_vm1 = vcmask 736256  }
 0x4f6   :  { %v10076_v62 = vpop.permute.xlu0 %4212  ;;  %3903 = vrot.lane.b32.xlu1 %v12429_v54, %s12425_s7  ;;  %v3788_v10 = vadd.f32 %v3774_v59, %v3743_v16  ;;  %v3609_v54 = vadd.f32 %v3595_v31, %v9927_v38  ;;  %v3909_v59 = vsel %vm2473_vm12, %v12437_v61, %v10006_v60  ;;  %v12438_v38 = vld [vmem:[#allocation58_spill] sm:$0xff] }
 0x4f7   :  { %v12440_v16 = vld [vmem:[#allocation90_spill] sm:$0xff]  ;;  %v3330_v61 = vrot.slane %v12438_v38, 4 }
 0x4f8   :  { %3253 = vrot.lane.b32.xlu0 %v3238_v49, %s11956_s3  ;;  %v10085_v8 = vpop.permute.xlu1 %4259  ;;  %v3654_v29 = vadd.f32 %v3640_v5, %v3609_v54  ;;  %v3775_v54 = vsel %vm2335_vm9, %v9982_v14, %v9980_v41  ;;  %v4023_v14 = vrot.slane %v12440_v16, 4 }
 0x4f9   :  { %12431 = vst [vmem:[#allocation165_spill] sm:$0xff] %v10085_v8 }
 0x4fa   :  { %v10094_v49 = vpop.permute.xlu0 %4257  ;;  %3946 = vrot.lane.b32.xlu1 %v3933_v7, %s12433_s27  ;;  %v3833_v7 = vadd.f32 %v3819_v47, %v3788_v10  ;;  %v3699_v17 = vadd.f32 %v3685_v46, %v3654_v29  ;;  %v12441_v47 = vld [vmem:[#allocation128_spill] sm:$0xff]  ;;  %v3820_v29 = vsel %vm2381_vm10, %v9991_v22, %v9988_v37 }
 0x4fb   :  { %v3954_v5 = vsel %vm2519_vm13, %v12441_v47, %v10015_v40  ;;  %v12444_v46 = vld [vmem:[#allocation92_spill] sm:$0xff] }
 0x4fc   :  { %3948 = vrot.lane.b32.xlu0 %v3934_v24, %s12433_s27  ;;  %v10105_v15 = vpop.permute.xlu1 %4304  ;;  %v3730_v24 = vsel %vm2289_vm8, %v9976_v48, %v9973_v51  ;;  %v3878_v31 = vadd.f32 %v3864_v55, %v3833_v7  ;;  %v12442_v48 = vld [vmem:[#allocation14_spill] sm:$0xff]  ;;  %v4024_v47 = vrot.slane %v12444_v46, 4 }
 0x4fd   :  { %12436 = vst [vmem:[#allocation164_spill] sm:$0xff] %v10105_v15  ;;  %v3744_v30 = vadd.f32 %v3730_v24, %v3699_v17  ;;  %v3999_v55 = vsel %vm12443_vm15, %v12442_v48, %v10024_v44  ;;  %v12445_v24 = vld [vmem:[#allocation17_spill] sm:$0xff]  ;;  %v3865_v48 = vsel %vm12447_vm0, %v10000_v52, %v9997_v32  ;;  %v12451_v52 = vld [vmem:[#allocation139_spill] sm:$0xff]  ;;  %vm12460_vm0 = vcmask 760832  }
 0x4fe   :  { %v10113_v43 = vpop.permute.xlu0 %4302  ;;  %3299 = vrot.lane.b32.xlu1 %v12438_v38, %s12058_s19  ;;  %v3923_v25 = vadd.f32 %v3909_v59, %v3878_v31  ;;  %v4044_v31 = vsel %vm12446_vm11, %v12445_v24, %v10030_v53  ;;  %v12455_v24 = vld [vmem:[#allocation62_spill] sm:$0xff]  ;;  %vm12459_vm11 = vcmask 728064  }
 0x4ff   :  { %v3789_v59 = vadd.f32 %v3775_v54, %v3744_v30  ;;  %v3910_v30 = vsel %vm2473_vm12, %v10006_v60, %v10004_v20 }
 0x500   :  { %3991 = vrot.lane.b32.xlu0 %v12440_v16, %s12439_s6  ;;  %v10125_v10 = vpop.permute.xlu1 %4349  ;;  %v3968_v38 = vadd.f32 %v3954_v5, %v3923_v25  ;;  %v12448_v5 = vld [vmem:[#allocation138_spill] sm:$0xff] }
 0x501   :  { %v3834_v22 = vadd.f32 %v3820_v29, %v3789_v59  ;;  %v3955_v29 = vsel %vm2519_vm13, %v10015_v40, %v10012_v63  ;;  %v12453_v59 = vld [vmem:[#allocation143_spill] sm:$0xff] }
 0x502   :  { %v10134_v7 = vpop.permute.xlu0 %4347  ;;  %3993 = vrot.lane.b32.xlu1 %v12444_v46, %s12439_s6  ;;  %v4013_v41 = vadd.f32 %v3999_v55, %v3968_v38  ;;  %v4134_v55 = vsel %vm12452_vm2, %v12451_v52, %v10048_v6  ;;  %v4179_v60 = vsel %vm12454_vm1, %v12453_v59, %v10060_v35  ;;  %vm12464_vm2 = vcmask 752640  }
 0x503   :  { %v3879_v25 = vadd.f32 %v3865_v48, %v3834_v22  ;;  %v12457_v48 = vld [vmem:[#allocation7_spill] sm:$0xff]  ;;  %v12458_v22 = vld [vmem:[#allocation152_spill] sm:$0xff]  ;;  %vm12466_vm1 = vcmask 515072  }
 0x504   :  { %3345 = vrot.lane.b32.xlu0 %v3330_v61, %s11961_s21  ;;  %v10146_v17 = vpop.permute.xlu1 %4394  ;;  %v4089_v61 = vsel %vm12449_vm14, %v12448_v5, %v10039_v42  ;;  %v4058_v54 = vadd.f32 %v4044_v31, %v4013_v41  ;;  %v4000_v31 = vsel %vm12443_vm15, %v10024_v44, %v10021_v3  ;;  %v4224_v5 = vsel %vm12459_vm11, %v12458_v22, %v10076_v62  ;;  %v12461_v44 = vld [vmem:[#allocation156_spill] sm:$0xff] }
 0x505   :  { %vm12462_vm14 = vcmask 523264   ;;  %vm12467_vm15 = vcmask 744448   ;;  %vm12469_vm11 = vcmask 506880  }
 0x506   :  { %v10155_v16 = vpop.permute.xlu0 %4392  ;;  %4036 = vrot.lane.b32.xlu1 %v4023_v14, %s12450_s25  ;;  %v4103_v38 = vadd.f32 %v4089_v61, %v4058_v54  ;;  %v3924_v14 = vadd.f32 %v3910_v30, %v3879_v25  ;;  %v3422_v30 = vrot.slane %v12455_v24, 4  ;;  %v4045_v54 = vsel %vm12460_vm0, %v10030_v53, %v10028_v0 }
 0x507   :  { %v4135_v22 = vsel %vm12467_vm15, %v10048_v6, %v10045_v27  ;;  %vm12471_vm0 = vcmask 736256   ;;  %vm12478_vm15 = vcmask 523264  }
 0x508   :  { %4038 = vrot.lane.b32.xlu0 %v4024_v47, %s12450_s25  ;;  %v10165_v46 = vpop.permute.xlu1 %4439  ;;  %v4148_v47 = vadd.f32 %v4134_v55, %v4103_v38  ;;  %v3969_v40 = vadd.f32 %v3955_v29, %v3924_v14  ;;  %v4269_v55 = vsel %vm12462_vm14, %v12461_v44, %v10094_v49  ;;  %v12463_v29 = vld [vmem:[#allocation95_spill] sm:$0xff]  ;;  %v4090_v14 = vsel %vm12464_vm2, %v10039_v42, %v10036_v36 }
 0x509   :  { %vm12473_vm14 = vcmask 498688   ;;  %vm12474_vm2 = vcmask 728064  }
 0x50a   :  { %v10173_v41 = vpop.permute.xlu0 %4437  ;;  %3391 = vrot.lane.b32.xlu1 %v12455_v24, %s12065_s22  ;;  %v4193_v25 = vadd.f32 %v4179_v60, %v4148_v47  ;;  %v4014_v52 = vadd.f32 %v4000_v31, %v3969_v40  ;;  %v4113_v24 = vrot.slane %v12457_v48, 4  ;;  %v12465_v60 = vld [vmem:[#allocation162_spill] sm:$0xff]  ;;  %v4114_v40 = vrot.slane %v12463_v29, 4 }
 0x50b   :  { %v4314_v31 = vsel %vm12466_vm1, %v12465_v60, %v10113_v43  ;;  %vm12476_vm1 = vcmask 490496  }
 0x50c   :  { %4081 = vrot.lane.b32.xlu0 %v12457_v48, %s12456_s26  ;;  %v10185_v61 = vpop.permute.xlu1 %4484  ;;  %v4238_v59 = vadd.f32 %v4224_v5, %v4193_v25  ;;  %v4059_v53 = vadd.f32 %v4045_v54, %v4014_v52  ;;  %v12468_v5 = vld [vmem:[#allocation27_spill] sm:$0xff]  ;;  %v4180_v54 = vsel %vm12471_vm0, %v10060_v35, %v10055_v2  ;;  %vm12483_vm0 = vcmask 515072  }
 0x50e   :  { %v4483_v38 = vpop.permute.xlu0 %4482  ;;  %4083 = vrot.lane.b32.xlu1 %v12463_v29, %s12456_s26  ;;  %v4283_v44 = vadd.f32 %v4269_v55, %v4238_v59  ;;  %v4104_v42 = vadd.f32 %v4090_v14, %v4059_v53  ;;  %v12472_v29 = vld [vmem:[#allocation173_spill] sm:$0xff]  ;;  %v4225_v14 = vsel %vm12474_vm2, %v10076_v62, %v10070_v21  ;;  %vm12487_vm2 = vcmask 506880  }
 0x50f   :  { %v4404_v6 = vsel %vm12473_vm14, %v12472_v29, %v10155_v16  ;;  %vm12485_vm14 = vcmask 474112  }
 0x510   :  { %3437 = vrot.lane.b32.xlu0 %v3422_v30, %s12070_s11  ;;  %v10204_v47 = vpop.permute.xlu1 %4529  ;;  %v4359_v30 = vsel %vm12469_vm11, %v12468_v5, %v10134_v7  ;;  %v4328_v25 = vadd.f32 %v4314_v31, %v4283_v44  ;;  %v4149_v52 = vadd.f32 %v4135_v22, %v4104_v42  ;;  %v12477_v31 = vld [vmem:[#allocation67_spill] sm:$0xff]  ;;  %v12480_v44 = vld [vmem:[#allocation8_spill] sm:$0xff]  ;;  %v12481_v42 = vld [vmem:[#allocation182_spill] sm:$0xff]  ;;  %vm12482_vm11 = vcmask 482304  }
 0x511   :  { %v4494_v5 = vsel %vm12482_vm11, %v12481_v42, %v4483_v38  ;;  %vm12491_vm11 = vcmask 490496  }
 0x512   :  { %v4528_v48 = vpop.permute.xlu0 %4527  ;;  %4126 = vrot.lane.b32.xlu1 %v4113_v24, %s12470_s24  ;;  %v4373_v59 = vadd.f32 %v4359_v30, %v4328_v25  ;;  %v4194_v53 = vadd.f32 %v4180_v54, %v4149_v52  ;;  %v12475_v24 = vld [vmem:[#allocation29_spill] sm:$0xff]  ;;  %v3514_v54 = vrot.slane %v12477_v31, 4  ;;  %v4315_v25 = vsel %vm12483_vm0, %v10113_v43, %v10105_v15 }
 0x513   :  { %v4449_v60 = vsel %vm12476_vm1, %v12475_v24, %v10173_v41  ;;  %v12484_v24 = vld [vmem:[#allocation183_spill] sm:$0xff]  ;;  %vm12488_vm1 = vcmask 498688   ;;  %vm12493_vm0 = vcmask 261120  }
 0x514   :  { %4128 = vrot.lane.b32.xlu0 %v4114_v40, %s12470_s24  ;;  %v4573_v55 = vpop.permute.xlu1 %4572  ;;  %v4270_v40 = vsel %vm12478_vm15, %v10094_v49, %v10085_v8  ;;  %v4418_v22 = vadd.f32 %v4404_v6, %v4373_v59  ;;  %v4239_v62 = vadd.f32 %v4225_v14, %v4194_v53  ;;  %v4539_v49 = vsel %vm12485_vm14, %v12484_v24, %v4528_v48  ;;  %v12486_v59 = vld [vmem:[#allocation98_spill] sm:$0xff]  ;;  %v12489_v24 = vld [vmem:[#allocation191_spill] sm:$0xff] }
 0x515   :  { %v4360_v14 = vsel %vm12487_vm2, %v10134_v7, %v10125_v10  ;;  %vm12490_vm15 = vcmask 465920   ;;  %v4450_v7 = vsel %vm12491_vm11, %v10173_v41, %v10165_v46  ;;  %vm12495_vm14 = vcmask 482304   ;;  %vm12506_vm11 = vmmov %vm12493_vm0 }
 0x516   :  { %v10227_v35 = vpop.permute.xlu0 %4574  ;;  %3483 = vrot.lane.b32.xlu1 %v12477_v31, %s12074_s9  ;;  %v4463_v52 = vadd.f32 %v4449_v60, %v4418_v22  ;;  %v4284_v29 = vadd.f32 %v4270_v40, %v4239_v62  ;;  %v4203_v31 = vrot.slane %v12480_v44, 4  ;;  %v4204_v60 = vrot.slane %v12486_v59, 4 }
 0x517   :  { %v4405_v40 = vsel %vm12488_vm1, %v10155_v16, %v10146_v17  ;;  %v4584_v15 = vsel %vm12490_vm15, %v12489_v24, %v4573_v55  ;;  %vm12497_vm2 = vcmask 474112   ;;  %vm12501_vm1 = vcmask 252928  }
 0x518   :  { %4171 = vrot.lane.b32.xlu0 %v12480_v44, %s12479_s23  ;;  %v10238_v30 = vpop.permute.xlu1 %4619  ;;  %v4508_v53 = vadd.f32 %v4494_v5, %v4463_v52  ;;  %v4329_v42 = vadd.f32 %v4315_v25, %v4284_v29  ;;  %v12492_v5 = vld [vmem:[#allocation35_spill] sm:$0xff]  ;;  %v4495_v25 = vsel %vm12495_vm14, %v4483_v38, %v10185_v61  ;;  %v4540_v41 = vsel %vm12497_vm2, %v4528_v48, %v10204_v47 }
 0x519   :  { %v4585_v48 = vsel %vm12490_vm15, %v4573_v55, %v10227_v35  ;;  %v12507_v55 = vld [vmem:[#allocation21_spill] sm:$0xff]  ;;  %vm12512_vm14 = vcmask 236544   ;;  %vm12516_vm2 = vcmask 228352  }
 0x51a   :  { %v4618_v6 = vpop.permute.xlu0 %4617  ;;  %4173 = vrot.lane.b32.xlu1 %v12486_v59, %s12479_s23  ;;  %v4553_v22 = vadd.f32 %v4539_v49, %v4508_v53  ;;  %v4374_v62 = vadd.f32 %v4360_v14, %v4329_v42  ;;  %v12496_v59 = vld [vmem:[#allocation100_spill] sm:$0xff]  ;;  %v12498_v53 = vld [vmem:[#allocation102_spill] sm:$0xff]  ;;  %vm12522_vm15 = vmmov %vm12516_vm2 }
 0x51c   :  { %3529 = vrot.lane.b32.xlu0 %v3514_v54, %s11846_s18  ;;  %v4663_v43 = vpop.permute.xlu1 %4662  ;;  %v4419_v44 = vadd.f32 %v4405_v40, %v4374_v62  ;;  %v4629_v54 = vsel %vm12493_vm0, %v12492_v5, %v4618_v6  ;;  %v4598_v52 = vadd.f32 %v4584_v15, %v4553_v22  ;;  %v12500_v40 = vld [vmem:[#allocation198_spill] sm:$0xff]  ;;  %v4293_v15 = vrot.slane %v12496_v59, 4  ;;  %v12502_v22 = vld [vmem:[#allocation57_spill] sm:$0xff]  ;;  %vm12510_vm0 = vmmov %vm12501_vm1  ;;  %s12602_s18 = smov 25  }
 0x51d   :  { %v4674_v62 = vsel %vm12501_vm1, %v12500_v40, %v4663_v43  ;;  %v2158_v24 = vsel %vm2151_vm5, %v12212_v50, %v12502_v22  ;;  %v4294_v50 = vrot.slane %v12498_v53, 4  ;;  %v12509_v40 = vld [vmem:[#allocation61_spill] sm:$0xff]  ;;  %vm12518_vm1 = vmmov %vm12512_vm14 }
 0x51e   :  { %v10259_v8 = vpop.permute.xlu0 %4664  ;;  %4216 = vrot.lane.b32.xlu1 %v4203_v31, %s12279_s28  ;;  %v4464_v29 = vadd.f32 %v4450_v7, %v4419_v44  ;;  %v4643_v14 = vadd.f32 %v4629_v54, %v4598_v52  ;;  %v12499_v31 = vld [vmem:[#allocation221_spill] sm:$0xff]  ;;  %v12503_v44 = vld [vmem:[#allocation199_spill] sm:$0xff] }
 0x51f   :  { %v3575_v42 = vrot.slane %v12499_v31, 4 }
 0x520   :  { %4218 = vrot.lane.b32.xlu0 %v4204_v60, %s12279_s28  ;;  %v10268_v16 = vpop.permute.xlu1 %4709  ;;  %v4509_v60 = vadd.f32 %v4495_v25, %v4464_v29  ;;  %v12505_v25 = vld [vmem:[#allocation219_spill] sm:$0xff]  ;;  %v4630_v29 = vsel %vm12506_vm11, %v4618_v6, %v10238_v30  ;;  %vm12527_vm11 = vcmask 990208  }
 0x521   :  { %12494 = vst [vmem:[#allocation197_spill] sm:$0xff] %v10268_v16  ;;  %v2204_v52 = vsel %vm2197_vm6, %v12218_v9, %v12505_v25  ;;  %v4675_v9 = vsel %vm12510_vm0, %v4663_v43, %v10259_v8  ;;  %vm12529_vm0 = vcmask 211968  }
 0x522   :  { %v4708_v49 = vpop.permute.xlu0 %4707  ;;  %4261 = vrot.lane.b32.xlu1 %v12496_v59, %s11740_s0  ;;  %v4554_v7 = vadd.f32 %v4540_v41, %v4509_v60  ;;  %v4688_v59 = vadd.f32 %v4674_v62, %v4643_v14  ;;  %v2172_v41 = vadd.f32 %v2158_v24, %v12507_v55  ;;  %v12511_v14 = vld [vmem:[#allocation210_spill] sm:$0xff] }
 0x523   :  { %v4719_v5 = vsel %vm3301_vm4, %v12503_v44, %v4708_v49 }
 0x524   :  { %4263 = vrot.lane.b32.xlu0 %v12498_v53, %s11740_s0  ;;  %v4753_v38 = vpop.permute.xlu1 %4752  ;;  %v4599_v31 = vadd.f32 %v4585_v48, %v4554_v7  ;;  %v4733_v22 = vadd.f32 %v4719_v5, %v4688_v59  ;;  %v2218_v44 = vadd.f32 %v2204_v52, %v2172_v41  ;;  %v12513_v53 = vld [vmem:[#allocation226_spill] sm:$0xff]  ;;  %v4720_v48 = vsel %vm3301_vm4, %v4708_v49, %v10268_v16  ;;  %v12515_v5 = vld [vmem:[#allocation36_spill] sm:$0xff] }
 0x525   :  { %v4764_v62 = vsel %vm12512_vm14, %v12511_v14, %v4753_v38  ;;  %v2296_v24 = vsel %vm2289_vm8, %v12224_v56, %v12513_v53  ;;  %v12524_v14 = vld [vmem:[#allocation214_spill] sm:$0xff]  ;;  %vm12530_vm14 = vmmov %vm12529_vm0 }
 0x526   :  { %v10289_v54 = vpop.permute.xlu0 %4754  ;;  %3590 = vrot.lane.b32.xlu1 %v3575_v42, %s11860_s20  ;;  %v2250_v42 = vsel %vm2243_vm7, %v12221_v39, %v12509_v40  ;;  %v4644_v6 = vadd.f32 %v4630_v29, %v4599_v31  ;;  %v12514_v39 = vld [vmem:[#allocation220_spill] sm:$0xff]  ;;  %v12517_v29 = vld [vmem:[#allocation66_spill] sm:$0xff]  ;;  %v12520_v31 = vld [vmem:[#allocation9_spill] sm:$0xff] }
 0x527   :  { %12504 = vst [vmem:[#allocation33_spill] sm:$0xff] %v10289_v54  ;;  %v2264_v43 = vadd.f32 %v2250_v42, %v2218_v44  ;;  %v2342_v59 = vsel %vm2335_vm9, %v12225_v23, %v12517_v29  ;;  %v4765_v56 = vsel %vm12518_vm1, %v4753_v38, %v10289_v54  ;;  %v12521_v40 = vld [vmem:[#allocation235_spill] sm:$0xff]  ;;  %v12523_v23 = vld [vmem:[#allocation105_spill] sm:$0xff]  ;;  %v3665_v38 = vrot.slane %v12514_v39, 4 }
 0x528   :  { %4306 = vrot.lane.b32.xlu0 %v4293_v15, %s11745_s10  ;;  %v10300_v60 = vpop.permute.xlu1 %4799  ;;  %v4689_v7 = vadd.f32 %v4675_v9, %v4644_v6  ;;  %v2388_v42 = vsel %vm2381_vm10, %v12226_v58, %v12521_v40  ;;  %v5091_v40 = vld [vmem:[%s11103_s4 + $0x400] sm:$0xff] }
 0x529   :  { %12508 = vst [vmem:[#allocation114_spill] sm:$0xff] %v10300_v60  ;;  %v2310_v55 = vadd.f32 %v2296_v24, %v2264_v43  ;;  %v4383_v24 = vrot.slane %v12520_v31, 4 }
 0x52a   :  { %v4798_v15 = vpop.permute.xlu0 %4797  ;;  %4308 = vrot.lane.b32.xlu1 %v4294_v50, %s11745_s10  ;;  %v4778_v50 = vadd.f32 %v4764_v62, %v4733_v22  ;;  %v4734_v41 = vadd.f32 %v4720_v48, %v4689_v7  ;;  %v12526_v48 = vld [vmem:[#allocation242_spill] sm:$0xff] }
 0x52b   :  { %v4809_v25 = vsel %vm12516_vm2, %v12515_v5, %v4798_v15  ;;  %v4810_v9 = vsel %vm12522_vm15, %v4798_v15, %v10300_v60  ;;  %v2356_v22 = vadd.f32 %v2342_v59, %v2310_v55  ;;  %v2434_v58 = vsel %vm12527_vm11, %v12235_v26, %v12526_v48  ;;  %v12639_v60 = vld [vmem:[#allocation164_spill] sm:$0xff] }
 0x52c   :  { %3635 = vrot.lane.b32.xlu0 %v12514_v39, %s6187_s2  ;;  %v4843_v52 = vpop.permute.xlu1 %4842  ;;  %v4823_v44 = vadd.f32 %v4809_v25, %v4778_v50  ;;  %v4779_v6 = vadd.f32 %v4765_v56, %v4734_v41  ;;  %s12528_s2 = smov 125   ;;  %v5092_v39 = vld [vmem:[%s11103_s4 + $0x408] sm:$0xff]  ;;  %v5094_v25 = vld [vmem:[%s11103_s4 + $0x418] sm:$0xff]  ;;  %v4384_v50 = vrot.slane %v12523_v23, 4  ;;  %vm12531_vm2 = vcmask 203776  }
 0x52d   :  { %v4854_v62 = vsel %vm3439_vm3, %v12524_v14, %v4843_v52  ;;  %v2402_v43 = vadd.f32 %v2388_v42, %v2356_v22  ;;  %v6035_v59 = vpack.c.bf16 %v5094_v25, %v5092_v39  ;;  %v12533_v22 = vld [vmem:[#allocation76_spill] sm:$0xff]  ;;  %v12534_v14 = vld [vmem:[#allocation243_spill] sm:$0xff]  ;;  %vm12535_vm1 = vmmov %vm12531_vm2  ;;  %vm12539_vm15 = vcmask 769024  }
 0x52e   :  { %v10324_v49 = vpop.permute.xlu0 %4844  ;;  %4351 = vrot.lane.b32.xlu1 %v12520_v31, %s12321_s8  ;;  %v4824_v7 = vadd.f32 %v4810_v9, %v4779_v6  ;;  %v4868_v29 = vadd.f32 %v4854_v62, %v4823_v44  ;;  %v2480_v6 = vsel %vm2473_vm12, %v12241_v19, %v12533_v22  ;;  %v5097_v25 = vld [vmem:[%s11103_s4 + $0x430] sm:$0xff]  ;;  %vm12542_vm11 = vcmask 760832  }
 0x52f   :  { %12519 = vst [vmem:[#allocation120_spill] sm:$0xff] %v10324_v49  ;;  %v4855_v15 = vsel %vm3439_vm3, %v4843_v52, %v10324_v49  ;;  %v2448_v56 = vadd.f32 %v2434_v58, %v2402_v43  ;;  %6036 = vmatprep.subr.bf16.mxu1 %v6035_v59  ;;  %v5102_v59 = vld [vmem:[%s11103_s4 + $0x458] sm:$0xff]  ;;  %v5101_v22 = vld [vmem:[%s11103_s4 + $0x450] sm:$0xff] }
 0x530   :  { %4353 = vrot.lane.b32.xlu0 %v12523_v23, %s12321_s8  ;;  %v10338_v53 = vpop.permute.xlu1 %4889  ;;  %v4869_v55 = vadd.f32 %v4855_v15, %v4824_v7  ;;  %v5096_v23 = vld [vmem:[%s11103_s4 + $0x428] sm:$0xff] }
 0x531   :  { %12525 = vst [vmem:[#allocation28_spill] sm:$0xff] %v10338_v53  ;;  %v2494_v48 = vadd.f32 %v2480_v6, %v2448_v56  ;;  %v12538_v7 = vld [vmem:[#allocation59_spill] sm:$0xff] }
 0x532   :  { %v4888_v5 = vpop.permute.xlu0 %4887  ;;  %3680 = vrot.lane.b32.xlu1 %v3665_v38, %s12528_s2  ;;  %v5098_v38 = vld [vmem:[%s11103_s4 + $0x438] sm:$0xff] }
 0x533   :  { %v4899_v26 = vsel %vm12529_vm0, %v12297_v4, %v4888_v5  ;;  %v4900_v52 = vsel %vm12530_vm14, %v4888_v5, %v10338_v53  ;;  %v5093_v4 = vld [vmem:[%s11103_s4 + $0x410] sm:$0xff]  ;;  %v2572_v5 = vsel %vm12539_vm15, %v12252_v11, %v12538_v7  ;;  %v6039_v19 = vpack.c.bf16 %v5098_v38, %v5096_v23  ;;  %v5100_v11 = vld [vmem:[%s11103_s4 + $0x448] sm:$0xff] }
 0x534   :  { %4396 = vrot.lane.b32.xlu0 %v4383_v24, %s12007_s16  ;;  %v4933_v41 = vpop.permute.xlu1 %4932  ;;  %v4913_v31 = vadd.f32 %v4899_v26, %v4868_v29  ;;  %v4914_v42 = vadd.f32 %v4900_v52, %v4869_v55  ;;  %v12537_v24 = vld [vmem:[#allocation224_spill] sm:$0xff]  ;;  %v6037_v43 = vpack.c.bf16 %v5093_v4, %v5091_v40  ;;  %v12540_v52 = vld [vmem:[#allocation10_spill] sm:$0xff]  ;;  %vm12545_vm0 = vcmask 752640  }
 0x535   :  { %v4944_v9 = vsel %vm12531_vm2, %v12300_v28, %v4933_v41  ;;  %v2526_v28 = vsel %vm2519_vm13, %v12246_v18, %v12534_v14  ;;  %v5095_v18 = vld [vmem:[%s11103_s4 + $0x420] sm:$0xff]  ;;  %v12543_v55 = vld [vmem:[#allocation108_spill] sm:$0xff]  ;;  %v6043_v38 = vpack.c.bf16 %v5102_v59, %v5100_v11  ;;  %vm12547_vm14 = vcmask 744448  }
 0x536   :  { %v10367_v44 = vpop.permute.xlu0 %4934  ;;  %4398 = vrot.lane.b32.xlu1 %v4384_v50, %s12007_s16  ;;  %v4958_v39 = vadd.f32 %v4944_v9, %v4913_v31  ;;  %v2540_v29 = vadd.f32 %v2526_v28, %v2494_v48  ;;  %v12541_v50 = vld [vmem:[#allocation83_spill] sm:$0xff]  ;;  %v6041_v4 = vpack.c.bf16 %v5097_v25, %v5095_v18  ;;  %v4474_v48 = vrot.slane %v12543_v55, 4  ;;  %v5103_v18 = vld [vmem:[%s11103_s4 + $0x460] sm:$0xff]  ;;  %v12550_v11 = vld [vmem:[#allocation248_spill] sm:$0xff] }
 0x537   :  { %12532 = vst [vmem:[#allocation2_spill] sm:$0xff] %v10367_v44  ;;  %v4945_v62 = vsel %vm12535_vm1, %v4933_v41, %v10367_v44  ;;  %v2618_v56 = vsel %vm12542_vm11, %v12257_v13, %v12541_v50  ;;  %v3755_v41 = vrot.slane %v12537_v24, 4  ;;  %v12544_v9 = vld [vmem:[#allocation91_spill] sm:$0xff]  ;;  %v5099_v13 = vld [vmem:[%s11103_s4 + $0x440] sm:$0xff]  ;;  %vm12549_vm2 = vcmask 736256   ;;  %v12636_v44 = vld [vmem:[#allocation165_spill] sm:$0xff] }
 0x538   :  { %3725 = vrot.lane.b32.xlu0 %v12537_v24, %s12536_s5  ;;  %v2840_v58 = vpop.permute.xlu1 %2839  ;;  %v4959_v15 = vadd.f32 %v4945_v62, %v4914_v42  ;;  %v2586_v31 = vadd.f32 %v2572_v5, %v2540_v29  ;;  %v4473_v42 = vrot.slane %v12540_v52, 4  ;;  %v2664_v23 = vsel %vm12545_vm0, %v12268_v34, %v12544_v9  ;;  %v5104_v28 = vld [vmem:[%s11103_s4 + $0x468] sm:$0xff]  ;;  %v5106_v34 = vld [vmem:[%s11103_s4 + $0x478] sm:$0xff]  ;;  %v12546_v62 = vld [vmem:[#allocation246_spill] sm:$0xff] }
 0x539   :  { %v2710_v24 = vsel %vm12547_vm14, %v12273_v33, %v12546_v62  ;;  %v6045_v7 = vpack.c.bf16 %v5101_v22, %v5099_v13  ;;  %v12548_v5 = vld [vmem:[#allocation97_spill] sm:$0xff]  ;;  %v5105_v33 = vld [vmem:[%s11103_s4 + $0x470] sm:$0xff]  ;;  %vm12551_vm1 = vcmask 728064   ;;  %v12552_v50 = vld [vmem:[#allocation223_spill] sm:$0xff]  ;;  %vm12553_vm15 = vcmask 523264  }
 0x53a   :  { %5322 = vmatprep.mubr.f32.mxu1 %v4959_v15  ;;  %v10395_v26 = vpop.permute.xlu0 %2885  ;;  %4441 = vrot.lane.b32.xlu1 %v12540_v52, %s12016_s17  ;;  %v2632_v6 = vadd.f32 %v2618_v56, %v2586_v31  ;;  %v5108_v52 = vld [vmem:[%s11103_s4 + $0x488] sm:$0xff]  ;;  %v2802_v59 = vsel %vm12551_vm1, %v12291_v45, %v12550_v11  ;;  %v2848_v31 = vsel %vm12553_vm15, %v12310_v1, %v2840_v58  ;;  %v5109_v45 = vld [vmem:[%s11103_s4 + $0x490] sm:$0xff]  ;;  %v5114_v1 = vld [vmem:[%s11103_s4 + $0x4b8] sm:$0xff]  ;;  %v3845_v22 = vrot.slane %v12552_v50, 4 }
 0x53b   :  { %5323 = vmatmul.mubr.f32.vlgmr.msra.gmra.mrb[124].mxu1 %v4958_v39  ;;  %v2756_v39 = vsel %vm12549_vm2, %v12286_v12, %v12548_v5  ;;  %v5110_v12 = vld [vmem:[%s11103_s4 + $0x498] sm:$0xff]  ;;  %v5112_v13 = vld [vmem:[%s11103_s4 + $0x4a8] sm:$0xff]  ;;  %vm12557_vm11 = vcmask 515072   ;;  %v5113_v5 = vld [vmem:[%s11103_s4 + $0x4b0] sm:$0xff]  ;;  %vm12560_vm0 = vcmask 506880   ;;  %vm12562_vm14 = vcmask 498688  }
 0x53c   :  { %4443 = vrot.lane.b32.xlu0 %v12543_v55, %s12016_s17  ;;  %v10411_v40 = vpop.permute.xlu1 %3586  ;;  %6038 = vmatpush1.bf16.msra.mxu1 %v6037_v43  ;;  %v2678_v15 = vadd.f32 %v2664_v23, %v2632_v6  ;;  %v12555_v58 = vld [vmem:[#allocation113_spill] sm:$0xff]  ;;  %vm12566_vm2 = vcmask 490496   ;;  %vm12571_vm1 = vcmask 482304   ;;  %vm12575_vm15 = vcmask 474112  }
 0x53d   :  { %6040 = vmatprep.subr.bf16.mxu1 %v6039_v19  ;;  %v6047_v19 = vpack.c.bf16 %v5106_v34, %v5104_v28 }
 0x53e   :  { %v10423_v14 = vpop.permute.xlu0 %3588  ;;  %3770 = vrot.lane.b32.xlu1 %v3755_v41, %s12415_s29  ;;  %v2724_v25 = vadd.f32 %v2710_v24, %v2678_v15  ;;  %v6049_v41 = vpack.c.bf16 %v5105_v33, %v5103_v18  ;;  %v12556_v24 = vld [vmem:[#allocation104_spill] sm:$0xff]  ;;  %v6055_v15 = vpack.c.bf16 %v5114_v1, %v5112_v13  ;;  %v12558_v18 = vld [vmem:[#allocation179_spill] sm:$0xff] }
 0x53f   :  { %v3596_v33 = vsel %vm2151_vm5, %v12558_v18, %v10411_v40 }
 0x540   :  { %4486 = vrot.lane.b32.xlu0 %v4473_v42, %s12025_s14  ;;  %v2932_v43 = vpop.permute.xlu1 %2931  ;;  %6042 = vmatpush1.bf16.msra.mxu1 %v6041_v4  ;;  %v2770_v56 = vadd.f32 %v2756_v39, %v2724_v25  ;;  %v6051_v4 = vpack.c.bf16 %v5110_v12, %v5108_v52  ;;  %v5107_v42 = vld [vmem:[%s11103_s4 + $0x480] sm:$0xff]  ;;  %v12559_v25 = vld [vmem:[#allocation253_spill] sm:$0xff]  ;;  %v4564_v12 = vrot.slane %v12555_v58, 4 }
 0x541   :  { %6044 = vmatprep.subr.bf16.mxu1 %v6043_v38  ;;  %v12554_v38 = vld [vmem:[#allocation110_spill] sm:$0xff]  ;;  %v6053_v34 = vpack.c.bf16 %v5109_v45, %v5107_v42  ;;  %v2940_v52 = vsel %vm12560_vm0, %v12559_v25, %v2932_v43  ;;  %v5117_v45 = vld [vmem:[%s11103_s4 + $0x4d0] sm:$0xff]  ;;  %vm12581_vm0 = vcmask 990208  }
 0x542   :  { %v3632_v29 = vpop.permute.xlu0 %3631  ;;  %4488 = vrot.lane.b32.xlu1 %v4474_v48, %s12025_s14  ;;  %v2816_v9 = vadd.f32 %v2802_v59, %v2770_v56  ;;  %v4563_v62 = vrot.slane %v12554_v38, 4  ;;  %v2894_v48 = vsel %vm12557_vm11, %v12556_v24, %v10395_v26  ;;  %v5118_v26 = vld [vmem:[%s11103_s4 + $0x4d8] sm:$0xff]  ;;  %v3597_v56 = vsel %vm2151_vm5, %v10411_v40, %v10423_v14  ;;  %v5115_v42 = vld [vmem:[%s11103_s4 + $0x4c0] sm:$0xff]  ;;  %v12568_v24 = vld [vmem:[#allocation159_spill] sm:$0xff] }
 0x543   :  { %v5121_v25 = vld [vmem:[%s11103_s4 + $0x4f0] sm:$0xff]  ;;  %vm12579_vm11 = vcmask 465920  }
 0x544   :  { %3815 = vrot.lane.b32.xlu0 %v12552_v50, %s12417_s30  ;;  %v10458_v55 = vpop.permute.xlu1 %3633  ;;  %6046 = vmatpush1.bf16.msra.mxu1 %v6045_v7  ;;  %v2862_v6 = vadd.f32 %v2848_v31, %v2816_v9  ;;  %v5111_v7 = vld [vmem:[%s11103_s4 + $0x4a0] sm:$0xff]  ;;  %v12561_v31 = vld [vmem:[#allocation112_spill] sm:$0xff]  ;;  %s12610_s30 = smov 63  }
 0x545   :  { %6048 = vmatprep.subr.bf16.mxu1 %v6047_v19  ;;  %v5116_v19 = vld [vmem:[%s11103_s4 + $0x4c8] sm:$0xff]  ;;  %v6057_v50 = vpack.c.bf16 %v5113_v5, %v5111_v7  ;;  %v12563_v9 = vld [vmem:[#allocation174_spill] sm:$0xff]  ;;  %v3642_v1 = vsel %vm2197_vm6, %v3632_v29, %v10458_v55 }
 0x546   :  { %v2978_v23 = vpop.permute.xlu0 %2977  ;;  %4531 = vrot.lane.b32.xlu1 %v12554_v38, %s12034_s15  ;;  %v2908_v11 = vadd.f32 %v2894_v48, %v2862_v6  ;;  %v6059_v43 = vpack.c.bf16 %v5118_v26, %v5116_v19  ;;  %v3610_v38 = vadd.f32 %v3596_v33, %v12563_v9  ;;  %v12565_v6 = vld [vmem:[#allocation117_spill] sm:$0xff]  ;;  %v3611_v48 = vadd.f32 %v3597_v56, %v12568_v24  ;;  %v5119_v33 = vld [vmem:[%s11103_s4 + $0x4e0] sm:$0xff]  ;;  %v5128_v24 = vld [vmem:[%s11103_s4 + $0x528] sm:$0xff] }
 0x547   :  { %v6061_v19 = vpack.c.bf16 %v5117_v45, %v5115_v42 }
 0x548   :  { %4533 = vrot.lane.b32.xlu0 %v12555_v58, %s12034_s15  ;;  %v3677_v28 = vpop.permute.xlu1 %3676  ;;  %6050 = vmatpush1.bf16.msra.mxu1 %v6049_v41  ;;  %v3641_v41 = vsel %vm2197_vm6, %v9945_v57, %v3632_v29  ;;  %v2954_v13 = vadd.f32 %v2940_v52, %v2908_v11  ;;  %v5120_v57 = vld [vmem:[%s11103_s4 + $0x4e8] sm:$0xff]  ;;  %v3656_v52 = vadd.f32 %v3642_v1, %v3611_v48  ;;  %v5130_v48 = vld [vmem:[%s11103_s4 + $0x538] sm:$0xff] }
 0x549   :  { %6052 = vmatprep.subr.bf16.mxu1 %v6051_v4  ;;  %v2986_v4 = vsel %vm12562_vm14, %v12561_v31, %v2978_v23  ;;  %v5122_v23 = vld [vmem:[%s11103_s4 + $0x4f8] sm:$0xff]  ;;  %v12564_v58 = vld [vmem:[#allocation187_spill] sm:$0xff]  ;;  %vm12582_vm14 = vmmov %vm12581_vm0 }
 0x54a   :  { %v10489_v39 = vpop.permute.xlu0 %3678  ;;  %3860 = vrot.lane.b32.xlu1 %v3845_v22, %s12420_s1  ;;  %v3686_v22 = vsel %vm2243_vm7, %v12564_v58, %v3677_v28  ;;  %v3000_v7 = vadd.f32 %v2986_v4, %v2954_v13  ;;  %v6063_v18 = vpack.c.bf16 %v5122_v23, %v5120_v57  ;;  %v12570_v31 = vld [vmem:[#allocation121_spill] sm:$0xff]  ;;  %v6065_v13 = vpack.c.bf16 %v5121_v25, %v5119_v33  ;;  %v12573_v23 = vld [vmem:[#allocation188_spill] sm:$0xff] }
 0x54b   :  { %v3687_v29 = vsel %vm2243_vm7, %v3677_v28, %v10489_v39  ;;  %v5126_v28 = vld [vmem:[%s11103_s4 + $0x518] sm:$0xff]  ;;  %v6071_v25 = vpack.c.bf16 %v5130_v48, %v5128_v24 }
 0x54c   :  { %4576 = vrot.lane.b32.xlu0 %v4563_v62, %s12044_s12  ;;  %v3024_v59 = vpop.permute.xlu1 %3023  ;;  %6054 = vmatpush1.bf16.msra.mxu1 %v6053_v34  ;;  %v12567_v62 = vld [vmem:[#allocation45_spill] sm:$0xff]  ;;  %v3701_v42 = vadd.f32 %v3687_v29, %v3656_v52  ;;  %v5127_v52 = vld [vmem:[%s11103_s4 + $0x520] sm:$0xff] }
 0x54d   :  { %6056 = vmatprep.subr.bf16.mxu1 %v6055_v15  ;;  %v3032_v34 = vsel %vm12566_vm2, %v12565_v6, %v3024_v59  ;;  %v3655_v15 = vadd.f32 %v3641_v41, %v3610_v38  ;;  %v3935_v56 = vrot.slane %v12567_v62, 4  ;;  %vm12584_vm2 = vcmask 261120  }
 0x54e   :  { %v3722_v40 = vpop.permute.xlu0 %3721  ;;  %4578 = vrot.lane.b32.xlu1 %v4564_v12, %s12044_s12  ;;  %v3046_v11 = vadd.f32 %v3032_v34, %v3000_v7 }
 0x54f   :  { %v3731_v26 = vsel %vm2289_vm8, %v9973_v51, %v3722_v40  ;;  %v3700_v12 = vadd.f32 %v3686_v22, %v3655_v15  ;;  %v5124_v51 = vld [vmem:[%s11103_s4 + $0x508] sm:$0xff]  ;;  %v5125_v22 = vld [vmem:[%s11103_s4 + $0x510] sm:$0xff] }
 0x550   :  { %3905 = vrot.lane.b32.xlu0 %v12567_v62, %s12425_s7  ;;  %v10535_v5 = vpop.permute.xlu1 %3723  ;;  %6058 = vmatpush1.bf16.msra.mxu1 %v6057_v50  ;;  %v12569_v50 = vld [vmem:[#allocation11_spill] sm:$0xff]  ;;  %v6067_v58 = vpack.c.bf16 %v5126_v28, %v5124_v51  ;;  %v5134_v51 = vld [vmem:[%s11103_s4 + $0x558] sm:$0xff]  ;;  %s12612_s7 = smov 62  }
 0x551   :  { %6060 = vmatprep.subr.bf16.mxu1 %v6059_v43  ;;  %v3732_v41 = vsel %vm2289_vm8, %v3722_v40, %v10535_v5  ;;  %v12572_v43 = vld [vmem:[#allocation118_spill] sm:$0xff]  ;;  %v3745_v45 = vadd.f32 %v3731_v26, %v3700_v12  ;;  %v4653_v57 = vrot.slane %v12569_v50, 4  ;;  %v5129_v12 = vld [vmem:[%s11103_s4 + $0x530] sm:$0xff] }
 0x552   :  { %v3070_v59 = vpop.permute.xlu0 %3069  ;;  %4621 = vrot.lane.b32.xlu1 %v12569_v50, %s12047_s13  ;;  %v5123_v40 = vld [vmem:[%s11103_s4 + $0x500] sm:$0xff]  ;;  %v3746_v6 = vadd.f32 %v3732_v41, %v3701_v42  ;;  %v4654_v7 = vrot.slane %v12572_v43, 4  ;;  %v5132_v50 = vld [vmem:[%s11103_s4 + $0x548] sm:$0xff] }
 0x553   :  { %v3078_v4 = vsel %vm12571_vm1, %v12570_v31, %v3070_v59  ;;  %v6069_v26 = vpack.c.bf16 %v5125_v22, %v5123_v40  ;;  %v6075_v42 = vpack.c.bf16 %v5134_v51, %v5132_v50  ;;  %v12580_v40 = vld [vmem:[#allocation122_spill] sm:$0xff]  ;;  %vm12588_vm1 = vcmask 252928  }
 0x554   :  { %4623 = vrot.lane.b32.xlu0 %v12572_v43, %s12047_s13  ;;  %v3092_v9 = vadd.f32 %v3078_v4, %v3046_v11  ;;  %v3767_v38 = vpop.permute.xlu1 %3766  ;;  %6062 = vmatpush1.bf16.msra.mxu1 %v6061_v19  ;;  %v6073_v4 = vpack.c.bf16 %v5129_v12, %v5127_v52  ;;  %v4744_v52 = vrot.slane %v12580_v40, 4  ;;  %v12583_v50 = vld [vmem:[#allocation258_spill] sm:$0xff] }
 0x555   :  { %v3776_v1 = vsel %vm2335_vm9, %v12573_v23, %v3767_v38  ;;  %6064 = vmatprep.subr.bf16.mxu1 %v6063_v18  ;;  %v12574_v18 = vld [vmem:[#allocation256_spill] sm:$0xff]  ;;  %v5138_v23 = vld [vmem:[%s11103_s4 + $0x578] sm:$0xff] }
 0x556   :  { %v3790_v34 = vadd.f32 %v3776_v1, %v3745_v45  ;;  %v10571_v62 = vpop.permute.xlu0 %3768  ;;  %3950 = vrot.lane.b32.xlu1 %v3935_v56, %s12433_s27  ;;  %v12576_v56 = vld [vmem:[#allocation63_spill] sm:$0xff]  ;;  %v5131_v45 = vld [vmem:[%s11103_s4 + $0x540] sm:$0xff] }
 0x557   :  { %v3777_v15 = vsel %vm2335_vm9, %v3767_v38, %v10571_v62  ;;  %v12578_v1 = vld [vmem:[#allocation251_spill] sm:$0xff]  ;;  %v4025_v22 = vrot.slane %v12576_v56, 4 }
 0x558   :  { %4666 = vrot.lane.b32.xlu0 %v4653_v57, %s11956_s3  ;;  %v3791_v19 = vadd.f32 %v3777_v15, %v3746_v6  ;;  %v3116_v29 = vpop.permute.xlu1 %3115  ;;  %6066 = vmatpush1.bf16.msra.mxu1 %v6065_v13  ;;  %v12577_v13 = vld [vmem:[#allocation12_spill] sm:$0xff]  ;;  %v5136_v57 = vld [vmem:[%s11103_s4 + $0x568] sm:$0xff] }
 0x559   :  { %v3124_v33 = vsel %vm12575_vm15, %v12574_v18, %v3116_v29  ;;  %6068 = vmatprep.subr.bf16.mxu1 %v6067_v58  ;;  %v4743_v48 = vrot.slane %v12577_v13, 4  ;;  %v5137_v29 = vld [vmem:[%s11103_s4 + $0x570] sm:$0xff]  ;;  %vm12591_vm15 = vcmask 769024  }
 0x55a   :  { %v3138_v11 = vadd.f32 %v3124_v33, %v3092_v9  ;;  %v3812_v59 = vpop.permute.xlu0 %3811  ;;  %4668 = vrot.lane.b32.xlu1 %v4654_v7, %s11956_s3  ;;  %v6079_v7 = vpack.c.bf16 %v5138_v23, %v5136_v57  ;;  %v5140_v33 = vld [vmem:[%s11103_s4 + $0x588] sm:$0xff] }
 0x55b   :  { %v3821_v28 = vsel %vm2381_vm10, %v9988_v37, %v3812_v59  ;;  %v5133_v37 = vld [vmem:[%s11103_s4 + $0x550] sm:$0xff] }
 0x55c   :  { %3995 = vrot.lane.b32.xlu0 %v12576_v56, %s12439_s6  ;;  %v3835_v41 = vadd.f32 %v3821_v28, %v3790_v34  ;;  %v10603_v31 = vpop.permute.xlu1 %3813  ;;  %6070 = vmatpush1.bf16.msra.mxu1 %v6069_v26  ;;  %v6077_v24 = vpack.c.bf16 %v5133_v37, %v5131_v45  ;;  %v5139_v56 = vld [vmem:[%s11103_s4 + $0x580] sm:$0xff]  ;;  %v5146_v45 = vld [vmem:[%s11103_s4 + $0x5b8] sm:$0xff] }
 0x55d   :  { %v3822_v43 = vsel %vm2381_vm10, %v3812_v59, %v10603_v31  ;;  %6072 = vmatprep.subr.bf16.mxu1 %v6071_v25 }
 0x55e   :  { %v3836_v9 = vadd.f32 %v3822_v43, %v3791_v19  ;;  %v3162_v38 = vpop.permute.xlu0 %3161  ;;  %4711 = vrot.lane.b32.xlu1 %v12577_v13, %s12058_s19  ;;  %v5135_v19 = vld [vmem:[%s11103_s4 + $0x560] sm:$0xff] }
 0x55f   :  { %v3170_v58 = vsel %vm12579_vm11, %v12578_v1, %v3162_v38  ;;  %v6081_v59 = vpack.c.bf16 %v5137_v29, %v5135_v19  ;;  %vm12593_vm11 = vmmov %vm12591_vm15 }
 0x560   :  { %4713 = vrot.lane.b32.xlu0 %v12580_v40, %s12058_s19  ;;  %v3184_v6 = vadd.f32 %v3170_v58, %v3138_v11  ;;  %v3857_v34 = vpop.permute.xlu1 %3856  ;;  %6074 = vmatpush1.bf16.msra.mxu1 %v6073_v4  ;;  %v5143_v58 = vld [vmem:[%s11103_s4 + $0x5a0] sm:$0xff] }
 0x561   :  { %v3866_v15 = vsel %vm12581_vm0, %v9997_v32, %v3857_v34  ;;  %6076 = vmatprep.subr.bf16.mxu1 %v6075_v42  ;;  %v5142_v32 = vld [vmem:[%s11103_s4 + $0x598] sm:$0xff]  ;;  %v5144_v42 = vld [vmem:[%s11103_s4 + $0x5a8] sm:$0xff]  ;;  %vm12596_vm0 = vcmask 236544  }
 0x562   :  { %v3880_v26 = vadd.f32 %v3866_v15, %v3835_v41  ;;  %v10635_v18 = vpop.permute.xlu0 %3858  ;;  %4040 = vrot.lane.b32.xlu1 %v4025_v22, %s12450_s25  ;;  %v6083_v28 = vpack.c.bf16 %v5142_v32, %v5140_v33  ;;  %v5141_v41 = vld [vmem:[%s11103_s4 + $0x590] sm:$0xff]  ;;  %v6087_v1 = vpack.c.bf16 %v5146_v45, %v5144_v42  ;;  %s12606_s25 = smov 64  }
 0x563   :  { %v3867_v25 = vsel %vm12582_vm14, %v3857_v34, %v10635_v18  ;;  %v6085_v57 = vpack.c.bf16 %v5141_v41, %v5139_v56  ;;  %v5148_v34 = vld [vmem:[%s11103_s4 + $0x5c8] sm:$0xff]  ;;  %v12590_v42 = vld [vmem:[#allocation260_spill] sm:$0xff]  ;;  %vm12598_vm14 = vcmask 760832  }
 0x564   :  { %4756 = vrot.lane.b32.xlu0 %v4743_v48, %s11961_s21  ;;  %v3881_v12 = vadd.f32 %v3867_v25, %v3836_v9  ;;  %v3208_v11 = vpop.permute.xlu1 %3207  ;;  %6078 = vmatpush1.bf16.msra.mxu1 %v6077_v24  ;;  %v12585_v9 = vld [vmem:[#allocation228_spill] sm:$0xff]  ;;  %v5150_v24 = vld [vmem:[%s11103_s4 + $0x5d8] sm:$0xff] }
 0x565   :  { %v3216_v51 = vsel %vm12584_vm2, %v12583_v50, %v3208_v11  ;;  %6080 = vmatprep.subr.bf16.mxu1 %v6079_v7  ;;  %v12587_v48 = vld [vmem:[#allocation252_spill] sm:$0xff]  ;;  %v12589_v7 = vld [vmem:[#allocation129_spill] sm:$0xff]  ;;  %v4115_v19 = vrot.slane %v12585_v9, 4  ;;  %vm12601_vm2 = vmmov %vm12598_vm14 }
 0x566   :  { %v3230_v4 = vadd.f32 %v3216_v51, %v3184_v6  ;;  %v3902_v43 = vpop.permute.xlu0 %3901  ;;  %4758 = vrot.lane.b32.xlu1 %v4744_v52, %s11961_s21  ;;  %v12586_v6 = vld [vmem:[#allocation127_spill] sm:$0xff]  ;;  %v6091_v52 = vpack.c.bf16 %v5150_v24, %v5148_v34  ;;  %v5149_v11 = vld [vmem:[%s11103_s4 + $0x5d0] sm:$0xff]  ;;  %v4834_v56 = vrot.slane %v12589_v7, 4 }
 0x567   :  { %v3911_v37 = vsel %vm2473_vm12, %v10004_v20, %v3902_v43  ;;  %v5145_v20 = vld [vmem:[%s11103_s4 + $0x5b0] sm:$0xff]  ;;  %v4833_v32 = vrot.slane %v12586_v6, 4  ;;  %v5152_v51 = vld [vmem:[%s11103_s4 + $0x5e8] sm:$0xff] }
 0x568   :  { %4085 = vrot.lane.b32.xlu0 %v12585_v9, %s12456_s26  ;;  %v3925_v38 = vadd.f32 %v3911_v37, %v3880_v26  ;;  %v10667_v13 = vpop.permute.xlu1 %3903  ;;  %6082 = vmatpush1.bf16.msra.mxu1 %v6081_v59  ;;  %v6089_v33 = vpack.c.bf16 %v5145_v20, %v5143_v58  ;;  %v5151_v9 = vld [vmem:[%s11103_s4 + $0x5e0] sm:$0xff]  ;;  %v5158_v58 = vld [vmem:[%s11103_s4 + $0x618] sm:$0xff] }
 0x569   :  { %v3912_v23 = vsel %vm2473_vm12, %v3902_v43, %v10667_v13  ;;  %6084 = vmatprep.subr.bf16.mxu1 %v6083_v28 }
 0x56a   :  { %v3926_v40 = vadd.f32 %v3912_v23, %v3881_v12  ;;  %v3254_v22 = vpop.permute.xlu0 %3253  ;;  %4801 = vrot.lane.b32.xlu1 %v12586_v6, %s12065_s22  ;;  %v5147_v12 = vld [vmem:[%s11103_s4 + $0x5c0] sm:$0xff] }
 0x56b   :  { %v3262_v15 = vsel %vm12588_vm1, %v12587_v48, %v3254_v22  ;;  %v6093_v43 = vpack.c.bf16 %v5149_v11, %v5147_v12  ;;  %vm12604_vm1 = vcmask 228352  }
 0x56c   :  { %4803 = vrot.lane.b32.xlu0 %v12589_v7, %s12065_s22  ;;  %v3276_v29 = vadd.f32 %v3262_v15, %v3230_v4  ;;  %v3947_v26 = vpop.permute.xlu1 %3946  ;;  %6086 = vmatpush1.bf16.msra.mxu1 %v6085_v57 }
 0x56d   :  { %v3956_v25 = vsel %vm2519_vm13, %v10012_v63, %v3947_v26  ;;  %6088 = vmatprep.subr.bf16.mxu1 %v6087_v1  ;;  %v5154_v63 = vld [vmem:[%s11103_s4 + $0x5f8] sm:$0xff]  ;;  %v5156_v1 = vld [vmem:[%s11103_s4 + $0x608] sm:$0xff] }
 0x56e   :  { %v3970_v59 = vadd.f32 %v3956_v25, %v3925_v38  ;;  %v10699_v50 = vpop.permute.xlu0 %3948  ;;  %4130 = vrot.lane.b32.xlu1 %v4115_v19, %s12470_s24  ;;  %v6095_v37 = vpack.c.bf16 %v5154_v63, %v5152_v51  ;;  %v5153_v38 = vld [vmem:[%s11103_s4 + $0x5f0] sm:$0xff]  ;;  %v6099_v48 = vpack.c.bf16 %v5158_v58, %v5156_v1  ;;  %v12611_v58 = vld [vmem:[#allocation255_spill] sm:$0xff] }
 0x56f   :  { %v3957_v28 = vsel %vm2519_vm13, %v3947_v26, %v10699_v50  ;;  %v6097_v34 = vpack.c.bf16 %v5153_v38, %v5151_v9  ;;  %v12594_v19 = vld [vmem:[#allocation132_spill] sm:$0xff]  ;;  %v12597_v26 = vld [vmem:[#allocation133_spill] sm:$0xff] }
 0x570   :  { %4846 = vrot.lane.b32.xlu0 %v4833_v32, %s12070_s11  ;;  %v3971_v41 = vadd.f32 %v3957_v28, %v3926_v40  ;;  %v3300_v4 = vpop.permute.xlu1 %3299  ;;  %6090 = vmatpush1.bf16.msra.mxu1 %v6089_v33  ;;  %v12592_v40 = vld [vmem:[#allocation227_spill] sm:$0xff]  ;;  %v4924_v63 = vrot.slane %v12597_v26, 4 }
 0x571   :  { %v3308_v45 = vsel %vm3301_vm4, %v12590_v42, %v3300_v4  ;;  %6092 = vmatprep.subr.bf16.mxu1 %v6091_v52  ;;  %v4205_v33 = vrot.slane %v12592_v40, 4  ;;  %v4923_v52 = vrot.slane %v12594_v19, 4 }
 0x572   :  { %v3322_v57 = vadd.f32 %v3308_v45, %v3276_v29  ;;  %v3992_v23 = vpop.permute.xlu0 %3991  ;;  %4848 = vrot.lane.b32.xlu1 %v4834_v56, %s12070_s11  ;;  %v12595_v29 = vld [vmem:[#allocation115_spill] sm:$0xff] }
 0x573   :  { %v4001_v20 = vsel %vm12591_vm15, %v10021_v3, %v3992_v23  ;;  %vm12605_vm15 = vcmask 752640   ;;  %v12607_v45 = vld [vmem:[#allocation231_spill] sm:$0xff] }
 0x574   :  { %4175 = vrot.lane.b32.xlu0 %v12592_v40, %s12479_s23  ;;  %v4015_v22 = vadd.f32 %v4001_v20, %v3970_v59  ;;  %v10731_v6 = vpop.permute.xlu1 %3993  ;;  %6094 = vmatpush1.bf16.msra.mxu1 %v6093_v43  ;;  %s12600_s23 = smov 89  }
 0x575   :  { %v4002_v24 = vsel %vm12593_vm11, %v3992_v23, %v10731_v6  ;;  %6096 = vmatprep.subr.bf16.mxu1 %v6095_v37  ;;  %v4295_v37 = vrot.slane %v12607_v45, 4  ;;  %vm12609_vm11 = vmmov %vm12605_vm15 }
 0x576   :  { %v4016_v15 = vadd.f32 %v4002_v24, %v3971_v41  ;;  %v3346_v7 = vpop.permute.xlu0 %3345  ;;  %4891 = vrot.lane.b32.xlu1 %v12594_v19, %s12074_s9  ;;  %v12603_v41 = vld [vmem:[#allocation41_spill] sm:$0xff]  ;;  %v12617_v19 = vld [vmem:[#allocation64_spill] sm:$0xff] }
 0x577   :  { %v3354_v3 = vsel %vm12596_vm0, %v12595_v29, %v3346_v7  ;;  %vm12614_vm0 = vcmask 744448   ;;  %v4475_v29 = vrot.slane %v12617_v19, 4 }
 0x578   :  { %4893 = vrot.lane.b32.xlu0 %v12597_v26, %s12074_s9  ;;  %v3368_v32 = vadd.f32 %v3354_v3, %v3322_v57  ;;  %v4037_v25 = vpop.permute.xlu1 %4036  ;;  %6098 = vmatpush1.bf16.msra.mxu1 %v6097_v34 }
 0x579   :  { %v4046_v12 = vsel %vm12598_vm14, %v10028_v0, %v4037_v25  ;;  %6100 = vmatprep.subr.bf16.mxu1 %v6099_v48  ;;  %vm12616_vm14 = vmmov %vm12614_vm0 }
 0x57a   :  { %v4060_v11 = vadd.f32 %v4046_v12, %v4015_v22  ;;  %v10745_v59 = vpop.permute.xlu0 %4038  ;;  %4220 = vrot.lane.b32.xlu1 %v4205_v33, %s12600_s23  ;;  %v12618_v33 = vld [vmem:[#allocation265_spill] sm:$0xff] }
 0x57b   :  { %12599 = vst [vmem:[#allocation135_spill] sm:$0xff] %v10745_v59  ;;  %v4047_v51 = vsel %vm12601_vm2, %v4037_v25, %v10745_v59  ;;  %vm12619_vm2 = vcmask 211968   ;;  %v12621_v12 = vld [vmem:[#allocation233_spill] sm:$0xff] }
 0x57c   :  { %4936 = vrot.lane.b32.xlu0 %v4923_v52, %s12602_s18  ;;  %v4061_v28 = vadd.f32 %v4047_v51, %v4016_v15  ;;  %v3392_v56 = vpop.permute.xlu1 %3391 }
 0x57d   :  { %v3400_v4 = vsel %vm12604_vm1, %v12603_v41, %v3392_v56  ;;  %vm12620_vm1 = vcmask 736256  }
 0x57e   :  { %v3414_v43 = vadd.f32 %v3400_v4, %v3368_v32  ;;  %v4082_v0 = vpop.permute.xlu0 %4081  ;;  %4938 = vrot.lane.b32.xlu1 %v4924_v63, %s12602_s18  ;;  %v12624_v4 = vld [vmem:[#allocation257_spill] sm:$0xff] }
 0x57f   :  { %v4091_v42 = vsel %vm12605_vm15, %v10036_v36, %v4082_v0  ;;  %v12613_v36 = vld [vmem:[#allocation230_spill] sm:$0xff]  ;;  %vm12623_vm15 = vmmov %vm12620_vm1 }
 0x580   :  { %4265 = vrot.lane.b32.xlu0 %v12607_v45, %s12606_s25  ;;  %v4105_v9 = vadd.f32 %v4091_v42, %v4060_v11  ;;  %v10760_v38 = vpop.permute.xlu1 %4083  ;;  %v4385_v40 = vrot.slane %v12613_v36, 4  ;;  %v4565_v11 = vrot.slane %v12621_v12, 4 }
 0x581   :  { %12608 = vst [vmem:[#allocation16_spill] sm:$0xff] %v10760_v38  ;;  %v4092_v57 = vsel %vm12609_vm11, %v4082_v0, %v10760_v38  ;;  %vm12625_vm11 = vcmask 203776  }
 0x582   :  { %v4106_v23 = vadd.f32 %v4092_v57, %v4061_v28  ;;  %v3438_v1 = vpop.permute.xlu0 %3437  ;;  %4310 = vrot.lane.b32.xlu1 %v4295_v37, %s12610_s30 }
 0x583   :  { %v3446_v20 = vsel %vm3439_vm3, %v12611_v58, %v3438_v1 }
 0x584   :  { %4355 = vrot.lane.b32.xlu0 %v12613_v36, %s12612_s7  ;;  %v3460_v22 = vadd.f32 %v3446_v20, %v3414_v43  ;;  %v4127_v34 = vpop.permute.xlu1 %4126  ;;  %v12631_v20 = vld [vmem:[#allocation236_spill] sm:$0xff] }
 0x585   :  { %v4136_v24 = vsel %vm12614_vm0, %v10045_v27, %v4127_v34  ;;  %vm12627_vm0 = vcmask 728064   ;;  %v4745_v36 = vrot.slane %v12631_v20, 4 }
 0x586   :  { %v4150_v48 = vadd.f32 %v4136_v24, %v4105_v9  ;;  %v10772_v15 = vpop.permute.xlu0 %4128  ;;  %4400 = vrot.lane.b32.xlu1 %v4385_v40, %s12007_s16  ;;  %v12628_v9 = vld [vmem:[#allocation71_spill] sm:$0xff]  ;;  %s12698_s16 = sld [smem:[#allocation268_spill]] }
 0x587   :  { %12615 = vst [vmem:[#allocation206_spill] sm:$0xff] %v10772_v15  ;;  %v4137_v7 = vsel %vm12616_vm14, %v4127_v34, %v10772_v15  ;;  %vm12630_vm14 = vmmov %vm12627_vm0 }
 0x588   :  { %4445 = vrot.lane.b32.xlu0 %v12617_v19, %s12016_s17  ;;  %v4151_v3 = vadd.f32 %v4137_v7, %v4106_v23  ;;  %v3484_v26 = vpop.permute.xlu1 %3483  ;;  %v12634_v19 = vld [vmem:[#allocation70_spill] sm:$0xff] }
 0x589   :  { %v3492_v32 = vsel %vm12619_vm2, %v12618_v33, %v3484_v26  ;;  %vm12635_vm2 = vcmask 523264  }
 0x58a   :  { %v3506_v25 = vadd.f32 %v3492_v32, %v3460_v22  ;;  %v4172_v27 = vpop.permute.xlu0 %4171  ;;  %4490 = vrot.lane.b32.xlu1 %v4475_v29, %s12025_s14  ;;  %v4925_v29 = vrot.slane %v12634_v19, 4 }
 0x58b   :  { %v4181_v52 = vsel %vm12620_vm1, %v10055_v2, %v4172_v27  ;;  %v12626_v2 = vld [vmem:[#allocation237_spill] sm:$0xff]  ;;  %vm12637_vm1 = vmmov %vm12635_vm2 }
 0x58c   :  { %4535 = vrot.lane.b32.xlu0 %v12621_v12, %s12034_s15  ;;  %v4195_v51 = vadd.f32 %v4181_v52, %v4150_v48  ;;  %v10788_v63 = vpop.permute.xlu1 %4173  ;;  %v4655_v0 = vrot.slane %v12626_v2, 4 }
 0x58d   :  { %12622 = vst [vmem:[#allocation26_spill] sm:$0xff] %v10788_v63  ;;  %v4182_v28 = vsel %vm12623_vm15, %v4172_v27, %v10788_v63  ;;  %vm12638_vm15 = vcmask 515072  }
 0x58e   :  { %v4196_v56 = vadd.f32 %v4182_v28, %v4151_v3  ;;  %v3530_v41 = vpop.permute.xlu0 %3529  ;;  %4580 = vrot.lane.b32.xlu1 %v4565_v11, %s12044_s12 }
 0x58f   :  { %v3538_v43 = vsel %vm12625_vm11, %v12624_v4, %v3530_v41  ;;  %vm12640_vm11 = vmmov %vm12638_vm15 }
 0x590   :  { %4625 = vrot.lane.b32.xlu0 %v12626_v2, %s12047_s13  ;;  %v3552_v42 = vadd.f32 %v3538_v43, %v3506_v25  ;;  %v4217_v45 = vpop.permute.xlu1 %4216 }
 0x591   :  { %v4226_v37 = vsel %vm12627_vm0, %v10070_v21, %v4217_v45  ;;  %v12633_v21 = vld [vmem:[#allocation239_spill] sm:$0xff]  ;;  %vm12641_vm0 = vcmask 506880  }
 0x592   :  { %v3559_v57 = vadd.f32 %v3552_v42, %v12628_v9  ;;  %v4240_v23 = vadd.f32 %v4226_v37, %v4195_v51  ;;  %v10801_v1 = vpop.permute.xlu0 %4218  ;;  %4670 = vrot.lane.b32.xlu1 %v4655_v0, %s11956_s3  ;;  %v4835_v24 = vrot.slane %v12633_v21, 4 }
 0x593   :  { %12629 = vst [vmem:[#allocation20_spill] sm:$0xff] %v10801_v1  ;;  %v4227_v58 = vsel %vm12630_vm14, %v4217_v45, %v10801_v1  ;;  %vm12643_vm14 = vcmask 498688  }
 0x594   :  { %4715 = vrot.lane.b32.xlu0 %v12631_v20, %s12058_s19  ;;  %v4241_v40 = vadd.f32 %v4227_v58, %v4196_v56  ;;  %v4262_v22 = vpop.permute.xlu1 %4261 }
 0x595   :  { %v4271_v1 = vsel %vm12637_vm1, %v12636_v44, %v4262_v22  ;;  %vm12647_vm1 = vcmask 482304  }
 0x596   :  { %v10809_v34 = vpop.permute.xlu0 %4263  ;;  %4760 = vrot.lane.b32.xlu1 %v4745_v36, %s11961_s21  ;;  %v4285_v59 = vadd.f32 %v4271_v1, %v4240_v23 }
 0x597   :  { %12632 = vst [vmem:[#allocation142_spill] sm:$0xff] %v10809_v34 }
 0x598   :  { %4805 = vrot.lane.b32.xlu0 %v12633_v21, %s12065_s22  ;;  %v3591_v48 = vpop.permute.xlu1 %3590 }
 0x599   :  { %v3598_v63 = vsel %vm2151_vm5, %v10423_v14, %v3591_v48  ;;  %vm12642_vm5 = vmmov %vm12641_vm0 }
 0x59a   :  { %v4307_v7 = vpop.permute.xlu0 %4306  ;;  %4850 = vrot.lane.b32.xlu1 %v4835_v24, %s12070_s11 }
 0x59b   :  { %v4316_v38 = vsel %vm12640_vm11, %v12639_v60, %v4307_v7  ;;  %vm12651_vm11 = vcmask 990208  }
 0x59c   :  { %4895 = vrot.lane.b32.xlu0 %v12634_v19, %s12074_s9  ;;  %v10819_v3 = vpop.permute.xlu1 %4308 }
 0x59d   :  { %v4317_v49 = vsel %vm12638_vm15, %v4307_v7, %v10819_v3  ;;  %vm12649_vm15 = vcmask 474112  }
 0x59e   :  { %v3636_v26 = vpop.permute.xlu0 %3635  ;;  %4940 = vrot.lane.b32.xlu1 %v4925_v29, %s12602_s18  ;;  %v4272_v29 = vsel %vm12635_vm2, %v4262_v22, %v10809_v34  ;;  %v3612_v22 = vadd.f32 %v3598_v63, %v3559_v57  ;;  %vm12645_vm2 = vcmask 490496  }
 0x59f   :  { %v4286_v15 = vadd.f32 %v4272_v29, %v4241_v40  ;;  %v3643_v34 = vsel %vm2197_vm6, %v10458_v55, %v3636_v26  ;;  %v4330_v40 = vadd.f32 %v4316_v38, %v4285_v59  ;;  %vm12644_vm6 = vmmov %vm12643_vm14 }
 0x5a0   :  { %v4352_v33 = vpop.permute.xlu1 %4351  ;;  %v3657_v1 = vadd.f32 %v3643_v34, %v3612_v22 }
 0x5a1   :  { %v4331_v16 = vadd.f32 %v4317_v49, %v4286_v15  ;;  %v4361_v14 = vsel %vm12642_vm5, %v10125_v10, %v4352_v33  ;;  %vm12654_vm5 = vcmask 261120  }
 0x5a2   :  { %v10822_v32 = vpop.permute.xlu0 %4353  ;;  %v4375_v49 = vadd.f32 %v4361_v14, %v4330_v40 }
 0x5a3   :  { %v4362_v44 = vsel %vm12641_vm0, %v4352_v33, %v10822_v32  ;;  %vm12652_vm0 = vcmask 465920  }
 0x5a4   :  { %v3681_v25 = vpop.permute.xlu1 %3680  ;;  %v4376_v7 = vadd.f32 %v4362_v44, %v4331_v16 }
 0x5a5   :  { %v3688_v60 = vsel %vm2243_vm7, %v10489_v39, %v3681_v25  ;;  %vm12646_vm7 = vmmov %vm12645_vm2 }
 0x5a6   :  { %v4397_v27 = vpop.permute.xlu0 %4396  ;;  %v3702_v38 = vadd.f32 %v3688_v60, %v3657_v1 }
 0x5a7   :  { %v4406_v55 = vsel %vm12644_vm6, %v10146_v17, %v4397_v27  ;;  %vm12656_vm6 = vcmask 252928  }
 0x5a8   :  { %v10824_v52 = vpop.permute.xlu1 %4398  ;;  %v4420_v57 = vadd.f32 %v4406_v55, %v4375_v49 }
 0x5a9   :  { %v4407_v23 = vsel %vm12643_vm14, %v4397_v27, %v10824_v52  ;;  %vm12655_vm14 = vmmov %vm12654_vm5 }
 0x5aa   :  { %v3726_v12 = vpop.permute.xlu0 %3725  ;;  %v4421_v15 = vadd.f32 %v4407_v23, %v4376_v7 }
 0x5ab   :  { %v3733_v10 = vsel %vm2289_vm8, %v10535_v5, %v3726_v12  ;;  %vm12648_vm8 = vmmov %vm12647_vm1 }
 0x5ac   :  { %v4442_v11 = vpop.permute.xlu1 %4441  ;;  %v3747_v34 = vadd.f32 %v3733_v10, %v3702_v38  ;;  %v12659_v10 = vld [vmem:[#allocation197_spill] sm:$0xff] }
 0x5ad   :  { %v4451_v39 = vsel %vm12646_vm7, %v10165_v46, %v4442_v11  ;;  %vm12662_vm7 = vcmask 236544  }
 0x5ae   :  { %v10826_v51 = vpop.permute.xlu0 %4443  ;;  %v4465_v27 = vadd.f32 %v4451_v39, %v4420_v57  ;;  %v12663_v57 = vld [vmem:[#allocation33_spill] sm:$0xff] }
 0x5af   :  { %v4452_v59 = vsel %vm12645_vm2, %v4442_v11, %v10826_v51  ;;  %vm12658_vm2 = vcmask 769024  }
 0x5b0   :  { %v3771_v28 = vpop.permute.xlu1 %3770  ;;  %v4466_v33 = vadd.f32 %v4452_v59, %v4421_v15 }
 0x5b1   :  { %v3778_v16 = vsel %vm2335_vm9, %v10571_v62, %v3771_v28  ;;  %vm12650_vm9 = vmmov %vm12649_vm15 }
 0x5b2   :  { %v4487_v56 = vpop.permute.xlu0 %4486  ;;  %v3792_v11 = vadd.f32 %v3778_v16, %v3747_v34 }
 0x5b3   :  { %v4496_v5 = vsel %vm12648_vm8, %v10185_v61, %v4487_v56  ;;  %vm12666_vm8 = vcmask 752640  }
 0x5b4   :  { %v10828_v41 = vpop.permute.xlu1 %4488  ;;  %v4510_v44 = vadd.f32 %v4496_v5, %v4465_v27 }
 0x5b5   :  { %v4497_v17 = vsel %vm12647_vm1, %v4487_v56, %v10828_v41  ;;  %vm12664_vm1 = vmmov %vm12662_vm7 }
 0x5b6   :  { %v3816_v4 = vpop.permute.xlu0 %3815  ;;  %v4511_v29 = vadd.f32 %v4497_v17, %v4466_v33  ;;  %v12665_v33 = vld [vmem:[#allocation16_spill] sm:$0xff] }
 0x5b7   :  { %v3823_v12 = vsel %vm2381_vm10, %v10603_v31, %v3816_v4  ;;  %vm12653_vm10 = vmmov %vm12652_vm0 }
 0x5b8   :  { %v4532_v43 = vpop.permute.xlu1 %4531  ;;  %v3837_v56 = vadd.f32 %v3823_v12, %v3792_v11  ;;  %v12668_v12 = vld [vmem:[#allocation114_spill] sm:$0xff] }
 0x5b9   :  { %v4541_v62 = vsel %vm12650_vm9, %v10204_v47, %v4532_v43 }
 0x5ba   :  { %v10830_v2 = vpop.permute.xlu0 %4533  ;;  %v4555_v40 = vadd.f32 %v4541_v62, %v4510_v44  ;;  %v12670_v62 = vld [vmem:[#allocation206_spill] sm:$0xff] }
 0x5bb   :  { %v4542_v46 = vsel %vm12649_vm15, %v4532_v43, %v10830_v2  ;;  %vm12667_vm15 = vcmask 228352  }
 0x5bc   :  { %v3861_v0 = vpop.permute.xlu1 %3860  ;;  %v4556_v14 = vadd.f32 %v4542_v46, %v4511_v29  ;;  %vm12669_vm9 = vmmov %vm12667_vm15 }
 0x5bd   :  { %v3868_v22 = vsel %vm12651_vm11, %v10635_v18, %v3861_v0  ;;  %vm12671_vm11 = vcmask 744448  }
 0x5be   :  { %v4577_v42 = vpop.permute.xlu0 %4576  ;;  %v3882_v43 = vadd.f32 %v3868_v22, %v3837_v56 }
 0x5bf   :  { %v4586_v31 = vsel %vm12653_vm10, %v10227_v35, %v4577_v42  ;;  %vm12675_vm10 = vcmask 211968  }
 0x5c0   :  { %v10832_v45 = vpop.permute.xlu1 %4578  ;;  %v4600_v1 = vadd.f32 %v4586_v31, %v4555_v40  ;;  %v12673_v40 = vld [vmem:[#allocation26_spill] sm:$0xff] }
 0x5c1   :  { %v4587_v61 = vsel %vm12652_vm0, %v4577_v42, %v10832_v45  ;;  %vm12674_vm0 = vcmask 736256  }
 0x5c2   :  { %v3906_v37 = vpop.permute.xlu0 %3905  ;;  %v4601_v23 = vadd.f32 %v4587_v61, %v4556_v14 }
 0x5c3   :  { %v3913_v60 = vsel %vm2473_vm12, %v10667_v13, %v3906_v37  ;;  %vm12657_vm12 = vmmov %vm12656_vm6 }
 0x5c4   :  { %v10834_v9 = vpop.permute.xlu1 %4621  ;;  %v3927_v42 = vadd.f32 %v3913_v60, %v3882_v43 }
 0x5c5   :  { %v4631_v18 = vsel %vm12655_vm14, %v10238_v30, %v10834_v9  ;;  %vm12679_vm14 = vcmask 728064  }
 0x5c6   :  { %v10836_v58 = vpop.permute.xlu0 %4623  ;;  %v4645_v49 = vadd.f32 %v4631_v18, %v4600_v1 }
 0x5c7   :  { %v4632_v47 = vsel %vm12654_vm5, %v10834_v9, %v10836_v58  ;;  %vm12677_vm5 = vmmov %vm12675_vm10 }
 0x5c8   :  { %v10838_v20 = vpop.permute.xlu1 %3950  ;;  %v4646_v37 = vadd.f32 %v4632_v47, %v4601_v23  ;;  %v12676_v23 = vld [vmem:[#allocation28_spill] sm:$0xff] }
 0x5c9   :  { %v3958_v35 = vsel %vm2519_vm13, %v10699_v50, %v10838_v20  ;;  %vm12661_vm13 = vcmask 760832  }
 0x5ca   :  { %v10840_v36 = vpop.permute.xlu0 %4666  ;;  %v3972_v9 = vadd.f32 %v3958_v35, %v3927_v42  ;;  %v12678_v35 = vld [vmem:[#allocation20_spill] sm:$0xff] }
 0x5cb   :  { %v4676_v7 = vsel %vm12657_vm12, %v10259_v8, %v10840_v36  ;;  %v12660_v8 = vld [vmem:[#allocation135_spill] sm:$0xff]  ;;  %v5157_v42 = vld [vmem:[%s11103_s4 + $0x610] sm:$0xff] }
 0x5cc   :  { %v10842_v21 = vpop.permute.xlu1 %4668  ;;  %v4690_v15 = vadd.f32 %v4676_v7, %v4645_v49  ;;  %v12680_v49 = vld [vmem:[#allocation2_spill] sm:$0xff] }
 0x5cd   :  { %v4677_v13 = vsel %vm12656_vm6, %v10840_v36, %v10842_v21  ;;  %vm12681_vm6 = vcmask 203776  }
 0x5ce   :  { %v10844_v24 = vpop.permute.xlu0 %3995  ;;  %v4691_v20 = vadd.f32 %v4677_v13, %v4646_v37  ;;  %vm12682_vm12 = vmmov %vm12681_vm6 }
 0x5cf   :  { %v4003_v30 = vsel %vm12658_vm2, %v10731_v6, %v10844_v24  ;;  %vm12684_vm2 = vcmask 523264  }
 0x5d0   :  { %v10846_v19 = vpop.permute.xlu1 %4711  ;;  %v4017_v24 = vadd.f32 %v4003_v30, %v3972_v9  ;;  %v5160_v9 = vld [vmem:[%s11103_s4 + $0x628] sm:$0xff] }
 0x5d1   :  { %v4721_v59 = vsel %vm3301_vm4, %v12659_v10, %v10846_v19 }
 0x5d2   :  { %v10852_v53 = vpop.permute.xlu0 %4713  ;;  %v4735_v34 = vadd.f32 %v4721_v59, %v4690_v15 }
 0x5d3   :  { %v4722_v50 = vsel %vm3301_vm4, %v10846_v19, %v10852_v53 }
 0x5d4   :  { %v10860_v54 = vpop.permute.xlu1 %4040  ;;  %v4736_v39 = vadd.f32 %v4722_v50, %v4691_v20  ;;  %v5162_v20 = vld [vmem:[%s11103_s4 + $0x638] sm:$0xff] }
 0x5d5   :  { %v4048_v36 = vsel %vm12661_vm13, %v12660_v8, %v10860_v54  ;;  %vm12685_vm13 = vcmask 515072  }
 0x5d6   :  { %v10868_v48 = vpop.permute.xlu0 %4756  ;;  %v4062_v27 = vadd.f32 %v4048_v36, %v4017_v24  ;;  %v12683_v24 = vld [vmem:[#allocation142_spill] sm:$0xff] }
 0x5d7   :  { %v4766_v16 = vsel %vm12664_vm1, %v12663_v57, %v10868_v48  ;;  %v6103_v57 = vpack.c.bf16 %v5162_v20, %v5160_v9  ;;  %vm12688_vm1 = vcmask 498688  }
 0x5d8   :  { %v10876_v26 = vpop.permute.xlu1 %4758  ;;  %v4780_v29 = vadd.f32 %v4766_v16, %v4735_v34  ;;  %v5159_v16 = vld [vmem:[%s11103_s4 + $0x620] sm:$0xff] }
 0x5d9   :  { %v4767_v6 = vsel %vm12662_vm7, %v10868_v48, %v10876_v26  ;;  %vm12687_vm7 = vcmask 506880  }
 0x5da   :  { %v4086_v63 = vpop.permute.xlu0 %4085  ;;  %v4781_v54 = vadd.f32 %v4767_v6, %v4736_v39 }
 0x5db   :  { %v4093_v19 = vsel %vm12666_vm8, %v12665_v33, %v4086_v63  ;;  %v12672_v63 = vld [vmem:[#allocation120_spill] sm:$0xff]  ;;  %vm12689_vm8 = vcmask 490496  }
 0x5dc   :  { %v4802_v25 = vpop.permute.xlu1 %4801  ;;  %v4107_v22 = vadd.f32 %v4093_v19, %v4062_v27  ;;  %v5164_v19 = vld [vmem:[%s11103_s4 + $0x648] sm:$0xff] }
 0x5dd   :  { %v4811_v46 = vsel %vm12669_vm9, %v12668_v12, %v4802_v25  ;;  %vm12691_vm9 = vcmask 474112  }
 0x5de   :  { %v10896_v28 = vpop.permute.xlu0 %4803  ;;  %v4825_v31 = vadd.f32 %v4811_v46, %v4780_v29  ;;  %v12686_v29 = vmov 0.0  }
 0x5df   :  { %v4812_v5 = vsel %vm12667_vm15, %v4802_v25, %v10896_v28  ;;  %vm12690_vm15 = vcmask 482304  }
 0x5e0   :  { %v4131_v4 = vpop.permute.xlu1 %4130  ;;  %v4826_v61 = vadd.f32 %v4812_v5, %v4781_v54  ;;  %v5166_v5 = vld [vmem:[%s11103_s4 + $0x658] sm:$0xff] }
 0x5e1   :  { %v4138_v44 = vsel %vm12671_vm11, %v12670_v62, %v4131_v4  ;;  %vm12692_vm11 = vcmask 465920  }
 0x5e2   :  { %v4847_v0 = vpop.permute.xlu0 %4846  ;;  %v4152_v47 = vadd.f32 %v4138_v44, %v4107_v22  ;;  %v6107_v44 = vpack.c.bf16 %v5166_v5, %v5164_v19  ;;  %v5179_v19 = vld [vmem:[%s11103_s4 + $0x6c0] sm:$0xff]  ;;  %v5181_v5 = vld [vmem:[%s11103_s4 + $0x6d0] sm:$0xff] }
 0x5e3   :  { %v4856_v56 = vsel %vm3439_vm3, %v12672_v63, %v4847_v0  ;;  %v5168_v63 = vld [vmem:[%s11103_s4 + $0x668] sm:$0xff] }
 0x5e4   :  { %v10921_v55 = vpop.permute.xlu1 %4848  ;;  %v4870_v1 = vadd.f32 %v4856_v56, %v4825_v31 }
 0x5e5   :  { %v4857_v48 = vsel %vm3439_vm3, %v4847_v0, %v10921_v55  ;;  %v5155_v0 = vld [vmem:[%s11103_s4 + $0x600] sm:$0xff] }
 0x5e6   :  { %v4176_v38 = vpop.permute.xlu0 %4175  ;;  %v4871_v43 = vadd.f32 %v4857_v48, %v4826_v61  ;;  %v6101_v36 = vpack.c.bf16 %v5157_v42, %v5155_v0  ;;  %v5163_v48 = vld [vmem:[%s11103_s4 + $0x640] sm:$0xff] }
 0x5e7   :  { %v4183_v60 = vsel %vm12674_vm0, %v12673_v40, %v4176_v38  ;;  %vm12693_vm0 = vcmask 261120  }
 0x5e8   :  { %v4892_v17 = vpop.permute.xlu1 %4891  ;;  %v4197_v37 = vadd.f32 %v4183_v60, %v4152_v47  ;;  %v5167_v47 = vld [vmem:[%s11103_s4 + $0x660] sm:$0xff] }
 0x5e9   :  { %v4901_v4 = vsel %vm12677_vm5, %v12676_v23, %v4892_v17  ;;  %vm12696_vm5 = vcmask 228352  }
 0x5ea   :  { %v10947_v11 = vpop.permute.xlu0 %4893  ;;  %v4915_v10 = vadd.f32 %v4901_v4, %v4870_v1 }
 0x5eb   :  { %v4902_v25 = vsel %vm12675_vm10, %v4892_v17, %v10947_v11  ;;  %v5161_v17 = vld [vmem:[%s11103_s4 + $0x630] sm:$0xff]  ;;  %vm12694_vm10 = vcmask 252928  }
 0x5ec   :  { %v4221_v14 = vpop.permute.xlu1 %4220  ;;  %v4916_v7 = vadd.f32 %v4902_v25, %v4871_v43  ;;  %v6105_v46 = vpack.c.bf16 %v5161_v17, %v5159_v16  ;;  %v5169_v43 = vld [vmem:[%s11103_s4 + $0x670] sm:$0xff] }
 0x5ed   :  { %v4228_v13 = vsel %vm12679_vm14, %v12678_v35, %v4221_v14  ;;  %vm12697_vm14 = vcmask 211968  }
 0x5ee   :  { %v4937_v18 = vpop.permute.xlu0 %4936  ;;  %v4242_v38 = vadd.f32 %v4228_v13, %v4197_v37  ;;  %v6113_v13 = vpack.c.bf16 %v5169_v43, %v5167_v47  ;;  %v5171_v37 = vld [vmem:[%s11103_s4 + $0x680] sm:$0xff] }
 0x5ef   :  { %v4946_v30 = vsel %vm12681_vm6, %v12680_v49, %v4937_v18 }
 0x5f0   :  { %v10971_v50 = vpop.permute.xlu1 %4938  ;;  %v4960_v6 = vadd.f32 %v4946_v30, %v4915_v10 }
 0x5f1   :  { %v4947_v59 = vsel %vm12682_vm12, %v4937_v18, %v10971_v50  ;;  %vm5471_vm12 = vcmask 1043456  }
 0x5f2   :  { %v4961_v15 = vadd.f32 %v4947_v59, %v4916_v7  ;;  %v4266_v8 = vpop.permute.xlu0 %4265  ;;  %v5173_v7 = vld [vmem:[%s11103_s4 + $0x690] sm:$0xff] }
 0x5f3   :  { %v4273_v39 = vsel %vm12684_vm2, %v12683_v24, %v4266_v8  ;;  %v6117_v59 = vpack.c.bf16 %v5173_v7, %v5171_v37  ;;  %v5175_v8 = vld [vmem:[%s11103_s4 + $0x6a0] sm:$0xff] }
 0x5f4   :  { %v4287_v34 = vadd.f32 %v4273_v39, %v4242_v38  ;;  %5393 = vmatprep.mubr.f32.mxu1 %v4961_v15  ;;  %v4311_v33 = vpop.permute.xlu1 %4310 }
 0x5f5   :  { %v4318_v27 = vsel %vm12685_vm13, %v10819_v3, %v4311_v33  ;;  %5394 = vmatmul.mubr.f32.vlgmr.msra.gmra.mrb[124].mxu1 %v4960_v6  ;;  %v5165_v3 = vld [vmem:[%s11103_s4 + $0x650] sm:$0xff] }
 0x5f6   :  { %v4332_v54 = vadd.f32 %v4318_v27, %v4287_v34  ;;  %6102 = vmatpush1.bf16.msra.mxu1 %v6101_v36  ;;  %v4356_v12 = vpop.permute.xlu0 %4355  ;;  %5464 = vmatprep.mubr.f32.mxu1 %v12686_v29  ;;  %v6109_v40 = vpack.c.bf16 %v5165_v3, %v5163_v48  ;;  %v5177_v36 = vld [vmem:[%s11103_s4 + $0x6b0] sm:$0xff]  ;;  %v5183_v3 = vld [vmem:[%s11103_s4 + $0x6e0] sm:$0xff] }
 0x5f7   :  { %v4363_v62 = vsel %vm12687_vm7, %v10822_v32, %v4356_v12  ;;  %6104 = vmatprep.subr.bf16.mxu1 %v6103_v57  ;;  %v5170_v32 = vld [vmem:[%s11103_s4 + $0x678] sm:$0xff]  ;;  %v6121_v17 = vpack.c.bf16 %v5177_v36, %v5175_v8 }
 0x5f8   :  { %v4377_v22 = vadd.f32 %v4363_v62, %v4332_v54  ;;  %v4401_v61 = vpop.permute.xlu1 %4400  ;;  %v6111_v25 = vpack.c.bf16 %v5170_v32, %v5168_v63  ;;  %v6125_v62 = vpack.c.bf16 %v5181_v5, %v5179_v19 }
 0x5f9   :  { %v4408_v56 = vsel %vm12688_vm1, %v10824_v52, %v4401_v61  ;;  %v5172_v52 = vld [vmem:[%s11103_s4 + $0x688] sm:$0xff] }
 0x5fa   :  { %v4422_v14 = vadd.f32 %v4408_v56, %v4377_v22  ;;  %6106 = vmatpush1.bf16.msra.mxu1 %v6105_v46  ;;  %v4446_v31 = vpop.permute.xlu0 %4445  ;;  %v5185_v22 = vld [vmem:[%s11103_s4 + $0x6f0] sm:$0xff] }
 0x5fb   :  { %v4453_v60 = vsel %vm12689_vm8, %v10826_v51, %v4446_v31  ;;  %6108 = vmatprep.subr.bf16.mxu1 %v6107_v44  ;;  %v5174_v51 = vld [vmem:[%s11103_s4 + $0x698] sm:$0xff] }
 0x5fc   :  { %v4467_v23 = vadd.f32 %v4453_v60, %v4422_v14  ;;  %v4491_v4 = vpop.permute.xlu1 %4490  ;;  %v6115_v42 = vpack.c.bf16 %v5174_v51, %v5172_v52  ;;  %v6129_v14 = vpack.c.bf16 %v5185_v22, %v5183_v3 }
 0x5fd   :  { %v4498_v18 = vsel %vm12690_vm15, %v10828_v41, %v4491_v4  ;;  %v5176_v41 = vld [vmem:[%s11103_s4 + $0x6a8] sm:$0xff] }
 0x5fe   :  { %v4512_v1 = vadd.f32 %v4498_v18, %v4467_v23  ;;  %6110 = vmatpush1.bf16.msra.mxu1 %v6109_v40  ;;  %v4536_v35 = vpop.permute.xlu0 %4535 }
 0x5ff   :  { %v4543_v0 = vsel %vm12691_vm9, %v10830_v2, %v4536_v35  ;;  %6112 = vmatprep.subr.bf16.mxu1 %v6111_v25  ;;  %v5178_v2 = vld [vmem:[%s11103_s4 + $0x6b8] sm:$0xff] }
 0x600   :  { %v4557_v49 = vadd.f32 %v4543_v0, %v4512_v1  ;;  %v4581_v30 = vpop.permute.xlu1 %4580  ;;  %v6119_v15 = vpack.c.bf16 %v5178_v2, %v5176_v41 }
 0x601   :  { %v4588_v9 = vsel %vm12692_vm11, %v10832_v45, %v4581_v30  ;;  %v5180_v45 = vld [vmem:[%s11103_s4 + $0x6c8] sm:$0xff] }
 0x602   :  { %v4602_v20 = vadd.f32 %v4588_v9, %v4557_v49  ;;  %6114 = vmatpush1.bf16.msra.mxu1 %v6113_v13  ;;  %v4626_v10 = vpop.permute.xlu0 %4625 }
 0x603   :  { %v4633_v38 = vsel %vm12693_vm0, %v10836_v58, %v4626_v10  ;;  %6116 = vmatprep.subr.bf16.mxu1 %v6115_v42  ;;  %v5182_v58 = vld [vmem:[%s11103_s4 + $0x6d8] sm:$0xff] }
 0x604   :  { %v4647_v6 = vadd.f32 %v4633_v38, %v4602_v20  ;;  %v4671_v24 = vpop.permute.xlu1 %4670  ;;  %v6123_v33 = vpack.c.bf16 %v5182_v58, %v5180_v45 }
 0x605   :  { %v4678_v39 = vsel %vm12694_vm10, %v10842_v21, %v4671_v24  ;;  %v5184_v21 = vld [vmem:[%s11103_s4 + $0x6e8] sm:$0xff] }
 0x606   :  { %v4692_v57 = vadd.f32 %v4678_v39, %v4647_v6  ;;  %6118 = vmatpush1.bf16.msra.mxu1 %v6117_v59  ;;  %v4716_v16 = vpop.permute.xlu0 %4715 }
 0x607   :  { %v4723_v34 = vsel %vm3301_vm4, %v10852_v53, %v4716_v16  ;;  %6120 = vmatprep.subr.bf16.mxu1 %v6119_v15  ;;  %v5186_v53 = vld [vmem:[%s11103_s4 + $0x6f8] sm:$0xff]  ;;  %vm12695_vm4 = vcmask 236544  }
 0x608   :  { %v4737_v27 = vadd.f32 %v4723_v34, %v4692_v57  ;;  %v4761_v54 = vpop.permute.xlu1 %4760  ;;  %v6127_v48 = vpack.c.bf16 %v5186_v53, %v5184_v21 }
 0x609   :  { %v4768_v12 = vsel %vm12695_vm4, %v10876_v26, %v4761_v54 }
 0x60a   :  { %v4782_v46 = vadd.f32 %v4768_v12, %v4737_v27  ;;  %6122 = vmatpush1.bf16.msra.mxu1 %v6121_v17  ;;  %v4806_v29 = vpop.permute.xlu0 %4805 }
 0x60b   :  { %v4813_v44 = vsel %vm12696_vm5, %v10896_v28, %v4806_v29  ;;  %6124 = vmatprep.subr.bf16.mxu1 %v6123_v33 }
 0x60c   :  { %v4827_v61 = vadd.f32 %v4813_v44, %v4782_v46  ;;  %v4851_v63 = vpop.permute.xlu1 %4850 }
 0x60d   :  { %v4858_v26 = vsel %vm3439_vm3, %v10921_v55, %v4851_v63 }
 0x60e   :  { %v4872_v32 = vadd.f32 %v4858_v26, %v4827_v61  ;;  %6126 = vmatpush1.bf16.msra.mxu1 %v6125_v62  ;;  %v4896_v56 = vpop.permute.xlu0 %4895 }
 0x60f   :  { %v4903_v28 = vsel %vm12697_vm14, %v10947_v11, %v4896_v56  ;;  %6128 = vmatprep.subr.bf16.mxu1 %v6127_v48 }
 0x610   :  { %v4917_v31 = vadd.f32 %v4903_v28, %v4872_v32  ;;  %v4941_v40 = vpop.permute.xlu1 %4940 }
 0x611   :  { %v4948_v60 = vsel %vm12681_vm6, %v10971_v50, %v4941_v40 }
 0x612   :  { %v4962_v25 = vadd.f32 %v4948_v60, %v4917_v31  ;;  %6130 = vmatpush1.bf16.msra.mxu1 %v6129_v14 }
 0x615   :  { %5465 = vmatmul.mubr.f32.vlgmr.msra.gmra.mrb[124].mxu1 %v4962_v25 }
 0x6e8   :  { %v5466_v47 = vpop.f32.mrb[124].mxu1 }
 0x6e9   :  { %v5472_v55 = vsel %vm5471_vm12, %v5466_v47, -inf  ;;  %v5468_v43 = vpop.f32.mrb[125].mxu1 }
 0x6ea   :  { %v5473_v23 = vsel %vm5471_vm12, %v5468_v43, -inf }
 0x6eb   :  { %v5474_v4 = vmax.f32 %v5472_v55, %v5473_v23 }
 0x6ed   :  { %5475 = vmax.xlane.f32.xlu0 %v5474_v4 }
 0x77a   :  { %v5476_v52 = vpop.xlane.xlu0 %5475 }
 0x77b   :  { %v5477_v11 = vrot.slane %v5476_v52, 4 }
 0x77d   :  { %v5478_v51 = vmax.f32 %v5476_v52, %v5477_v11 }
 0x77f   :  { %v5479_v18 = vrot.slane %v5478_v51, 2 }
 0x781   :  { %v5480_v1 = vmax.f32 %v5478_v51, %v5479_v18 }
 0x783   :  { %v5481_v35 = vrot.slane %v5480_v1, 1 }
 0x785   :  { %v5482_v13 = vmax.f32 %v5480_v1, %v5481_v35 }
 0x787   :  { %6139 = vpush %v5482_v13 }
 0x7b8   :  { %s6140_s4 = spop %6139 }
 0x7b9   :  { %v5484_v50 = vstv %s6140_s4 }
 0x7ba   :  { %v5485_v0 = vsub.f32 %v5466_v47, %v5484_v50  ;;  %v5486_v42 = vsub.f32 %v5468_v43, %v5484_v50 }
 0x7bc   :  { %v5487_v37 = vmul.f32 1.442695, %v5485_v0  ;;  %v5489_v7 = vmul.f32 1.442695, %v5486_v42 }
 0x7be   :  { %6178 = vpow2.f32 %v5487_v37 }
 0x7bf   :  { %6180 = vpow2.f32 %v5489_v7 }
 0x7c8   :  { %v6179_v49 = vpop.eup %6178 }
 0x7c9   :  { %v6181_v30 = vpop.eup %6180  ;;  %v5491_v41 = vsel %vm5471_vm12, %v6179_v49, 0.0 }
 0x7ca   :  { %v5492_v2 = vsel %vm5471_vm12, %v6181_v30, 0.0 }
 0x7cb   :  { %v5493_v9 = vadd.f32 %v5492_v2, %v5491_v41 }
 0x7cd   :  { %5494 = vadd.xlane.f32.xlu1 %v5493_v9 }
 0x85a   :  { %v5495_v20 = vpop.xlane.xlu1 %5494 }
 0x85b   :  { %v5496_v10 = vrot.slane %v5495_v20, 4 }
 0x85d   :  { %v5497_v59 = vadd.f32 %v5496_v10, %v5495_v20 }
 0x85f   :  { %v5498_v38 = vrot.slane %v5497_v59, 2 }
 0x861   :  { %v5499_v15 = vadd.f32 %v5498_v38, %v5497_v59 }
 0x863   :  { %v5500_v8 = vrot.slane %v5499_v15, 1 }
 0x865   :  { %v5501_v36 = vadd.f32 %v5500_v8, %v5499_v15 }
 0x867   :  { %6141 = vpush %v5501_v36 }
 0x898   :  { %s6142_s9 = spop %6141 }
 0x899   :  { %v5503_v6 = vstv %s6142_s9 }
 0x89a   :  { %6182 = vrcp.f32 %v5503_v6 }
 0x8a4   :  { %v6183_v24 = vpop.eup %6182 }
 0x8a5   :  { %6143 = vpush %v6183_v24 }
 0x8d6   :  { %s6144_s3 = spop %6143 }
 0x8d7   :  { %v5506_v45 = vstv %s6144_s3 }
 0x8d8   :  { %v5507_v58 = vmul.f32 %v6179_v49, %v5506_v45  ;;  %v5508_v39 = vmul.f32 %v6181_v30, %v5506_v45 }
 0x8da   :  { %v5511_v57 = vcombine.low %v5507_v58, %v5508_v39 }
 0x8dc   :  { %5513 = vst [vmem:[%s12698_s16] sm:$0xff] %v5511_v57 }

</bundles_post_ra>
